<compile_context>
chip_gen: v6e
topology: v6e:2x2x1
jax: 0.10.0
libtpu: 0.0.40
codegen_flags: <defaults>
</compile_context>

<pallas_src>
import math

import jax
import jax.numpy as jnp
import numpy as np
from jax.experimental import pallas as pl
from jax.experimental.pallas import tpu as pltpu


def _round_up(x, m):
    return ((x + m - 1) // m) * m


def _trnet_kernel(x_ref, wa_ref, v_ref, out_ref, s_ref, xs_ref, ms_ref):
    # x_ref  : (block_b, t_chunk, n)   raw input block (batch-major HBM layout)
    # wa_ref : (rank*rank, n)          wa[(i,k), j] = W[i, j, k]      (resident)
    # v_ref  : (categories, rank)      v[c,i] = sum_{j,r} LW[c,i,j,r] (resident)
    # out_ref: (categories, block_b)   lane-dense logits block (batch on lanes)
    # s_ref  : VMEM (rank, block_b) f32          ring state, carried over t chunks
    # xs_ref : VMEM (n, t_chunk*block_b)         staged x chunk, time-major lanes
    # ms_ref : VMEM (rank*rank, t_chunk*block_b) chunk matmul result
    t_idx = pl.program_id(1)
    bb, tc, n = x_ref.shape
    rank = v_ref.shape[1]

    # Stage: small per-t XLU transposes put batch on lanes, time-major, so every
    # later slice is a lane-aligned (multiple-of-128) window.
    for t in range(tc):
        xs_ref[:, t * bb:(t + 1) * bb] = x_ref[:, t, :].T.astype(xs_ref.dtype)

    # One MXU matmul for the whole time chunk:
    #   M[(i,k), (t,b)] = sum_j W[i,j,k] * x[b, t, j]
    ms_ref[...] = jnp.dot(wa_ref[...].astype(xs_ref.dtype), xs_ref[...],
                          preferred_element_type=jnp.float32)

    def m_at(t):
        # (rank, rank, bb) with batch on lanes; lane-aligned read from scratch.
        return ms_ref[:, t * bb:(t + 1) * bb].reshape(rank, rank, bb)

    def step(s, m3):
        # s_new[k, b] = sum_i s[i, b] * m3[i, k, b]
        # Explicit products + pairwise tree: no (rank, rank, bb) broadcast temp
        # and a short dependency chain inside each serial step.
        terms = [s[i:i + 1, :] * m3[i] for i in range(rank)]
        while len(terms) > 1:
            nxt = [terms[j] + terms[j + 1] for j in range(0, len(terms) - 1, 2)]
            if len(terms) % 2:
                nxt.append(terms[-1])
            terms = nxt
        return terms[0]

    m0 = m_at(0)

    @pl.when(t_idx == 0)
    def _():
        # state0 is all-ones (and r-constant), so the first update folds to a
        # plain sum over i of M_0.
        s_ref[...] = jnp.sum(m0, axis=0)

    @pl.when(t_idx != 0)
    def _():
        s_ref[...] = step(s_ref[...], m0)

    s = s_ref[...]
    for t in range(1, tc):                      # static unroll over the chunk
        s = step(s, m_at(t))
    s_ref[...] = s

    @pl.when(t_idx == pl.num_programs(1) - 1)
    def _():
        # logits[c, b] = sum_i v[c, i] * s[i, b]   (pad-ones sum + ring trace
        # pre-folded into v on the host); lane-dense (categories, block_b) store.
        out_ref[...] = jnp.dot(v_ref[...], s,
                               preferred_element_type=jnp.float32
                               ).astype(out_ref.dtype)


def trnet_shared_forward(tensor, shared_w, last_w, rank, *,
                         block_b=None, t_chunk=None, mxu_dtype=jnp.float32):
    """tensor: (batch, divisions, n) float; returns logits (batch, categories).

    mxu_dtype=jnp.bfloat16 switches the chunk matmul inputs to bf16 (native
    MXU rate on v6e/v7x) while keeping f32 accumulation and an f32 state chain.
    """
    b, times, n = tensor.shape
    categories = last_w.shape[0]
    assert shared_w.shape == (rank, n, rank)
    assert last_w.shape[1] == rank and last_w.shape[3] == rank

    # ---- block sizing (lane-dense batch, >=2 parallel blocks when b > 128) ----
    if block_b is None:
        if b >= 1024:
            block_b = 512
        elif b >= 512:
            block_b = 256
        else:
            block_b = 128
    b_pad = _round_up(b, block_b)
    nb = b_pad // block_b

    if t_chunk is None:
        if times % 16 == 0 and times > 16:
            t_chunk = 16
        elif times % 8 == 0:
            t_chunk = 8
        else:
            t_chunk = times        # fallback: whole time axis in one chunk
    assert times % t_chunk == 0
    nt = times // t_chunk

    x = tensor.astype(jnp.float32)
    if b_pad != b:
        # Zero rows produce a zero state and zero logits; sliced off below.
        x = jnp.pad(x, ((0, b_pad - b), (0, 0), (0, 0)))

    # ---- host-side constant folds of the (tiny) weights ----
    #   wa[(i,k), j] = W[i, j, k]
    wa = jnp.transpose(shared_w, (0, 2, 1)).reshape(rank * rank, n)
    wa = wa.astype(jnp.float32)
    #   v[c, i] = sum_{j, r} LW[c, i, j, r]   (pad-ones sum + r==k ring trace)
    v = jnp.sum(last_w, axis=(2, 3)).astype(jnp.float32)

    # ---- explicit VMEM budget (generation-safe: v5e 16 MiB .. v7x 64 MiB) ----
    itemsize = jnp.dtype(mxu_dtype).itemsize
    est = (2 * block_b * t_chunk * n * 4                       # x double buffer
           + (n * itemsize + rank * rank * 4) * t_chunk * block_b  # xs + ms
           + (rank + 2 * categories) * block_b * 4             # s + out buffers
           + 2 * (rank * rank * n + categories * rank) * 4)    # weights
    vmem_limit = int(min(64 * 2**20, max(8 * 2**20, 3 * est)))

    out_cb = pl.pallas_call(
        _trnet_kernel,
        out_shape=jax.ShapeDtypeStruct((categories, b_pad), jnp.float32),
        grid_spec=pltpu.PrefetchScalarGridSpec(
            num_scalar_prefetch=0,
            grid=(nb, nt),
            in_specs=[
                pl.BlockSpec((block_b, t_chunk, n), lambda i, t: (i, t, 0)),
                pl.BlockSpec((rank * rank, n), lambda i, t: (0, 0)),
                pl.BlockSpec((categories, rank), lambda i, t: (0, 0)),
            ],
            out_specs=pl.BlockSpec((categories, block_b), lambda i, t: (0, i)),
            scratch_shapes=[
                pltpu.VMEM((rank, block_b), jnp.float32),
                pltpu.VMEM((n, t_chunk * block_b), mxu_dtype),
                pltpu.VMEM((rank * rank, t_chunk * block_b), jnp.float32),
            ],
        ),
        compiler_params=pltpu.CompilerParams(
            dimension_semantics=("parallel", "arbitrary"),
            vmem_limit_bytes=vmem_limit,
        ),
    )(x, wa, v)

    # Tiny (categories, b) slab; match the PyTorch (batch, categories) layout.
    return out_cb[:, :b].T


def _xavier_uniform(key, shape, gain):
    # Matches torch.nn.init.xavier_uniform_ fan computation.
    receptive = 1
    for s in shape[2:]:
        receptive *= s
    fan_in = shape[1] * receptive
    fan_out = shape[0] * receptive
    bound = gain * math.sqrt(6.0 / (fan_in + fan_out))
    return jax.random.uniform(key, shape, jnp.float32, -bound, bound)


def _reference(tensor, shared_w, last_w, rank):
    """Pure-JAX transcription of the PyTorch forward (for verification)."""
    b, times, _ = tensor.shape
    m = last_w.shape[2]
    state = jnp.ones((rank, b, rank), jnp.float32)
    for t in range(times):
        xt = tensor[:, t, :]
        tmp = jnp.einsum('bj,rbi->rbji', xt, state)
        state = jnp.einsum('ijk,rbji->rbk', shared_w, tmp)
    pad = jnp.ones((b, m), jnp.float32)
    tmp = jnp.einsum('bj,rbi->rbji', pad, state)
    last = jnp.einsum('cijk,rbji->cbrk', last_w, tmp)
    # TODO(synk): TRNetSerialized.calculate_traces_serialized source unavailable;
    # implemented as the standard tensor-ring trace over the (r, k) ring axes.
    return jnp.einsum('cbrr->bc', last)


if __name__ == "__main__":
    # Small deterministic config; divisions=16 exercises the multi-chunk
    # (carried-state) time pipeline with t_chunk=8.
    batch = 8
    divisions = 16     # number of time steps ("amount_of_divisions")
    n = 32             # per-division feature size
    m = 16             # pad-input size of the last kernel
    rank = 8           # all tensor-ring ranks equal
    categories = 4
    init_value = 1.0

    key = jax.random.PRNGKey(0)
    k_x, k_w, k_lw = jax.random.split(key, 3)

    tensor = jax.random.normal(k_x, (batch, divisions, n), jnp.float32)
    shared_w = _xavier_uniform(k_w, (rank, n, rank), init_value)
    last_w = _xavier_uniform(k_lw, (categories, rank, m, rank), init_value)

    out = trnet_shared_forward(tensor, shared_w, last_w, rank)
    out = jax.block_until_ready(out)

    ref = jax.block_until_ready(_reference(tensor, shared_w, last_w, rank))
    np.testing.assert_allclose(np.asarray(out), np.asarray(ref),
                               rtol=1e-3, atol=1e-3)

    print("KERNEL_OK")
</pallas_src>

<mosaic_0001>
module attributes {stable_mosaic.version = 11 : i64} {
  func.func @_trnet_kernel(%arg0: i32, %arg1: i32, %arg2: memref<128x8x32xf32, #tpu.memory_space<vmem>>, %arg3: memref<64x32xf32, #tpu.memory_space<vmem>>, %arg4: memref<4x8xf32, #tpu.memory_space<vmem>>, %arg5: memref<4x128xf32, #tpu.memory_space<vmem>>, %arg6: memref<8x128xf32, #tpu.memory_space<vmem>>, %arg7: memref<32x1024xf32, #tpu.memory_space<vmem>>, %arg8: memref<64x1024xf32, #tpu.memory_space<vmem>>) attributes {dimension_semantics = [#tpu.dimension_semantics<parallel>, #tpu.dimension_semantics<arbitrary>], iteration_bounds = array<i64: 1, 2>, scalar_prefetch = 0 : i64, scratch_operands = 3 : i64, tpu.core_type = #tpu.core_type<tc>, window_params = [{transform_indices = @transform_0, window_bounds = array<i64: 128, 8, 32>}, {pipeline_mode = #tpu.pipeline_mode<synchronous>, transform_indices = @transform_1, window_bounds = array<i64: 64, 32>}, {pipeline_mode = #tpu.pipeline_mode<synchronous>, transform_indices = @transform_2, window_bounds = array<i64: 4, 8>}, {transform_indices = @transform_3, window_bounds = array<i64: 4, 128>}]} {
    %c0 = arith.constant 0 : index
    %c0_0 = arith.constant 0 : index
    %c0_1 = arith.constant 0 : index
    %0 = vector.load %arg2[%c0, %c0_0, %c0_1] : memref<128x8x32xf32, #tpu.memory_space<vmem>>, vector<128x1x32xf32>
    %1 = vector.shape_cast %0 : vector<128x1x32xf32> to vector<128x32xf32>
    %2 = tpu.transpose %1, [1, 0] : vector<128x32xf32> -> vector<32x128xf32>
    %c0_2 = arith.constant 0 : index
    %c0_3 = arith.constant 0 : index
    %3 = vector.load %arg7[%c0_2, %c0_3] : memref<32x1024xf32, #tpu.memory_space<vmem>>, vector<32x128xf32>
    tpu.vector_store %arg7[%c0_2, %c0_3], %2 {strides = array<i32>} : memref<32x1024xf32, #tpu.memory_space<vmem>>, vector<32x128xf32>,
    %c0_4 = arith.constant 0 : index
    %c1 = arith.constant 1 : index
    %c0_5 = arith.constant 0 : index
    %4 = vector.load %arg2[%c0_4, %c1, %c0_5] : memref<128x8x32xf32, #tpu.memory_space<vmem>>, vector<128x1x32xf32>
    %5 = vector.shape_cast %4 : vector<128x1x32xf32> to vector<128x32xf32>
    %6 = tpu.transpose %5, [1, 0] : vector<128x32xf32> -> vector<32x128xf32>
    %c0_6 = arith.constant 0 : index
    %c128 = arith.constant 128 : index
    %7 = vector.load %arg7[%c0_6, %c128] : memref<32x1024xf32, #tpu.memory_space<vmem>>, vector<32x128xf32>
    tpu.vector_store %arg7[%c0_6, %c128], %6 {strides = array<i32>} : memref<32x1024xf32, #tpu.memory_space<vmem>>, vector<32x128xf32>,
    %c0_7 = arith.constant 0 : index
    %c2 = arith.constant 2 : index
    %c0_8 = arith.constant 0 : index
    %8 = vector.load %arg2[%c0_7, %c2, %c0_8] : memref<128x8x32xf32, #tpu.memory_space<vmem>>, vector<128x1x32xf32>
    %9 = vector.shape_cast %8 : vector<128x1x32xf32> to vector<128x32xf32>
    %10 = tpu.transpose %9, [1, 0] : vector<128x32xf32> -> vector<32x128xf32>
    %c0_9 = arith.constant 0 : index
    %c256 = arith.constant 256 : index
    %11 = vector.load %arg7[%c0_9, %c256] : memref<32x1024xf32, #tpu.memory_space<vmem>>, vector<32x128xf32>
    tpu.vector_store %arg7[%c0_9, %c256], %10 {strides = array<i32>} : memref<32x1024xf32, #tpu.memory_space<vmem>>, vector<32x128xf32>,
    %c0_10 = arith.constant 0 : index
    %c3 = arith.constant 3 : index
    %c0_11 = arith.constant 0 : index
    %12 = vector.load %arg2[%c0_10, %c3, %c0_11] : memref<128x8x32xf32, #tpu.memory_space<vmem>>, vector<128x1x32xf32>
    %13 = vector.shape_cast %12 : vector<128x1x32xf32> to vector<128x32xf32>
    %14 = tpu.transpose %13, [1, 0] : vector<128x32xf32> -> vector<32x128xf32>
    %c0_12 = arith.constant 0 : index
    %c384 = arith.constant 384 : index
    %15 = vector.load %arg7[%c0_12, %c384] : memref<32x1024xf32, #tpu.memory_space<vmem>>, vector<32x128xf32>
    tpu.vector_store %arg7[%c0_12, %c384], %14 {strides = array<i32>} : memref<32x1024xf32, #tpu.memory_space<vmem>>, vector<32x128xf32>,
    %c0_13 = arith.constant 0 : index
    %c4 = arith.constant 4 : index
    %c0_14 = arith.constant 0 : index
    %16 = vector.load %arg2[%c0_13, %c4, %c0_14] : memref<128x8x32xf32, #tpu.memory_space<vmem>>, vector<128x1x32xf32>
    %17 = vector.shape_cast %16 : vector<128x1x32xf32> to vector<128x32xf32>
    %18 = tpu.transpose %17, [1, 0] : vector<128x32xf32> -> vector<32x128xf32>
    %c0_15 = arith.constant 0 : index
    %c512 = arith.constant 512 : index
    %19 = vector.load %arg7[%c0_15, %c512] : memref<32x1024xf32, #tpu.memory_space<vmem>>, vector<32x128xf32>
    tpu.vector_store %arg7[%c0_15, %c512], %18 {strides = array<i32>} : memref<32x1024xf32, #tpu.memory_space<vmem>>, vector<32x128xf32>,
    %c0_16 = arith.constant 0 : index
    %c5 = arith.constant 5 : index
    %c0_17 = arith.constant 0 : index
    %20 = vector.load %arg2[%c0_16, %c5, %c0_17] : memref<128x8x32xf32, #tpu.memory_space<vmem>>, vector<128x1x32xf32>
    %21 = vector.shape_cast %20 : vector<128x1x32xf32> to vector<128x32xf32>
    %22 = tpu.transpose %21, [1, 0] : vector<128x32xf32> -> vector<32x128xf32>
    %c0_18 = arith.constant 0 : index
    %c640 = arith.constant 640 : index
    %23 = vector.load %arg7[%c0_18, %c640] : memref<32x1024xf32, #tpu.memory_space<vmem>>, vector<32x128xf32>
    tpu.vector_store %arg7[%c0_18, %c640], %22 {strides = array<i32>} : memref<32x1024xf32, #tpu.memory_space<vmem>>, vector<32x128xf32>,
    %c0_19 = arith.constant 0 : index
    %c6 = arith.constant 6 : index
    %c0_20 = arith.constant 0 : index
    %24 = vector.load %arg2[%c0_19, %c6, %c0_20] : memref<128x8x32xf32, #tpu.memory_space<vmem>>, vector<128x1x32xf32>
    %25 = vector.shape_cast %24 : vector<128x1x32xf32> to vector<128x32xf32>
    %26 = tpu.transpose %25, [1, 0] : vector<128x32xf32> -> vector<32x128xf32>
    %c0_21 = arith.constant 0 : index
    %c768 = arith.constant 768 : index
    %27 = vector.load %arg7[%c0_21, %c768] : memref<32x1024xf32, #tpu.memory_space<vmem>>, vector<32x128xf32>
    tpu.vector_store %arg7[%c0_21, %c768], %26 {strides = array<i32>} : memref<32x1024xf32, #tpu.memory_space<vmem>>, vector<32x128xf32>,
    %c0_22 = arith.constant 0 : index
    %c7 = arith.constant 7 : index
    %c0_23 = arith.constant 0 : index
    %28 = vector.load %arg2[%c0_22, %c7, %c0_23] : memref<128x8x32xf32, #tpu.memory_space<vmem>>, vector<128x1x32xf32>
    %29 = vector.shape_cast %28 : vector<128x1x32xf32> to vector<128x32xf32>
    %30 = tpu.transpose %29, [1, 0] : vector<128x32xf32> -> vector<32x128xf32>
    %c0_24 = arith.constant 0 : index
    %c896 = arith.constant 896 : index
    %31 = vector.load %arg7[%c0_24, %c896] : memref<32x1024xf32, #tpu.memory_space<vmem>>, vector<32x128xf32>
    tpu.vector_store %arg7[%c0_24, %c896], %30 {strides = array<i32>} : memref<32x1024xf32, #tpu.memory_space<vmem>>, vector<32x128xf32>,
    %c0_25 = arith.constant 0 : index
    %c0_26 = arith.constant 0 : index
    %32 = vector.load %arg3[%c0_25, %c0_26] : memref<64x32xf32, #tpu.memory_space<vmem>>, vector<64x32xf32>
    %c0_27 = arith.constant 0 : index
    %c0_28 = arith.constant 0 : index
    %33 = vector.load %arg7[%c0_27, %c0_28] : memref<32x1024xf32, #tpu.memory_space<vmem>>, vector<32x1024xf32>
    %cst = arith.constant dense<0.000000e+00> : vector<64x1024xf32>
    %34 = tpu.matmul %32, %33, %cst {dimension_numbers = #tpu.dot_dimension_numbers<[1], [0], [0], [1], [0, 0, 1, 1], [], []>} : vector<64x32xf32>, vector<32x1024xf32>, vector<64x1024xf32> -> vector<64x1024xf32>
    %c0_29 = arith.constant 0 : index
    %c0_30 = arith.constant 0 : index
    %35 = vector.load %arg8[%c0_29, %c0_30] : memref<64x1024xf32, #tpu.memory_space<vmem>>, vector<64x1024xf32>
    tpu.vector_store %arg8[%c0_29, %c0_30], %34 {strides = array<i32>} : memref<64x1024xf32, #tpu.memory_space<vmem>>, vector<64x1024xf32>,
    %c0_31 = arith.constant 0 : index
    %c0_32 = arith.constant 0 : index
    %36 = vector.load %arg8[%c0_31, %c0_32] : memref<64x1024xf32, #tpu.memory_space<vmem>>, vector<64x128xf32>
    %37 = vector.shape_cast %36 : vector<64x128xf32> to vector<8x8x128xf32>
    %c0_i32 = arith.constant 0 : i32
    %38 = arith.cmpi eq, %arg1, %c0_i32 : i32
    %39 = arith.extui %38 : i1 to i32
    %c0_i32_33 = arith.constant 0 : i32
    %40 = arith.cmpi ne, %39, %c0_i32_33 : i32
    scf.if %40 {
      %cst_55 = arith.constant dense<0.000000e+00> : vector<8x128xf32>
      %392 = vector.multi_reduction <add>, %37, %cst_55 [0] : vector<8x8x128xf32> to vector<8x128xf32>
      %c0_56 = arith.constant 0 : index
      %c0_57 = arith.constant 0 : index
      %393 = vector.load %arg6[%c0_56, %c0_57] : memref<8x128xf32, #tpu.memory_space<vmem>>, vector<8x128xf32>
      tpu.vector_store %arg6[%c0_56, %c0_57], %392 {strides = array<i32>} : memref<8x128xf32, #tpu.memory_space<vmem>>, vector<8x128xf32>,
    } else {
    }
    %c0_i32_34 = arith.constant 0 : i32
    %41 = arith.cmpi ne, %arg1, %c0_i32_34 : i32
    %42 = arith.extui %41 : i1 to i32
    %c0_i32_35 = arith.constant 0 : i32
    %43 = arith.cmpi ne, %42, %c0_i32_35 : i32
    scf.if %43 {
      %c0_55 = arith.constant 0 : index
      %c0_56 = arith.constant 0 : index
      %392 = vector.load %arg6[%c0_55, %c0_56] : memref<8x128xf32, #tpu.memory_space<vmem>>, vector<8x128xf32>
      %393 = vector.extract_strided_slice %392 {offsets = [0, 0], sizes = [1, 128], strides = [1, 1]} : vector<8x128xf32> to vector<1x128xf32>
      %394 = vector.extract_strided_slice %37 {offsets = [0, 0, 0], sizes = [1, 8, 128], strides = [1, 1, 1]} : vector<8x8x128xf32> to vector<1x8x128xf32>
      %395 = vector.shape_cast %394 : vector<1x8x128xf32> to vector<8x128xf32>
      %396 = vector.broadcast %393 : vector<1x128xf32> to vector<8x128xf32>
      %397 = arith.mulf %396, %395 : vector<8x128xf32>
      %398 = vector.extract_strided_slice %392 {offsets = [1, 0], sizes = [1, 128], strides = [1, 1]} : vector<8x128xf32> to vector<1x128xf32>
      %399 = vector.extract_strided_slice %37 {offsets = [1, 0, 0], sizes = [1, 8, 128], strides = [1, 1, 1]} : vector<8x8x128xf32> to vector<1x8x128xf32>
      %400 = vector.shape_cast %399 : vector<1x8x128xf32> to vector<8x128xf32>
      %401 = vector.broadcast %398 : vector<1x128xf32> to vector<8x128xf32>
      %402 = arith.mulf %401, %400 : vector<8x128xf32>
      %403 = vector.extract_strided_slice %392 {offsets = [2, 0], sizes = [1, 128], strides = [1, 1]} : vector<8x128xf32> to vector<1x128xf32>
      %404 = vector.extract_strided_slice %37 {offsets = [2, 0, 0], sizes = [1, 8, 128], strides = [1, 1, 1]} : vector<8x8x128xf32> to vector<1x8x128xf32>
      %405 = vector.shape_cast %404 : vector<1x8x128xf32> to vector<8x128xf32>
      %406 = vector.broadcast %403 : vector<1x128xf32> to vector<8x128xf32>
      %407 = arith.mulf %406, %405 : vector<8x128xf32>
      %408 = vector.extract_strided_slice %392 {offsets = [3, 0], sizes = [1, 128], strides = [1, 1]} : vector<8x128xf32> to vector<1x128xf32>
      %409 = vector.extract_strided_slice %37 {offsets = [3, 0, 0], sizes = [1, 8, 128], strides = [1, 1, 1]} : vector<8x8x128xf32> to vector<1x8x128xf32>
      %410 = vector.shape_cast %409 : vector<1x8x128xf32> to vector<8x128xf32>
      %411 = vector.broadcast %408 : vector<1x128xf32> to vector<8x128xf32>
      %412 = arith.mulf %411, %410 : vector<8x128xf32>
      %413 = vector.extract_strided_slice %392 {offsets = [4, 0], sizes = [1, 128], strides = [1, 1]} : vector<8x128xf32> to vector<1x128xf32>
      %414 = vector.extract_strided_slice %37 {offsets = [4, 0, 0], sizes = [1, 8, 128], strides = [1, 1, 1]} : vector<8x8x128xf32> to vector<1x8x128xf32>
      %415 = vector.shape_cast %414 : vector<1x8x128xf32> to vector<8x128xf32>
      %416 = vector.broadcast %413 : vector<1x128xf32> to vector<8x128xf32>
      %417 = arith.mulf %416, %415 : vector<8x128xf32>
      %418 = vector.extract_strided_slice %392 {offsets = [5, 0], sizes = [1, 128], strides = [1, 1]} : vector<8x128xf32> to vector<1x128xf32>
      %419 = vector.extract_strided_slice %37 {offsets = [5, 0, 0], sizes = [1, 8, 128], strides = [1, 1, 1]} : vector<8x8x128xf32> to vector<1x8x128xf32>
      %420 = vector.shape_cast %419 : vector<1x8x128xf32> to vector<8x128xf32>
      %421 = vector.broadcast %418 : vector<1x128xf32> to vector<8x128xf32>
      %422 = arith.mulf %421, %420 : vector<8x128xf32>
      %423 = vector.extract_strided_slice %392 {offsets = [6, 0], sizes = [1, 128], strides = [1, 1]} : vector<8x128xf32> to vector<1x128xf32>
      %424 = vector.extract_strided_slice %37 {offsets = [6, 0, 0], sizes = [1, 8, 128], strides = [1, 1, 1]} : vector<8x8x128xf32> to vector<1x8x128xf32>
      %425 = vector.shape_cast %424 : vector<1x8x128xf32> to vector<8x128xf32>
      %426 = vector.broadcast %423 : vector<1x128xf32> to vector<8x128xf32>
      %427 = arith.mulf %426, %425 : vector<8x128xf32>
      %428 = vector.extract_strided_slice %392 {offsets = [7, 0], sizes = [1, 128], strides = [1, 1]} : vector<8x128xf32> to vector<1x128xf32>
      %429 = vector.extract_strided_slice %37 {offsets = [7, 0, 0], sizes = [1, 8, 128], strides = [1, 1, 1]} : vector<8x8x128xf32> to vector<1x8x128xf32>
      %430 = vector.shape_cast %429 : vector<1x8x128xf32> to vector<8x128xf32>
      %431 = vector.broadcast %428 : vector<1x128xf32> to vector<8x128xf32>
      %432 = arith.mulf %431, %430 : vector<8x128xf32>
      %433 = arith.addf %397, %402 : vector<8x128xf32>
      %434 = arith.addf %407, %412 : vector<8x128xf32>
      %435 = arith.addf %417, %422 : vector<8x128xf32>
      %436 = arith.addf %427, %432 : vector<8x128xf32>
      %437 = arith.addf %433, %434 : vector<8x128xf32>
      %438 = arith.addf %435, %436 : vector<8x128xf32>
      %439 = arith.addf %437, %438 : vector<8x128xf32>
      %c0_57 = arith.constant 0 : index
      %c0_58 = arith.constant 0 : index
      %440 = vector.load %arg6[%c0_57, %c0_58] : memref<8x128xf32, #tpu.memory_space<vmem>>, vector<8x128xf32>
      tpu.vector_store %arg6[%c0_57, %c0_58], %439 {strides = array<i32>} : memref<8x128xf32, #tpu.memory_space<vmem>>, vector<8x128xf32>,
    } else {
    }
    %c0_36 = arith.constant 0 : index
    %c0_37 = arith.constant 0 : index
    %44 = vector.load %arg6[%c0_36, %c0_37] : memref<8x128xf32, #tpu.memory_space<vmem>>, vector<8x128xf32>
    %c0_38 = arith.constant 0 : index
    %c128_39 = arith.constant 128 : index
    %45 = vector.load %arg8[%c0_38, %c128_39] : memref<64x1024xf32, #tpu.memory_space<vmem>>, vector<64x128xf32>
    %46 = vector.shape_cast %45 : vector<64x128xf32> to vector<8x8x128xf32>
    %47 = vector.extract_strided_slice %44 {offsets = [0, 0], sizes = [1, 128], strides = [1, 1]} : vector<8x128xf32> to vector<1x128xf32>
    %48 = vector.extract_strided_slice %46 {offsets = [0, 0, 0], sizes = [1, 8, 128], strides = [1, 1, 1]} : vector<8x8x128xf32> to vector<1x8x128xf32>
    %49 = vector.shape_cast %48 : vector<1x8x128xf32> to vector<8x128xf32>
    %50 = vector.broadcast %47 : vector<1x128xf32> to vector<8x128xf32>
    %51 = arith.mulf %50, %49 : vector<8x128xf32>
    %52 = vector.extract_strided_slice %44 {offsets = [1, 0], sizes = [1, 128], strides = [1, 1]} : vector<8x128xf32> to vector<1x128xf32>
    %53 = vector.extract_strided_slice %46 {offsets = [1, 0, 0], sizes = [1, 8, 128], strides = [1, 1, 1]} : vector<8x8x128xf32> to vector<1x8x128xf32>
    %54 = vector.shape_cast %53 : vector<1x8x128xf32> to vector<8x128xf32>
    %55 = vector.broadcast %52 : vector<1x128xf32> to vector<8x128xf32>
    %56 = arith.mulf %55, %54 : vector<8x128xf32>
    %57 = vector.extract_strided_slice %44 {offsets = [2, 0], sizes = [1, 128], strides = [1, 1]} : vector<8x128xf32> to vector<1x128xf32>
    %58 = vector.extract_strided_slice %46 {offsets = [2, 0, 0], sizes = [1, 8, 128], strides = [1, 1, 1]} : vector<8x8x128xf32> to vector<1x8x128xf32>
    %59 = vector.shape_cast %58 : vector<1x8x128xf32> to vector<8x128xf32>
    %60 = vector.broadcast %57 : vector<1x128xf32> to vector<8x128xf32>
    %61 = arith.mulf %60, %59 : vector<8x128xf32>
    %62 = vector.extract_strided_slice %44 {offsets = [3, 0], sizes = [1, 128], strides = [1, 1]} : vector<8x128xf32> to vector<1x128xf32>
    %63 = vector.extract_strided_slice %46 {offsets = [3, 0, 0], sizes = [1, 8, 128], strides = [1, 1, 1]} : vector<8x8x128xf32> to vector<1x8x128xf32>
    %64 = vector.shape_cast %63 : vector<1x8x128xf32> to vector<8x128xf32>
    %65 = vector.broadcast %62 : vector<1x128xf32> to vector<8x128xf32>
    %66 = arith.mulf %65, %64 : vector<8x128xf32>
    %67 = vector.extract_strided_slice %44 {offsets = [4, 0], sizes = [1, 128], strides = [1, 1]} : vector<8x128xf32> to vector<1x128xf32>
    %68 = vector.extract_strided_slice %46 {offsets = [4, 0, 0], sizes = [1, 8, 128], strides = [1, 1, 1]} : vector<8x8x128xf32> to vector<1x8x128xf32>
    %69 = vector.shape_cast %68 : vector<1x8x128xf32> to vector<8x128xf32>
    %70 = vector.broadcast %67 : vector<1x128xf32> to vector<8x128xf32>
    %71 = arith.mulf %70, %69 : vector<8x128xf32>
    %72 = vector.extract_strided_slice %44 {offsets = [5, 0], sizes = [1, 128], strides = [1, 1]} : vector<8x128xf32> to vector<1x128xf32>
    %73 = vector.extract_strided_slice %46 {offsets = [5, 0, 0], sizes = [1, 8, 128], strides = [1, 1, 1]} : vector<8x8x128xf32> to vector<1x8x128xf32>
    %74 = vector.shape_cast %73 : vector<1x8x128xf32> to vector<8x128xf32>
    %75 = vector.broadcast %72 : vector<1x128xf32> to vector<8x128xf32>
    %76 = arith.mulf %75, %74 : vector<8x128xf32>
    %77 = vector.extract_strided_slice %44 {offsets = [6, 0], sizes = [1, 128], strides = [1, 1]} : vector<8x128xf32> to vector<1x128xf32>
    %78 = vector.extract_strided_slice %46 {offsets = [6, 0, 0], sizes = [1, 8, 128], strides = [1, 1, 1]} : vector<8x8x128xf32> to vector<1x8x128xf32>
    %79 = vector.shape_cast %78 : vector<1x8x128xf32> to vector<8x128xf32>
    %80 = vector.broadcast %77 : vector<1x128xf32> to vector<8x128xf32>
    %81 = arith.mulf %80, %79 : vector<8x128xf32>
    %82 = vector.extract_strided_slice %44 {offsets = [7, 0], sizes = [1, 128], strides = [1, 1]} : vector<8x128xf32> to vector<1x128xf32>
    %83 = vector.extract_strided_slice %46 {offsets = [7, 0, 0], sizes = [1, 8, 128], strides = [1, 1, 1]} : vector<8x8x128xf32> to vector<1x8x128xf32>
    %84 = vector.shape_cast %83 : vector<1x8x128xf32> to vector<8x128xf32>
    %85 = vector.broadcast %82 : vector<1x128xf32> to vector<8x128xf32>
    %86 = arith.mulf %85, %84 : vector<8x128xf32>
    %87 = arith.addf %51, %56 : vector<8x128xf32>
    %88 = arith.addf %61, %66 : vector<8x128xf32>
    %89 = arith.addf %71, %76 : vector<8x128xf32>
    %90 = arith.addf %81, %86 : vector<8x128xf32>
    %91 = arith.addf %87, %88 : vector<8x128xf32>
    %92 = arith.addf %89, %90 : vector<8x128xf32>
    %93 = arith.addf %91, %92 : vector<8x128xf32>
    %c0_40 = arith.constant 0 : index
    %c256_41 = arith.constant 256 : index
    %94 = vector.load %arg8[%c0_40, %c256_41] : memref<64x1024xf32, #tpu.memory_space<vmem>>, vector<64x128xf32>
    %95 = vector.shape_cast %94 : vector<64x128xf32> to vector<8x8x128xf32>
    %96 = vector.extract_strided_slice %93 {offsets = [0, 0], sizes = [1, 128], strides = [1, 1]} : vector<8x128xf32> to vector<1x128xf32>
    %97 = vector.extract_strided_slice %95 {offsets = [0, 0, 0], sizes = [1, 8, 128], strides = [1, 1, 1]} : vector<8x8x128xf32> to vector<1x8x128xf32>
    %98 = vector.shape_cast %97 : vector<1x8x128xf32> to vector<8x128xf32>
    %99 = vector.broadcast %96 : vector<1x128xf32> to vector<8x128xf32>
    %100 = arith.mulf %99, %98 : vector<8x128xf32>
    %101 = vector.extract_strided_slice %93 {offsets = [1, 0], sizes = [1, 128], strides = [1, 1]} : vector<8x128xf32> to vector<1x128xf32>
    %102 = vector.extract_strided_slice %95 {offsets = [1, 0, 0], sizes = [1, 8, 128], strides = [1, 1, 1]} : vector<8x8x128xf32> to vector<1x8x128xf32>
    %103 = vector.shape_cast %102 : vector<1x8x128xf32> to vector<8x128xf32>
    %104 = vector.broadcast %101 : vector<1x128xf32> to vector<8x128xf32>
    %105 = arith.mulf %104, %103 : vector<8x128xf32>
    %106 = vector.extract_strided_slice %93 {offsets = [2, 0], sizes = [1, 128], strides = [1, 1]} : vector<8x128xf32> to vector<1x128xf32>
    %107 = vector.extract_strided_slice %95 {offsets = [2, 0, 0], sizes = [1, 8, 128], strides = [1, 1, 1]} : vector<8x8x128xf32> to vector<1x8x128xf32>
    %108 = vector.shape_cast %107 : vector<1x8x128xf32> to vector<8x128xf32>
    %109 = vector.broadcast %106 : vector<1x128xf32> to vector<8x128xf32>
    %110 = arith.mulf %109, %108 : vector<8x128xf32>
    %111 = vector.extract_strided_slice %93 {offsets = [3, 0], sizes = [1, 128], strides = [1, 1]} : vector<8x128xf32> to vector<1x128xf32>
    %112 = vector.extract_strided_slice %95 {offsets = [3, 0, 0], sizes = [1, 8, 128], strides = [1, 1, 1]} : vector<8x8x128xf32> to vector<1x8x128xf32>
    %113 = vector.shape_cast %112 : vector<1x8x128xf32> to vector<8x128xf32>
    %114 = vector.broadcast %111 : vector<1x128xf32> to vector<8x128xf32>
    %115 = arith.mulf %114, %113 : vector<8x128xf32>
    %116 = vector.extract_strided_slice %93 {offsets = [4, 0], sizes = [1, 128], strides = [1, 1]} : vector<8x128xf32> to vector<1x128xf32>
    %117 = vector.extract_strided_slice %95 {offsets = [4, 0, 0], sizes = [1, 8, 128], strides = [1, 1, 1]} : vector<8x8x128xf32> to vector<1x8x128xf32>
    %118 = vector.shape_cast %117 : vector<1x8x128xf32> to vector<8x128xf32>
    %119 = vector.broadcast %116 : vector<1x128xf32> to vector<8x128xf32>
    %120 = arith.mulf %119, %118 : vector<8x128xf32>
    %121 = vector.extract_strided_slice %93 {offsets = [5, 0], sizes = [1, 128], strides = [1, 1]} : vector<8x128xf32> to vector<1x128xf32>
    %122 = vector.extract_strided_slice %95 {offsets = [5, 0, 0], sizes = [1, 8, 128], strides = [1, 1, 1]} : vector<8x8x128xf32> to vector<1x8x128xf32>
    %123 = vector.shape_cast %122 : vector<1x8x128xf32> to vector<8x128xf32>
    %124 = vector.broadcast %121 : vector<1x128xf32> to vector<8x128xf32>
    %125 = arith.mulf %124, %123 : vector<8x128xf32>
    %126 = vector.extract_strided_slice %93 {offsets = [6, 0], sizes = [1, 128], strides = [1, 1]} : vector<8x128xf32> to vector<1x128xf32>
    %127 = vector.extract_strided_slice %95 {offsets = [6, 0, 0], sizes = [1, 8, 128], strides = [1, 1, 1]} : vector<8x8x128xf32> to vector<1x8x128xf32>
    %128 = vector.shape_cast %127 : vector<1x8x128xf32> to vector<8x128xf32>
    %129 = vector.broadcast %126 : vector<1x128xf32> to vector<8x128xf32>
    %130 = arith.mulf %129, %128 : vector<8x128xf32>
    %131 = vector.extract_strided_slice %93 {offsets = [7, 0], sizes = [1, 128], strides = [1, 1]} : vector<8x128xf32> to vector<1x128xf32>
    %132 = vector.extract_strided_slice %95 {offsets = [7, 0, 0], sizes = [1, 8, 128], strides = [1, 1, 1]} : vector<8x8x128xf32> to vector<1x8x128xf32>
    %133 = vector.shape_cast %132 : vector<1x8x128xf32> to vector<8x128xf32>
    %134 = vector.broadcast %131 : vector<1x128xf32> to vector<8x128xf32>
    %135 = arith.mulf %134, %133 : vector<8x128xf32>
    %136 = arith.addf %100, %105 : vector<8x128xf32>
    %137 = arith.addf %110, %115 : vector<8x128xf32>
    %138 = arith.addf %120, %125 : vector<8x128xf32>
    %139 = arith.addf %130, %135 : vector<8x128xf32>
    %140 = arith.addf %136, %137 : vector<8x128xf32>
    %141 = arith.addf %138, %139 : vector<8x128xf32>
    %142 = arith.addf %140, %141 : vector<8x128xf32>
    %c0_42 = arith.constant 0 : index
    %c384_43 = arith.constant 384 : index
    %143 = vector.load %arg8[%c0_42, %c384_43] : memref<64x1024xf32, #tpu.memory_space<vmem>>, vector<64x128xf32>
    %144 = vector.shape_cast %143 : vector<64x128xf32> to vector<8x8x128xf32>
    %145 = vector.extract_strided_slice %142 {offsets = [0, 0], sizes = [1, 128], strides = [1, 1]} : vector<8x128xf32> to vector<1x128xf32>
    %146 = vector.extract_strided_slice %144 {offsets = [0, 0, 0], sizes = [1, 8, 128], strides = [1, 1, 1]} : vector<8x8x128xf32> to vector<1x8x128xf32>
    %147 = vector.shape_cast %146 : vector<1x8x128xf32> to vector<8x128xf32>
    %148 = vector.broadcast %145 : vector<1x128xf32> to vector<8x128xf32>
    %149 = arith.mulf %148, %147 : vector<8x128xf32>
    %150 = vector.extract_strided_slice %142 {offsets = [1, 0], sizes = [1, 128], strides = [1, 1]} : vector<8x128xf32> to vector<1x128xf32>
    %151 = vector.extract_strided_slice %144 {offsets = [1, 0, 0], sizes = [1, 8, 128], strides = [1, 1, 1]} : vector<8x8x128xf32> to vector<1x8x128xf32>
    %152 = vector.shape_cast %151 : vector<1x8x128xf32> to vector<8x128xf32>
    %153 = vector.broadcast %150 : vector<1x128xf32> to vector<8x128xf32>
    %154 = arith.mulf %153, %152 : vector<8x128xf32>
    %155 = vector.extract_strided_slice %142 {offsets = [2, 0], sizes = [1, 128], strides = [1, 1]} : vector<8x128xf32> to vector<1x128xf32>
    %156 = vector.extract_strided_slice %144 {offsets = [2, 0, 0], sizes = [1, 8, 128], strides = [1, 1, 1]} : vector<8x8x128xf32> to vector<1x8x128xf32>
    %157 = vector.shape_cast %156 : vector<1x8x128xf32> to vector<8x128xf32>
    %158 = vector.broadcast %155 : vector<1x128xf32> to vector<8x128xf32>
    %159 = arith.mulf %158, %157 : vector<8x128xf32>
    %160 = vector.extract_strided_slice %142 {offsets = [3, 0], sizes = [1, 128], strides = [1, 1]} : vector<8x128xf32> to vector<1x128xf32>
    %161 = vector.extract_strided_slice %144 {offsets = [3, 0, 0], sizes = [1, 8, 128], strides = [1, 1, 1]} : vector<8x8x128xf32> to vector<1x8x128xf32>
    %162 = vector.shape_cast %161 : vector<1x8x128xf32> to vector<8x128xf32>
    %163 = vector.broadcast %160 : vector<1x128xf32> to vector<8x128xf32>
    %164 = arith.mulf %163, %162 : vector<8x128xf32>
    %165 = vector.extract_strided_slice %142 {offsets = [4, 0], sizes = [1, 128], strides = [1, 1]} : vector<8x128xf32> to vector<1x128xf32>
    %166 = vector.extract_strided_slice %144 {offsets = [4, 0, 0], sizes = [1, 8, 128], strides = [1, 1, 1]} : vector<8x8x128xf32> to vector<1x8x128xf32>
    %167 = vector.shape_cast %166 : vector<1x8x128xf32> to vector<8x128xf32>
    %168 = vector.broadcast %165 : vector<1x128xf32> to vector<8x128xf32>
    %169 = arith.mulf %168, %167 : vector<8x128xf32>
    %170 = vector.extract_strided_slice %142 {offsets = [5, 0], sizes = [1, 128], strides = [1, 1]} : vector<8x128xf32> to vector<1x128xf32>
    %171 = vector.extract_strided_slice %144 {offsets = [5, 0, 0], sizes = [1, 8, 128], strides = [1, 1, 1]} : vector<8x8x128xf32> to vector<1x8x128xf32>
    %172 = vector.shape_cast %171 : vector<1x8x128xf32> to vector<8x128xf32>
    %173 = vector.broadcast %170 : vector<1x128xf32> to vector<8x128xf32>
    %174 = arith.mulf %173, %172 : vector<8x128xf32>
    %175 = vector.extract_strided_slice %142 {offsets = [6, 0], sizes = [1, 128], strides = [1, 1]} : vector<8x128xf32> to vector<1x128xf32>
    %176 = vector.extract_strided_slice %144 {offsets = [6, 0, 0], sizes = [1, 8, 128], strides = [1, 1, 1]} : vector<8x8x128xf32> to vector<1x8x128xf32>
    %177 = vector.shape_cast %176 : vector<1x8x128xf32> to vector<8x128xf32>
    %178 = vector.broadcast %175 : vector<1x128xf32> to vector<8x128xf32>
    %179 = arith.mulf %178, %177 : vector<8x128xf32>
    %180 = vector.extract_strided_slice %142 {offsets = [7, 0], sizes = [1, 128], strides = [1, 1]} : vector<8x128xf32> to vector<1x128xf32>
    %181 = vector.extract_strided_slice %144 {offsets = [7, 0, 0], sizes = [1, 8, 128], strides = [1, 1, 1]} : vector<8x8x128xf32> to vector<1x8x128xf32>
    %182 = vector.shape_cast %181 : vector<1x8x128xf32> to vector<8x128xf32>
    %183 = vector.broadcast %180 : vector<1x128xf32> to vector<8x128xf32>
    %184 = arith.mulf %183, %182 : vector<8x128xf32>
    %185 = arith.addf %149, %154 : vector<8x128xf32>
    %186 = arith.addf %159, %164 : vector<8x128xf32>
    %187 = arith.addf %169, %174 : vector<8x128xf32>
    %188 = arith.addf %179, %184 : vector<8x128xf32>
    %189 = arith.addf %185, %186 : vector<8x128xf32>
    %190 = arith.addf %187, %188 : vector<8x128xf32>
    %191 = arith.addf %189, %190 : vector<8x128xf32>
    %c0_44 = arith.constant 0 : index
    %c512_45 = arith.constant 512 : index
    %192 = vector.load %arg8[%c0_44, %c512_45] : memref<64x1024xf32, #tpu.memory_space<vmem>>, vector<64x128xf32>
    %193 = vector.shape_cast %192 : vector<64x128xf32> to vector<8x8x128xf32>
    %194 = vector.extract_strided_slice %191 {offsets = [0, 0], sizes = [1, 128], strides = [1, 1]} : vector<8x128xf32> to vector<1x128xf32>
    %195 = vector.extract_strided_slice %193 {offsets = [0, 0, 0], sizes = [1, 8, 128], strides = [1, 1, 1]} : vector<8x8x128xf32> to vector<1x8x128xf32>
    %196 = vector.shape_cast %195 : vector<1x8x128xf32> to vector<8x128xf32>
    %197 = vector.broadcast %194 : vector<1x128xf32> to vector<8x128xf32>
    %198 = arith.mulf %197, %196 : vector<8x128xf32>
    %199 = vector.extract_strided_slice %191 {offsets = [1, 0], sizes = [1, 128], strides = [1, 1]} : vector<8x128xf32> to vector<1x128xf32>
    %200 = vector.extract_strided_slice %193 {offsets = [1, 0, 0], sizes = [1, 8, 128], strides = [1, 1, 1]} : vector<8x8x128xf32> to vector<1x8x128xf32>
    %201 = vector.shape_cast %200 : vector<1x8x128xf32> to vector<8x128xf32>
    %202 = vector.broadcast %199 : vector<1x128xf32> to vector<8x128xf32>
    %203 = arith.mulf %202, %201 : vector<8x128xf32>
    %204 = vector.extract_strided_slice %191 {offsets = [2, 0], sizes = [1, 128], strides = [1, 1]} : vector<8x128xf32> to vector<1x128xf32>
    %205 = vector.extract_strided_slice %193 {offsets = [2, 0, 0], sizes = [1, 8, 128], strides = [1, 1, 1]} : vector<8x8x128xf32> to vector<1x8x128xf32>
    %206 = vector.shape_cast %205 : vector<1x8x128xf32> to vector<8x128xf32>
    %207 = vector.broadcast %204 : vector<1x128xf32> to vector<8x128xf32>
    %208 = arith.mulf %207, %206 : vector<8x128xf32>
    %209 = vector.extract_strided_slice %191 {offsets = [3, 0], sizes = [1, 128], strides = [1, 1]} : vector<8x128xf32> to vector<1x128xf32>
    %210 = vector.extract_strided_slice %193 {offsets = [3, 0, 0], sizes = [1, 8, 128], strides = [1, 1, 1]} : vector<8x8x128xf32> to vector<1x8x128xf32>
    %211 = vector.shape_cast %210 : vector<1x8x128xf32> to vector<8x128xf32>
    %212 = vector.broadcast %209 : vector<1x128xf32> to vector<8x128xf32>
    %213 = arith.mulf %212, %211 : vector<8x128xf32>
    %214 = vector.extract_strided_slice %191 {offsets = [4, 0], sizes = [1, 128], strides = [1, 1]} : vector<8x128xf32> to vector<1x128xf32>
    %215 = vector.extract_strided_slice %193 {offsets = [4, 0, 0], sizes = [1, 8, 128], strides = [1, 1, 1]} : vector<8x8x128xf32> to vector<1x8x128xf32>
    %216 = vector.shape_cast %215 : vector<1x8x128xf32> to vector<8x128xf32>
    %217 = vector.broadcast %214 : vector<1x128xf32> to vector<8x128xf32>
    %218 = arith.mulf %217, %216 : vector<8x128xf32>
    %219 = vector.extract_strided_slice %191 {offsets = [5, 0], sizes = [1, 128], strides = [1, 1]} : vector<8x128xf32> to vector<1x128xf32>
    %220 = vector.extract_strided_slice %193 {offsets = [5, 0, 0], sizes = [1, 8, 128], strides = [1, 1, 1]} : vector<8x8x128xf32> to vector<1x8x128xf32>
    %221 = vector.shape_cast %220 : vector<1x8x128xf32> to vector<8x128xf32>
    %222 = vector.broadcast %219 : vector<1x128xf32> to vector<8x128xf32>
    %223 = arith.mulf %222, %221 : vector<8x128xf32>
    %224 = vector.extract_strided_slice %191 {offsets = [6, 0], sizes = [1, 128], strides = [1, 1]} : vector<8x128xf32> to vector<1x128xf32>
    %225 = vector.extract_strided_slice %193 {offsets = [6, 0, 0], sizes = [1, 8, 128], strides = [1, 1, 1]} : vector<8x8x128xf32> to vector<1x8x128xf32>
    %226 = vector.shape_cast %225 : vector<1x8x128xf32> to vector<8x128xf32>
    %227 = vector.broadcast %224 : vector<1x128xf32> to vector<8x128xf32>
    %228 = arith.mulf %227, %226 : vector<8x128xf32>
    %229 = vector.extract_strided_slice %191 {offsets = [7, 0], sizes = [1, 128], strides = [1, 1]} : vector<8x128xf32> to vector<1x128xf32>
    %230 = vector.extract_strided_slice %193 {offsets = [7, 0, 0], sizes = [1, 8, 128], strides = [1, 1, 1]} : vector<8x8x128xf32> to vector<1x8x128xf32>
    %231 = vector.shape_cast %230 : vector<1x8x128xf32> to vector<8x128xf32>
    %232 = vector.broadcast %229 : vector<1x128xf32> to vector<8x128xf32>
    %233 = arith.mulf %232, %231 : vector<8x128xf32>
    %234 = arith.addf %198, %203 : vector<8x128xf32>
    %235 = arith.addf %208, %213 : vector<8x128xf32>
    %236 = arith.addf %218, %223 : vector<8x128xf32>
    %237 = arith.addf %228, %233 : vector<8x128xf32>
    %238 = arith.addf %234, %235 : vector<8x128xf32>
    %239 = arith.addf %236, %237 : vector<8x128xf32>
    %240 = arith.addf %238, %239 : vector<8x128xf32>
    %c0_46 = arith.constant 0 : index
    %c640_47 = arith.constant 640 : index
    %241 = vector.load %arg8[%c0_46, %c640_47] : memref<64x1024xf32, #tpu.memory_space<vmem>>, vector<64x128xf32>
    %242 = vector.shape_cast %241 : vector<64x128xf32> to vector<8x8x128xf32>
    %243 = vector.extract_strided_slice %240 {offsets = [0, 0], sizes = [1, 128], strides = [1, 1]} : vector<8x128xf32> to vector<1x128xf32>
    %244 = vector.extract_strided_slice %242 {offsets = [0, 0, 0], sizes = [1, 8, 128], strides = [1, 1, 1]} : vector<8x8x128xf32> to vector<1x8x128xf32>
    %245 = vector.shape_cast %244 : vector<1x8x128xf32> to vector<8x128xf32>
    %246 = vector.broadcast %243 : vector<1x128xf32> to vector<8x128xf32>
    %247 = arith.mulf %246, %245 : vector<8x128xf32>
    %248 = vector.extract_strided_slice %240 {offsets = [1, 0], sizes = [1, 128], strides = [1, 1]} : vector<8x128xf32> to vector<1x128xf32>
    %249 = vector.extract_strided_slice %242 {offsets = [1, 0, 0], sizes = [1, 8, 128], strides = [1, 1, 1]} : vector<8x8x128xf32> to vector<1x8x128xf32>
    %250 = vector.shape_cast %249 : vector<1x8x128xf32> to vector<8x128xf32>
    %251 = vector.broadcast %248 : vector<1x128xf32> to vector<8x128xf32>
    %252 = arith.mulf %251, %250 : vector<8x128xf32>
    %253 = vector.extract_strided_slice %240 {offsets = [2, 0], sizes = [1, 128], strides = [1, 1]} : vector<8x128xf32> to vector<1x128xf32>
    %254 = vector.extract_strided_slice %242 {offsets = [2, 0, 0], sizes = [1, 8, 128], strides = [1, 1, 1]} : vector<8x8x128xf32> to vector<1x8x128xf32>
    %255 = vector.shape_cast %254 : vector<1x8x128xf32> to vector<8x128xf32>
    %256 = vector.broadcast %253 : vector<1x128xf32> to vector<8x128xf32>
    %257 = arith.mulf %256, %255 : vector<8x128xf32>
    %258 = vector.extract_strided_slice %240 {offsets = [3, 0], sizes = [1, 128], strides = [1, 1]} : vector<8x128xf32> to vector<1x128xf32>
    %259 = vector.extract_strided_slice %242 {offsets = [3, 0, 0], sizes = [1, 8, 128], strides = [1, 1, 1]} : vector<8x8x128xf32> to vector<1x8x128xf32>
    %260 = vector.shape_cast %259 : vector<1x8x128xf32> to vector<8x128xf32>
    %261 = vector.broadcast %258 : vector<1x128xf32> to vector<8x128xf32>
    %262 = arith.mulf %261, %260 : vector<8x128xf32>
    %263 = vector.extract_strided_slice %240 {offsets = [4, 0], sizes = [1, 128], strides = [1, 1]} : vector<8x128xf32> to vector<1x128xf32>
    %264 = vector.extract_strided_slice %242 {offsets = [4, 0, 0], sizes = [1, 8, 128], strides = [1, 1, 1]} : vector<8x8x128xf32> to vector<1x8x128xf32>
    %265 = vector.shape_cast %264 : vector<1x8x128xf32> to vector<8x128xf32>
    %266 = vector.broadcast %263 : vector<1x128xf32> to vector<8x128xf32>
    %267 = arith.mulf %266, %265 : vector<8x128xf32>
    %268 = vector.extract_strided_slice %240 {offsets = [5, 0], sizes = [1, 128], strides = [1, 1]} : vector<8x128xf32> to vector<1x128xf32>
    %269 = vector.extract_strided_slice %242 {offsets = [5, 0, 0], sizes = [1, 8, 128], strides = [1, 1, 1]} : vector<8x8x128xf32> to vector<1x8x128xf32>
    %270 = vector.shape_cast %269 : vector<1x8x128xf32> to vector<8x128xf32>
    %271 = vector.broadcast %268 : vector<1x128xf32> to vector<8x128xf32>
    %272 = arith.mulf %271, %270 : vector<8x128xf32>
    %273 = vector.extract_strided_slice %240 {offsets = [6, 0], sizes = [1, 128], strides = [1, 1]} : vector<8x128xf32> to vector<1x128xf32>
    %274 = vector.extract_strided_slice %242 {offsets = [6, 0, 0], sizes = [1, 8, 128], strides = [1, 1, 1]} : vector<8x8x128xf32> to vector<1x8x128xf32>
    %275 = vector.shape_cast %274 : vector<1x8x128xf32> to vector<8x128xf32>
    %276 = vector.broadcast %273 : vector<1x128xf32> to vector<8x128xf32>
    %277 = arith.mulf %276, %275 : vector<8x128xf32>
    %278 = vector.extract_strided_slice %240 {offsets = [7, 0], sizes = [1, 128], strides = [1, 1]} : vector<8x128xf32> to vector<1x128xf32>
    %279 = vector.extract_strided_slice %242 {offsets = [7, 0, 0], sizes = [1, 8, 128], strides = [1, 1, 1]} : vector<8x8x128xf32> to vector<1x8x128xf32>
    %280 = vector.shape_cast %279 : vector<1x8x128xf32> to vector<8x128xf32>
    %281 = vector.broadcast %278 : vector<1x128xf32> to vector<8x128xf32>
    %282 = arith.mulf %281, %280 : vector<8x128xf32>
    %283 = arith.addf %247, %252 : vector<8x128xf32>
    %284 = arith.addf %257, %262 : vector<8x128xf32>
    %285 = arith.addf %267, %272 : vector<8x128xf32>
    %286 = arith.addf %277, %282 : vector<8x128xf32>
    %287 = arith.addf %283, %284 : vector<8x128xf32>
    %288 = arith.addf %285, %286 : vector<8x128xf32>
    %289 = arith.addf %287, %288 : vector<8x128xf32>
    %c0_48 = arith.constant 0 : index
    %c768_49 = arith.constant 768 : index
    %290 = vector.load %arg8[%c0_48, %c768_49] : memref<64x1024xf32, #tpu.memory_space<vmem>>, vector<64x128xf32>
    %291 = vector.shape_cast %290 : vector<64x128xf32> to vector<8x8x128xf32>
    %292 = vector.extract_strided_slice %289 {offsets = [0, 0], sizes = [1, 128], strides = [1, 1]} : vector<8x128xf32> to vector<1x128xf32>
    %293 = vector.extract_strided_slice %291 {offsets = [0, 0, 0], sizes = [1, 8, 128], strides = [1, 1, 1]} : vector<8x8x128xf32> to vector<1x8x128xf32>
    %294 = vector.shape_cast %293 : vector<1x8x128xf32> to vector<8x128xf32>
    %295 = vector.broadcast %292 : vector<1x128xf32> to vector<8x128xf32>
    %296 = arith.mulf %295, %294 : vector<8x128xf32>
    %297 = vector.extract_strided_slice %289 {offsets = [1, 0], sizes = [1, 128], strides = [1, 1]} : vector<8x128xf32> to vector<1x128xf32>
    %298 = vector.extract_strided_slice %291 {offsets = [1, 0, 0], sizes = [1, 8, 128], strides = [1, 1, 1]} : vector<8x8x128xf32> to vector<1x8x128xf32>
    %299 = vector.shape_cast %298 : vector<1x8x128xf32> to vector<8x128xf32>
    %300 = vector.broadcast %297 : vector<1x128xf32> to vector<8x128xf32>
    %301 = arith.mulf %300, %299 : vector<8x128xf32>
    %302 = vector.extract_strided_slice %289 {offsets = [2, 0], sizes = [1, 128], strides = [1, 1]} : vector<8x128xf32> to vector<1x128xf32>
    %303 = vector.extract_strided_slice %291 {offsets = [2, 0, 0], sizes = [1, 8, 128], strides = [1, 1, 1]} : vector<8x8x128xf32> to vector<1x8x128xf32>
    %304 = vector.shape_cast %303 : vector<1x8x128xf32> to vector<8x128xf32>
    %305 = vector.broadcast %302 : vector<1x128xf32> to vector<8x128xf32>
    %306 = arith.mulf %305, %304 : vector<8x128xf32>
    %307 = vector.extract_strided_slice %289 {offsets = [3, 0], sizes = [1, 128], strides = [1, 1]} : vector<8x128xf32> to vector<1x128xf32>
    %308 = vector.extract_strided_slice %291 {offsets = [3, 0, 0], sizes = [1, 8, 128], strides = [1, 1, 1]} : vector<8x8x128xf32> to vector<1x8x128xf32>
    %309 = vector.shape_cast %308 : vector<1x8x128xf32> to vector<8x128xf32>
    %310 = vector.broadcast %307 : vector<1x128xf32> to vector<8x128xf32>
    %311 = arith.mulf %310, %309 : vector<8x128xf32>
    %312 = vector.extract_strided_slice %289 {offsets = [4, 0], sizes = [1, 128], strides = [1, 1]} : vector<8x128xf32> to vector<1x128xf32>
    %313 = vector.extract_strided_slice %291 {offsets = [4, 0, 0], sizes = [1, 8, 128], strides = [1, 1, 1]} : vector<8x8x128xf32> to vector<1x8x128xf32>
    %314 = vector.shape_cast %313 : vector<1x8x128xf32> to vector<8x128xf32>
    %315 = vector.broadcast %312 : vector<1x128xf32> to vector<8x128xf32>
    %316 = arith.mulf %315, %314 : vector<8x128xf32>
    %317 = vector.extract_strided_slice %289 {offsets = [5, 0], sizes = [1, 128], strides = [1, 1]} : vector<8x128xf32> to vector<1x128xf32>
    %318 = vector.extract_strided_slice %291 {offsets = [5, 0, 0], sizes = [1, 8, 128], strides = [1, 1, 1]} : vector<8x8x128xf32> to vector<1x8x128xf32>
    %319 = vector.shape_cast %318 : vector<1x8x128xf32> to vector<8x128xf32>
    %320 = vector.broadcast %317 : vector<1x128xf32> to vector<8x128xf32>
    %321 = arith.mulf %320, %319 : vector<8x128xf32>
    %322 = vector.extract_strided_slice %289 {offsets = [6, 0], sizes = [1, 128], strides = [1, 1]} : vector<8x128xf32> to vector<1x128xf32>
    %323 = vector.extract_strided_slice %291 {offsets = [6, 0, 0], sizes = [1, 8, 128], strides = [1, 1, 1]} : vector<8x8x128xf32> to vector<1x8x128xf32>
    %324 = vector.shape_cast %323 : vector<1x8x128xf32> to vector<8x128xf32>
    %325 = vector.broadcast %322 : vector<1x128xf32> to vector<8x128xf32>
    %326 = arith.mulf %325, %324 : vector<8x128xf32>
    %327 = vector.extract_strided_slice %289 {offsets = [7, 0], sizes = [1, 128], strides = [1, 1]} : vector<8x128xf32> to vector<1x128xf32>
    %328 = vector.extract_strided_slice %291 {offsets = [7, 0, 0], sizes = [1, 8, 128], strides = [1, 1, 1]} : vector<8x8x128xf32> to vector<1x8x128xf32>
    %329 = vector.shape_cast %328 : vector<1x8x128xf32> to vector<8x128xf32>
    %330 = vector.broadcast %327 : vector<1x128xf32> to vector<8x128xf32>
    %331 = arith.mulf %330, %329 : vector<8x128xf32>
    %332 = arith.addf %296, %301 : vector<8x128xf32>
    %333 = arith.addf %306, %311 : vector<8x128xf32>
    %334 = arith.addf %316, %321 : vector<8x128xf32>
    %335 = arith.addf %326, %331 : vector<8x128xf32>
    %336 = arith.addf %332, %333 : vector<8x128xf32>
    %337 = arith.addf %334, %335 : vector<8x128xf32>
    %338 = arith.addf %336, %337 : vector<8x128xf32>
    %c0_50 = arith.constant 0 : index
    %c896_51 = arith.constant 896 : index
    %339 = vector.load %arg8[%c0_50, %c896_51] : memref<64x1024xf32, #tpu.memory_space<vmem>>, vector<64x128xf32>
    %340 = vector.shape_cast %339 : vector<64x128xf32> to vector<8x8x128xf32>
    %341 = vector.extract_strided_slice %338 {offsets = [0, 0], sizes = [1, 128], strides = [1, 1]} : vector<8x128xf32> to vector<1x128xf32>
    %342 = vector.extract_strided_slice %340 {offsets = [0, 0, 0], sizes = [1, 8, 128], strides = [1, 1, 1]} : vector<8x8x128xf32> to vector<1x8x128xf32>
    %343 = vector.shape_cast %342 : vector<1x8x128xf32> to vector<8x128xf32>
    %344 = vector.broadcast %341 : vector<1x128xf32> to vector<8x128xf32>
    %345 = arith.mulf %344, %343 : vector<8x128xf32>
    %346 = vector.extract_strided_slice %338 {offsets = [1, 0], sizes = [1, 128], strides = [1, 1]} : vector<8x128xf32> to vector<1x128xf32>
    %347 = vector.extract_strided_slice %340 {offsets = [1, 0, 0], sizes = [1, 8, 128], strides = [1, 1, 1]} : vector<8x8x128xf32> to vector<1x8x128xf32>
    %348 = vector.shape_cast %347 : vector<1x8x128xf32> to vector<8x128xf32>
    %349 = vector.broadcast %346 : vector<1x128xf32> to vector<8x128xf32>
    %350 = arith.mulf %349, %348 : vector<8x128xf32>
    %351 = vector.extract_strided_slice %338 {offsets = [2, 0], sizes = [1, 128], strides = [1, 1]} : vector<8x128xf32> to vector<1x128xf32>
    %352 = vector.extract_strided_slice %340 {offsets = [2, 0, 0], sizes = [1, 8, 128], strides = [1, 1, 1]} : vector<8x8x128xf32> to vector<1x8x128xf32>
    %353 = vector.shape_cast %352 : vector<1x8x128xf32> to vector<8x128xf32>
    %354 = vector.broadcast %351 : vector<1x128xf32> to vector<8x128xf32>
    %355 = arith.mulf %354, %353 : vector<8x128xf32>
    %356 = vector.extract_strided_slice %338 {offsets = [3, 0], sizes = [1, 128], strides = [1, 1]} : vector<8x128xf32> to vector<1x128xf32>
    %357 = vector.extract_strided_slice %340 {offsets = [3, 0, 0], sizes = [1, 8, 128], strides = [1, 1, 1]} : vector<8x8x128xf32> to vector<1x8x128xf32>
    %358 = vector.shape_cast %357 : vector<1x8x128xf32> to vector<8x128xf32>
    %359 = vector.broadcast %356 : vector<1x128xf32> to vector<8x128xf32>
    %360 = arith.mulf %359, %358 : vector<8x128xf32>
    %361 = vector.extract_strided_slice %338 {offsets = [4, 0], sizes = [1, 128], strides = [1, 1]} : vector<8x128xf32> to vector<1x128xf32>
    %362 = vector.extract_strided_slice %340 {offsets = [4, 0, 0], sizes = [1, 8, 128], strides = [1, 1, 1]} : vector<8x8x128xf32> to vector<1x8x128xf32>
    %363 = vector.shape_cast %362 : vector<1x8x128xf32> to vector<8x128xf32>
    %364 = vector.broadcast %361 : vector<1x128xf32> to vector<8x128xf32>
    %365 = arith.mulf %364, %363 : vector<8x128xf32>
    %366 = vector.extract_strided_slice %338 {offsets = [5, 0], sizes = [1, 128], strides = [1, 1]} : vector<8x128xf32> to vector<1x128xf32>
    %367 = vector.extract_strided_slice %340 {offsets = [5, 0, 0], sizes = [1, 8, 128], strides = [1, 1, 1]} : vector<8x8x128xf32> to vector<1x8x128xf32>
    %368 = vector.shape_cast %367 : vector<1x8x128xf32> to vector<8x128xf32>
    %369 = vector.broadcast %366 : vector<1x128xf32> to vector<8x128xf32>
    %370 = arith.mulf %369, %368 : vector<8x128xf32>
    %371 = vector.extract_strided_slice %338 {offsets = [6, 0], sizes = [1, 128], strides = [1, 1]} : vector<8x128xf32> to vector<1x128xf32>
    %372 = vector.extract_strided_slice %340 {offsets = [6, 0, 0], sizes = [1, 8, 128], strides = [1, 1, 1]} : vector<8x8x128xf32> to vector<1x8x128xf32>
    %373 = vector.shape_cast %372 : vector<1x8x128xf32> to vector<8x128xf32>
    %374 = vector.broadcast %371 : vector<1x128xf32> to vector<8x128xf32>
    %375 = arith.mulf %374, %373 : vector<8x128xf32>
    %376 = vector.extract_strided_slice %338 {offsets = [7, 0], sizes = [1, 128], strides = [1, 1]} : vector<8x128xf32> to vector<1x128xf32>
    %377 = vector.extract_strided_slice %340 {offsets = [7, 0, 0], sizes = [1, 8, 128], strides = [1, 1, 1]} : vector<8x8x128xf32> to vector<1x8x128xf32>
    %378 = vector.shape_cast %377 : vector<1x8x128xf32> to vector<8x128xf32>
    %379 = vector.broadcast %376 : vector<1x128xf32> to vector<8x128xf32>
    %380 = arith.mulf %379, %378 : vector<8x128xf32>
    %381 = arith.addf %345, %350 : vector<8x128xf32>
    %382 = arith.addf %355, %360 : vector<8x128xf32>
    %383 = arith.addf %365, %370 : vector<8x128xf32>
    %384 = arith.addf %375, %380 : vector<8x128xf32>
    %385 = arith.addf %381, %382 : vector<8x128xf32>
    %386 = arith.addf %383, %384 : vector<8x128xf32>
    %387 = arith.addf %385, %386 : vector<8x128xf32>
    %c0_52 = arith.constant 0 : index
    %c0_53 = arith.constant 0 : index
    %388 = vector.load %arg6[%c0_52, %c0_53] : memref<8x128xf32, #tpu.memory_space<vmem>>, vector<8x128xf32>
    tpu.vector_store %arg6[%c0_52, %c0_53], %387 {strides = array<i32>} : memref<8x128xf32, #tpu.memory_space<vmem>>, vector<8x128xf32>,
    %c1_i32 = arith.constant 1 : i32
    %389 = arith.cmpi eq, %arg1, %c1_i32 : i32
    %390 = arith.extui %389 : i1 to i32
    %c0_i32_54 = arith.constant 0 : i32
    %391 = arith.cmpi ne, %390, %c0_i32_54 : i32
    scf.if %391 {
      %c0_55 = arith.constant 0 : index
      %c0_56 = arith.constant 0 : index
      %392 = vector.load %arg4[%c0_55, %c0_56] : memref<4x8xf32, #tpu.memory_space<vmem>>, vector<4x8xf32>
      %cst_57 = arith.constant dense<0.000000e+00> : vector<4x128xf32>
      %393 = tpu.matmul %392, %387, %cst_57 {dimension_numbers = #tpu.dot_dimension_numbers<[1], [0], [0], [1], [0, 0, 1, 1], [], []>} : vector<4x8xf32>, vector<8x128xf32>, vector<4x128xf32> -> vector<4x128xf32>
      %c0_58 = arith.constant 0 : index
      %c0_59 = arith.constant 0 : index
      %394 = vector.load %arg5[%c0_58, %c0_59] : memref<4x128xf32, #tpu.memory_space<vmem>>, vector<4x128xf32>
      tpu.vector_store %arg5[%c0_58, %c0_59], %393 {strides = array<i32>} : memref<4x128xf32, #tpu.memory_space<vmem>>, vector<4x128xf32>,
    } else {
    }
    return
  }
  func.func @transform_0(%arg0: i32, %arg1: i32) -> (i32, i32, i32) {
    %c0_i32 = arith.constant 0 : i32
    %c0_i32_0 = arith.constant 0 : i32
    return %arg0, %arg1, %c0_i32 : i32, i32, i32
  }
  func.func @transform_1(%arg0: i32, %arg1: i32) -> (i32, i32) {
    %c0_i32 = arith.constant 0 : i32
    %c0_i32_0 = arith.constant 0 : i32
    %c0_i32_1 = arith.constant 0 : i32
    return %c0_i32, %c0_i32_0 : i32, i32
  }
  func.func @transform_2(%arg0: i32, %arg1: i32) -> (i32, i32) {
    %c0_i32 = arith.constant 0 : i32
    %c0_i32_0 = arith.constant 0 : i32
    %c0_i32_1 = arith.constant 0 : i32
    return %c0_i32, %c0_i32_0 : i32, i32
  }
  func.func @transform_3(%arg0: i32, %arg1: i32) -> (i32, i32) {
    %c0_i32 = arith.constant 0 : i32
    %c0_i32_0 = arith.constant 0 : i32
    return %c0_i32, %arg0 : i32, i32
  }
}

</mosaic_0001>

<bundles_post_ra>
// kernel: tpu_custom_call.1
= control target key start
LH: loop header
LB: loop body
LE: loop exit
PB: predicated region body
PF: predicated region fallthrough
CT: control target
= control target key end

     0   :  { %8 = vsyncpa [#allocation7], 0  ;;  %s6370_s12 = smov 0   ;;  %s6372_s13 = smov 0   ;;  %s8895_s0 = inlined_call_operand.vmem [shape: f32[128,16,32], index: 0, kind: input, shape index: {}]   ;;  %s8896_s1 = inlined_call_operand.vmem [shape: f32[64,32], index: 1, kind: input, shape index: {}]   ;;  %s8897_s2 = inlined_call_operand.vmem [shape: f32[4,8], index: 2, kind: input, shape index: {}]   ;;  %s8898_s3 = inlined_call_operand.hbm [shape: f32[4,128], index: 3, kind: output, shape index: {}]  }
   0x1   :  { %s6374_s14 = smov 0   ;;  %s6376_s15 = smov 0  }
   0x2   :  { %s6378_s16 = smov 0  }
   0x3 LB: > { %s6174_s17 = sadd.s32 4294967295, %s6344_s16   ;;  %s23_s18 = sadd.s32 1, %s6340_s15  ;;  %s6344_s16 = sphi %s6378_s16, %s14_s16   ;;  %s6340_s15 = sphi %s6376_s15, %s8903_s15   ;;  %s6336_s14 = sphi %s6374_s14, %s8902_s14   ;;  %s6332_s13 = sphi %s6372_s13, %s8901_s13   ;;  %s6328_s12 = sphi %s6370_s12, %s8900_s12  }
   0x4   : > { %p24_p0 = scmp.ge.s32.totalorder %s23_s18, 2  ;;  %p42_p1 = scmp.ne.s32.totalorder %s6332_s13, %s6328_s12 }
   0x5   : > { %p43_p2 = scmp.eq.s32.totalorder %s6344_s16, 0  ;;  %s35_s20 = sadd.s32 1, %s6332_s13 }
   0x6   : > { %s8905_s18 = smov (%p24_p0, %s23_s18), 0  ;;  %p6176_p5 = scmp.ge.s32.totalorder %s6344_s16, 2 }
   0x7   : > { %p44_p3 = por %p43_p2, %p42_p1  ;;  %s31_s19 = ssub.s32 %s6340_s15, %s8905_s18 }
   0x8   : > { %p33_p4 = scmp.eq.s32.totalorder %s31_s19, 0  ;;  %142 = sbr.rel (%p6176_p5) target bundleno = 81 (0x51), region = 24 }
   0xa   : > { %s6406_s21 = scalar_select %p33_p4, %s6332_s13, %s35_s20  }
   0xd   : > { %145 = sbr.rel (!%p44_p3) target bundleno = 81 (0x51), region = 28  ;;  %s147_s22 = sand.u32 (%p44_p3), 1, %s6332_s13  }
   0xe   : > { %s6178_s23 = sshll.u32 (%p44_p3), %s6340_s15, 3  ;;  %s6177_s24 = sshll.u32 (%p44_p3), %s147_s22, 10 }
   0xf   : > { %s6414_s27 = scalar_lea.vmem (%p44_p3), %s8895_s0, %s6178_s23  ;;  %s6419_s28 = scalar_lea.vmem (%p44_p3), [#allocation5], %s6177_s24 }
  0x10   : > { %v437_v0 = vld [vmem:[%s6414_s27] sm:$0xff] (%p44_p3)  ;;  %v439_v1 = vld [vmem:[%s6414_s27 + $0x10] sm:$0xff] (%p44_p3) }
  0x11   : > { %v441_v2 = vld [vmem:[%s6414_s27 + $0x20] sm:$0xff] (%p44_p3)  ;;  %438 = vst [vmem:[%s6419_s28] sm:$0xff] (%p44_p3), %v437_v0  ;;  %440 = vst [vmem:[%s6419_s28 + $0x8] sm:$0xff] (%p44_p3), %v439_v1  ;;  %v443_v3 = vld [vmem:[%s6414_s27 + $0x30] sm:$0xff] (%p44_p3) }
  0x12   : > { %442 = vst [vmem:[%s6419_s28 + $0x10] sm:$0xff] %v441_v2  ;;  %v445_v4 = vld [vmem:[%s6414_s27 + $0x40] sm:$0xff]  ;;  %v447_v5 = vld [vmem:[%s6414_s27 + $0x50] sm:$0xff]  ;;  %444 = vst [vmem:[%s6419_s28 + $0x18] sm:$0xff] %v443_v3 }
  0x13   : > { %446 = vst [vmem:[%s6419_s28 + $0x20] sm:$0xff] %v445_v4  ;;  %448 = vst [vmem:[%s6419_s28 + $0x28] sm:$0xff] %v447_v5  ;;  %v449_v6 = vld [vmem:[%s6414_s27 + $0x60] sm:$0xff]  ;;  %v451_v7 = vld [vmem:[%s6414_s27 + $0x70] sm:$0xff] }
  0x14   : > { %v453_v8 = vld [vmem:[%s6414_s27 + $0x80] sm:$0xff]  ;;  %450 = vst [vmem:[%s6419_s28 + $0x30] sm:$0xff] %v449_v6  ;;  %452 = vst [vmem:[%s6419_s28 + $0x38] sm:$0xff] %v451_v7  ;;  %v455_v9 = vld [vmem:[%s6414_s27 + $0x90] sm:$0xff] }
  0x15   : > { %454 = vst [vmem:[%s6419_s28 + $0x40] sm:$0xff] %v453_v8  ;;  %v457_v10 = vld [vmem:[%s6414_s27 + $0xa0] sm:$0xff]  ;;  %v459_v11 = vld [vmem:[%s6414_s27 + $0xb0] sm:$0xff]  ;;  %456 = vst [vmem:[%s6419_s28 + $0x48] sm:$0xff] %v455_v9 }
  0x16   : > { %458 = vst [vmem:[%s6419_s28 + $0x50] sm:$0xff] %v457_v10  ;;  %460 = vst [vmem:[%s6419_s28 + $0x58] sm:$0xff] %v459_v11  ;;  %v461_v12 = vld [vmem:[%s6414_s27 + $0xc0] sm:$0xff]  ;;  %v463_v13 = vld [vmem:[%s6414_s27 + $0xd0] sm:$0xff] }
  0x17   : > { %v465_v14 = vld [vmem:[%s6414_s27 + $0xe0] sm:$0xff]  ;;  %462 = vst [vmem:[%s6419_s28 + $0x60] sm:$0xff] %v461_v12  ;;  %464 = vst [vmem:[%s6419_s28 + $0x68] sm:$0xff] %v463_v13  ;;  %v467_v15 = vld [vmem:[%s6414_s27 + $0xf0] sm:$0xff] }
  0x18   : > { %466 = vst [vmem:[%s6419_s28 + $0x70] sm:$0xff] %v465_v14  ;;  %v469_v16 = vld [vmem:[%s6414_s27 + $0x100] sm:$0xff]  ;;  %v471_v17 = vld [vmem:[%s6414_s27 + $0x110] sm:$0xff]  ;;  %468 = vst [vmem:[%s6419_s28 + $0x78] sm:$0xff] %v467_v15 }
  0x19   : > { %470 = vst [vmem:[%s6419_s28 + $0x80] sm:$0xff] %v469_v16  ;;  %472 = vst [vmem:[%s6419_s28 + $0x88] sm:$0xff] %v471_v17  ;;  %v473_v18 = vld [vmem:[%s6414_s27 + $0x120] sm:$0xff]  ;;  %v475_v19 = vld [vmem:[%s6414_s27 + $0x130] sm:$0xff] }
  0x1a   : > { %v477_v20 = vld [vmem:[%s6414_s27 + $0x140] sm:$0xff]  ;;  %474 = vst [vmem:[%s6419_s28 + $0x90] sm:$0xff] %v473_v18  ;;  %476 = vst [vmem:[%s6419_s28 + $0x98] sm:$0xff] %v475_v19  ;;  %v479_v21 = vld [vmem:[%s6414_s27 + $0x150] sm:$0xff] }
  0x1b   : > { %478 = vst [vmem:[%s6419_s28 + $0xa0] sm:$0xff] %v477_v20  ;;  %v481_v22 = vld [vmem:[%s6414_s27 + $0x160] sm:$0xff]  ;;  %v483_v23 = vld [vmem:[%s6414_s27 + $0x170] sm:$0xff]  ;;  %480 = vst [vmem:[%s6419_s28 + $0xa8] sm:$0xff] %v479_v21 }
  0x1c   : > { %482 = vst [vmem:[%s6419_s28 + $0xb0] sm:$0xff] %v481_v22  ;;  %484 = vst [vmem:[%s6419_s28 + $0xb8] sm:$0xff] %v483_v23  ;;  %v485_v24 = vld [vmem:[%s6414_s27 + $0x180] sm:$0xff]  ;;  %v487_v25 = vld [vmem:[%s6414_s27 + $0x190] sm:$0xff] }
  0x1d   : > { %v489_v26 = vld [vmem:[%s6414_s27 + $0x1a0] sm:$0xff]  ;;  %486 = vst [vmem:[%s6419_s28 + $0xc0] sm:$0xff] %v485_v24  ;;  %488 = vst [vmem:[%s6419_s28 + $0xc8] sm:$0xff] %v487_v25  ;;  %v491_v27 = vld [vmem:[%s6414_s27 + $0x1b0] sm:$0xff] }
  0x1e   : > { %490 = vst [vmem:[%s6419_s28 + $0xd0] sm:$0xff] %v489_v26  ;;  %v493_v28 = vld [vmem:[%s6414_s27 + $0x1c0] sm:$0xff]  ;;  %v495_v29 = vld [vmem:[%s6414_s27 + $0x1d0] sm:$0xff]  ;;  %492 = vst [vmem:[%s6419_s28 + $0xd8] sm:$0xff] %v491_v27 }
  0x1f   : > { %494 = vst [vmem:[%s6419_s28 + $0xe0] sm:$0xff] %v493_v28  ;;  %496 = vst [vmem:[%s6419_s28 + $0xe8] sm:$0xff] %v495_v29  ;;  %v497_v30 = vld [vmem:[%s6414_s27 + $0x1e0] sm:$0xff]  ;;  %v499_v31 = vld [vmem:[%s6414_s27 + $0x1f0] sm:$0xff] }
  0x20   : > { %v501_v32 = vld [vmem:[%s6414_s27 + $0x200] sm:$0xff]  ;;  %498 = vst [vmem:[%s6419_s28 + $0xf0] sm:$0xff] %v497_v30  ;;  %500 = vst [vmem:[%s6419_s28 + $0xf8] sm:$0xff] %v499_v31  ;;  %v503_v33 = vld [vmem:[%s6414_s27 + $0x210] sm:$0xff] }
  0x21   : > { %502 = vst [vmem:[%s6419_s28 + $0x100] sm:$0xff] %v501_v32  ;;  %v505_v34 = vld [vmem:[%s6414_s27 + $0x220] sm:$0xff]  ;;  %v507_v35 = vld [vmem:[%s6414_s27 + $0x230] sm:$0xff]  ;;  %504 = vst [vmem:[%s6419_s28 + $0x108] sm:$0xff] %v503_v33 }
  0x22   : > { %506 = vst [vmem:[%s6419_s28 + $0x110] sm:$0xff] %v505_v34  ;;  %508 = vst [vmem:[%s6419_s28 + $0x118] sm:$0xff] %v507_v35  ;;  %v509_v36 = vld [vmem:[%s6414_s27 + $0x240] sm:$0xff]  ;;  %v511_v37 = vld [vmem:[%s6414_s27 + $0x250] sm:$0xff] }
  0x23   : > { %v513_v38 = vld [vmem:[%s6414_s27 + $0x260] sm:$0xff]  ;;  %510 = vst [vmem:[%s6419_s28 + $0x120] sm:$0xff] %v509_v36  ;;  %512 = vst [vmem:[%s6419_s28 + $0x128] sm:$0xff] %v511_v37  ;;  %v515_v39 = vld [vmem:[%s6414_s27 + $0x270] sm:$0xff] }
  0x24   : > { %514 = vst [vmem:[%s6419_s28 + $0x130] sm:$0xff] %v513_v38  ;;  %v517_v40 = vld [vmem:[%s6414_s27 + $0x280] sm:$0xff]  ;;  %v519_v41 = vld [vmem:[%s6414_s27 + $0x290] sm:$0xff]  ;;  %516 = vst [vmem:[%s6419_s28 + $0x138] sm:$0xff] %v515_v39 }
  0x25   : > { %518 = vst [vmem:[%s6419_s28 + $0x140] sm:$0xff] %v517_v40  ;;  %520 = vst [vmem:[%s6419_s28 + $0x148] sm:$0xff] %v519_v41  ;;  %v521_v42 = vld [vmem:[%s6414_s27 + $0x2a0] sm:$0xff]  ;;  %v523_v43 = vld [vmem:[%s6414_s27 + $0x2b0] sm:$0xff] }
  0x26   : > { %v525_v44 = vld [vmem:[%s6414_s27 + $0x2c0] sm:$0xff]  ;;  %522 = vst [vmem:[%s6419_s28 + $0x150] sm:$0xff] %v521_v42  ;;  %524 = vst [vmem:[%s6419_s28 + $0x158] sm:$0xff] %v523_v43  ;;  %v527_v45 = vld [vmem:[%s6414_s27 + $0x2d0] sm:$0xff] }
  0x27   : > { %526 = vst [vmem:[%s6419_s28 + $0x160] sm:$0xff] %v525_v44  ;;  %v529_v46 = vld [vmem:[%s6414_s27 + $0x2e0] sm:$0xff]  ;;  %v531_v47 = vld [vmem:[%s6414_s27 + $0x2f0] sm:$0xff]  ;;  %528 = vst [vmem:[%s6419_s28 + $0x168] sm:$0xff] %v527_v45 }
  0x28   : > { %530 = vst [vmem:[%s6419_s28 + $0x170] sm:$0xff] %v529_v46  ;;  %532 = vst [vmem:[%s6419_s28 + $0x178] sm:$0xff] %v531_v47  ;;  %v533_v48 = vld [vmem:[%s6414_s27 + $0x300] sm:$0xff]  ;;  %v535_v49 = vld [vmem:[%s6414_s27 + $0x310] sm:$0xff] }
  0x29   : > { %v537_v50 = vld [vmem:[%s6414_s27 + $0x320] sm:$0xff]  ;;  %534 = vst [vmem:[%s6419_s28 + $0x180] sm:$0xff] %v533_v48  ;;  %536 = vst [vmem:[%s6419_s28 + $0x188] sm:$0xff] %v535_v49  ;;  %v539_v51 = vld [vmem:[%s6414_s27 + $0x330] sm:$0xff] }
  0x2a   : > { %538 = vst [vmem:[%s6419_s28 + $0x190] sm:$0xff] %v537_v50  ;;  %v541_v52 = vld [vmem:[%s6414_s27 + $0x340] sm:$0xff]  ;;  %v543_v53 = vld [vmem:[%s6414_s27 + $0x350] sm:$0xff]  ;;  %540 = vst [vmem:[%s6419_s28 + $0x198] sm:$0xff] %v539_v51 }
  0x2b   : > { %542 = vst [vmem:[%s6419_s28 + $0x1a0] sm:$0xff] %v541_v52  ;;  %544 = vst [vmem:[%s6419_s28 + $0x1a8] sm:$0xff] %v543_v53  ;;  %v545_v54 = vld [vmem:[%s6414_s27 + $0x360] sm:$0xff]  ;;  %v547_v55 = vld [vmem:[%s6414_s27 + $0x370] sm:$0xff] }
  0x2c   : > { %v549_v56 = vld [vmem:[%s6414_s27 + $0x380] sm:$0xff]  ;;  %546 = vst [vmem:[%s6419_s28 + $0x1b0] sm:$0xff] %v545_v54  ;;  %548 = vst [vmem:[%s6419_s28 + $0x1b8] sm:$0xff] %v547_v55  ;;  %v551_v57 = vld [vmem:[%s6414_s27 + $0x390] sm:$0xff] }
  0x2d   : > { %550 = vst [vmem:[%s6419_s28 + $0x1c0] sm:$0xff] %v549_v56  ;;  %v553_v58 = vld [vmem:[%s6414_s27 + $0x3a0] sm:$0xff]  ;;  %v555_v59 = vld [vmem:[%s6414_s27 + $0x3b0] sm:$0xff]  ;;  %552 = vst [vmem:[%s6419_s28 + $0x1c8] sm:$0xff] %v551_v57 }
  0x2e   : > { %554 = vst [vmem:[%s6419_s28 + $0x1d0] sm:$0xff] %v553_v58  ;;  %556 = vst [vmem:[%s6419_s28 + $0x1d8] sm:$0xff] %v555_v59  ;;  %v557_v60 = vld [vmem:[%s6414_s27 + $0x3c0] sm:$0xff]  ;;  %v559_v61 = vld [vmem:[%s6414_s27 + $0x3d0] sm:$0xff] }
  0x2f   : > { %v561_v62 = vld [vmem:[%s6414_s27 + $0x3e0] sm:$0xff]  ;;  %558 = vst [vmem:[%s6419_s28 + $0x1e0] sm:$0xff] %v557_v60  ;;  %560 = vst [vmem:[%s6419_s28 + $0x1e8] sm:$0xff] %v559_v61  ;;  %v563_v63 = vld [vmem:[%s6414_s27 + $0x3f0] sm:$0xff] }
  0x30   : > { %562 = vst [vmem:[%s6419_s28 + $0x1f0] sm:$0xff] %v561_v62  ;;  %v565_v0 = vld [vmem:[%s6414_s27 + $0x400] sm:$0xff]  ;;  %v567_v1 = vld [vmem:[%s6414_s27 + $0x410] sm:$0xff]  ;;  %564 = vst [vmem:[%s6419_s28 + $0x1f8] sm:$0xff] %v563_v63 }
  0x31   : > { %566 = vst [vmem:[%s6419_s28 + $0x200] sm:$0xff] %v565_v0  ;;  %568 = vst [vmem:[%s6419_s28 + $0x208] sm:$0xff] %v567_v1  ;;  %v569_v2 = vld [vmem:[%s6414_s27 + $0x420] sm:$0xff]  ;;  %v571_v3 = vld [vmem:[%s6414_s27 + $0x430] sm:$0xff] }
  0x32   : > { %v573_v4 = vld [vmem:[%s6414_s27 + $0x440] sm:$0xff]  ;;  %570 = vst [vmem:[%s6419_s28 + $0x210] sm:$0xff] %v569_v2  ;;  %572 = vst [vmem:[%s6419_s28 + $0x218] sm:$0xff] %v571_v3  ;;  %v575_v5 = vld [vmem:[%s6414_s27 + $0x450] sm:$0xff] }
  0x33   : > { %574 = vst [vmem:[%s6419_s28 + $0x220] sm:$0xff] %v573_v4  ;;  %v577_v6 = vld [vmem:[%s6414_s27 + $0x460] sm:$0xff]  ;;  %v579_v7 = vld [vmem:[%s6414_s27 + $0x470] sm:$0xff]  ;;  %576 = vst [vmem:[%s6419_s28 + $0x228] sm:$0xff] %v575_v5 }
  0x34   : > { %578 = vst [vmem:[%s6419_s28 + $0x230] sm:$0xff] %v577_v6  ;;  %580 = vst [vmem:[%s6419_s28 + $0x238] sm:$0xff] %v579_v7  ;;  %v581_v8 = vld [vmem:[%s6414_s27 + $0x480] sm:$0xff]  ;;  %v583_v9 = vld [vmem:[%s6414_s27 + $0x490] sm:$0xff] }
  0x35   : > { %v585_v10 = vld [vmem:[%s6414_s27 + $0x4a0] sm:$0xff]  ;;  %582 = vst [vmem:[%s6419_s28 + $0x240] sm:$0xff] %v581_v8  ;;  %584 = vst [vmem:[%s6419_s28 + $0x248] sm:$0xff] %v583_v9  ;;  %v587_v11 = vld [vmem:[%s6414_s27 + $0x4b0] sm:$0xff] }
  0x36   : > { %586 = vst [vmem:[%s6419_s28 + $0x250] sm:$0xff] %v585_v10  ;;  %v589_v12 = vld [vmem:[%s6414_s27 + $0x4c0] sm:$0xff]  ;;  %v591_v13 = vld [vmem:[%s6414_s27 + $0x4d0] sm:$0xff]  ;;  %588 = vst [vmem:[%s6419_s28 + $0x258] sm:$0xff] %v587_v11 }
  0x37   : > { %590 = vst [vmem:[%s6419_s28 + $0x260] sm:$0xff] %v589_v12  ;;  %592 = vst [vmem:[%s6419_s28 + $0x268] sm:$0xff] %v591_v13  ;;  %v593_v14 = vld [vmem:[%s6414_s27 + $0x4e0] sm:$0xff]  ;;  %v595_v15 = vld [vmem:[%s6414_s27 + $0x4f0] sm:$0xff] }
  0x38   : > { %v597_v16 = vld [vmem:[%s6414_s27 + $0x500] sm:$0xff]  ;;  %594 = vst [vmem:[%s6419_s28 + $0x270] sm:$0xff] %v593_v14  ;;  %596 = vst [vmem:[%s6419_s28 + $0x278] sm:$0xff] %v595_v15  ;;  %v599_v17 = vld [vmem:[%s6414_s27 + $0x510] sm:$0xff] }
  0x39   : > { %598 = vst [vmem:[%s6419_s28 + $0x280] sm:$0xff] %v597_v16  ;;  %v601_v18 = vld [vmem:[%s6414_s27 + $0x520] sm:$0xff]  ;;  %v603_v19 = vld [vmem:[%s6414_s27 + $0x530] sm:$0xff]  ;;  %600 = vst [vmem:[%s6419_s28 + $0x288] sm:$0xff] %v599_v17 }
  0x3a   : > { %602 = vst [vmem:[%s6419_s28 + $0x290] sm:$0xff] %v601_v18  ;;  %604 = vst [vmem:[%s6419_s28 + $0x298] sm:$0xff] %v603_v19  ;;  %v605_v20 = vld [vmem:[%s6414_s27 + $0x540] sm:$0xff]  ;;  %v607_v21 = vld [vmem:[%s6414_s27 + $0x550] sm:$0xff] }
  0x3b   : > { %v609_v22 = vld [vmem:[%s6414_s27 + $0x560] sm:$0xff]  ;;  %606 = vst [vmem:[%s6419_s28 + $0x2a0] sm:$0xff] %v605_v20  ;;  %608 = vst [vmem:[%s6419_s28 + $0x2a8] sm:$0xff] %v607_v21  ;;  %v611_v23 = vld [vmem:[%s6414_s27 + $0x570] sm:$0xff] }
  0x3c   : > { %610 = vst [vmem:[%s6419_s28 + $0x2b0] sm:$0xff] %v609_v22  ;;  %v613_v24 = vld [vmem:[%s6414_s27 + $0x580] sm:$0xff]  ;;  %v615_v25 = vld [vmem:[%s6414_s27 + $0x590] sm:$0xff]  ;;  %612 = vst [vmem:[%s6419_s28 + $0x2b8] sm:$0xff] %v611_v23 }
  0x3d   : > { %614 = vst [vmem:[%s6419_s28 + $0x2c0] sm:$0xff] %v613_v24  ;;  %616 = vst [vmem:[%s6419_s28 + $0x2c8] sm:$0xff] %v615_v25  ;;  %v617_v26 = vld [vmem:[%s6414_s27 + $0x5a0] sm:$0xff]  ;;  %v619_v27 = vld [vmem:[%s6414_s27 + $0x5b0] sm:$0xff] }
  0x3e   : > { %v621_v28 = vld [vmem:[%s6414_s27 + $0x5c0] sm:$0xff]  ;;  %618 = vst [vmem:[%s6419_s28 + $0x2d0] sm:$0xff] %v617_v26  ;;  %620 = vst [vmem:[%s6419_s28 + $0x2d8] sm:$0xff] %v619_v27  ;;  %v623_v29 = vld [vmem:[%s6414_s27 + $0x5d0] sm:$0xff] }
  0x3f   : > { %622 = vst [vmem:[%s6419_s28 + $0x2e0] sm:$0xff] %v621_v28  ;;  %v625_v30 = vld [vmem:[%s6414_s27 + $0x5e0] sm:$0xff]  ;;  %v627_v31 = vld [vmem:[%s6414_s27 + $0x5f0] sm:$0xff]  ;;  %624 = vst [vmem:[%s6419_s28 + $0x2e8] sm:$0xff] %v623_v29 }
  0x40   : > { %626 = vst [vmem:[%s6419_s28 + $0x2f0] sm:$0xff] %v625_v30  ;;  %628 = vst [vmem:[%s6419_s28 + $0x2f8] sm:$0xff] %v627_v31  ;;  %v629_v32 = vld [vmem:[%s6414_s27 + $0x600] sm:$0xff]  ;;  %v631_v33 = vld [vmem:[%s6414_s27 + $0x610] sm:$0xff] }
  0x41   : > { %v633_v34 = vld [vmem:[%s6414_s27 + $0x620] sm:$0xff]  ;;  %630 = vst [vmem:[%s6419_s28 + $0x300] sm:$0xff] %v629_v32  ;;  %632 = vst [vmem:[%s6419_s28 + $0x308] sm:$0xff] %v631_v33  ;;  %v635_v35 = vld [vmem:[%s6414_s27 + $0x630] sm:$0xff] }
  0x42   : > { %634 = vst [vmem:[%s6419_s28 + $0x310] sm:$0xff] %v633_v34  ;;  %v637_v36 = vld [vmem:[%s6414_s27 + $0x640] sm:$0xff]  ;;  %v639_v37 = vld [vmem:[%s6414_s27 + $0x650] sm:$0xff]  ;;  %636 = vst [vmem:[%s6419_s28 + $0x318] sm:$0xff] %v635_v35 }
  0x43   : > { %638 = vst [vmem:[%s6419_s28 + $0x320] sm:$0xff] %v637_v36  ;;  %640 = vst [vmem:[%s6419_s28 + $0x328] sm:$0xff] %v639_v37  ;;  %v641_v38 = vld [vmem:[%s6414_s27 + $0x660] sm:$0xff]  ;;  %v643_v39 = vld [vmem:[%s6414_s27 + $0x670] sm:$0xff] }
  0x44   : > { %v645_v40 = vld [vmem:[%s6414_s27 + $0x680] sm:$0xff]  ;;  %642 = vst [vmem:[%s6419_s28 + $0x330] sm:$0xff] %v641_v38  ;;  %644 = vst [vmem:[%s6419_s28 + $0x338] sm:$0xff] %v643_v39  ;;  %v647_v41 = vld [vmem:[%s6414_s27 + $0x690] sm:$0xff] }
  0x45   : > { %646 = vst [vmem:[%s6419_s28 + $0x340] sm:$0xff] %v645_v40  ;;  %v649_v42 = vld [vmem:[%s6414_s27 + $0x6a0] sm:$0xff]  ;;  %v651_v43 = vld [vmem:[%s6414_s27 + $0x6b0] sm:$0xff]  ;;  %648 = vst [vmem:[%s6419_s28 + $0x348] sm:$0xff] %v647_v41 }
  0x46   : > { %650 = vst [vmem:[%s6419_s28 + $0x350] sm:$0xff] %v649_v42  ;;  %652 = vst [vmem:[%s6419_s28 + $0x358] sm:$0xff] %v651_v43  ;;  %v653_v44 = vld [vmem:[%s6414_s27 + $0x6c0] sm:$0xff]  ;;  %v655_v45 = vld [vmem:[%s6414_s27 + $0x6d0] sm:$0xff] }
  0x47   : > { %v657_v46 = vld [vmem:[%s6414_s27 + $0x6e0] sm:$0xff]  ;;  %654 = vst [vmem:[%s6419_s28 + $0x360] sm:$0xff] %v653_v44  ;;  %656 = vst [vmem:[%s6419_s28 + $0x368] sm:$0xff] %v655_v45  ;;  %v659_v47 = vld [vmem:[%s6414_s27 + $0x6f0] sm:$0xff] }
  0x48   : > { %658 = vst [vmem:[%s6419_s28 + $0x370] sm:$0xff] %v657_v46  ;;  %v661_v48 = vld [vmem:[%s6414_s27 + $0x700] sm:$0xff]  ;;  %v663_v49 = vld [vmem:[%s6414_s27 + $0x710] sm:$0xff]  ;;  %660 = vst [vmem:[%s6419_s28 + $0x378] sm:$0xff] %v659_v47 }
  0x49   : > { %662 = vst [vmem:[%s6419_s28 + $0x380] sm:$0xff] %v661_v48  ;;  %664 = vst [vmem:[%s6419_s28 + $0x388] sm:$0xff] %v663_v49  ;;  %v665_v50 = vld [vmem:[%s6414_s27 + $0x720] sm:$0xff]  ;;  %v667_v51 = vld [vmem:[%s6414_s27 + $0x730] sm:$0xff] }
  0x4a   : > { %v669_v52 = vld [vmem:[%s6414_s27 + $0x740] sm:$0xff]  ;;  %666 = vst [vmem:[%s6419_s28 + $0x390] sm:$0xff] %v665_v50  ;;  %668 = vst [vmem:[%s6419_s28 + $0x398] sm:$0xff] %v667_v51  ;;  %v671_v53 = vld [vmem:[%s6414_s27 + $0x750] sm:$0xff] }
  0x4b   : > { %670 = vst [vmem:[%s6419_s28 + $0x3a0] sm:$0xff] %v669_v52  ;;  %v673_v54 = vld [vmem:[%s6414_s27 + $0x760] sm:$0xff]  ;;  %v675_v55 = vld [vmem:[%s6414_s27 + $0x770] sm:$0xff]  ;;  %672 = vst [vmem:[%s6419_s28 + $0x3a8] sm:$0xff] %v671_v53 }
  0x4c   : > { %674 = vst [vmem:[%s6419_s28 + $0x3b0] sm:$0xff] %v673_v54  ;;  %676 = vst [vmem:[%s6419_s28 + $0x3b8] sm:$0xff] %v675_v55  ;;  %v677_v56 = vld [vmem:[%s6414_s27 + $0x780] sm:$0xff]  ;;  %v679_v57 = vld [vmem:[%s6414_s27 + $0x790] sm:$0xff] }
  0x4d   : > { %v681_v58 = vld [vmem:[%s6414_s27 + $0x7a0] sm:$0xff]  ;;  %678 = vst [vmem:[%s6419_s28 + $0x3c0] sm:$0xff] %v677_v56  ;;  %680 = vst [vmem:[%s6419_s28 + $0x3c8] sm:$0xff] %v679_v57  ;;  %v683_v59 = vld [vmem:[%s6414_s27 + $0x7b0] sm:$0xff] }
  0x4e   : > { %682 = vst [vmem:[%s6419_s28 + $0x3d0] sm:$0xff] %v681_v58  ;;  %v685_v60 = vld [vmem:[%s6414_s27 + $0x7c0] sm:$0xff]  ;;  %v687_v61 = vld [vmem:[%s6414_s27 + $0x7d0] sm:$0xff]  ;;  %684 = vst [vmem:[%s6419_s28 + $0x3d8] sm:$0xff] %v683_v59 }
  0x4f   : > { %686 = vst [vmem:[%s6419_s28 + $0x3e0] sm:$0xff] %v685_v60  ;;  %688 = vst [vmem:[%s6419_s28 + $0x3e8] sm:$0xff] %v687_v61  ;;  %v689_v62 = vld [vmem:[%s6414_s27 + $0x7e0] sm:$0xff]  ;;  %v691_v63 = vld [vmem:[%s6414_s27 + $0x7f0] sm:$0xff] }
  0x50   : > { %690 = vst [vmem:[%s6419_s28 + $0x3f0] sm:$0xff] %v689_v62  ;;  %692 = vst [vmem:[%s6419_s28 + $0x3f8] sm:$0xff] %v691_v63 }
  0x51 PF: > { %p6179_p6 = scmp.ge.s32.totalorder %s6344_s16, 1  ;;  %p697_p7 = scmp.lt.s32.totalorder %s6344_s16, 3 }
  0x53   : > { %p698_p8 = pnand %p6179_p6, %p697_p7 }
  0x54   : > { %s704_s29 = sand.u32 (!%p698_p8), 1, %s6328_s12   ;;  %p6213_p9 = scmp.ne.s32.totalorder (!%p698_p8), %s6336_s14, 0 }
  0x55   : > { %701 = sbr.rel (%p698_p8) target bundleno = 1256 (0x4e8), region = 66  ;;  %s6180_s30 = sshll.u32 (!%p698_p8), %s704_s29, 10 }
  0x56   : > { %s6677_s4 = scalar_lea.vmem (!%p698_p8), [#allocation5], %s6180_s30 }
  0x5a   : > { %vm980_vm0 = vcmask 1041409   ;;  %vm983_vm1 = vcmask 1042434   ;;  %vm986_vm2 = vcmask 1043459   ;;  %vm989_vm3 = vcmask 1044484   ;;  %v2326_v0 = vld [vmem:[%s6677_s4 + $0x3] sm:$0x1] }
  0x5b   : > { %vm992_vm4 = vcmask 1045509   ;;  %vm995_vm5 = vcmask 1046534   ;;  %v2327_v1 = vld [vmem:[%s6677_s4 + $0xb] sm:$0x1]  ;;  %v2328_v2 = vld [vmem:[%s6677_s4 + $0x13] sm:$0x1] }
  0x5c   : > { %v2329_v3 = vld [vmem:[%s6677_s4 + $0x1b] sm:$0x1]  ;;  %v2330_v4 = vld [vmem:[%s6677_s4 + $0x23] sm:$0x1]  ;;  %v2331_v5 = vld [vmem:[%s6677_s4 + $0x2b] sm:$0x1] }
  0x5d   : > { %v2332_v6 = vld [vmem:[%s6677_s4 + $0x33] sm:$0x1]  ;;  %v2333_v7 = vld [vmem:[%s6677_s4 + $0x3b] sm:$0x1]  ;;  %v2582_v8 = vrot.slane %v2327_v1, 7  ;;  %v2584_v9 = vrot.slane %v2328_v2, 6 }
  0x5e   : > { %vm998_vm6 = vcmask 1047559   ;;  %v2586_v10 = vrot.slane %v2329_v3, 5  ;;  %v2588_v11 = vrot.slane %v2330_v4, 4  ;;  %v2590_v12 = vrot.slane %v2331_v5, 3  ;;  %v1262_v13 = vld [vmem:[%s6677_s4 + $0x1] sm:$0x1] }
  0x5f   : > { %v2583_v14 = vsel %vm980_vm0, %v2582_v8, %v2326_v0  ;;  %v2592_v15 = vrot.slane %v2332_v6, 2  ;;  %v2594_v16 = vrot.slane %v2333_v7, 1  ;;  %v1263_v17 = vld [vmem:[%s6677_s4 + $0x9] sm:$0x1]  ;;  %v1264_v18 = vld [vmem:[%s6677_s4 + $0x11] sm:$0x1] }
  0x60   : > { %v2585_v19 = vsel %vm983_vm1, %v2584_v9, %v2583_v14  ;;  %v1265_v20 = vld [vmem:[%s6677_s4 + $0x19] sm:$0x1]  ;;  %v1266_v21 = vld [vmem:[%s6677_s4 + $0x21] sm:$0x1]  ;;  %v1267_v22 = vld [vmem:[%s6677_s4 + $0x29] sm:$0x1] }
  0x61   : > { %v2587_v23 = vsel %vm986_vm2, %v2586_v10, %v2585_v19  ;;  %v1268_v24 = vld [vmem:[%s6677_s4 + $0x31] sm:$0x1]  ;;  %v1269_v25 = vld [vmem:[%s6677_s4 + $0x39] sm:$0x1]  ;;  %v1518_v26 = vrot.slane %v1263_v17, 7  ;;  %v1520_v27 = vrot.slane %v1264_v18, 6 }
  0x62   : > { %v2589_v28 = vsel %vm989_vm3, %v2588_v11, %v2587_v23  ;;  %v1522_v29 = vrot.slane %v1265_v20, 5  ;;  %v1524_v30 = vrot.slane %v1266_v21, 4  ;;  %v1526_v31 = vrot.slane %v1267_v22, 3  ;;  %v2334_v32 = vld [vmem:[%s6677_s4 + $0x43] sm:$0x1] }
  0x63   : > { %v2591_v33 = vsel %vm992_vm4, %v2590_v12, %v2589_v28  ;;  %v1519_v34 = vsel %vm980_vm0, %v1518_v26, %v1262_v13  ;;  %v1528_v35 = vrot.slane %v1268_v24, 2  ;;  %v1530_v36 = vrot.slane %v1269_v25, 1  ;;  %v2335_v37 = vld [vmem:[%s6677_s4 + $0x4b] sm:$0x1]  ;;  %v2336_v38 = vld [vmem:[%s6677_s4 + $0x53] sm:$0x1] }
  0x64   : > { %v2593_v39 = vsel %vm995_vm5, %v2592_v15, %v2591_v33  ;;  %v1521_v40 = vsel %vm983_vm1, %v1520_v27, %v1519_v34  ;;  %v2337_v41 = vld [vmem:[%s6677_s4 + $0x5b] sm:$0x1]  ;;  %v2338_v42 = vld [vmem:[%s6677_s4 + $0x63] sm:$0x1]  ;;  %v2339_v43 = vld [vmem:[%s6677_s4 + $0x6b] sm:$0x1] }
  0x65   : > { %v2595_v44 = vsel %vm998_vm6, %v2594_v16, %v2593_v39  ;;  %v1523_v45 = vsel %vm986_vm2, %v1522_v29, %v1521_v40  ;;  %v2340_v46 = vld [vmem:[%s6677_s4 + $0x73] sm:$0x1]  ;;  %v2341_v47 = vld [vmem:[%s6677_s4 + $0x7b] sm:$0x1]  ;;  %v2596_v48 = vrot.slane %v2335_v37, 7  ;;  %v2598_v49 = vrot.slane %v2336_v38, 6 }
  0x66   : > { %2822 = vxpose.xlu1.b32.start [1/16] (narrow) %v2595_v44, 32  ;;  %v1525_v50 = vsel %vm989_vm3, %v1524_v30, %v1523_v45  ;;  %v2600_v51 = vrot.slane %v2337_v41, 5  ;;  %v2602_v52 = vrot.slane %v2338_v42, 4  ;;  %v2604_v53 = vrot.slane %v2339_v43, 3  ;;  %v1270_v54 = vld [vmem:[%s6677_s4 + $0x41] sm:$0x1] }
  0x67   : > { %v1527_v55 = vsel %vm992_vm4, %v1526_v31, %v1525_v50  ;;  %v2597_v56 = vsel %vm980_vm0, %v2596_v48, %v2334_v32  ;;  %v2606_v57 = vrot.slane %v2340_v46, 2  ;;  %v2608_v58 = vrot.slane %v2341_v47, 1  ;;  %v1271_v59 = vld [vmem:[%s6677_s4 + $0x49] sm:$0x1]  ;;  %v1272_v60 = vld [vmem:[%s6677_s4 + $0x51] sm:$0x1] }
  0x68   : > { %v1529_v61 = vsel %vm995_vm5, %v1528_v35, %v1527_v55  ;;  %v2599_v62 = vsel %vm983_vm1, %v2598_v49, %v2597_v56  ;;  %v1273_v63 = vld [vmem:[%s6677_s4 + $0x59] sm:$0x1]  ;;  %v1274_v0 = vld [vmem:[%s6677_s4 + $0x61] sm:$0x1]  ;;  %v1275_v1 = vld [vmem:[%s6677_s4 + $0x69] sm:$0x1] }
  0x69   : > { %v1531_v2 = vsel %vm998_vm6, %v1530_v36, %v1529_v61  ;;  %v2601_v3 = vsel %vm986_vm2, %v2600_v51, %v2599_v62  ;;  %v1276_v4 = vld [vmem:[%s6677_s4 + $0x71] sm:$0x1]  ;;  %v1277_v5 = vld [vmem:[%s6677_s4 + $0x79] sm:$0x1]  ;;  %v1532_v6 = vrot.slane %v1271_v59, 7  ;;  %v1534_v7 = vrot.slane %v1272_v60, 6 }
  0x6a   : > { %1758 = vxpose.xlu0.b32.start [1/16] (narrow) %v1531_v2, 32  ;;  %v2603_v8 = vsel %vm989_vm3, %v2602_v52, %v2601_v3  ;;  %v1536_v9 = vrot.slane %v1273_v63, 5  ;;  %v1538_v10 = vrot.slane %v1274_v0, 4  ;;  %v1540_v11 = vrot.slane %v1275_v1, 3  ;;  %v2342_v12 = vld [vmem:[%s6677_s4 + $0x83] sm:$0x1] }
  0x6b   : > { %v2605_v13 = vsel %vm992_vm4, %v2604_v53, %v2603_v8  ;;  %v1533_v14 = vsel %vm980_vm0, %v1532_v6, %v1270_v54  ;;  %v1542_v15 = vrot.slane %v1276_v4, 2  ;;  %v1544_v16 = vrot.slane %v1277_v5, 1  ;;  %v2343_v17 = vld [vmem:[%s6677_s4 + $0x8b] sm:$0x1]  ;;  %v2344_v18 = vld [vmem:[%s6677_s4 + $0x93] sm:$0x1] }
  0x6c   : > { %v2607_v19 = vsel %vm995_vm5, %v2606_v57, %v2605_v13  ;;  %v1535_v20 = vsel %vm983_vm1, %v1534_v7, %v1533_v14  ;;  %v2345_v21 = vld [vmem:[%s6677_s4 + $0x9b] sm:$0x1]  ;;  %v2346_v22 = vld [vmem:[%s6677_s4 + $0xa3] sm:$0x1]  ;;  %v2347_v23 = vld [vmem:[%s6677_s4 + $0xab] sm:$0x1] }
  0x6d   : > { %v2609_v24 = vsel %vm998_vm6, %v2608_v58, %v2607_v19  ;;  %v1537_v25 = vsel %vm986_vm2, %v1536_v9, %v1535_v20  ;;  %v2348_v26 = vld [vmem:[%s6677_s4 + $0xb3] sm:$0x1]  ;;  %v2349_v27 = vld [vmem:[%s6677_s4 + $0xbb] sm:$0x1]  ;;  %v2610_v28 = vrot.slane %v2343_v17, 7  ;;  %v2612_v29 = vrot.slane %v2344_v18, 6 }
  0x6e   : > { %2823 = vxpose.xlu1.b32.cont [2/16] (narrow) %v2609_v24, 32  ;;  %v1539_v30 = vsel %vm989_vm3, %v1538_v10, %v1537_v25  ;;  %v2614_v31 = vrot.slane %v2345_v21, 5  ;;  %v2616_v32 = vrot.slane %v2346_v22, 4  ;;  %v2618_v33 = vrot.slane %v2347_v23, 3  ;;  %v1278_v34 = vld [vmem:[%s6677_s4 + $0x81] sm:$0x1] }
  0x6f   : > { %v1541_v35 = vsel %vm992_vm4, %v1540_v11, %v1539_v30  ;;  %v2611_v36 = vsel %vm980_vm0, %v2610_v28, %v2342_v12  ;;  %v2620_v37 = vrot.slane %v2348_v26, 2  ;;  %v2622_v38 = vrot.slane %v2349_v27, 1  ;;  %v1279_v39 = vld [vmem:[%s6677_s4 + $0x89] sm:$0x1]  ;;  %v1280_v40 = vld [vmem:[%s6677_s4 + $0x91] sm:$0x1] }
  0x70   : > { %v1543_v41 = vsel %vm995_vm5, %v1542_v15, %v1541_v35  ;;  %v2613_v42 = vsel %vm983_vm1, %v2612_v29, %v2611_v36  ;;  %v1281_v43 = vld [vmem:[%s6677_s4 + $0x99] sm:$0x1]  ;;  %v1282_v44 = vld [vmem:[%s6677_s4 + $0xa1] sm:$0x1]  ;;  %v1283_v45 = vld [vmem:[%s6677_s4 + $0xa9] sm:$0x1] }
  0x71   : > { %v1545_v46 = vsel %vm998_vm6, %v1544_v16, %v1543_v41  ;;  %v2615_v47 = vsel %vm986_vm2, %v2614_v31, %v2613_v42  ;;  %v1284_v48 = vld [vmem:[%s6677_s4 + $0xb1] sm:$0x1]  ;;  %v1285_v49 = vld [vmem:[%s6677_s4 + $0xb9] sm:$0x1]  ;;  %v1546_v50 = vrot.slane %v1279_v39, 7  ;;  %v1548_v51 = vrot.slane %v1280_v40, 6 }
  0x72   : > { %1759 = vxpose.xlu0.b32.cont [2/16] (narrow) %v1545_v46, 32  ;;  %v2617_v52 = vsel %vm989_vm3, %v2616_v32, %v2615_v47  ;;  %v1550_v53 = vrot.slane %v1281_v43, 5  ;;  %v1552_v54 = vrot.slane %v1282_v44, 4  ;;  %v1554_v55 = vrot.slane %v1283_v45, 3  ;;  %v2350_v56 = vld [vmem:[%s6677_s4 + $0xc3] sm:$0x1] }
  0x73   : > { %v2619_v57 = vsel %vm992_vm4, %v2618_v33, %v2617_v52  ;;  %v1547_v58 = vsel %vm980_vm0, %v1546_v50, %v1278_v34  ;;  %v1556_v59 = vrot.slane %v1284_v48, 2  ;;  %v1558_v60 = vrot.slane %v1285_v49, 1  ;;  %v2351_v61 = vld [vmem:[%s6677_s4 + $0xcb] sm:$0x1]  ;;  %v2352_v62 = vld [vmem:[%s6677_s4 + $0xd3] sm:$0x1] }
  0x74   : > { %v2621_v63 = vsel %vm995_vm5, %v2620_v37, %v2619_v57  ;;  %v1549_v0 = vsel %vm983_vm1, %v1548_v51, %v1547_v58  ;;  %v2353_v1 = vld [vmem:[%s6677_s4 + $0xdb] sm:$0x1]  ;;  %v2354_v2 = vld [vmem:[%s6677_s4 + $0xe3] sm:$0x1]  ;;  %v2355_v3 = vld [vmem:[%s6677_s4 + $0xeb] sm:$0x1] }
  0x75   : > { %v2623_v4 = vsel %vm998_vm6, %v2622_v38, %v2621_v63  ;;  %v1551_v5 = vsel %vm986_vm2, %v1550_v53, %v1549_v0  ;;  %v2356_v6 = vld [vmem:[%s6677_s4 + $0xf3] sm:$0x1]  ;;  %v2357_v7 = vld [vmem:[%s6677_s4 + $0xfb] sm:$0x1]  ;;  %v2624_v8 = vrot.slane %v2351_v61, 7  ;;  %v2626_v9 = vrot.slane %v2352_v62, 6 }
  0x76   : > { %2824 = vxpose.xlu1.b32.cont [3/16] (narrow) %v2623_v4, 32  ;;  %v1553_v10 = vsel %vm989_vm3, %v1552_v54, %v1551_v5  ;;  %v2628_v11 = vrot.slane %v2353_v1, 5  ;;  %v2630_v12 = vrot.slane %v2354_v2, 4  ;;  %v2632_v13 = vrot.slane %v2355_v3, 3  ;;  %v1286_v14 = vld [vmem:[%s6677_s4 + $0xc1] sm:$0x1] }
  0x77   : > { %v1555_v15 = vsel %vm992_vm4, %v1554_v55, %v1553_v10  ;;  %v2625_v16 = vsel %vm980_vm0, %v2624_v8, %v2350_v56  ;;  %v2634_v17 = vrot.slane %v2356_v6, 2  ;;  %v2636_v18 = vrot.slane %v2357_v7, 1  ;;  %v1287_v19 = vld [vmem:[%s6677_s4 + $0xc9] sm:$0x1]  ;;  %v1288_v20 = vld [vmem:[%s6677_s4 + $0xd1] sm:$0x1] }
  0x78   : > { %v1557_v21 = vsel %vm995_vm5, %v1556_v59, %v1555_v15  ;;  %v2627_v22 = vsel %vm983_vm1, %v2626_v9, %v2625_v16  ;;  %v1289_v23 = vld [vmem:[%s6677_s4 + $0xd9] sm:$0x1]  ;;  %v1290_v24 = vld [vmem:[%s6677_s4 + $0xe1] sm:$0x1]  ;;  %v1291_v25 = vld [vmem:[%s6677_s4 + $0xe9] sm:$0x1] }
  0x79   : > { %v1559_v26 = vsel %vm998_vm6, %v1558_v60, %v1557_v21  ;;  %v2629_v27 = vsel %vm986_vm2, %v2628_v11, %v2627_v22  ;;  %v1292_v28 = vld [vmem:[%s6677_s4 + $0xf1] sm:$0x1]  ;;  %v1293_v29 = vld [vmem:[%s6677_s4 + $0xf9] sm:$0x1]  ;;  %v1560_v30 = vrot.slane %v1287_v19, 7  ;;  %v1562_v31 = vrot.slane %v1288_v20, 6 }
  0x7a   : > { %1760 = vxpose.xlu0.b32.cont [3/16] (narrow) %v1559_v26, 32  ;;  %v2631_v32 = vsel %vm989_vm3, %v2630_v12, %v2629_v27  ;;  %v1564_v33 = vrot.slane %v1289_v23, 5  ;;  %v1566_v34 = vrot.slane %v1290_v24, 4  ;;  %v1568_v35 = vrot.slane %v1291_v25, 3  ;;  %v2358_v36 = vld [vmem:[%s6677_s4 + $0x103] sm:$0x1] }
  0x7b   : > { %v2633_v37 = vsel %vm992_vm4, %v2632_v13, %v2631_v32  ;;  %v1561_v38 = vsel %vm980_vm0, %v1560_v30, %v1286_v14  ;;  %v1570_v39 = vrot.slane %v1292_v28, 2  ;;  %v1572_v40 = vrot.slane %v1293_v29, 1  ;;  %v2359_v41 = vld [vmem:[%s6677_s4 + $0x10b] sm:$0x1]  ;;  %v2360_v42 = vld [vmem:[%s6677_s4 + $0x113] sm:$0x1] }
  0x7c   : > { %v2635_v43 = vsel %vm995_vm5, %v2634_v17, %v2633_v37  ;;  %v1563_v44 = vsel %vm983_vm1, %v1562_v31, %v1561_v38  ;;  %v2361_v45 = vld [vmem:[%s6677_s4 + $0x11b] sm:$0x1]  ;;  %v2362_v46 = vld [vmem:[%s6677_s4 + $0x123] sm:$0x1]  ;;  %v2363_v47 = vld [vmem:[%s6677_s4 + $0x12b] sm:$0x1] }
  0x7d   : > { %v2637_v48 = vsel %vm998_vm6, %v2636_v18, %v2635_v43  ;;  %v1565_v49 = vsel %vm986_vm2, %v1564_v33, %v1563_v44  ;;  %v2364_v50 = vld [vmem:[%s6677_s4 + $0x133] sm:$0x1]  ;;  %v2365_v51 = vld [vmem:[%s6677_s4 + $0x13b] sm:$0x1]  ;;  %v2638_v52 = vrot.slane %v2359_v41, 7  ;;  %v2640_v53 = vrot.slane %v2360_v42, 6 }
  0x7e   : > { %2825 = vxpose.xlu1.b32.cont [4/16] (narrow) %v2637_v48, 32  ;;  %v1567_v54 = vsel %vm989_vm3, %v1566_v34, %v1565_v49  ;;  %v2642_v55 = vrot.slane %v2361_v45, 5  ;;  %v2644_v56 = vrot.slane %v2362_v46, 4  ;;  %v2646_v57 = vrot.slane %v2363_v47, 3  ;;  %v1294_v58 = vld [vmem:[%s6677_s4 + $0x101] sm:$0x1] }
  0x7f   : > { %v1569_v59 = vsel %vm992_vm4, %v1568_v35, %v1567_v54  ;;  %v2639_v60 = vsel %vm980_vm0, %v2638_v52, %v2358_v36  ;;  %v2648_v61 = vrot.slane %v2364_v50, 2  ;;  %v2650_v62 = vrot.slane %v2365_v51, 1  ;;  %v1295_v63 = vld [vmem:[%s6677_s4 + $0x109] sm:$0x1]  ;;  %v1296_v0 = vld [vmem:[%s6677_s4 + $0x111] sm:$0x1] }
  0x80   : > { %v1571_v1 = vsel %vm995_vm5, %v1570_v39, %v1569_v59  ;;  %v2641_v2 = vsel %vm983_vm1, %v2640_v53, %v2639_v60  ;;  %v1297_v3 = vld [vmem:[%s6677_s4 + $0x119] sm:$0x1]  ;;  %v1298_v4 = vld [vmem:[%s6677_s4 + $0x121] sm:$0x1]  ;;  %v1299_v5 = vld [vmem:[%s6677_s4 + $0x129] sm:$0x1] }
  0x81   : > { %v1573_v6 = vsel %vm998_vm6, %v1572_v40, %v1571_v1  ;;  %v2643_v7 = vsel %vm986_vm2, %v2642_v55, %v2641_v2  ;;  %v1300_v8 = vld [vmem:[%s6677_s4 + $0x131] sm:$0x1]  ;;  %v1301_v9 = vld [vmem:[%s6677_s4 + $0x139] sm:$0x1]  ;;  %v1574_v10 = vrot.slane %v1295_v63, 7  ;;  %v1576_v11 = vrot.slane %v1296_v0, 6 }
  0x82   : > { %1761 = vxpose.xlu0.b32.cont [4/16] (narrow) %v1573_v6, 32  ;;  %v2645_v12 = vsel %vm989_vm3, %v2644_v56, %v2643_v7  ;;  %v1578_v13 = vrot.slane %v1297_v3, 5  ;;  %v1580_v14 = vrot.slane %v1298_v4, 4  ;;  %v1582_v15 = vrot.slane %v1299_v5, 3  ;;  %v2366_v16 = vld [vmem:[%s6677_s4 + $0x143] sm:$0x1] }
  0x83   : > { %v2647_v17 = vsel %vm992_vm4, %v2646_v57, %v2645_v12  ;;  %v1575_v18 = vsel %vm980_vm0, %v1574_v10, %v1294_v58  ;;  %v1584_v19 = vrot.slane %v1300_v8, 2  ;;  %v1586_v20 = vrot.slane %v1301_v9, 1  ;;  %v2367_v21 = vld [vmem:[%s6677_s4 + $0x14b] sm:$0x1]  ;;  %v2368_v22 = vld [vmem:[%s6677_s4 + $0x153] sm:$0x1] }
  0x84   : > { %v2649_v23 = vsel %vm995_vm5, %v2648_v61, %v2647_v17  ;;  %v1577_v24 = vsel %vm983_vm1, %v1576_v11, %v1575_v18  ;;  %v2369_v25 = vld [vmem:[%s6677_s4 + $0x15b] sm:$0x1]  ;;  %v2370_v26 = vld [vmem:[%s6677_s4 + $0x163] sm:$0x1]  ;;  %v2371_v27 = vld [vmem:[%s6677_s4 + $0x16b] sm:$0x1] }
  0x85   : > { %v2651_v28 = vsel %vm998_vm6, %v2650_v62, %v2649_v23  ;;  %v1579_v29 = vsel %vm986_vm2, %v1578_v13, %v1577_v24  ;;  %v2372_v30 = vld [vmem:[%s6677_s4 + $0x173] sm:$0x1]  ;;  %v2373_v31 = vld [vmem:[%s6677_s4 + $0x17b] sm:$0x1]  ;;  %v2652_v32 = vrot.slane %v2367_v21, 7  ;;  %v2654_v33 = vrot.slane %v2368_v22, 6 }
  0x86   : > { %2826 = vxpose.xlu1.b32.cont [5/16] (narrow) %v2651_v28, 32  ;;  %v1581_v34 = vsel %vm989_vm3, %v1580_v14, %v1579_v29  ;;  %v2656_v35 = vrot.slane %v2369_v25, 5  ;;  %v2658_v36 = vrot.slane %v2370_v26, 4  ;;  %v2660_v37 = vrot.slane %v2371_v27, 3  ;;  %v1302_v38 = vld [vmem:[%s6677_s4 + $0x141] sm:$0x1] }
  0x87   : > { %v1583_v39 = vsel %vm992_vm4, %v1582_v15, %v1581_v34  ;;  %v2653_v40 = vsel %vm980_vm0, %v2652_v32, %v2366_v16  ;;  %v2662_v41 = vrot.slane %v2372_v30, 2  ;;  %v2664_v42 = vrot.slane %v2373_v31, 1  ;;  %v1303_v43 = vld [vmem:[%s6677_s4 + $0x149] sm:$0x1]  ;;  %v1304_v44 = vld [vmem:[%s6677_s4 + $0x151] sm:$0x1] }
  0x88   : > { %v1585_v45 = vsel %vm995_vm5, %v1584_v19, %v1583_v39  ;;  %v2655_v46 = vsel %vm983_vm1, %v2654_v33, %v2653_v40  ;;  %v1305_v47 = vld [vmem:[%s6677_s4 + $0x159] sm:$0x1]  ;;  %v1306_v48 = vld [vmem:[%s6677_s4 + $0x161] sm:$0x1]  ;;  %v1307_v49 = vld [vmem:[%s6677_s4 + $0x169] sm:$0x1] }
  0x89   : > { %v1587_v50 = vsel %vm998_vm6, %v1586_v20, %v1585_v45  ;;  %v2657_v51 = vsel %vm986_vm2, %v2656_v35, %v2655_v46  ;;  %v1308_v52 = vld [vmem:[%s6677_s4 + $0x171] sm:$0x1]  ;;  %v1309_v53 = vld [vmem:[%s6677_s4 + $0x179] sm:$0x1]  ;;  %v1588_v54 = vrot.slane %v1303_v43, 7  ;;  %v1590_v55 = vrot.slane %v1304_v44, 6 }
  0x8a   : > { %1762 = vxpose.xlu0.b32.cont [5/16] (narrow) %v1587_v50, 32  ;;  %v2659_v56 = vsel %vm989_vm3, %v2658_v36, %v2657_v51  ;;  %v1592_v57 = vrot.slane %v1305_v47, 5  ;;  %v1594_v58 = vrot.slane %v1306_v48, 4  ;;  %v1596_v59 = vrot.slane %v1307_v49, 3  ;;  %v2374_v60 = vld [vmem:[%s6677_s4 + $0x183] sm:$0x1] }
  0x8b   : > { %v2661_v61 = vsel %vm992_vm4, %v2660_v37, %v2659_v56  ;;  %v1589_v62 = vsel %vm980_vm0, %v1588_v54, %v1302_v38  ;;  %v1598_v63 = vrot.slane %v1308_v52, 2  ;;  %v1600_v0 = vrot.slane %v1309_v53, 1  ;;  %v2375_v1 = vld [vmem:[%s6677_s4 + $0x18b] sm:$0x1]  ;;  %v2376_v2 = vld [vmem:[%s6677_s4 + $0x193] sm:$0x1] }
  0x8c   : > { %v2663_v3 = vsel %vm995_vm5, %v2662_v41, %v2661_v61  ;;  %v1591_v4 = vsel %vm983_vm1, %v1590_v55, %v1589_v62  ;;  %v2377_v5 = vld [vmem:[%s6677_s4 + $0x19b] sm:$0x1]  ;;  %v2378_v6 = vld [vmem:[%s6677_s4 + $0x1a3] sm:$0x1]  ;;  %v2379_v7 = vld [vmem:[%s6677_s4 + $0x1ab] sm:$0x1] }
  0x8d   : > { %v2665_v8 = vsel %vm998_vm6, %v2664_v42, %v2663_v3  ;;  %v1593_v9 = vsel %vm986_vm2, %v1592_v57, %v1591_v4  ;;  %v2380_v10 = vld [vmem:[%s6677_s4 + $0x1b3] sm:$0x1]  ;;  %v2381_v11 = vld [vmem:[%s6677_s4 + $0x1bb] sm:$0x1]  ;;  %v2666_v12 = vrot.slane %v2375_v1, 7  ;;  %v2668_v13 = vrot.slane %v2376_v2, 6 }
  0x8e   : > { %2827 = vxpose.xlu1.b32.cont [6/16] (narrow) %v2665_v8, 32  ;;  %v1595_v14 = vsel %vm989_vm3, %v1594_v58, %v1593_v9  ;;  %v2670_v15 = vrot.slane %v2377_v5, 5  ;;  %v2672_v16 = vrot.slane %v2378_v6, 4  ;;  %v2674_v17 = vrot.slane %v2379_v7, 3  ;;  %v1310_v18 = vld [vmem:[%s6677_s4 + $0x181] sm:$0x1] }
  0x8f   : > { %v1597_v19 = vsel %vm992_vm4, %v1596_v59, %v1595_v14  ;;  %v2667_v20 = vsel %vm980_vm0, %v2666_v12, %v2374_v60  ;;  %v2676_v21 = vrot.slane %v2380_v10, 2  ;;  %v2678_v22 = vrot.slane %v2381_v11, 1  ;;  %v1311_v23 = vld [vmem:[%s6677_s4 + $0x189] sm:$0x1]  ;;  %v1312_v24 = vld [vmem:[%s6677_s4 + $0x191] sm:$0x1] }
  0x90   : > { %v1599_v25 = vsel %vm995_vm5, %v1598_v63, %v1597_v19  ;;  %v2669_v26 = vsel %vm983_vm1, %v2668_v13, %v2667_v20  ;;  %v1313_v27 = vld [vmem:[%s6677_s4 + $0x199] sm:$0x1]  ;;  %v1314_v28 = vld [vmem:[%s6677_s4 + $0x1a1] sm:$0x1]  ;;  %v1315_v29 = vld [vmem:[%s6677_s4 + $0x1a9] sm:$0x1] }
  0x91   : > { %v1601_v30 = vsel %vm998_vm6, %v1600_v0, %v1599_v25  ;;  %v2671_v31 = vsel %vm986_vm2, %v2670_v15, %v2669_v26  ;;  %v1316_v32 = vld [vmem:[%s6677_s4 + $0x1b1] sm:$0x1]  ;;  %v1317_v33 = vld [vmem:[%s6677_s4 + $0x1b9] sm:$0x1]  ;;  %v1602_v34 = vrot.slane %v1311_v23, 7  ;;  %v1604_v35 = vrot.slane %v1312_v24, 6 }
  0x92   : > { %1763 = vxpose.xlu0.b32.cont [6/16] (narrow) %v1601_v30, 32  ;;  %v2673_v36 = vsel %vm989_vm3, %v2672_v16, %v2671_v31  ;;  %v1606_v37 = vrot.slane %v1313_v27, 5  ;;  %v1608_v38 = vrot.slane %v1314_v28, 4  ;;  %v1610_v39 = vrot.slane %v1315_v29, 3  ;;  %v2382_v40 = vld [vmem:[%s6677_s4 + $0x1c3] sm:$0x1] }
  0x93   : > { %v2675_v41 = vsel %vm992_vm4, %v2674_v17, %v2673_v36  ;;  %v1603_v42 = vsel %vm980_vm0, %v1602_v34, %v1310_v18  ;;  %v1612_v43 = vrot.slane %v1316_v32, 2  ;;  %v1614_v44 = vrot.slane %v1317_v33, 1  ;;  %v2383_v45 = vld [vmem:[%s6677_s4 + $0x1cb] sm:$0x1]  ;;  %v2384_v46 = vld [vmem:[%s6677_s4 + $0x1d3] sm:$0x1] }
  0x94   : > { %v2677_v47 = vsel %vm995_vm5, %v2676_v21, %v2675_v41  ;;  %v1605_v48 = vsel %vm983_vm1, %v1604_v35, %v1603_v42  ;;  %v2385_v49 = vld [vmem:[%s6677_s4 + $0x1db] sm:$0x1]  ;;  %v2386_v50 = vld [vmem:[%s6677_s4 + $0x1e3] sm:$0x1]  ;;  %v2387_v51 = vld [vmem:[%s6677_s4 + $0x1eb] sm:$0x1] }
  0x95   : > { %v2679_v52 = vsel %vm998_vm6, %v2678_v22, %v2677_v47  ;;  %v1607_v53 = vsel %vm986_vm2, %v1606_v37, %v1605_v48  ;;  %v2388_v54 = vld [vmem:[%s6677_s4 + $0x1f3] sm:$0x1]  ;;  %v2389_v55 = vld [vmem:[%s6677_s4 + $0x1fb] sm:$0x1]  ;;  %v2680_v56 = vrot.slane %v2383_v45, 7  ;;  %v2682_v57 = vrot.slane %v2384_v46, 6 }
  0x96   : > { %2828 = vxpose.xlu1.b32.cont [7/16] (narrow) %v2679_v52, 32  ;;  %v1609_v58 = vsel %vm989_vm3, %v1608_v38, %v1607_v53  ;;  %v2684_v59 = vrot.slane %v2385_v49, 5  ;;  %v2686_v60 = vrot.slane %v2386_v50, 4  ;;  %v2688_v61 = vrot.slane %v2387_v51, 3  ;;  %v1318_v62 = vld [vmem:[%s6677_s4 + $0x1c1] sm:$0x1] }
  0x97   : > { %v1611_v63 = vsel %vm992_vm4, %v1610_v39, %v1609_v58  ;;  %v2681_v0 = vsel %vm980_vm0, %v2680_v56, %v2382_v40  ;;  %v2690_v1 = vrot.slane %v2388_v54, 2  ;;  %v2692_v2 = vrot.slane %v2389_v55, 1  ;;  %v1319_v3 = vld [vmem:[%s6677_s4 + $0x1c9] sm:$0x1]  ;;  %v1320_v4 = vld [vmem:[%s6677_s4 + $0x1d1] sm:$0x1] }
  0x98   : > { %v1613_v5 = vsel %vm995_vm5, %v1612_v43, %v1611_v63  ;;  %v2683_v6 = vsel %vm983_vm1, %v2682_v57, %v2681_v0  ;;  %v1321_v7 = vld [vmem:[%s6677_s4 + $0x1d9] sm:$0x1]  ;;  %v1322_v8 = vld [vmem:[%s6677_s4 + $0x1e1] sm:$0x1]  ;;  %v1323_v9 = vld [vmem:[%s6677_s4 + $0x1e9] sm:$0x1] }
  0x99   : > { %v1615_v10 = vsel %vm998_vm6, %v1614_v44, %v1613_v5  ;;  %v2685_v11 = vsel %vm986_vm2, %v2684_v59, %v2683_v6  ;;  %v1324_v12 = vld [vmem:[%s6677_s4 + $0x1f1] sm:$0x1]  ;;  %v1325_v13 = vld [vmem:[%s6677_s4 + $0x1f9] sm:$0x1]  ;;  %v1616_v14 = vrot.slane %v1319_v3, 7  ;;  %v1618_v15 = vrot.slane %v1320_v4, 6 }
  0x9a   : > { %1764 = vxpose.xlu0.b32.cont [7/16] (narrow) %v1615_v10, 32  ;;  %v2687_v16 = vsel %vm989_vm3, %v2686_v60, %v2685_v11  ;;  %v1620_v17 = vrot.slane %v1321_v7, 5  ;;  %v1622_v18 = vrot.slane %v1322_v8, 4  ;;  %v1624_v19 = vrot.slane %v1323_v9, 3  ;;  %v2390_v20 = vld [vmem:[%s6677_s4 + $0x203] sm:$0x1] }
  0x9b   : > { %v2689_v21 = vsel %vm992_vm4, %v2688_v61, %v2687_v16  ;;  %v1617_v22 = vsel %vm980_vm0, %v1616_v14, %v1318_v62  ;;  %v1626_v23 = vrot.slane %v1324_v12, 2  ;;  %v1628_v24 = vrot.slane %v1325_v13, 1  ;;  %v2391_v25 = vld [vmem:[%s6677_s4 + $0x20b] sm:$0x1]  ;;  %v2392_v26 = vld [vmem:[%s6677_s4 + $0x213] sm:$0x1] }
  0x9c   : > { %v2691_v27 = vsel %vm995_vm5, %v2690_v1, %v2689_v21  ;;  %v1619_v28 = vsel %vm983_vm1, %v1618_v15, %v1617_v22  ;;  %v2393_v29 = vld [vmem:[%s6677_s4 + $0x21b] sm:$0x1]  ;;  %v2394_v30 = vld [vmem:[%s6677_s4 + $0x223] sm:$0x1]  ;;  %v2395_v31 = vld [vmem:[%s6677_s4 + $0x22b] sm:$0x1] }
  0x9d   : > { %v2693_v32 = vsel %vm998_vm6, %v2692_v2, %v2691_v27  ;;  %v1621_v33 = vsel %vm986_vm2, %v1620_v17, %v1619_v28  ;;  %v2396_v34 = vld [vmem:[%s6677_s4 + $0x233] sm:$0x1]  ;;  %v2397_v35 = vld [vmem:[%s6677_s4 + $0x23b] sm:$0x1]  ;;  %v2694_v36 = vrot.slane %v2391_v25, 7  ;;  %v2696_v37 = vrot.slane %v2392_v26, 6 }
  0x9e   : > { %2829 = vxpose.xlu1.b32.cont [8/16] (narrow) %v2693_v32, 32  ;;  %v1623_v38 = vsel %vm989_vm3, %v1622_v18, %v1621_v33  ;;  %v2698_v39 = vrot.slane %v2393_v29, 5  ;;  %v2700_v40 = vrot.slane %v2394_v30, 4  ;;  %v2702_v41 = vrot.slane %v2395_v31, 3  ;;  %v1326_v42 = vld [vmem:[%s6677_s4 + $0x201] sm:$0x1] }
  0x9f   : > { %v1625_v43 = vsel %vm992_vm4, %v1624_v19, %v1623_v38  ;;  %v2695_v44 = vsel %vm980_vm0, %v2694_v36, %v2390_v20  ;;  %v2704_v45 = vrot.slane %v2396_v34, 2  ;;  %v2706_v46 = vrot.slane %v2397_v35, 1  ;;  %v1327_v47 = vld [vmem:[%s6677_s4 + $0x209] sm:$0x1]  ;;  %v1328_v48 = vld [vmem:[%s6677_s4 + $0x211] sm:$0x1] }
  0xa0   : > { %v1627_v49 = vsel %vm995_vm5, %v1626_v23, %v1625_v43  ;;  %v2697_v50 = vsel %vm983_vm1, %v2696_v37, %v2695_v44  ;;  %v1329_v51 = vld [vmem:[%s6677_s4 + $0x219] sm:$0x1]  ;;  %v1330_v52 = vld [vmem:[%s6677_s4 + $0x221] sm:$0x1]  ;;  %v1331_v53 = vld [vmem:[%s6677_s4 + $0x229] sm:$0x1] }
  0xa1   : > { %v1629_v54 = vsel %vm998_vm6, %v1628_v24, %v1627_v49  ;;  %v2699_v55 = vsel %vm986_vm2, %v2698_v39, %v2697_v50  ;;  %v1332_v56 = vld [vmem:[%s6677_s4 + $0x231] sm:$0x1]  ;;  %v1333_v57 = vld [vmem:[%s6677_s4 + $0x239] sm:$0x1]  ;;  %v1630_v58 = vrot.slane %v1327_v47, 7  ;;  %v1632_v59 = vrot.slane %v1328_v48, 6 }
  0xa2   : > { %1765 = vxpose.xlu0.b32.cont [8/16] (narrow) %v1629_v54, 32  ;;  %v2701_v60 = vsel %vm989_vm3, %v2700_v40, %v2699_v55  ;;  %v1634_v61 = vrot.slane %v1329_v51, 5  ;;  %v1636_v62 = vrot.slane %v1330_v52, 4  ;;  %v1638_v63 = vrot.slane %v1331_v53, 3  ;;  %v2398_v0 = vld [vmem:[%s6677_s4 + $0x243] sm:$0x1] }
  0xa3   : > { %v2703_v1 = vsel %vm992_vm4, %v2702_v41, %v2701_v60  ;;  %v1631_v2 = vsel %vm980_vm0, %v1630_v58, %v1326_v42  ;;  %v1640_v3 = vrot.slane %v1332_v56, 2  ;;  %v1642_v4 = vrot.slane %v1333_v57, 1  ;;  %v2399_v5 = vld [vmem:[%s6677_s4 + $0x24b] sm:$0x1]  ;;  %v2400_v6 = vld [vmem:[%s6677_s4 + $0x253] sm:$0x1] }
  0xa4   : > { %v2705_v7 = vsel %vm995_vm5, %v2704_v45, %v2703_v1  ;;  %v1633_v8 = vsel %vm983_vm1, %v1632_v59, %v1631_v2  ;;  %v2401_v9 = vld [vmem:[%s6677_s4 + $0x25b] sm:$0x1]  ;;  %v2402_v10 = vld [vmem:[%s6677_s4 + $0x263] sm:$0x1]  ;;  %v2403_v11 = vld [vmem:[%s6677_s4 + $0x26b] sm:$0x1] }
  0xa5   : > { %v2707_v12 = vsel %vm998_vm6, %v2706_v46, %v2705_v7  ;;  %v1635_v13 = vsel %vm986_vm2, %v1634_v61, %v1633_v8  ;;  %v2404_v14 = vld [vmem:[%s6677_s4 + $0x273] sm:$0x1]  ;;  %v2405_v15 = vld [vmem:[%s6677_s4 + $0x27b] sm:$0x1]  ;;  %v2708_v16 = vrot.slane %v2399_v5, 7  ;;  %v2710_v17 = vrot.slane %v2400_v6, 6 }
  0xa6   : > { %2830 = vxpose.xlu1.b32.cont [9/16] (narrow) %v2707_v12, 32  ;;  %v1637_v18 = vsel %vm989_vm3, %v1636_v62, %v1635_v13  ;;  %v2712_v19 = vrot.slane %v2401_v9, 5  ;;  %v2714_v20 = vrot.slane %v2402_v10, 4  ;;  %v2716_v21 = vrot.slane %v2403_v11, 3  ;;  %v1334_v22 = vld [vmem:[%s6677_s4 + $0x241] sm:$0x1] }
  0xa7   : > { %v1639_v23 = vsel %vm992_vm4, %v1638_v63, %v1637_v18  ;;  %v2709_v24 = vsel %vm980_vm0, %v2708_v16, %v2398_v0  ;;  %v2718_v25 = vrot.slane %v2404_v14, 2  ;;  %v2720_v26 = vrot.slane %v2405_v15, 1  ;;  %v1335_v27 = vld [vmem:[%s6677_s4 + $0x249] sm:$0x1]  ;;  %v1336_v28 = vld [vmem:[%s6677_s4 + $0x251] sm:$0x1] }
  0xa8   : > { %v1641_v29 = vsel %vm995_vm5, %v1640_v3, %v1639_v23  ;;  %v2711_v30 = vsel %vm983_vm1, %v2710_v17, %v2709_v24  ;;  %v1337_v31 = vld [vmem:[%s6677_s4 + $0x259] sm:$0x1]  ;;  %v1338_v32 = vld [vmem:[%s6677_s4 + $0x261] sm:$0x1]  ;;  %v1339_v33 = vld [vmem:[%s6677_s4 + $0x269] sm:$0x1] }
  0xa9   : > { %v1643_v34 = vsel %vm998_vm6, %v1642_v4, %v1641_v29  ;;  %v2713_v35 = vsel %vm986_vm2, %v2712_v19, %v2711_v30  ;;  %v1340_v36 = vld [vmem:[%s6677_s4 + $0x271] sm:$0x1]  ;;  %v1341_v37 = vld [vmem:[%s6677_s4 + $0x279] sm:$0x1]  ;;  %v1644_v38 = vrot.slane %v1335_v27, 7  ;;  %v1646_v39 = vrot.slane %v1336_v28, 6 }
  0xaa   : > { %1766 = vxpose.xlu0.b32.cont [9/16] (narrow) %v1643_v34, 32  ;;  %v2715_v40 = vsel %vm989_vm3, %v2714_v20, %v2713_v35  ;;  %v1648_v41 = vrot.slane %v1337_v31, 5  ;;  %v1650_v42 = vrot.slane %v1338_v32, 4  ;;  %v1652_v43 = vrot.slane %v1339_v33, 3  ;;  %v2406_v44 = vld [vmem:[%s6677_s4 + $0x283] sm:$0x1] }
  0xab   : > { %v2717_v45 = vsel %vm992_vm4, %v2716_v21, %v2715_v40  ;;  %v1645_v46 = vsel %vm980_vm0, %v1644_v38, %v1334_v22  ;;  %v1654_v47 = vrot.slane %v1340_v36, 2  ;;  %v1656_v48 = vrot.slane %v1341_v37, 1  ;;  %v2407_v49 = vld [vmem:[%s6677_s4 + $0x28b] sm:$0x1]  ;;  %v2408_v50 = vld [vmem:[%s6677_s4 + $0x293] sm:$0x1] }
  0xac   : > { %v2719_v51 = vsel %vm995_vm5, %v2718_v25, %v2717_v45  ;;  %v1647_v52 = vsel %vm983_vm1, %v1646_v39, %v1645_v46  ;;  %v2409_v53 = vld [vmem:[%s6677_s4 + $0x29b] sm:$0x1]  ;;  %v2410_v54 = vld [vmem:[%s6677_s4 + $0x2a3] sm:$0x1]  ;;  %v2411_v55 = vld [vmem:[%s6677_s4 + $0x2ab] sm:$0x1] }
  0xad   : > { %v2721_v56 = vsel %vm998_vm6, %v2720_v26, %v2719_v51  ;;  %v1649_v57 = vsel %vm986_vm2, %v1648_v41, %v1647_v52  ;;  %v2412_v58 = vld [vmem:[%s6677_s4 + $0x2b3] sm:$0x1]  ;;  %v2413_v59 = vld [vmem:[%s6677_s4 + $0x2bb] sm:$0x1]  ;;  %v2722_v60 = vrot.slane %v2407_v49, 7  ;;  %v2724_v61 = vrot.slane %v2408_v50, 6 }
  0xae   : > { %2831 = vxpose.xlu1.b32.cont [10/16] (narrow) %v2721_v56, 32  ;;  %v1651_v62 = vsel %vm989_vm3, %v1650_v42, %v1649_v57  ;;  %v2726_v63 = vrot.slane %v2409_v53, 5  ;;  %v2728_v0 = vrot.slane %v2410_v54, 4  ;;  %v2730_v1 = vrot.slane %v2411_v55, 3  ;;  %v1342_v2 = vld [vmem:[%s6677_s4 + $0x281] sm:$0x1] }
  0xaf   : > { %v1653_v3 = vsel %vm992_vm4, %v1652_v43, %v1651_v62  ;;  %v2723_v4 = vsel %vm980_vm0, %v2722_v60, %v2406_v44  ;;  %v2732_v5 = vrot.slane %v2412_v58, 2  ;;  %v2734_v6 = vrot.slane %v2413_v59, 1  ;;  %v1343_v7 = vld [vmem:[%s6677_s4 + $0x289] sm:$0x1]  ;;  %v1344_v8 = vld [vmem:[%s6677_s4 + $0x291] sm:$0x1] }
  0xb0   : > { %v1655_v9 = vsel %vm995_vm5, %v1654_v47, %v1653_v3  ;;  %v2725_v10 = vsel %vm983_vm1, %v2724_v61, %v2723_v4  ;;  %v1345_v11 = vld [vmem:[%s6677_s4 + $0x299] sm:$0x1]  ;;  %v1346_v12 = vld [vmem:[%s6677_s4 + $0x2a1] sm:$0x1]  ;;  %v1347_v13 = vld [vmem:[%s6677_s4 + $0x2a9] sm:$0x1] }
  0xb1   : > { %v1657_v14 = vsel %vm998_vm6, %v1656_v48, %v1655_v9  ;;  %v2727_v15 = vsel %vm986_vm2, %v2726_v63, %v2725_v10  ;;  %v1348_v16 = vld [vmem:[%s6677_s4 + $0x2b1] sm:$0x1]  ;;  %v1349_v17 = vld [vmem:[%s6677_s4 + $0x2b9] sm:$0x1]  ;;  %v1658_v18 = vrot.slane %v1343_v7, 7  ;;  %v1660_v19 = vrot.slane %v1344_v8, 6 }
  0xb2   : > { %1767 = vxpose.xlu0.b32.cont [10/16] (narrow) %v1657_v14, 32  ;;  %v2729_v20 = vsel %vm989_vm3, %v2728_v0, %v2727_v15  ;;  %v1662_v21 = vrot.slane %v1345_v11, 5  ;;  %v1664_v22 = vrot.slane %v1346_v12, 4  ;;  %v1666_v23 = vrot.slane %v1347_v13, 3  ;;  %v2414_v24 = vld [vmem:[%s6677_s4 + $0x2c3] sm:$0x1] }
  0xb3   : > { %v2731_v25 = vsel %vm992_vm4, %v2730_v1, %v2729_v20  ;;  %v1659_v26 = vsel %vm980_vm0, %v1658_v18, %v1342_v2  ;;  %v1668_v27 = vrot.slane %v1348_v16, 2  ;;  %v1670_v28 = vrot.slane %v1349_v17, 1  ;;  %v2415_v29 = vld [vmem:[%s6677_s4 + $0x2cb] sm:$0x1]  ;;  %v2416_v30 = vld [vmem:[%s6677_s4 + $0x2d3] sm:$0x1] }
  0xb4   : > { %v2733_v31 = vsel %vm995_vm5, %v2732_v5, %v2731_v25  ;;  %v1661_v32 = vsel %vm983_vm1, %v1660_v19, %v1659_v26  ;;  %v2417_v33 = vld [vmem:[%s6677_s4 + $0x2db] sm:$0x1]  ;;  %v2418_v34 = vld [vmem:[%s6677_s4 + $0x2e3] sm:$0x1]  ;;  %v2419_v35 = vld [vmem:[%s6677_s4 + $0x2eb] sm:$0x1] }
  0xb5   : > { %v2735_v36 = vsel %vm998_vm6, %v2734_v6, %v2733_v31  ;;  %v1663_v37 = vsel %vm986_vm2, %v1662_v21, %v1661_v32  ;;  %v2420_v38 = vld [vmem:[%s6677_s4 + $0x2f3] sm:$0x1]  ;;  %v2421_v39 = vld [vmem:[%s6677_s4 + $0x2fb] sm:$0x1]  ;;  %v2736_v40 = vrot.slane %v2415_v29, 7  ;;  %v2738_v41 = vrot.slane %v2416_v30, 6 }
  0xb6   : > { %2832 = vxpose.xlu1.b32.cont [11/16] (narrow) %v2735_v36, 32  ;;  %v1665_v42 = vsel %vm989_vm3, %v1664_v22, %v1663_v37  ;;  %v2740_v43 = vrot.slane %v2417_v33, 5  ;;  %v2742_v44 = vrot.slane %v2418_v34, 4  ;;  %v2744_v45 = vrot.slane %v2419_v35, 3  ;;  %v1350_v46 = vld [vmem:[%s6677_s4 + $0x2c1] sm:$0x1] }
  0xb7   : > { %v1667_v47 = vsel %vm992_vm4, %v1666_v23, %v1665_v42  ;;  %v2737_v48 = vsel %vm980_vm0, %v2736_v40, %v2414_v24  ;;  %v2746_v49 = vrot.slane %v2420_v38, 2  ;;  %v2748_v50 = vrot.slane %v2421_v39, 1  ;;  %v1351_v51 = vld [vmem:[%s6677_s4 + $0x2c9] sm:$0x1]  ;;  %v1352_v52 = vld [vmem:[%s6677_s4 + $0x2d1] sm:$0x1] }
  0xb8   : > { %v1669_v53 = vsel %vm995_vm5, %v1668_v27, %v1667_v47  ;;  %v2739_v54 = vsel %vm983_vm1, %v2738_v41, %v2737_v48  ;;  %v1353_v55 = vld [vmem:[%s6677_s4 + $0x2d9] sm:$0x1]  ;;  %v1354_v56 = vld [vmem:[%s6677_s4 + $0x2e1] sm:$0x1]  ;;  %v1355_v57 = vld [vmem:[%s6677_s4 + $0x2e9] sm:$0x1] }
  0xb9   : > { %v1671_v58 = vsel %vm998_vm6, %v1670_v28, %v1669_v53  ;;  %v2741_v59 = vsel %vm986_vm2, %v2740_v43, %v2739_v54  ;;  %v1356_v60 = vld [vmem:[%s6677_s4 + $0x2f1] sm:$0x1]  ;;  %v1357_v61 = vld [vmem:[%s6677_s4 + $0x2f9] sm:$0x1]  ;;  %v1672_v62 = vrot.slane %v1351_v51, 7  ;;  %v1674_v63 = vrot.slane %v1352_v52, 6 }
  0xba   : > { %1768 = vxpose.xlu0.b32.cont [11/16] (narrow) %v1671_v58, 32  ;;  %v2743_v0 = vsel %vm989_vm3, %v2742_v44, %v2741_v59  ;;  %v1676_v1 = vrot.slane %v1353_v55, 5  ;;  %v1678_v2 = vrot.slane %v1354_v56, 4  ;;  %v1680_v3 = vrot.slane %v1355_v57, 3  ;;  %v2422_v4 = vld [vmem:[%s6677_s4 + $0x303] sm:$0x1] }
  0xbb   : > { %v2745_v5 = vsel %vm992_vm4, %v2744_v45, %v2743_v0  ;;  %v1673_v6 = vsel %vm980_vm0, %v1672_v62, %v1350_v46  ;;  %v1682_v7 = vrot.slane %v1356_v60, 2  ;;  %v1684_v8 = vrot.slane %v1357_v61, 1  ;;  %v2423_v9 = vld [vmem:[%s6677_s4 + $0x30b] sm:$0x1]  ;;  %v2424_v10 = vld [vmem:[%s6677_s4 + $0x313] sm:$0x1] }
  0xbc   : > { %v2747_v11 = vsel %vm995_vm5, %v2746_v49, %v2745_v5  ;;  %v1675_v12 = vsel %vm983_vm1, %v1674_v63, %v1673_v6  ;;  %v2425_v13 = vld [vmem:[%s6677_s4 + $0x31b] sm:$0x1]  ;;  %v2426_v14 = vld [vmem:[%s6677_s4 + $0x323] sm:$0x1]  ;;  %v2427_v15 = vld [vmem:[%s6677_s4 + $0x32b] sm:$0x1] }
  0xbd   : > { %v2749_v16 = vsel %vm998_vm6, %v2748_v50, %v2747_v11  ;;  %v1677_v17 = vsel %vm986_vm2, %v1676_v1, %v1675_v12  ;;  %v2428_v18 = vld [vmem:[%s6677_s4 + $0x333] sm:$0x1]  ;;  %v2429_v19 = vld [vmem:[%s6677_s4 + $0x33b] sm:$0x1]  ;;  %v2750_v20 = vrot.slane %v2423_v9, 7  ;;  %v2752_v21 = vrot.slane %v2424_v10, 6 }
  0xbe   : > { %2833 = vxpose.xlu1.b32.cont [12/16] (narrow) %v2749_v16, 32  ;;  %v1679_v22 = vsel %vm989_vm3, %v1678_v2, %v1677_v17  ;;  %v2754_v23 = vrot.slane %v2425_v13, 5  ;;  %v2756_v24 = vrot.slane %v2426_v14, 4  ;;  %v2758_v25 = vrot.slane %v2427_v15, 3  ;;  %v1358_v26 = vld [vmem:[%s6677_s4 + $0x301] sm:$0x1] }
  0xbf   : > { %v1681_v27 = vsel %vm992_vm4, %v1680_v3, %v1679_v22  ;;  %v2751_v28 = vsel %vm980_vm0, %v2750_v20, %v2422_v4  ;;  %v2760_v29 = vrot.slane %v2428_v18, 2  ;;  %v2762_v30 = vrot.slane %v2429_v19, 1  ;;  %v1359_v31 = vld [vmem:[%s6677_s4 + $0x309] sm:$0x1]  ;;  %v1360_v32 = vld [vmem:[%s6677_s4 + $0x311] sm:$0x1] }
  0xc0   : > { %v1683_v33 = vsel %vm995_vm5, %v1682_v7, %v1681_v27  ;;  %v2753_v34 = vsel %vm983_vm1, %v2752_v21, %v2751_v28  ;;  %v1361_v35 = vld [vmem:[%s6677_s4 + $0x319] sm:$0x1]  ;;  %v1362_v36 = vld [vmem:[%s6677_s4 + $0x321] sm:$0x1]  ;;  %v1363_v37 = vld [vmem:[%s6677_s4 + $0x329] sm:$0x1] }
  0xc1   : > { %v1685_v38 = vsel %vm998_vm6, %v1684_v8, %v1683_v33  ;;  %v2755_v39 = vsel %vm986_vm2, %v2754_v23, %v2753_v34  ;;  %v1364_v40 = vld [vmem:[%s6677_s4 + $0x331] sm:$0x1]  ;;  %v1365_v41 = vld [vmem:[%s6677_s4 + $0x339] sm:$0x1]  ;;  %v1686_v42 = vrot.slane %v1359_v31, 7  ;;  %v1688_v43 = vrot.slane %v1360_v32, 6 }
  0xc2   : > { %1769 = vxpose.xlu0.b32.cont [12/16] (narrow) %v1685_v38, 32  ;;  %v2757_v44 = vsel %vm989_vm3, %v2756_v24, %v2755_v39  ;;  %v1690_v45 = vrot.slane %v1361_v35, 5  ;;  %v1692_v46 = vrot.slane %v1362_v36, 4  ;;  %v1694_v47 = vrot.slane %v1363_v37, 3  ;;  %v2430_v48 = vld [vmem:[%s6677_s4 + $0x343] sm:$0x1] }
  0xc3   : > { %v2759_v49 = vsel %vm992_vm4, %v2758_v25, %v2757_v44  ;;  %v1687_v50 = vsel %vm980_vm0, %v1686_v42, %v1358_v26  ;;  %v1696_v51 = vrot.slane %v1364_v40, 2  ;;  %v1698_v52 = vrot.slane %v1365_v41, 1  ;;  %v2431_v53 = vld [vmem:[%s6677_s4 + $0x34b] sm:$0x1]  ;;  %v2432_v54 = vld [vmem:[%s6677_s4 + $0x353] sm:$0x1] }
  0xc4   : > { %v2761_v55 = vsel %vm995_vm5, %v2760_v29, %v2759_v49  ;;  %v1689_v56 = vsel %vm983_vm1, %v1688_v43, %v1687_v50  ;;  %v2433_v57 = vld [vmem:[%s6677_s4 + $0x35b] sm:$0x1]  ;;  %v2434_v58 = vld [vmem:[%s6677_s4 + $0x363] sm:$0x1]  ;;  %v2435_v59 = vld [vmem:[%s6677_s4 + $0x36b] sm:$0x1] }
  0xc5   : > { %v2763_v60 = vsel %vm998_vm6, %v2762_v30, %v2761_v55  ;;  %v1691_v61 = vsel %vm986_vm2, %v1690_v45, %v1689_v56  ;;  %v2436_v62 = vld [vmem:[%s6677_s4 + $0x373] sm:$0x1]  ;;  %v2437_v63 = vld [vmem:[%s6677_s4 + $0x37b] sm:$0x1]  ;;  %v2764_v0 = vrot.slane %v2431_v53, 7  ;;  %v2766_v1 = vrot.slane %v2432_v54, 6 }
  0xc6   : > { %2834 = vxpose.xlu1.b32.cont [13/16] (narrow) %v2763_v60, 32  ;;  %v1693_v2 = vsel %vm989_vm3, %v1692_v46, %v1691_v61  ;;  %v2768_v3 = vrot.slane %v2433_v57, 5  ;;  %v2770_v4 = vrot.slane %v2434_v58, 4  ;;  %v2772_v5 = vrot.slane %v2435_v59, 3  ;;  %v1366_v6 = vld [vmem:[%s6677_s4 + $0x341] sm:$0x1] }
  0xc7   : > { %v1695_v7 = vsel %vm992_vm4, %v1694_v47, %v1693_v2  ;;  %v2765_v8 = vsel %vm980_vm0, %v2764_v0, %v2430_v48  ;;  %v2774_v9 = vrot.slane %v2436_v62, 2  ;;  %v2776_v10 = vrot.slane %v2437_v63, 1  ;;  %v1367_v11 = vld [vmem:[%s6677_s4 + $0x349] sm:$0x1]  ;;  %v1368_v12 = vld [vmem:[%s6677_s4 + $0x351] sm:$0x1] }
  0xc8   : > { %v1697_v13 = vsel %vm995_vm5, %v1696_v51, %v1695_v7  ;;  %v2767_v14 = vsel %vm983_vm1, %v2766_v1, %v2765_v8  ;;  %v1369_v15 = vld [vmem:[%s6677_s4 + $0x359] sm:$0x1]  ;;  %v1370_v16 = vld [vmem:[%s6677_s4 + $0x361] sm:$0x1]  ;;  %v1371_v17 = vld [vmem:[%s6677_s4 + $0x369] sm:$0x1] }
  0xc9   : > { %v1699_v18 = vsel %vm998_vm6, %v1698_v52, %v1697_v13  ;;  %v2769_v19 = vsel %vm986_vm2, %v2768_v3, %v2767_v14  ;;  %v1372_v20 = vld [vmem:[%s6677_s4 + $0x371] sm:$0x1]  ;;  %v1373_v21 = vld [vmem:[%s6677_s4 + $0x379] sm:$0x1]  ;;  %v1700_v22 = vrot.slane %v1367_v11, 7  ;;  %v1702_v23 = vrot.slane %v1368_v12, 6 }
  0xca   : > { %1770 = vxpose.xlu0.b32.cont [13/16] (narrow) %v1699_v18, 32  ;;  %v2771_v24 = vsel %vm989_vm3, %v2770_v4, %v2769_v19  ;;  %v1704_v25 = vrot.slane %v1369_v15, 5  ;;  %v1706_v26 = vrot.slane %v1370_v16, 4  ;;  %v1708_v27 = vrot.slane %v1371_v17, 3  ;;  %v2438_v28 = vld [vmem:[%s6677_s4 + $0x383] sm:$0x1] }
  0xcb   : > { %v2773_v29 = vsel %vm992_vm4, %v2772_v5, %v2771_v24  ;;  %v1701_v30 = vsel %vm980_vm0, %v1700_v22, %v1366_v6  ;;  %v1710_v31 = vrot.slane %v1372_v20, 2  ;;  %v1712_v32 = vrot.slane %v1373_v21, 1  ;;  %v2439_v33 = vld [vmem:[%s6677_s4 + $0x38b] sm:$0x1]  ;;  %v2440_v34 = vld [vmem:[%s6677_s4 + $0x393] sm:$0x1] }
  0xcc   : > { %v2775_v35 = vsel %vm995_vm5, %v2774_v9, %v2773_v29  ;;  %v1703_v36 = vsel %vm983_vm1, %v1702_v23, %v1701_v30  ;;  %v2441_v37 = vld [vmem:[%s6677_s4 + $0x39b] sm:$0x1]  ;;  %v2442_v38 = vld [vmem:[%s6677_s4 + $0x3a3] sm:$0x1]  ;;  %v2443_v39 = vld [vmem:[%s6677_s4 + $0x3ab] sm:$0x1] }
  0xcd   : > { %v2777_v40 = vsel %vm998_vm6, %v2776_v10, %v2775_v35  ;;  %v1705_v41 = vsel %vm986_vm2, %v1704_v25, %v1703_v36  ;;  %v2444_v42 = vld [vmem:[%s6677_s4 + $0x3b3] sm:$0x1]  ;;  %v2445_v43 = vld [vmem:[%s6677_s4 + $0x3bb] sm:$0x1]  ;;  %v2778_v44 = vrot.slane %v2439_v33, 7  ;;  %v2780_v45 = vrot.slane %v2440_v34, 6 }
  0xce   : > { %2835 = vxpose.xlu1.b32.cont [14/16] (narrow) %v2777_v40, 32  ;;  %v1707_v46 = vsel %vm989_vm3, %v1706_v26, %v1705_v41  ;;  %v2782_v47 = vrot.slane %v2441_v37, 5  ;;  %v2784_v48 = vrot.slane %v2442_v38, 4  ;;  %v2786_v49 = vrot.slane %v2443_v39, 3  ;;  %v1374_v50 = vld [vmem:[%s6677_s4 + $0x381] sm:$0x1] }
  0xcf   : > { %v1709_v51 = vsel %vm992_vm4, %v1708_v27, %v1707_v46  ;;  %v2779_v52 = vsel %vm980_vm0, %v2778_v44, %v2438_v28  ;;  %v2788_v53 = vrot.slane %v2444_v42, 2  ;;  %v2790_v54 = vrot.slane %v2445_v43, 1  ;;  %v1375_v55 = vld [vmem:[%s6677_s4 + $0x389] sm:$0x1]  ;;  %v1376_v56 = vld [vmem:[%s6677_s4 + $0x391] sm:$0x1] }
  0xd0   : > { %v1711_v57 = vsel %vm995_vm5, %v1710_v31, %v1709_v51  ;;  %v2781_v58 = vsel %vm983_vm1, %v2780_v45, %v2779_v52  ;;  %v1377_v59 = vld [vmem:[%s6677_s4 + $0x399] sm:$0x1]  ;;  %v1378_v60 = vld [vmem:[%s6677_s4 + $0x3a1] sm:$0x1]  ;;  %v1379_v61 = vld [vmem:[%s6677_s4 + $0x3a9] sm:$0x1] }
  0xd1   : > { %v1713_v62 = vsel %vm998_vm6, %v1712_v32, %v1711_v57  ;;  %v2783_v63 = vsel %vm986_vm2, %v2782_v47, %v2781_v58  ;;  %v1380_v0 = vld [vmem:[%s6677_s4 + $0x3b1] sm:$0x1]  ;;  %v1381_v1 = vld [vmem:[%s6677_s4 + $0x3b9] sm:$0x1]  ;;  %v1714_v2 = vrot.slane %v1375_v55, 7  ;;  %v1716_v3 = vrot.slane %v1376_v56, 6 }
  0xd2   : > { %1771 = vxpose.xlu0.b32.cont [14/16] (narrow) %v1713_v62, 32  ;;  %v2785_v4 = vsel %vm989_vm3, %v2784_v48, %v2783_v63  ;;  %v1718_v5 = vrot.slane %v1377_v59, 5  ;;  %v1720_v6 = vrot.slane %v1378_v60, 4  ;;  %v1722_v7 = vrot.slane %v1379_v61, 3  ;;  %v2446_v8 = vld [vmem:[%s6677_s4 + $0x3c3] sm:$0x1] }
  0xd3   : > { %v2787_v9 = vsel %vm992_vm4, %v2786_v49, %v2785_v4  ;;  %v1715_v10 = vsel %vm980_vm0, %v1714_v2, %v1374_v50  ;;  %v1724_v11 = vrot.slane %v1380_v0, 2  ;;  %v1726_v12 = vrot.slane %v1381_v1, 1  ;;  %v2447_v13 = vld [vmem:[%s6677_s4 + $0x3cb] sm:$0x1]  ;;  %v2448_v14 = vld [vmem:[%s6677_s4 + $0x3d3] sm:$0x1] }
  0xd4   : > { %v2789_v15 = vsel %vm995_vm5, %v2788_v53, %v2787_v9  ;;  %v1717_v16 = vsel %vm983_vm1, %v1716_v3, %v1715_v10  ;;  %v2449_v17 = vld [vmem:[%s6677_s4 + $0x3db] sm:$0x1]  ;;  %v2450_v18 = vld [vmem:[%s6677_s4 + $0x3e3] sm:$0x1]  ;;  %v2451_v19 = vld [vmem:[%s6677_s4 + $0x3eb] sm:$0x1] }
  0xd5   : > { %v2791_v20 = vsel %vm998_vm6, %v2790_v54, %v2789_v15  ;;  %v1719_v21 = vsel %vm986_vm2, %v1718_v5, %v1717_v16  ;;  %v2452_v22 = vld [vmem:[%s6677_s4 + $0x3f3] sm:$0x1]  ;;  %v2453_v23 = vld [vmem:[%s6677_s4 + $0x3fb] sm:$0x1]  ;;  %v2792_v24 = vrot.slane %v2447_v13, 7  ;;  %v2794_v25 = vrot.slane %v2448_v14, 6 }
  0xd6   : > { %2836 = vxpose.xlu1.b32.cont [15/16] (narrow) %v2791_v20, 32  ;;  %v1721_v26 = vsel %vm989_vm3, %v1720_v6, %v1719_v21  ;;  %v2796_v27 = vrot.slane %v2449_v17, 5  ;;  %v2798_v28 = vrot.slane %v2450_v18, 4  ;;  %v2800_v29 = vrot.slane %v2451_v19, 3  ;;  %v1382_v30 = vld [vmem:[%s6677_s4 + $0x3c1] sm:$0x1] }
  0xd7   : > { %v1723_v31 = vsel %vm992_vm4, %v1722_v7, %v1721_v26  ;;  %v2793_v32 = vsel %vm980_vm0, %v2792_v24, %v2446_v8  ;;  %v2802_v33 = vrot.slane %v2452_v22, 2  ;;  %v2804_v34 = vrot.slane %v2453_v23, 1  ;;  %v1383_v35 = vld [vmem:[%s6677_s4 + $0x3c9] sm:$0x1]  ;;  %v1384_v36 = vld [vmem:[%s6677_s4 + $0x3d1] sm:$0x1] }
  0xd8   : > { %v1725_v37 = vsel %vm995_vm5, %v1724_v11, %v1723_v31  ;;  %v2795_v38 = vsel %vm983_vm1, %v2794_v25, %v2793_v32  ;;  %v1385_v39 = vld [vmem:[%s6677_s4 + $0x3d9] sm:$0x1]  ;;  %v1386_v40 = vld [vmem:[%s6677_s4 + $0x3e1] sm:$0x1]  ;;  %v1387_v41 = vld [vmem:[%s6677_s4 + $0x3e9] sm:$0x1] }
  0xd9   : > { %v1727_v42 = vsel %vm998_vm6, %v1726_v12, %v1725_v37  ;;  %v2797_v43 = vsel %vm986_vm2, %v2796_v27, %v2795_v38  ;;  %v1388_v44 = vld [vmem:[%s6677_s4 + $0x3f1] sm:$0x1]  ;;  %v1389_v45 = vld [vmem:[%s6677_s4 + $0x3f9] sm:$0x1]  ;;  %v1728_v46 = vrot.slane %v1383_v35, 7  ;;  %v1730_v47 = vrot.slane %v1384_v36, 6 }
  0xda   : > { %1772 = vxpose.xlu0.b32.cont [15/16] (narrow) %v1727_v42, 32  ;;  %v2799_v48 = vsel %vm989_vm3, %v2798_v28, %v2797_v43  ;;  %v1732_v49 = vrot.slane %v1385_v39, 5  ;;  %v1734_v50 = vrot.slane %v1386_v40, 4  ;;  %v1736_v51 = vrot.slane %v1387_v41, 3  ;;  %v1794_v52 = vld [vmem:[%s6677_s4 + $0x2] sm:$0x1] }
  0xdb   : > { %v2801_v53 = vsel %vm992_vm4, %v2800_v29, %v2799_v48  ;;  %v1729_v54 = vsel %vm980_vm0, %v1728_v46, %v1382_v30  ;;  %v1738_v55 = vrot.slane %v1388_v44, 2  ;;  %v1740_v56 = vrot.slane %v1389_v45, 1  ;;  %v1795_v57 = vld [vmem:[%s6677_s4 + $0xa] sm:$0x1]  ;;  %v1796_v58 = vld [vmem:[%s6677_s4 + $0x12] sm:$0x1] }
  0xdc   : > { %v2803_v59 = vsel %vm995_vm5, %v2802_v33, %v2801_v53  ;;  %v1731_v60 = vsel %vm983_vm1, %v1730_v47, %v1729_v54  ;;  %v1797_v61 = vld [vmem:[%s6677_s4 + $0x1a] sm:$0x1]  ;;  %v1798_v62 = vld [vmem:[%s6677_s4 + $0x22] sm:$0x1]  ;;  %v1799_v63 = vld [vmem:[%s6677_s4 + $0x2a] sm:$0x1] }
  0xdd   : > { %v2805_v0 = vsel %vm998_vm6, %v2804_v34, %v2803_v59  ;;  %v1733_v1 = vsel %vm986_vm2, %v1732_v49, %v1731_v60  ;;  %v1800_v2 = vld [vmem:[%s6677_s4 + $0x32] sm:$0x1]  ;;  %v1801_v3 = vld [vmem:[%s6677_s4 + $0x3a] sm:$0x1]  ;;  %v2050_v4 = vrot.slane %v1795_v57, 7  ;;  %v2052_v5 = vrot.slane %v1796_v58, 6 }
  0xde   : > { %2837 = vxpose.xlu1.b32.end [16/16] (narrow) %v2805_v0, 32  ;;  %v1735_v6 = vsel %vm989_vm3, %v1734_v50, %v1733_v1  ;;  %v2054_v7 = vrot.slane %v1797_v61, 5  ;;  %v2056_v8 = vrot.slane %v1798_v62, 4  ;;  %v2058_v9 = vrot.slane %v1799_v63, 3  ;;  %v723_v10 = vld [vmem:[%s6677_s4] sm:$0x1] }
  0xdf   : > { %v1737_v11 = vsel %vm992_vm4, %v1736_v51, %v1735_v6  ;;  %v2051_v12 = vsel %vm980_vm0, %v2050_v4, %v1794_v52  ;;  %v2060_v13 = vrot.slane %v1800_v2, 2  ;;  %v2062_v14 = vrot.slane %v1801_v3, 1  ;;  %v724_v15 = vld [vmem:[%s6677_s4 + $0x8] sm:$0x1]  ;;  %v725_v16 = vld [vmem:[%s6677_s4 + $0x10] sm:$0x1] }
  0xe0   : > { %v1739_v17 = vsel %vm995_vm5, %v1738_v55, %v1737_v11  ;;  %v2053_v18 = vsel %vm983_vm1, %v2052_v5, %v2051_v12  ;;  %v726_v19 = vld [vmem:[%s6677_s4 + $0x18] sm:$0x1]  ;;  %v727_v20 = vld [vmem:[%s6677_s4 + $0x20] sm:$0x1]  ;;  %v728_v21 = vld [vmem:[%s6677_s4 + $0x28] sm:$0x1] }
  0xe1   : > { %v1741_v22 = vsel %vm998_vm6, %v1740_v56, %v1739_v17  ;;  %v2055_v23 = vsel %vm986_vm2, %v2054_v7, %v2053_v18  ;;  %v729_v24 = vld [vmem:[%s6677_s4 + $0x30] sm:$0x1]  ;;  %v730_v25 = vld [vmem:[%s6677_s4 + $0x38] sm:$0x1]  ;;  %v979_v26 = vrot.slane %v724_v15, 7  ;;  %v982_v27 = vrot.slane %v725_v16, 6 }
  0xe2   : > { %1773 = vxpose.xlu0.b32.end [16/16] (narrow) %v1741_v22, 32  ;;  %v2057_v28 = vsel %vm989_vm3, %v2056_v8, %v2055_v23  ;;  %v985_v29 = vrot.slane %v726_v19, 5  ;;  %v988_v30 = vrot.slane %v727_v20, 4  ;;  %v991_v31 = vrot.slane %v728_v21, 3  ;;  %v1802_v32 = vld [vmem:[%s6677_s4 + $0x42] sm:$0x1] }
  0xe3   : > { %v2059_v33 = vsel %vm992_vm4, %v2058_v9, %v2057_v28  ;;  %v981_v34 = vsel %vm980_vm0, %v979_v26, %v723_v10  ;;  %v994_v35 = vrot.slane %v729_v24, 2  ;;  %v997_v36 = vrot.slane %v730_v25, 1  ;;  %v1803_v37 = vld [vmem:[%s6677_s4 + $0x4a] sm:$0x1]  ;;  %v1804_v38 = vld [vmem:[%s6677_s4 + $0x52] sm:$0x1] }
  0xe4   : > { %v2061_v39 = vsel %vm995_vm5, %v2060_v13, %v2059_v33  ;;  %v984_v40 = vsel %vm983_vm1, %v982_v27, %v981_v34  ;;  %v1805_v41 = vld [vmem:[%s6677_s4 + $0x5a] sm:$0x1]  ;;  %v1806_v42 = vld [vmem:[%s6677_s4 + $0x62] sm:$0x1]  ;;  %v1807_v43 = vld [vmem:[%s6677_s4 + $0x6a] sm:$0x1] }
  0xe5   : > { %v2063_v44 = vsel %vm998_vm6, %v2062_v14, %v2061_v39  ;;  %v987_v45 = vsel %vm986_vm2, %v985_v29, %v984_v40  ;;  %v1808_v46 = vld [vmem:[%s6677_s4 + $0x72] sm:$0x1]  ;;  %v1809_v47 = vld [vmem:[%s6677_s4 + $0x7a] sm:$0x1]  ;;  %v2064_v48 = vrot.slane %v1803_v37, 7  ;;  %v2066_v49 = vrot.slane %v1804_v38, 6 }
  0xe6   : > { %2290 = vxpose.xlu1.b32.start [1/16] (narrow) %v2063_v44, 32  ;;  %v990_v50 = vsel %vm989_vm3, %v988_v30, %v987_v45  ;;  %v2068_v51 = vrot.slane %v1805_v41, 5  ;;  %v2070_v52 = vrot.slane %v1806_v42, 4  ;;  %v2072_v53 = vrot.slane %v1807_v43, 3  ;;  %v731_v54 = vld [vmem:[%s6677_s4 + $0x40] sm:$0x1] }
  0xe7   : > { %v993_v55 = vsel %vm992_vm4, %v991_v31, %v990_v50  ;;  %v2065_v56 = vsel %vm980_vm0, %v2064_v48, %v1802_v32  ;;  %v2074_v57 = vrot.slane %v1808_v46, 2  ;;  %v2076_v58 = vrot.slane %v1809_v47, 1  ;;  %v732_v59 = vld [vmem:[%s6677_s4 + $0x48] sm:$0x1]  ;;  %v733_v60 = vld [vmem:[%s6677_s4 + $0x50] sm:$0x1] }
  0xe8   : > { %v996_v61 = vsel %vm995_vm5, %v994_v35, %v993_v55  ;;  %v2067_v62 = vsel %vm983_vm1, %v2066_v49, %v2065_v56  ;;  %v734_v63 = vld [vmem:[%s6677_s4 + $0x58] sm:$0x1]  ;;  %v735_v0 = vld [vmem:[%s6677_s4 + $0x60] sm:$0x1]  ;;  %v736_v1 = vld [vmem:[%s6677_s4 + $0x68] sm:$0x1] }
  0xe9   : > { %v999_v2 = vsel %vm998_vm6, %v997_v36, %v996_v61  ;;  %v2069_v3 = vsel %vm986_vm2, %v2068_v51, %v2067_v62  ;;  %v737_v4 = vld [vmem:[%s6677_s4 + $0x70] sm:$0x1]  ;;  %v738_v5 = vld [vmem:[%s6677_s4 + $0x78] sm:$0x1]  ;;  %v1000_v6 = vrot.slane %v732_v59, 7  ;;  %v1002_v7 = vrot.slane %v733_v60, 6 }
  0xea   : > { %1226 = vxpose.xlu0.b32.start [1/16] (narrow) %v999_v2, 32  ;;  %v2071_v8 = vsel %vm989_vm3, %v2070_v52, %v2069_v3  ;;  %v1004_v9 = vrot.slane %v734_v63, 5  ;;  %v1006_v10 = vrot.slane %v735_v0, 4  ;;  %v1008_v11 = vrot.slane %v736_v1, 3  ;;  %v1810_v12 = vld [vmem:[%s6677_s4 + $0x82] sm:$0x1] }
  0xeb   : > { %v2073_v13 = vsel %vm992_vm4, %v2072_v53, %v2071_v8  ;;  %v1001_v14 = vsel %vm980_vm0, %v1000_v6, %v731_v54  ;;  %v1010_v15 = vrot.slane %v737_v4, 2  ;;  %v1012_v16 = vrot.slane %v738_v5, 1  ;;  %v1811_v17 = vld [vmem:[%s6677_s4 + $0x8a] sm:$0x1]  ;;  %v1812_v18 = vld [vmem:[%s6677_s4 + $0x92] sm:$0x1] }
  0xec   : > { %v2075_v19 = vsel %vm995_vm5, %v2074_v57, %v2073_v13  ;;  %v1003_v20 = vsel %vm983_vm1, %v1002_v7, %v1001_v14  ;;  %v1813_v21 = vld [vmem:[%s6677_s4 + $0x9a] sm:$0x1]  ;;  %v1814_v22 = vld [vmem:[%s6677_s4 + $0xa2] sm:$0x1]  ;;  %v1815_v23 = vld [vmem:[%s6677_s4 + $0xaa] sm:$0x1] }
  0xed   : > { %v2077_v24 = vsel %vm998_vm6, %v2076_v58, %v2075_v19  ;;  %v1005_v25 = vsel %vm986_vm2, %v1004_v9, %v1003_v20  ;;  %v1816_v26 = vld [vmem:[%s6677_s4 + $0xb2] sm:$0x1]  ;;  %v1817_v27 = vld [vmem:[%s6677_s4 + $0xba] sm:$0x1]  ;;  %v2078_v28 = vrot.slane %v1811_v17, 7  ;;  %v2080_v29 = vrot.slane %v1812_v18, 6 }
  0xee   : > { %2291 = vxpose.xlu1.b32.cont [2/16] (narrow) %v2077_v24, 32  ;;  %v1007_v30 = vsel %vm989_vm3, %v1006_v10, %v1005_v25  ;;  %v2082_v31 = vrot.slane %v1813_v21, 5  ;;  %v2084_v32 = vrot.slane %v1814_v22, 4  ;;  %v2086_v33 = vrot.slane %v1815_v23, 3  ;;  %v739_v34 = vld [vmem:[%s6677_s4 + $0x80] sm:$0x1] }
  0xef   : > { %v1009_v35 = vsel %vm992_vm4, %v1008_v11, %v1007_v30  ;;  %v2079_v36 = vsel %vm980_vm0, %v2078_v28, %v1810_v12  ;;  %v2088_v37 = vrot.slane %v1816_v26, 2  ;;  %v2090_v38 = vrot.slane %v1817_v27, 1  ;;  %v740_v39 = vld [vmem:[%s6677_s4 + $0x88] sm:$0x1]  ;;  %v741_v40 = vld [vmem:[%s6677_s4 + $0x90] sm:$0x1] }
  0xf0   : > { %v1011_v41 = vsel %vm995_vm5, %v1010_v15, %v1009_v35  ;;  %v2081_v42 = vsel %vm983_vm1, %v2080_v29, %v2079_v36  ;;  %v742_v43 = vld [vmem:[%s6677_s4 + $0x98] sm:$0x1]  ;;  %v743_v44 = vld [vmem:[%s6677_s4 + $0xa0] sm:$0x1]  ;;  %v744_v45 = vld [vmem:[%s6677_s4 + $0xa8] sm:$0x1] }
  0xf1   : > { %v1013_v46 = vsel %vm998_vm6, %v1012_v16, %v1011_v41  ;;  %v2083_v47 = vsel %vm986_vm2, %v2082_v31, %v2081_v42  ;;  %v745_v48 = vld [vmem:[%s6677_s4 + $0xb0] sm:$0x1]  ;;  %v746_v49 = vld [vmem:[%s6677_s4 + $0xb8] sm:$0x1]  ;;  %v1014_v50 = vrot.slane %v740_v39, 7  ;;  %v1016_v51 = vrot.slane %v741_v40, 6 }
  0xf2   : > { %1227 = vxpose.xlu0.b32.cont [2/16] (narrow) %v1013_v46, 32  ;;  %v2085_v52 = vsel %vm989_vm3, %v2084_v32, %v2083_v47  ;;  %v1018_v53 = vrot.slane %v742_v43, 5  ;;  %v1020_v54 = vrot.slane %v743_v44, 4  ;;  %v1022_v55 = vrot.slane %v744_v45, 3  ;;  %v1818_v56 = vld [vmem:[%s6677_s4 + $0xc2] sm:$0x1] }
  0xf3   : > { %v2087_v57 = vsel %vm992_vm4, %v2086_v33, %v2085_v52  ;;  %v1015_v58 = vsel %vm980_vm0, %v1014_v50, %v739_v34  ;;  %v1024_v59 = vrot.slane %v745_v48, 2  ;;  %v1026_v60 = vrot.slane %v746_v49, 1  ;;  %v1819_v61 = vld [vmem:[%s6677_s4 + $0xca] sm:$0x1]  ;;  %v1820_v62 = vld [vmem:[%s6677_s4 + $0xd2] sm:$0x1] }
  0xf4   : > { %v2089_v63 = vsel %vm995_vm5, %v2088_v37, %v2087_v57  ;;  %v1017_v0 = vsel %vm983_vm1, %v1016_v51, %v1015_v58  ;;  %v1821_v1 = vld [vmem:[%s6677_s4 + $0xda] sm:$0x1]  ;;  %v1822_v2 = vld [vmem:[%s6677_s4 + $0xe2] sm:$0x1]  ;;  %v1823_v3 = vld [vmem:[%s6677_s4 + $0xea] sm:$0x1] }
  0xf5   : > { %v2091_v4 = vsel %vm998_vm6, %v2090_v38, %v2089_v63  ;;  %v1019_v5 = vsel %vm986_vm2, %v1018_v53, %v1017_v0  ;;  %v1824_v6 = vld [vmem:[%s6677_s4 + $0xf2] sm:$0x1]  ;;  %v1825_v7 = vld [vmem:[%s6677_s4 + $0xfa] sm:$0x1]  ;;  %v2092_v8 = vrot.slane %v1819_v61, 7  ;;  %v2094_v9 = vrot.slane %v1820_v62, 6 }
  0xf6   : > { %2292 = vxpose.xlu1.b32.cont [3/16] (narrow) %v2091_v4, 32  ;;  %v1021_v10 = vsel %vm989_vm3, %v1020_v54, %v1019_v5  ;;  %v2096_v11 = vrot.slane %v1821_v1, 5  ;;  %v2098_v12 = vrot.slane %v1822_v2, 4  ;;  %v2100_v13 = vrot.slane %v1823_v3, 3  ;;  %v747_v14 = vld [vmem:[%s6677_s4 + $0xc0] sm:$0x1] }
  0xf7   : > { %v1023_v15 = vsel %vm992_vm4, %v1022_v55, %v1021_v10  ;;  %v2093_v16 = vsel %vm980_vm0, %v2092_v8, %v1818_v56  ;;  %v2102_v17 = vrot.slane %v1824_v6, 2  ;;  %v2104_v18 = vrot.slane %v1825_v7, 1  ;;  %v748_v19 = vld [vmem:[%s6677_s4 + $0xc8] sm:$0x1]  ;;  %v749_v20 = vld [vmem:[%s6677_s4 + $0xd0] sm:$0x1] }
  0xf8   : > { %v1025_v21 = vsel %vm995_vm5, %v1024_v59, %v1023_v15  ;;  %v2095_v22 = vsel %vm983_vm1, %v2094_v9, %v2093_v16  ;;  %v750_v23 = vld [vmem:[%s6677_s4 + $0xd8] sm:$0x1]  ;;  %v751_v24 = vld [vmem:[%s6677_s4 + $0xe0] sm:$0x1]  ;;  %v752_v25 = vld [vmem:[%s6677_s4 + $0xe8] sm:$0x1] }
  0xf9   : > { %v1027_v26 = vsel %vm998_vm6, %v1026_v60, %v1025_v21  ;;  %v2097_v27 = vsel %vm986_vm2, %v2096_v11, %v2095_v22  ;;  %v753_v28 = vld [vmem:[%s6677_s4 + $0xf0] sm:$0x1]  ;;  %v754_v29 = vld [vmem:[%s6677_s4 + $0xf8] sm:$0x1]  ;;  %v1028_v30 = vrot.slane %v748_v19, 7  ;;  %v1030_v31 = vrot.slane %v749_v20, 6 }
  0xfa   : > { %1228 = vxpose.xlu0.b32.cont [3/16] (narrow) %v1027_v26, 32  ;;  %v2099_v32 = vsel %vm989_vm3, %v2098_v12, %v2097_v27  ;;  %v1032_v33 = vrot.slane %v750_v23, 5  ;;  %v1034_v34 = vrot.slane %v751_v24, 4  ;;  %v1036_v35 = vrot.slane %v752_v25, 3  ;;  %v1826_v36 = vld [vmem:[%s6677_s4 + $0x102] sm:$0x1] }
  0xfb   : > { %v2101_v37 = vsel %vm992_vm4, %v2100_v13, %v2099_v32  ;;  %v1029_v38 = vsel %vm980_vm0, %v1028_v30, %v747_v14  ;;  %v1038_v39 = vrot.slane %v753_v28, 2  ;;  %v1040_v40 = vrot.slane %v754_v29, 1  ;;  %v1827_v41 = vld [vmem:[%s6677_s4 + $0x10a] sm:$0x1]  ;;  %v1828_v42 = vld [vmem:[%s6677_s4 + $0x112] sm:$0x1] }
  0xfc   : > { %v2103_v43 = vsel %vm995_vm5, %v2102_v17, %v2101_v37  ;;  %v1031_v44 = vsel %vm983_vm1, %v1030_v31, %v1029_v38  ;;  %v1829_v45 = vld [vmem:[%s6677_s4 + $0x11a] sm:$0x1]  ;;  %v1830_v46 = vld [vmem:[%s6677_s4 + $0x122] sm:$0x1]  ;;  %v1831_v47 = vld [vmem:[%s6677_s4 + $0x12a] sm:$0x1] }
  0xfd   : > { %v2105_v48 = vsel %vm998_vm6, %v2104_v18, %v2103_v43  ;;  %v1033_v49 = vsel %vm986_vm2, %v1032_v33, %v1031_v44  ;;  %v1832_v50 = vld [vmem:[%s6677_s4 + $0x132] sm:$0x1]  ;;  %v1833_v51 = vld [vmem:[%s6677_s4 + $0x13a] sm:$0x1]  ;;  %v2106_v52 = vrot.slane %v1827_v41, 7  ;;  %v2108_v53 = vrot.slane %v1828_v42, 6 }
  0xfe   : > { %2293 = vxpose.xlu1.b32.cont [4/16] (narrow) %v2105_v48, 32  ;;  %v1035_v54 = vsel %vm989_vm3, %v1034_v34, %v1033_v49  ;;  %v2110_v55 = vrot.slane %v1829_v45, 5  ;;  %v2112_v56 = vrot.slane %v1830_v46, 4  ;;  %v2114_v57 = vrot.slane %v1831_v47, 3  ;;  %v755_v58 = vld [vmem:[%s6677_s4 + $0x100] sm:$0x1] }
  0xff   : > { %v1037_v59 = vsel %vm992_vm4, %v1036_v35, %v1035_v54  ;;  %v2107_v60 = vsel %vm980_vm0, %v2106_v52, %v1826_v36  ;;  %v2116_v61 = vrot.slane %v1832_v50, 2  ;;  %v2118_v62 = vrot.slane %v1833_v51, 1  ;;  %v756_v63 = vld [vmem:[%s6677_s4 + $0x108] sm:$0x1]  ;;  %v757_v0 = vld [vmem:[%s6677_s4 + $0x110] sm:$0x1] }
 0x100   : > { %v1039_v1 = vsel %vm995_vm5, %v1038_v39, %v1037_v59  ;;  %v2109_v2 = vsel %vm983_vm1, %v2108_v53, %v2107_v60  ;;  %v758_v3 = vld [vmem:[%s6677_s4 + $0x118] sm:$0x1]  ;;  %v759_v4 = vld [vmem:[%s6677_s4 + $0x120] sm:$0x1]  ;;  %v760_v5 = vld [vmem:[%s6677_s4 + $0x128] sm:$0x1] }
 0x101   : > { %v1041_v6 = vsel %vm998_vm6, %v1040_v40, %v1039_v1  ;;  %v2111_v7 = vsel %vm986_vm2, %v2110_v55, %v2109_v2  ;;  %v761_v8 = vld [vmem:[%s6677_s4 + $0x130] sm:$0x1]  ;;  %v762_v9 = vld [vmem:[%s6677_s4 + $0x138] sm:$0x1]  ;;  %v1042_v10 = vrot.slane %v756_v63, 7  ;;  %v1044_v11 = vrot.slane %v757_v0, 6 }
 0x102   : > { %1229 = vxpose.xlu0.b32.cont [4/16] (narrow) %v1041_v6, 32  ;;  %v2113_v12 = vsel %vm989_vm3, %v2112_v56, %v2111_v7  ;;  %v1046_v13 = vrot.slane %v758_v3, 5  ;;  %v1048_v14 = vrot.slane %v759_v4, 4  ;;  %v1050_v15 = vrot.slane %v760_v5, 3  ;;  %v1834_v16 = vld [vmem:[%s6677_s4 + $0x142] sm:$0x1] }
 0x103   : > { %v2115_v17 = vsel %vm992_vm4, %v2114_v57, %v2113_v12  ;;  %v1043_v18 = vsel %vm980_vm0, %v1042_v10, %v755_v58  ;;  %v1052_v19 = vrot.slane %v761_v8, 2  ;;  %v1054_v20 = vrot.slane %v762_v9, 1  ;;  %v1835_v21 = vld [vmem:[%s6677_s4 + $0x14a] sm:$0x1]  ;;  %v1836_v22 = vld [vmem:[%s6677_s4 + $0x152] sm:$0x1] }
 0x104   : > { %v2117_v23 = vsel %vm995_vm5, %v2116_v61, %v2115_v17  ;;  %v1045_v24 = vsel %vm983_vm1, %v1044_v11, %v1043_v18  ;;  %v1837_v25 = vld [vmem:[%s6677_s4 + $0x15a] sm:$0x1]  ;;  %v1838_v26 = vld [vmem:[%s6677_s4 + $0x162] sm:$0x1]  ;;  %v1839_v27 = vld [vmem:[%s6677_s4 + $0x16a] sm:$0x1] }
 0x105   : > { %v2119_v28 = vsel %vm998_vm6, %v2118_v62, %v2117_v23  ;;  %v1047_v29 = vsel %vm986_vm2, %v1046_v13, %v1045_v24  ;;  %v1840_v30 = vld [vmem:[%s6677_s4 + $0x172] sm:$0x1]  ;;  %v1841_v31 = vld [vmem:[%s6677_s4 + $0x17a] sm:$0x1]  ;;  %v2120_v32 = vrot.slane %v1835_v21, 7  ;;  %v2122_v33 = vrot.slane %v1836_v22, 6 }
 0x106   : > { %2294 = vxpose.xlu1.b32.cont [5/16] (narrow) %v2119_v28, 32  ;;  %v1049_v34 = vsel %vm989_vm3, %v1048_v14, %v1047_v29  ;;  %v2124_v35 = vrot.slane %v1837_v25, 5  ;;  %v2126_v36 = vrot.slane %v1838_v26, 4  ;;  %v2128_v37 = vrot.slane %v1839_v27, 3  ;;  %v763_v38 = vld [vmem:[%s6677_s4 + $0x140] sm:$0x1] }
 0x107   : > { %v1051_v39 = vsel %vm992_vm4, %v1050_v15, %v1049_v34  ;;  %v2121_v40 = vsel %vm980_vm0, %v2120_v32, %v1834_v16  ;;  %v2130_v41 = vrot.slane %v1840_v30, 2  ;;  %v2132_v42 = vrot.slane %v1841_v31, 1  ;;  %v764_v43 = vld [vmem:[%s6677_s4 + $0x148] sm:$0x1]  ;;  %v765_v44 = vld [vmem:[%s6677_s4 + $0x150] sm:$0x1] }
 0x108   : > { %v1053_v45 = vsel %vm995_vm5, %v1052_v19, %v1051_v39  ;;  %v2123_v46 = vsel %vm983_vm1, %v2122_v33, %v2121_v40  ;;  %v766_v47 = vld [vmem:[%s6677_s4 + $0x158] sm:$0x1]  ;;  %v767_v48 = vld [vmem:[%s6677_s4 + $0x160] sm:$0x1]  ;;  %v768_v49 = vld [vmem:[%s6677_s4 + $0x168] sm:$0x1] }
 0x109   : > { %v1055_v50 = vsel %vm998_vm6, %v1054_v20, %v1053_v45  ;;  %v2125_v51 = vsel %vm986_vm2, %v2124_v35, %v2123_v46  ;;  %v769_v52 = vld [vmem:[%s6677_s4 + $0x170] sm:$0x1]  ;;  %v770_v53 = vld [vmem:[%s6677_s4 + $0x178] sm:$0x1]  ;;  %v1056_v54 = vrot.slane %v764_v43, 7  ;;  %v1058_v55 = vrot.slane %v765_v44, 6 }
 0x10a   : > { %1230 = vxpose.xlu0.b32.cont [5/16] (narrow) %v1055_v50, 32  ;;  %v2127_v56 = vsel %vm989_vm3, %v2126_v36, %v2125_v51  ;;  %v1060_v57 = vrot.slane %v766_v47, 5  ;;  %v1062_v58 = vrot.slane %v767_v48, 4  ;;  %v1064_v59 = vrot.slane %v768_v49, 3  ;;  %v1842_v60 = vld [vmem:[%s6677_s4 + $0x182] sm:$0x1] }
 0x10b   : > { %v2129_v61 = vsel %vm992_vm4, %v2128_v37, %v2127_v56  ;;  %v1057_v62 = vsel %vm980_vm0, %v1056_v54, %v763_v38  ;;  %v1066_v63 = vrot.slane %v769_v52, 2  ;;  %v1068_v0 = vrot.slane %v770_v53, 1  ;;  %v1843_v1 = vld [vmem:[%s6677_s4 + $0x18a] sm:$0x1]  ;;  %v1844_v2 = vld [vmem:[%s6677_s4 + $0x192] sm:$0x1] }
 0x10c   : > { %v2131_v3 = vsel %vm995_vm5, %v2130_v41, %v2129_v61  ;;  %v1059_v4 = vsel %vm983_vm1, %v1058_v55, %v1057_v62  ;;  %v1845_v5 = vld [vmem:[%s6677_s4 + $0x19a] sm:$0x1]  ;;  %v1846_v6 = vld [vmem:[%s6677_s4 + $0x1a2] sm:$0x1]  ;;  %v1847_v7 = vld [vmem:[%s6677_s4 + $0x1aa] sm:$0x1] }
 0x10d   : > { %v2133_v8 = vsel %vm998_vm6, %v2132_v42, %v2131_v3  ;;  %v1061_v9 = vsel %vm986_vm2, %v1060_v57, %v1059_v4  ;;  %v1848_v10 = vld [vmem:[%s6677_s4 + $0x1b2] sm:$0x1]  ;;  %v1849_v11 = vld [vmem:[%s6677_s4 + $0x1ba] sm:$0x1]  ;;  %v2134_v12 = vrot.slane %v1843_v1, 7  ;;  %v2136_v13 = vrot.slane %v1844_v2, 6 }
 0x10e   : > { %2295 = vxpose.xlu1.b32.cont [6/16] (narrow) %v2133_v8, 32  ;;  %v1063_v14 = vsel %vm989_vm3, %v1062_v58, %v1061_v9  ;;  %v2138_v15 = vrot.slane %v1845_v5, 5  ;;  %v2140_v16 = vrot.slane %v1846_v6, 4  ;;  %v2142_v17 = vrot.slane %v1847_v7, 3  ;;  %v771_v18 = vld [vmem:[%s6677_s4 + $0x180] sm:$0x1] }
 0x10f   : > { %v1065_v19 = vsel %vm992_vm4, %v1064_v59, %v1063_v14  ;;  %v2135_v20 = vsel %vm980_vm0, %v2134_v12, %v1842_v60  ;;  %v2144_v21 = vrot.slane %v1848_v10, 2  ;;  %v2146_v22 = vrot.slane %v1849_v11, 1  ;;  %v772_v23 = vld [vmem:[%s6677_s4 + $0x188] sm:$0x1]  ;;  %v773_v24 = vld [vmem:[%s6677_s4 + $0x190] sm:$0x1] }
 0x110   : > { %v1067_v25 = vsel %vm995_vm5, %v1066_v63, %v1065_v19  ;;  %v2137_v26 = vsel %vm983_vm1, %v2136_v13, %v2135_v20  ;;  %v774_v27 = vld [vmem:[%s6677_s4 + $0x198] sm:$0x1]  ;;  %v775_v28 = vld [vmem:[%s6677_s4 + $0x1a0] sm:$0x1]  ;;  %v776_v29 = vld [vmem:[%s6677_s4 + $0x1a8] sm:$0x1] }
 0x111   : > { %v1069_v30 = vsel %vm998_vm6, %v1068_v0, %v1067_v25  ;;  %v2139_v31 = vsel %vm986_vm2, %v2138_v15, %v2137_v26  ;;  %v777_v32 = vld [vmem:[%s6677_s4 + $0x1b0] sm:$0x1]  ;;  %v778_v33 = vld [vmem:[%s6677_s4 + $0x1b8] sm:$0x1]  ;;  %v1070_v34 = vrot.slane %v772_v23, 7  ;;  %v1072_v35 = vrot.slane %v773_v24, 6 }
 0x112   : > { %1231 = vxpose.xlu0.b32.cont [6/16] (narrow) %v1069_v30, 32  ;;  %v2141_v36 = vsel %vm989_vm3, %v2140_v16, %v2139_v31  ;;  %v1074_v37 = vrot.slane %v774_v27, 5  ;;  %v1076_v38 = vrot.slane %v775_v28, 4  ;;  %v1078_v39 = vrot.slane %v776_v29, 3  ;;  %v1850_v40 = vld [vmem:[%s6677_s4 + $0x1c2] sm:$0x1] }
 0x113   : > { %v2143_v41 = vsel %vm992_vm4, %v2142_v17, %v2141_v36  ;;  %v1071_v42 = vsel %vm980_vm0, %v1070_v34, %v771_v18  ;;  %v1080_v43 = vrot.slane %v777_v32, 2  ;;  %v1082_v44 = vrot.slane %v778_v33, 1  ;;  %v1851_v45 = vld [vmem:[%s6677_s4 + $0x1ca] sm:$0x1]  ;;  %v1852_v46 = vld [vmem:[%s6677_s4 + $0x1d2] sm:$0x1] }
 0x114   : > { %v2145_v47 = vsel %vm995_vm5, %v2144_v21, %v2143_v41  ;;  %v1073_v48 = vsel %vm983_vm1, %v1072_v35, %v1071_v42  ;;  %v1853_v49 = vld [vmem:[%s6677_s4 + $0x1da] sm:$0x1]  ;;  %v1854_v50 = vld [vmem:[%s6677_s4 + $0x1e2] sm:$0x1]  ;;  %v1855_v51 = vld [vmem:[%s6677_s4 + $0x1ea] sm:$0x1] }
 0x115   : > { %v2147_v52 = vsel %vm998_vm6, %v2146_v22, %v2145_v47  ;;  %v1075_v53 = vsel %vm986_vm2, %v1074_v37, %v1073_v48  ;;  %v1856_v54 = vld [vmem:[%s6677_s4 + $0x1f2] sm:$0x1]  ;;  %v1857_v55 = vld [vmem:[%s6677_s4 + $0x1fa] sm:$0x1]  ;;  %v2148_v56 = vrot.slane %v1851_v45, 7  ;;  %v2150_v57 = vrot.slane %v1852_v46, 6 }
 0x116   : > { %2296 = vxpose.xlu1.b32.cont [7/16] (narrow) %v2147_v52, 32  ;;  %v1077_v58 = vsel %vm989_vm3, %v1076_v38, %v1075_v53  ;;  %v2152_v59 = vrot.slane %v1853_v49, 5  ;;  %v2154_v60 = vrot.slane %v1854_v50, 4  ;;  %v2156_v61 = vrot.slane %v1855_v51, 3  ;;  %v779_v62 = vld [vmem:[%s6677_s4 + $0x1c0] sm:$0x1] }
 0x117   : > { %v1079_v63 = vsel %vm992_vm4, %v1078_v39, %v1077_v58  ;;  %v2149_v0 = vsel %vm980_vm0, %v2148_v56, %v1850_v40  ;;  %v2158_v1 = vrot.slane %v1856_v54, 2  ;;  %v2160_v2 = vrot.slane %v1857_v55, 1  ;;  %v780_v3 = vld [vmem:[%s6677_s4 + $0x1c8] sm:$0x1]  ;;  %v781_v4 = vld [vmem:[%s6677_s4 + $0x1d0] sm:$0x1] }
 0x118   : > { %v1081_v5 = vsel %vm995_vm5, %v1080_v43, %v1079_v63  ;;  %v2151_v6 = vsel %vm983_vm1, %v2150_v57, %v2149_v0  ;;  %v782_v7 = vld [vmem:[%s6677_s4 + $0x1d8] sm:$0x1]  ;;  %v783_v8 = vld [vmem:[%s6677_s4 + $0x1e0] sm:$0x1]  ;;  %v784_v9 = vld [vmem:[%s6677_s4 + $0x1e8] sm:$0x1] }
 0x119   : > { %v1083_v10 = vsel %vm998_vm6, %v1082_v44, %v1081_v5  ;;  %v2153_v11 = vsel %vm986_vm2, %v2152_v59, %v2151_v6  ;;  %v785_v12 = vld [vmem:[%s6677_s4 + $0x1f0] sm:$0x1]  ;;  %v786_v13 = vld [vmem:[%s6677_s4 + $0x1f8] sm:$0x1]  ;;  %v1084_v14 = vrot.slane %v780_v3, 7  ;;  %v1086_v15 = vrot.slane %v781_v4, 6 }
 0x11a   : > { %1232 = vxpose.xlu0.b32.cont [7/16] (narrow) %v1083_v10, 32  ;;  %v2155_v16 = vsel %vm989_vm3, %v2154_v60, %v2153_v11  ;;  %v1088_v17 = vrot.slane %v782_v7, 5  ;;  %v1090_v18 = vrot.slane %v783_v8, 4  ;;  %v1092_v19 = vrot.slane %v784_v9, 3  ;;  %v1858_v20 = vld [vmem:[%s6677_s4 + $0x202] sm:$0x1] }
 0x11b   : > { %v2157_v21 = vsel %vm992_vm4, %v2156_v61, %v2155_v16  ;;  %v1085_v22 = vsel %vm980_vm0, %v1084_v14, %v779_v62  ;;  %v1094_v23 = vrot.slane %v785_v12, 2  ;;  %v1096_v24 = vrot.slane %v786_v13, 1  ;;  %v1859_v25 = vld [vmem:[%s6677_s4 + $0x20a] sm:$0x1]  ;;  %v1860_v26 = vld [vmem:[%s6677_s4 + $0x212] sm:$0x1] }
 0x11c   : > { %v2159_v27 = vsel %vm995_vm5, %v2158_v1, %v2157_v21  ;;  %v1087_v28 = vsel %vm983_vm1, %v1086_v15, %v1085_v22  ;;  %v1861_v29 = vld [vmem:[%s6677_s4 + $0x21a] sm:$0x1]  ;;  %v1862_v30 = vld [vmem:[%s6677_s4 + $0x222] sm:$0x1]  ;;  %v1863_v31 = vld [vmem:[%s6677_s4 + $0x22a] sm:$0x1] }
 0x11d   : > { %v2161_v32 = vsel %vm998_vm6, %v2160_v2, %v2159_v27  ;;  %v1089_v33 = vsel %vm986_vm2, %v1088_v17, %v1087_v28  ;;  %v1864_v34 = vld [vmem:[%s6677_s4 + $0x232] sm:$0x1]  ;;  %v1865_v35 = vld [vmem:[%s6677_s4 + $0x23a] sm:$0x1]  ;;  %v2162_v36 = vrot.slane %v1859_v25, 7  ;;  %v2164_v37 = vrot.slane %v1860_v26, 6 }
 0x11e   : > { %2297 = vxpose.xlu1.b32.cont [8/16] (narrow) %v2161_v32, 32  ;;  %v1091_v38 = vsel %vm989_vm3, %v1090_v18, %v1089_v33  ;;  %v2166_v39 = vrot.slane %v1861_v29, 5  ;;  %v2168_v40 = vrot.slane %v1862_v30, 4  ;;  %v2170_v41 = vrot.slane %v1863_v31, 3  ;;  %v787_v42 = vld [vmem:[%s6677_s4 + $0x200] sm:$0x1] }
 0x11f   : > { %v1093_v43 = vsel %vm992_vm4, %v1092_v19, %v1091_v38  ;;  %v2163_v44 = vsel %vm980_vm0, %v2162_v36, %v1858_v20  ;;  %v2172_v45 = vrot.slane %v1864_v34, 2  ;;  %v2174_v46 = vrot.slane %v1865_v35, 1  ;;  %v788_v47 = vld [vmem:[%s6677_s4 + $0x208] sm:$0x1]  ;;  %v789_v48 = vld [vmem:[%s6677_s4 + $0x210] sm:$0x1] }
 0x120   : > { %v1095_v49 = vsel %vm995_vm5, %v1094_v23, %v1093_v43  ;;  %v2165_v50 = vsel %vm983_vm1, %v2164_v37, %v2163_v44  ;;  %v790_v51 = vld [vmem:[%s6677_s4 + $0x218] sm:$0x1]  ;;  %v791_v52 = vld [vmem:[%s6677_s4 + $0x220] sm:$0x1]  ;;  %v792_v53 = vld [vmem:[%s6677_s4 + $0x228] sm:$0x1] }
 0x121   : > { %v1097_v54 = vsel %vm998_vm6, %v1096_v24, %v1095_v49  ;;  %v2167_v55 = vsel %vm986_vm2, %v2166_v39, %v2165_v50  ;;  %v793_v56 = vld [vmem:[%s6677_s4 + $0x230] sm:$0x1]  ;;  %v794_v57 = vld [vmem:[%s6677_s4 + $0x238] sm:$0x1]  ;;  %v1098_v58 = vrot.slane %v788_v47, 7  ;;  %v1100_v59 = vrot.slane %v789_v48, 6 }
 0x122   : > { %1233 = vxpose.xlu0.b32.cont [8/16] (narrow) %v1097_v54, 32  ;;  %v2169_v60 = vsel %vm989_vm3, %v2168_v40, %v2167_v55  ;;  %v1102_v61 = vrot.slane %v790_v51, 5  ;;  %v1104_v62 = vrot.slane %v791_v52, 4  ;;  %v1106_v63 = vrot.slane %v792_v53, 3  ;;  %v1866_v0 = vld [vmem:[%s6677_s4 + $0x242] sm:$0x1] }
 0x123   : > { %v2171_v1 = vsel %vm992_vm4, %v2170_v41, %v2169_v60  ;;  %v1099_v2 = vsel %vm980_vm0, %v1098_v58, %v787_v42  ;;  %v1108_v3 = vrot.slane %v793_v56, 2  ;;  %v1110_v4 = vrot.slane %v794_v57, 1  ;;  %v1867_v5 = vld [vmem:[%s6677_s4 + $0x24a] sm:$0x1]  ;;  %v1868_v6 = vld [vmem:[%s6677_s4 + $0x252] sm:$0x1] }
 0x124   : > { %v2173_v7 = vsel %vm995_vm5, %v2172_v45, %v2171_v1  ;;  %v1101_v8 = vsel %vm983_vm1, %v1100_v59, %v1099_v2  ;;  %v1869_v9 = vld [vmem:[%s6677_s4 + $0x25a] sm:$0x1]  ;;  %v1870_v10 = vld [vmem:[%s6677_s4 + $0x262] sm:$0x1]  ;;  %v1871_v11 = vld [vmem:[%s6677_s4 + $0x26a] sm:$0x1] }
 0x125   : > { %v2175_v12 = vsel %vm998_vm6, %v2174_v46, %v2173_v7  ;;  %v1103_v13 = vsel %vm986_vm2, %v1102_v61, %v1101_v8  ;;  %v1872_v14 = vld [vmem:[%s6677_s4 + $0x272] sm:$0x1]  ;;  %v1873_v15 = vld [vmem:[%s6677_s4 + $0x27a] sm:$0x1]  ;;  %v2176_v16 = vrot.slane %v1867_v5, 7  ;;  %v2178_v17 = vrot.slane %v1868_v6, 6 }
 0x126   : > { %2298 = vxpose.xlu1.b32.cont [9/16] (narrow) %v2175_v12, 32  ;;  %v1105_v18 = vsel %vm989_vm3, %v1104_v62, %v1103_v13  ;;  %v2180_v19 = vrot.slane %v1869_v9, 5  ;;  %v2182_v20 = vrot.slane %v1870_v10, 4  ;;  %v2184_v21 = vrot.slane %v1871_v11, 3  ;;  %v795_v22 = vld [vmem:[%s6677_s4 + $0x240] sm:$0x1] }
 0x127   : > { %v1107_v23 = vsel %vm992_vm4, %v1106_v63, %v1105_v18  ;;  %v2177_v24 = vsel %vm980_vm0, %v2176_v16, %v1866_v0  ;;  %v2186_v25 = vrot.slane %v1872_v14, 2  ;;  %v2188_v26 = vrot.slane %v1873_v15, 1  ;;  %v796_v27 = vld [vmem:[%s6677_s4 + $0x248] sm:$0x1]  ;;  %v797_v28 = vld [vmem:[%s6677_s4 + $0x250] sm:$0x1] }
 0x128   : > { %v1109_v29 = vsel %vm995_vm5, %v1108_v3, %v1107_v23  ;;  %v2179_v30 = vsel %vm983_vm1, %v2178_v17, %v2177_v24  ;;  %v798_v31 = vld [vmem:[%s6677_s4 + $0x258] sm:$0x1]  ;;  %v799_v32 = vld [vmem:[%s6677_s4 + $0x260] sm:$0x1]  ;;  %v800_v33 = vld [vmem:[%s6677_s4 + $0x268] sm:$0x1] }
 0x129   : > { %v1111_v34 = vsel %vm998_vm6, %v1110_v4, %v1109_v29  ;;  %v2181_v35 = vsel %vm986_vm2, %v2180_v19, %v2179_v30  ;;  %v801_v36 = vld [vmem:[%s6677_s4 + $0x270] sm:$0x1]  ;;  %v802_v37 = vld [vmem:[%s6677_s4 + $0x278] sm:$0x1]  ;;  %v1112_v38 = vrot.slane %v796_v27, 7  ;;  %v1114_v39 = vrot.slane %v797_v28, 6 }
 0x12a   : > { %1234 = vxpose.xlu0.b32.cont [9/16] (narrow) %v1111_v34, 32  ;;  %v2183_v40 = vsel %vm989_vm3, %v2182_v20, %v2181_v35  ;;  %v1116_v41 = vrot.slane %v798_v31, 5  ;;  %v1118_v42 = vrot.slane %v799_v32, 4  ;;  %v1120_v43 = vrot.slane %v800_v33, 3  ;;  %v1874_v44 = vld [vmem:[%s6677_s4 + $0x282] sm:$0x1] }
 0x12b   : > { %v2185_v45 = vsel %vm992_vm4, %v2184_v21, %v2183_v40  ;;  %v1113_v46 = vsel %vm980_vm0, %v1112_v38, %v795_v22  ;;  %v1122_v47 = vrot.slane %v801_v36, 2  ;;  %v1124_v48 = vrot.slane %v802_v37, 1  ;;  %v1875_v49 = vld [vmem:[%s6677_s4 + $0x28a] sm:$0x1]  ;;  %v1876_v50 = vld [vmem:[%s6677_s4 + $0x292] sm:$0x1] }
 0x12c   : > { %v2187_v51 = vsel %vm995_vm5, %v2186_v25, %v2185_v45  ;;  %v1115_v52 = vsel %vm983_vm1, %v1114_v39, %v1113_v46  ;;  %v1877_v53 = vld [vmem:[%s6677_s4 + $0x29a] sm:$0x1]  ;;  %v1878_v54 = vld [vmem:[%s6677_s4 + $0x2a2] sm:$0x1]  ;;  %v1879_v55 = vld [vmem:[%s6677_s4 + $0x2aa] sm:$0x1] }
 0x12d   : > { %v2189_v56 = vsel %vm998_vm6, %v2188_v26, %v2187_v51  ;;  %v1117_v57 = vsel %vm986_vm2, %v1116_v41, %v1115_v52  ;;  %v1880_v58 = vld [vmem:[%s6677_s4 + $0x2b2] sm:$0x1]  ;;  %v1881_v59 = vld [vmem:[%s6677_s4 + $0x2ba] sm:$0x1]  ;;  %v2190_v60 = vrot.slane %v1875_v49, 7  ;;  %v2192_v61 = vrot.slane %v1876_v50, 6 }
 0x12e   : > { %2299 = vxpose.xlu1.b32.cont [10/16] (narrow) %v2189_v56, 32  ;;  %v1119_v62 = vsel %vm989_vm3, %v1118_v42, %v1117_v57  ;;  %v2194_v63 = vrot.slane %v1877_v53, 5  ;;  %v2196_v0 = vrot.slane %v1878_v54, 4  ;;  %v2198_v1 = vrot.slane %v1879_v55, 3  ;;  %v803_v2 = vld [vmem:[%s6677_s4 + $0x280] sm:$0x1] }
 0x12f   : > { %v1121_v3 = vsel %vm992_vm4, %v1120_v43, %v1119_v62  ;;  %v2191_v4 = vsel %vm980_vm0, %v2190_v60, %v1874_v44  ;;  %v2200_v5 = vrot.slane %v1880_v58, 2  ;;  %v2202_v6 = vrot.slane %v1881_v59, 1  ;;  %v804_v7 = vld [vmem:[%s6677_s4 + $0x288] sm:$0x1]  ;;  %v805_v8 = vld [vmem:[%s6677_s4 + $0x290] sm:$0x1] }
 0x130   : > { %v1123_v9 = vsel %vm995_vm5, %v1122_v47, %v1121_v3  ;;  %v2193_v10 = vsel %vm983_vm1, %v2192_v61, %v2191_v4  ;;  %v806_v11 = vld [vmem:[%s6677_s4 + $0x298] sm:$0x1]  ;;  %v807_v12 = vld [vmem:[%s6677_s4 + $0x2a0] sm:$0x1]  ;;  %v808_v13 = vld [vmem:[%s6677_s4 + $0x2a8] sm:$0x1] }
 0x131   : > { %v1125_v14 = vsel %vm998_vm6, %v1124_v48, %v1123_v9  ;;  %v2195_v15 = vsel %vm986_vm2, %v2194_v63, %v2193_v10  ;;  %v809_v16 = vld [vmem:[%s6677_s4 + $0x2b0] sm:$0x1]  ;;  %v810_v17 = vld [vmem:[%s6677_s4 + $0x2b8] sm:$0x1]  ;;  %v1126_v18 = vrot.slane %v804_v7, 7  ;;  %v1128_v19 = vrot.slane %v805_v8, 6 }
 0x132   : > { %1235 = vxpose.xlu0.b32.cont [10/16] (narrow) %v1125_v14, 32  ;;  %v2197_v20 = vsel %vm989_vm3, %v2196_v0, %v2195_v15  ;;  %v1130_v21 = vrot.slane %v806_v11, 5  ;;  %v1132_v22 = vrot.slane %v807_v12, 4  ;;  %v1134_v23 = vrot.slane %v808_v13, 3  ;;  %v1882_v24 = vld [vmem:[%s6677_s4 + $0x2c2] sm:$0x1] }
 0x133   : > { %v2199_v25 = vsel %vm992_vm4, %v2198_v1, %v2197_v20  ;;  %v1127_v26 = vsel %vm980_vm0, %v1126_v18, %v803_v2  ;;  %v1136_v27 = vrot.slane %v809_v16, 2  ;;  %v1138_v28 = vrot.slane %v810_v17, 1  ;;  %v1883_v29 = vld [vmem:[%s6677_s4 + $0x2ca] sm:$0x1]  ;;  %v1884_v30 = vld [vmem:[%s6677_s4 + $0x2d2] sm:$0x1] }
 0x134   : > { %v2201_v31 = vsel %vm995_vm5, %v2200_v5, %v2199_v25  ;;  %v1129_v32 = vsel %vm983_vm1, %v1128_v19, %v1127_v26  ;;  %v1885_v33 = vld [vmem:[%s6677_s4 + $0x2da] sm:$0x1]  ;;  %v1886_v34 = vld [vmem:[%s6677_s4 + $0x2e2] sm:$0x1]  ;;  %v1887_v35 = vld [vmem:[%s6677_s4 + $0x2ea] sm:$0x1] }
 0x135   : > { %v2203_v36 = vsel %vm998_vm6, %v2202_v6, %v2201_v31  ;;  %v1131_v37 = vsel %vm986_vm2, %v1130_v21, %v1129_v32  ;;  %v1888_v38 = vld [vmem:[%s6677_s4 + $0x2f2] sm:$0x1]  ;;  %v1889_v39 = vld [vmem:[%s6677_s4 + $0x2fa] sm:$0x1]  ;;  %v2204_v40 = vrot.slane %v1883_v29, 7  ;;  %v2206_v41 = vrot.slane %v1884_v30, 6 }
 0x136   : > { %2300 = vxpose.xlu1.b32.cont [11/16] (narrow) %v2203_v36, 32  ;;  %v1133_v42 = vsel %vm989_vm3, %v1132_v22, %v1131_v37  ;;  %v2208_v43 = vrot.slane %v1885_v33, 5  ;;  %v2210_v44 = vrot.slane %v1886_v34, 4  ;;  %v2212_v45 = vrot.slane %v1887_v35, 3  ;;  %v811_v46 = vld [vmem:[%s6677_s4 + $0x2c0] sm:$0x1] }
 0x137   : > { %v1135_v47 = vsel %vm992_vm4, %v1134_v23, %v1133_v42  ;;  %v2205_v48 = vsel %vm980_vm0, %v2204_v40, %v1882_v24  ;;  %v2214_v49 = vrot.slane %v1888_v38, 2  ;;  %v2216_v50 = vrot.slane %v1889_v39, 1  ;;  %v812_v51 = vld [vmem:[%s6677_s4 + $0x2c8] sm:$0x1]  ;;  %v813_v52 = vld [vmem:[%s6677_s4 + $0x2d0] sm:$0x1] }
 0x138   : > { %v1137_v53 = vsel %vm995_vm5, %v1136_v27, %v1135_v47  ;;  %v2207_v54 = vsel %vm983_vm1, %v2206_v41, %v2205_v48  ;;  %v814_v55 = vld [vmem:[%s6677_s4 + $0x2d8] sm:$0x1]  ;;  %v815_v56 = vld [vmem:[%s6677_s4 + $0x2e0] sm:$0x1]  ;;  %v816_v57 = vld [vmem:[%s6677_s4 + $0x2e8] sm:$0x1] }
 0x139   : > { %v1139_v58 = vsel %vm998_vm6, %v1138_v28, %v1137_v53  ;;  %v2209_v59 = vsel %vm986_vm2, %v2208_v43, %v2207_v54  ;;  %v817_v60 = vld [vmem:[%s6677_s4 + $0x2f0] sm:$0x1]  ;;  %v818_v61 = vld [vmem:[%s6677_s4 + $0x2f8] sm:$0x1]  ;;  %v1140_v62 = vrot.slane %v812_v51, 7  ;;  %v1142_v63 = vrot.slane %v813_v52, 6 }
 0x13a   : > { %1236 = vxpose.xlu0.b32.cont [11/16] (narrow) %v1139_v58, 32  ;;  %v2211_v0 = vsel %vm989_vm3, %v2210_v44, %v2209_v59  ;;  %v1144_v1 = vrot.slane %v814_v55, 5  ;;  %v1146_v2 = vrot.slane %v815_v56, 4  ;;  %v1148_v3 = vrot.slane %v816_v57, 3  ;;  %v1890_v4 = vld [vmem:[%s6677_s4 + $0x302] sm:$0x1] }
 0x13b   : > { %v2213_v5 = vsel %vm992_vm4, %v2212_v45, %v2211_v0  ;;  %v1141_v6 = vsel %vm980_vm0, %v1140_v62, %v811_v46  ;;  %v1150_v7 = vrot.slane %v817_v60, 2  ;;  %v1152_v8 = vrot.slane %v818_v61, 1  ;;  %v1891_v9 = vld [vmem:[%s6677_s4 + $0x30a] sm:$0x1]  ;;  %v1892_v10 = vld [vmem:[%s6677_s4 + $0x312] sm:$0x1] }
 0x13c   : > { %v2215_v11 = vsel %vm995_vm5, %v2214_v49, %v2213_v5  ;;  %v1143_v12 = vsel %vm983_vm1, %v1142_v63, %v1141_v6  ;;  %v1893_v13 = vld [vmem:[%s6677_s4 + $0x31a] sm:$0x1]  ;;  %v1894_v14 = vld [vmem:[%s6677_s4 + $0x322] sm:$0x1]  ;;  %v1895_v15 = vld [vmem:[%s6677_s4 + $0x32a] sm:$0x1] }
 0x13d   : > { %v2217_v16 = vsel %vm998_vm6, %v2216_v50, %v2215_v11  ;;  %v1145_v17 = vsel %vm986_vm2, %v1144_v1, %v1143_v12  ;;  %v1896_v18 = vld [vmem:[%s6677_s4 + $0x332] sm:$0x1]  ;;  %v1897_v19 = vld [vmem:[%s6677_s4 + $0x33a] sm:$0x1]  ;;  %v2218_v20 = vrot.slane %v1891_v9, 7  ;;  %v2220_v21 = vrot.slane %v1892_v10, 6 }
 0x13e   : > { %2301 = vxpose.xlu1.b32.cont [12/16] (narrow) %v2217_v16, 32  ;;  %v1147_v22 = vsel %vm989_vm3, %v1146_v2, %v1145_v17  ;;  %v2222_v23 = vrot.slane %v1893_v13, 5  ;;  %v2224_v24 = vrot.slane %v1894_v14, 4  ;;  %v2226_v25 = vrot.slane %v1895_v15, 3  ;;  %v819_v26 = vld [vmem:[%s6677_s4 + $0x300] sm:$0x1] }
 0x13f   : > { %v1149_v27 = vsel %vm992_vm4, %v1148_v3, %v1147_v22  ;;  %v2219_v28 = vsel %vm980_vm0, %v2218_v20, %v1890_v4  ;;  %v2228_v29 = vrot.slane %v1896_v18, 2  ;;  %v2230_v30 = vrot.slane %v1897_v19, 1  ;;  %v820_v31 = vld [vmem:[%s6677_s4 + $0x308] sm:$0x1]  ;;  %v821_v32 = vld [vmem:[%s6677_s4 + $0x310] sm:$0x1] }
 0x140   : > { %v1151_v33 = vsel %vm995_vm5, %v1150_v7, %v1149_v27  ;;  %v2221_v34 = vsel %vm983_vm1, %v2220_v21, %v2219_v28  ;;  %v822_v35 = vld [vmem:[%s6677_s4 + $0x318] sm:$0x1]  ;;  %v823_v36 = vld [vmem:[%s6677_s4 + $0x320] sm:$0x1]  ;;  %v824_v37 = vld [vmem:[%s6677_s4 + $0x328] sm:$0x1] }
 0x141   : > { %v1153_v38 = vsel %vm998_vm6, %v1152_v8, %v1151_v33  ;;  %v2223_v39 = vsel %vm986_vm2, %v2222_v23, %v2221_v34  ;;  %v825_v40 = vld [vmem:[%s6677_s4 + $0x330] sm:$0x1]  ;;  %v826_v41 = vld [vmem:[%s6677_s4 + $0x338] sm:$0x1]  ;;  %v1154_v42 = vrot.slane %v820_v31, 7  ;;  %v1156_v43 = vrot.slane %v821_v32, 6 }
 0x142   : > { %1237 = vxpose.xlu0.b32.cont [12/16] (narrow) %v1153_v38, 32  ;;  %v2225_v44 = vsel %vm989_vm3, %v2224_v24, %v2223_v39  ;;  %v1158_v45 = vrot.slane %v822_v35, 5  ;;  %v1160_v46 = vrot.slane %v823_v36, 4  ;;  %v1162_v47 = vrot.slane %v824_v37, 3  ;;  %v1898_v48 = vld [vmem:[%s6677_s4 + $0x342] sm:$0x1] }
 0x143   : > { %v2227_v49 = vsel %vm992_vm4, %v2226_v25, %v2225_v44  ;;  %v1155_v50 = vsel %vm980_vm0, %v1154_v42, %v819_v26  ;;  %v1164_v51 = vrot.slane %v825_v40, 2  ;;  %v1166_v52 = vrot.slane %v826_v41, 1  ;;  %v1899_v53 = vld [vmem:[%s6677_s4 + $0x34a] sm:$0x1]  ;;  %v1900_v54 = vld [vmem:[%s6677_s4 + $0x352] sm:$0x1] }
 0x144   : > { %v2229_v55 = vsel %vm995_vm5, %v2228_v29, %v2227_v49  ;;  %v1157_v56 = vsel %vm983_vm1, %v1156_v43, %v1155_v50  ;;  %v1901_v57 = vld [vmem:[%s6677_s4 + $0x35a] sm:$0x1]  ;;  %v1902_v58 = vld [vmem:[%s6677_s4 + $0x362] sm:$0x1]  ;;  %v1903_v59 = vld [vmem:[%s6677_s4 + $0x36a] sm:$0x1] }
 0x145   : > { %v2231_v60 = vsel %vm998_vm6, %v2230_v30, %v2229_v55  ;;  %v1159_v61 = vsel %vm986_vm2, %v1158_v45, %v1157_v56  ;;  %v1904_v62 = vld [vmem:[%s6677_s4 + $0x372] sm:$0x1]  ;;  %v1905_v63 = vld [vmem:[%s6677_s4 + $0x37a] sm:$0x1]  ;;  %v2232_v0 = vrot.slane %v1899_v53, 7  ;;  %v2234_v1 = vrot.slane %v1900_v54, 6 }
 0x146   : > { %2302 = vxpose.xlu1.b32.cont [13/16] (narrow) %v2231_v60, 32  ;;  %v1161_v2 = vsel %vm989_vm3, %v1160_v46, %v1159_v61  ;;  %v2236_v3 = vrot.slane %v1901_v57, 5  ;;  %v2238_v4 = vrot.slane %v1902_v58, 4  ;;  %v2240_v5 = vrot.slane %v1903_v59, 3  ;;  %v827_v6 = vld [vmem:[%s6677_s4 + $0x340] sm:$0x1] }
 0x147   : > { %v1163_v7 = vsel %vm992_vm4, %v1162_v47, %v1161_v2  ;;  %v2233_v8 = vsel %vm980_vm0, %v2232_v0, %v1898_v48  ;;  %v2242_v9 = vrot.slane %v1904_v62, 2  ;;  %v2244_v10 = vrot.slane %v1905_v63, 1  ;;  %v828_v11 = vld [vmem:[%s6677_s4 + $0x348] sm:$0x1]  ;;  %v829_v12 = vld [vmem:[%s6677_s4 + $0x350] sm:$0x1] }
 0x148   : > { %v1165_v13 = vsel %vm995_vm5, %v1164_v51, %v1163_v7  ;;  %v2235_v14 = vsel %vm983_vm1, %v2234_v1, %v2233_v8  ;;  %v830_v15 = vld [vmem:[%s6677_s4 + $0x358] sm:$0x1]  ;;  %v831_v16 = vld [vmem:[%s6677_s4 + $0x360] sm:$0x1]  ;;  %v832_v17 = vld [vmem:[%s6677_s4 + $0x368] sm:$0x1] }
 0x149   : > { %v1167_v18 = vsel %vm998_vm6, %v1166_v52, %v1165_v13  ;;  %v2237_v19 = vsel %vm986_vm2, %v2236_v3, %v2235_v14  ;;  %v833_v20 = vld [vmem:[%s6677_s4 + $0x370] sm:$0x1]  ;;  %v834_v21 = vld [vmem:[%s6677_s4 + $0x378] sm:$0x1]  ;;  %v1168_v22 = vrot.slane %v828_v11, 7  ;;  %v1170_v23 = vrot.slane %v829_v12, 6 }
 0x14a   : > { %1238 = vxpose.xlu0.b32.cont [13/16] (narrow) %v1167_v18, 32  ;;  %v2239_v24 = vsel %vm989_vm3, %v2238_v4, %v2237_v19  ;;  %v1172_v25 = vrot.slane %v830_v15, 5  ;;  %v1174_v26 = vrot.slane %v831_v16, 4  ;;  %v1176_v27 = vrot.slane %v832_v17, 3  ;;  %v1906_v28 = vld [vmem:[%s6677_s4 + $0x382] sm:$0x1] }
 0x14b   : > { %v2241_v29 = vsel %vm992_vm4, %v2240_v5, %v2239_v24  ;;  %v1169_v30 = vsel %vm980_vm0, %v1168_v22, %v827_v6  ;;  %v1178_v31 = vrot.slane %v833_v20, 2  ;;  %v1180_v32 = vrot.slane %v834_v21, 1  ;;  %v1907_v33 = vld [vmem:[%s6677_s4 + $0x38a] sm:$0x1]  ;;  %v1908_v34 = vld [vmem:[%s6677_s4 + $0x392] sm:$0x1] }
 0x14c   : > { %v2243_v35 = vsel %vm995_vm5, %v2242_v9, %v2241_v29  ;;  %v1171_v36 = vsel %vm983_vm1, %v1170_v23, %v1169_v30  ;;  %v1909_v37 = vld [vmem:[%s6677_s4 + $0x39a] sm:$0x1]  ;;  %v1910_v38 = vld [vmem:[%s6677_s4 + $0x3a2] sm:$0x1]  ;;  %v1911_v39 = vld [vmem:[%s6677_s4 + $0x3aa] sm:$0x1] }
 0x14d   : > { %v2245_v40 = vsel %vm998_vm6, %v2244_v10, %v2243_v35  ;;  %v1173_v41 = vsel %vm986_vm2, %v1172_v25, %v1171_v36  ;;  %v1912_v42 = vld [vmem:[%s6677_s4 + $0x3b2] sm:$0x1]  ;;  %v1913_v43 = vld [vmem:[%s6677_s4 + $0x3ba] sm:$0x1]  ;;  %v2246_v44 = vrot.slane %v1907_v33, 7  ;;  %v2248_v45 = vrot.slane %v1908_v34, 6 }
 0x14e   : > { %2303 = vxpose.xlu1.b32.cont [14/16] (narrow) %v2245_v40, 32  ;;  %v1175_v46 = vsel %vm989_vm3, %v1174_v26, %v1173_v41  ;;  %v2250_v47 = vrot.slane %v1909_v37, 5  ;;  %v2252_v48 = vrot.slane %v1910_v38, 4  ;;  %v2254_v49 = vrot.slane %v1911_v39, 3  ;;  %v835_v50 = vld [vmem:[%s6677_s4 + $0x380] sm:$0x1] }
 0x14f   : > { %v1177_v51 = vsel %vm992_vm4, %v1176_v27, %v1175_v46  ;;  %v2247_v52 = vsel %vm980_vm0, %v2246_v44, %v1906_v28  ;;  %v2256_v53 = vrot.slane %v1912_v42, 2  ;;  %v2258_v54 = vrot.slane %v1913_v43, 1  ;;  %v836_v55 = vld [vmem:[%s6677_s4 + $0x388] sm:$0x1]  ;;  %v837_v56 = vld [vmem:[%s6677_s4 + $0x390] sm:$0x1] }
 0x150   : > { %v1179_v57 = vsel %vm995_vm5, %v1178_v31, %v1177_v51  ;;  %v2249_v58 = vsel %vm983_vm1, %v2248_v45, %v2247_v52  ;;  %v838_v59 = vld [vmem:[%s6677_s4 + $0x398] sm:$0x1]  ;;  %v839_v60 = vld [vmem:[%s6677_s4 + $0x3a0] sm:$0x1]  ;;  %v840_v61 = vld [vmem:[%s6677_s4 + $0x3a8] sm:$0x1] }
 0x151   : > { %v1181_v62 = vsel %vm998_vm6, %v1180_v32, %v1179_v57  ;;  %v2251_v63 = vsel %vm986_vm2, %v2250_v47, %v2249_v58  ;;  %v841_v0 = vld [vmem:[%s6677_s4 + $0x3b0] sm:$0x1]  ;;  %v842_v1 = vld [vmem:[%s6677_s4 + $0x3b8] sm:$0x1]  ;;  %v1182_v2 = vrot.slane %v836_v55, 7  ;;  %v1184_v3 = vrot.slane %v837_v56, 6 }
 0x152   : > { %1239 = vxpose.xlu0.b32.cont [14/16] (narrow) %v1181_v62, 32  ;;  %v2253_v4 = vsel %vm989_vm3, %v2252_v48, %v2251_v63  ;;  %v1186_v5 = vrot.slane %v838_v59, 5  ;;  %v1188_v6 = vrot.slane %v839_v60, 4  ;;  %v1190_v7 = vrot.slane %v840_v61, 3  ;;  %v1914_v8 = vld [vmem:[%s6677_s4 + $0x3c2] sm:$0x1] }
 0x153   : > { %v2255_v9 = vsel %vm992_vm4, %v2254_v49, %v2253_v4  ;;  %v1183_v10 = vsel %vm980_vm0, %v1182_v2, %v835_v50  ;;  %v1192_v11 = vrot.slane %v841_v0, 2  ;;  %v1194_v12 = vrot.slane %v842_v1, 1  ;;  %v1915_v13 = vld [vmem:[%s6677_s4 + $0x3ca] sm:$0x1]  ;;  %v1916_v14 = vld [vmem:[%s6677_s4 + $0x3d2] sm:$0x1] }
 0x154   : > { %v2257_v15 = vsel %vm995_vm5, %v2256_v53, %v2255_v9  ;;  %v1185_v16 = vsel %vm983_vm1, %v1184_v3, %v1183_v10  ;;  %v1917_v17 = vld [vmem:[%s6677_s4 + $0x3da] sm:$0x1]  ;;  %v1918_v18 = vld [vmem:[%s6677_s4 + $0x3e2] sm:$0x1]  ;;  %v1919_v19 = vld [vmem:[%s6677_s4 + $0x3ea] sm:$0x1] }
 0x155   : > { %v2259_v20 = vsel %vm998_vm6, %v2258_v54, %v2257_v15  ;;  %v1187_v21 = vsel %vm986_vm2, %v1186_v5, %v1185_v16  ;;  %v1920_v22 = vld [vmem:[%s6677_s4 + $0x3f2] sm:$0x1]  ;;  %v1921_v23 = vld [vmem:[%s6677_s4 + $0x3fa] sm:$0x1]  ;;  %v2260_v24 = vrot.slane %v1915_v13, 7  ;;  %v2262_v25 = vrot.slane %v1916_v14, 6 }
 0x156   : > { %2304 = vxpose.xlu1.b32.cont [15/16] (narrow) %v2259_v20, 32  ;;  %v1189_v26 = vsel %vm989_vm3, %v1188_v6, %v1187_v21  ;;  %v2264_v27 = vrot.slane %v1917_v17, 5  ;;  %v2266_v28 = vrot.slane %v1918_v18, 4  ;;  %v2268_v29 = vrot.slane %v1919_v19, 3  ;;  %v843_v30 = vld [vmem:[%s6677_s4 + $0x3c0] sm:$0x1] }
 0x157   : > { %v1191_v31 = vsel %vm992_vm4, %v1190_v7, %v1189_v26  ;;  %v2261_v32 = vsel %vm980_vm0, %v2260_v24, %v1914_v8  ;;  %v2270_v33 = vrot.slane %v1920_v22, 2  ;;  %v2272_v34 = vrot.slane %v1921_v23, 1  ;;  %v844_v35 = vld [vmem:[%s6677_s4 + $0x3c8] sm:$0x1]  ;;  %v845_v36 = vld [vmem:[%s6677_s4 + $0x3d0] sm:$0x1] }
 0x158   : > { %v1193_v37 = vsel %vm995_vm5, %v1192_v11, %v1191_v31  ;;  %v2263_v38 = vsel %vm983_vm1, %v2262_v25, %v2261_v32  ;;  %v846_v39 = vld [vmem:[%s6677_s4 + $0x3d8] sm:$0x1]  ;;  %v847_v40 = vld [vmem:[%s6677_s4 + $0x3e0] sm:$0x1]  ;;  %v848_v41 = vld [vmem:[%s6677_s4 + $0x3e8] sm:$0x1] }
 0x159   : > { %v1195_v42 = vsel %vm998_vm6, %v1194_v12, %v1193_v37  ;;  %v2265_v43 = vsel %vm986_vm2, %v2264_v27, %v2263_v38  ;;  %v849_v44 = vld [vmem:[%s6677_s4 + $0x3f0] sm:$0x1]  ;;  %v850_v45 = vld [vmem:[%s6677_s4 + $0x3f8] sm:$0x1]  ;;  %v1196_v46 = vrot.slane %v844_v35, 7  ;;  %v1198_v47 = vrot.slane %v845_v36, 6 }
 0x15a   : > { %1240 = vxpose.xlu0.b32.cont [15/16] (narrow) %v1195_v42, 32  ;;  %v2267_v48 = vsel %vm989_vm3, %v2266_v28, %v2265_v43  ;;  %v1200_v49 = vrot.slane %v846_v39, 5  ;;  %v1202_v50 = vrot.slane %v847_v40, 4  ;;  %v1204_v51 = vrot.slane %v848_v41, 3  ;;  %v4454_v52 = vld [vmem:[%s6677_s4 + $0x7] sm:$0x1] }
 0x15b   : > { %v2269_v53 = vsel %vm992_vm4, %v2268_v29, %v2267_v48  ;;  %v1197_v54 = vsel %vm980_vm0, %v1196_v46, %v843_v30  ;;  %v1206_v55 = vrot.slane %v849_v44, 2  ;;  %v1208_v56 = vrot.slane %v850_v45, 1  ;;  %v4455_v57 = vld [vmem:[%s6677_s4 + $0xf] sm:$0x1]  ;;  %v4456_v58 = vld [vmem:[%s6677_s4 + $0x17] sm:$0x1] }
 0x15c   : > { %v2271_v59 = vsel %vm995_vm5, %v2270_v33, %v2269_v53  ;;  %v1199_v60 = vsel %vm983_vm1, %v1198_v47, %v1197_v54  ;;  %v4457_v61 = vld [vmem:[%s6677_s4 + $0x1f] sm:$0x1]  ;;  %v4458_v62 = vld [vmem:[%s6677_s4 + $0x27] sm:$0x1]  ;;  %v4459_v63 = vld [vmem:[%s6677_s4 + $0x2f] sm:$0x1] }
 0x15d   : > { %v2273_v0 = vsel %vm998_vm6, %v2272_v34, %v2271_v59  ;;  %v1201_v1 = vsel %vm986_vm2, %v1200_v49, %v1199_v60  ;;  %v4460_v2 = vld [vmem:[%s6677_s4 + $0x37] sm:$0x1]  ;;  %v4461_v3 = vld [vmem:[%s6677_s4 + $0x3f] sm:$0x1]  ;;  %v4710_v4 = vrot.slane %v4455_v57, 7  ;;  %v4712_v5 = vrot.slane %v4456_v58, 6 }
 0x15e   : > { %2305 = vxpose.xlu1.b32.end [16/16] (narrow) %v2273_v0, 32  ;;  %v1203_v6 = vsel %vm989_vm3, %v1202_v50, %v1201_v1  ;;  %v4714_v7 = vrot.slane %v4457_v61, 5  ;;  %v4716_v8 = vrot.slane %v4458_v62, 4  ;;  %v4718_v9 = vrot.slane %v4459_v63, 3  ;;  %v3390_v10 = vld [vmem:[%s6677_s4 + $0x5] sm:$0x1] }
 0x15f   : > { %v1205_v11 = vsel %vm992_vm4, %v1204_v51, %v1203_v6  ;;  %v4711_v12 = vsel %vm980_vm0, %v4710_v4, %v4454_v52  ;;  %v4720_v13 = vrot.slane %v4460_v2, 2  ;;  %v4722_v14 = vrot.slane %v4461_v3, 1  ;;  %v3391_v15 = vld [vmem:[%s6677_s4 + $0xd] sm:$0x1]  ;;  %v3392_v16 = vld [vmem:[%s6677_s4 + $0x15] sm:$0x1] }
 0x160   : > { %v1207_v17 = vsel %vm995_vm5, %v1206_v55, %v1205_v11  ;;  %v4713_v18 = vsel %vm983_vm1, %v4712_v5, %v4711_v12  ;;  %v3393_v19 = vld [vmem:[%s6677_s4 + $0x1d] sm:$0x1]  ;;  %v3394_v20 = vld [vmem:[%s6677_s4 + $0x25] sm:$0x1]  ;;  %v3395_v21 = vld [vmem:[%s6677_s4 + $0x2d] sm:$0x1] }
 0x161   : > { %v1209_v22 = vsel %vm998_vm6, %v1208_v56, %v1207_v17  ;;  %v4715_v23 = vsel %vm986_vm2, %v4714_v7, %v4713_v18  ;;  %v3396_v24 = vld [vmem:[%s6677_s4 + $0x35] sm:$0x1]  ;;  %v3397_v25 = vld [vmem:[%s6677_s4 + $0x3d] sm:$0x1]  ;;  %v3646_v26 = vrot.slane %v3391_v15, 7  ;;  %v3648_v27 = vrot.slane %v3392_v16, 6 }
 0x162   : > { %1241 = vxpose.xlu0.b32.end [16/16] (narrow) %v1209_v22, 32  ;;  %v4717_v28 = vsel %vm989_vm3, %v4716_v8, %v4715_v23  ;;  %v3650_v29 = vrot.slane %v3393_v19, 5  ;;  %v3652_v30 = vrot.slane %v3394_v20, 4  ;;  %v3654_v31 = vrot.slane %v3395_v21, 3  ;;  %v4462_v32 = vld [vmem:[%s6677_s4 + $0x47] sm:$0x1] }
 0x163   : > { %v4719_v33 = vsel %vm992_vm4, %v4718_v9, %v4717_v28  ;;  %v3647_v34 = vsel %vm980_vm0, %v3646_v26, %v3390_v10  ;;  %v3656_v35 = vrot.slane %v3396_v24, 2  ;;  %v3658_v36 = vrot.slane %v3397_v25, 1  ;;  %v4463_v37 = vld [vmem:[%s6677_s4 + $0x4f] sm:$0x1]  ;;  %v4464_v38 = vld [vmem:[%s6677_s4 + $0x57] sm:$0x1] }
 0x164   : > { %v4721_v39 = vsel %vm995_vm5, %v4720_v13, %v4719_v33  ;;  %v3649_v40 = vsel %vm983_vm1, %v3648_v27, %v3647_v34  ;;  %v4465_v41 = vld [vmem:[%s6677_s4 + $0x5f] sm:$0x1]  ;;  %v4466_v42 = vld [vmem:[%s6677_s4 + $0x67] sm:$0x1]  ;;  %v4467_v43 = vld [vmem:[%s6677_s4 + $0x6f] sm:$0x1] }
 0x165   : > { %v4723_v44 = vsel %vm998_vm6, %v4722_v14, %v4721_v39  ;;  %v3651_v45 = vsel %vm986_vm2, %v3650_v29, %v3649_v40  ;;  %v4468_v46 = vld [vmem:[%s6677_s4 + $0x77] sm:$0x1]  ;;  %v4469_v47 = vld [vmem:[%s6677_s4 + $0x7f] sm:$0x1]  ;;  %v4724_v48 = vrot.slane %v4463_v37, 7  ;;  %v4726_v49 = vrot.slane %v4464_v38, 6 }
 0x166   : > { %4950 = vxpose.xlu1.b32.start [1/16] (narrow) %v4723_v44, 32  ;;  %v3653_v50 = vsel %vm989_vm3, %v3652_v30, %v3651_v45  ;;  %v4728_v51 = vrot.slane %v4465_v41, 5  ;;  %v4730_v52 = vrot.slane %v4466_v42, 4  ;;  %v4732_v53 = vrot.slane %v4467_v43, 3  ;;  %v3398_v54 = vld [vmem:[%s6677_s4 + $0x45] sm:$0x1] }
 0x167   : > { %v3655_v55 = vsel %vm992_vm4, %v3654_v31, %v3653_v50  ;;  %v4725_v56 = vsel %vm980_vm0, %v4724_v48, %v4462_v32  ;;  %v4734_v57 = vrot.slane %v4468_v46, 2  ;;  %v4736_v58 = vrot.slane %v4469_v47, 1  ;;  %v3399_v59 = vld [vmem:[%s6677_s4 + $0x4d] sm:$0x1]  ;;  %v3400_v60 = vld [vmem:[%s6677_s4 + $0x55] sm:$0x1] }
 0x168   : > { %v3657_v61 = vsel %vm995_vm5, %v3656_v35, %v3655_v55  ;;  %v4727_v62 = vsel %vm983_vm1, %v4726_v49, %v4725_v56  ;;  %v3401_v63 = vld [vmem:[%s6677_s4 + $0x5d] sm:$0x1]  ;;  %v3402_v0 = vld [vmem:[%s6677_s4 + $0x65] sm:$0x1]  ;;  %v3403_v1 = vld [vmem:[%s6677_s4 + $0x6d] sm:$0x1] }
 0x169   : > { %v3659_v2 = vsel %vm998_vm6, %v3658_v36, %v3657_v61  ;;  %v4729_v3 = vsel %vm986_vm2, %v4728_v51, %v4727_v62  ;;  %v3404_v4 = vld [vmem:[%s6677_s4 + $0x75] sm:$0x1]  ;;  %v3405_v5 = vld [vmem:[%s6677_s4 + $0x7d] sm:$0x1]  ;;  %v3660_v6 = vrot.slane %v3399_v59, 7  ;;  %v3662_v7 = vrot.slane %v3400_v60, 6 }
 0x16a   : > { %3886 = vxpose.xlu0.b32.start [1/16] (narrow) %v3659_v2, 32  ;;  %v4731_v8 = vsel %vm989_vm3, %v4730_v52, %v4729_v3  ;;  %v3664_v9 = vrot.slane %v3401_v63, 5  ;;  %v3666_v10 = vrot.slane %v3402_v0, 4  ;;  %v3668_v11 = vrot.slane %v3403_v1, 3  ;;  %v4470_v12 = vld [vmem:[%s6677_s4 + $0x87] sm:$0x1] }
 0x16b   : > { %v4733_v13 = vsel %vm992_vm4, %v4732_v53, %v4731_v8  ;;  %v3661_v14 = vsel %vm980_vm0, %v3660_v6, %v3398_v54  ;;  %v3670_v15 = vrot.slane %v3404_v4, 2  ;;  %v3672_v16 = vrot.slane %v3405_v5, 1  ;;  %v4471_v17 = vld [vmem:[%s6677_s4 + $0x8f] sm:$0x1]  ;;  %v4472_v18 = vld [vmem:[%s6677_s4 + $0x97] sm:$0x1] }
 0x16c   : > { %v4735_v19 = vsel %vm995_vm5, %v4734_v57, %v4733_v13  ;;  %v3663_v20 = vsel %vm983_vm1, %v3662_v7, %v3661_v14  ;;  %v4473_v21 = vld [vmem:[%s6677_s4 + $0x9f] sm:$0x1]  ;;  %v4474_v22 = vld [vmem:[%s6677_s4 + $0xa7] sm:$0x1]  ;;  %v4475_v23 = vld [vmem:[%s6677_s4 + $0xaf] sm:$0x1] }
 0x16d   : > { %v4737_v24 = vsel %vm998_vm6, %v4736_v58, %v4735_v19  ;;  %v3665_v25 = vsel %vm986_vm2, %v3664_v9, %v3663_v20  ;;  %v4476_v26 = vld [vmem:[%s6677_s4 + $0xb7] sm:$0x1]  ;;  %v4477_v27 = vld [vmem:[%s6677_s4 + $0xbf] sm:$0x1]  ;;  %v4738_v28 = vrot.slane %v4471_v17, 7  ;;  %v4740_v29 = vrot.slane %v4472_v18, 6 }
 0x16e   : > { %4951 = vxpose.xlu1.b32.cont [2/16] (narrow) %v4737_v24, 32  ;;  %v3667_v30 = vsel %vm989_vm3, %v3666_v10, %v3665_v25  ;;  %v4742_v31 = vrot.slane %v4473_v21, 5  ;;  %v4744_v32 = vrot.slane %v4474_v22, 4  ;;  %v4746_v33 = vrot.slane %v4475_v23, 3  ;;  %v3406_v34 = vld [vmem:[%s6677_s4 + $0x85] sm:$0x1] }
 0x16f   : > { %v3669_v35 = vsel %vm992_vm4, %v3668_v11, %v3667_v30  ;;  %v4739_v36 = vsel %vm980_vm0, %v4738_v28, %v4470_v12  ;;  %v4748_v37 = vrot.slane %v4476_v26, 2  ;;  %v4750_v38 = vrot.slane %v4477_v27, 1  ;;  %v3407_v39 = vld [vmem:[%s6677_s4 + $0x8d] sm:$0x1]  ;;  %v3408_v40 = vld [vmem:[%s6677_s4 + $0x95] sm:$0x1] }
 0x170   : > { %v3671_v41 = vsel %vm995_vm5, %v3670_v15, %v3669_v35  ;;  %v4741_v42 = vsel %vm983_vm1, %v4740_v29, %v4739_v36  ;;  %v3409_v43 = vld [vmem:[%s6677_s4 + $0x9d] sm:$0x1]  ;;  %v3410_v44 = vld [vmem:[%s6677_s4 + $0xa5] sm:$0x1]  ;;  %v3411_v45 = vld [vmem:[%s6677_s4 + $0xad] sm:$0x1] }
 0x171   : > { %v3673_v46 = vsel %vm998_vm6, %v3672_v16, %v3671_v41  ;;  %v4743_v47 = vsel %vm986_vm2, %v4742_v31, %v4741_v42  ;;  %v3412_v48 = vld [vmem:[%s6677_s4 + $0xb5] sm:$0x1]  ;;  %v3413_v49 = vld [vmem:[%s6677_s4 + $0xbd] sm:$0x1]  ;;  %v3674_v50 = vrot.slane %v3407_v39, 7  ;;  %v3676_v51 = vrot.slane %v3408_v40, 6 }
 0x172   : > { %3887 = vxpose.xlu0.b32.cont [2/16] (narrow) %v3673_v46, 32  ;;  %v4745_v52 = vsel %vm989_vm3, %v4744_v32, %v4743_v47  ;;  %v3678_v53 = vrot.slane %v3409_v43, 5  ;;  %v3680_v54 = vrot.slane %v3410_v44, 4  ;;  %v3682_v55 = vrot.slane %v3411_v45, 3  ;;  %v4478_v56 = vld [vmem:[%s6677_s4 + $0xc7] sm:$0x1] }
 0x173   : > { %v4747_v57 = vsel %vm992_vm4, %v4746_v33, %v4745_v52  ;;  %v3675_v58 = vsel %vm980_vm0, %v3674_v50, %v3406_v34  ;;  %v3684_v59 = vrot.slane %v3412_v48, 2  ;;  %v3686_v60 = vrot.slane %v3413_v49, 1  ;;  %v4479_v61 = vld [vmem:[%s6677_s4 + $0xcf] sm:$0x1]  ;;  %v4480_v62 = vld [vmem:[%s6677_s4 + $0xd7] sm:$0x1] }
 0x174   : > { %v4749_v63 = vsel %vm995_vm5, %v4748_v37, %v4747_v57  ;;  %v3677_v0 = vsel %vm983_vm1, %v3676_v51, %v3675_v58  ;;  %v4481_v1 = vld [vmem:[%s6677_s4 + $0xdf] sm:$0x1]  ;;  %v4482_v2 = vld [vmem:[%s6677_s4 + $0xe7] sm:$0x1]  ;;  %v4483_v3 = vld [vmem:[%s6677_s4 + $0xef] sm:$0x1] }
 0x175   : > { %v4751_v4 = vsel %vm998_vm6, %v4750_v38, %v4749_v63  ;;  %v3679_v5 = vsel %vm986_vm2, %v3678_v53, %v3677_v0  ;;  %v4484_v6 = vld [vmem:[%s6677_s4 + $0xf7] sm:$0x1]  ;;  %v4485_v7 = vld [vmem:[%s6677_s4 + $0xff] sm:$0x1]  ;;  %v4752_v8 = vrot.slane %v4479_v61, 7  ;;  %v4754_v9 = vrot.slane %v4480_v62, 6 }
 0x176   : > { %4952 = vxpose.xlu1.b32.cont [3/16] (narrow) %v4751_v4, 32  ;;  %v3681_v10 = vsel %vm989_vm3, %v3680_v54, %v3679_v5  ;;  %v4756_v11 = vrot.slane %v4481_v1, 5  ;;  %v4758_v12 = vrot.slane %v4482_v2, 4  ;;  %v4760_v13 = vrot.slane %v4483_v3, 3  ;;  %v3414_v14 = vld [vmem:[%s6677_s4 + $0xc5] sm:$0x1] }
 0x177   : > { %v3683_v15 = vsel %vm992_vm4, %v3682_v55, %v3681_v10  ;;  %v4753_v16 = vsel %vm980_vm0, %v4752_v8, %v4478_v56  ;;  %v4762_v17 = vrot.slane %v4484_v6, 2  ;;  %v4764_v18 = vrot.slane %v4485_v7, 1  ;;  %v3415_v19 = vld [vmem:[%s6677_s4 + $0xcd] sm:$0x1]  ;;  %v3416_v20 = vld [vmem:[%s6677_s4 + $0xd5] sm:$0x1] }
 0x178   : > { %v3685_v21 = vsel %vm995_vm5, %v3684_v59, %v3683_v15  ;;  %v4755_v22 = vsel %vm983_vm1, %v4754_v9, %v4753_v16  ;;  %v3417_v23 = vld [vmem:[%s6677_s4 + $0xdd] sm:$0x1]  ;;  %v3418_v24 = vld [vmem:[%s6677_s4 + $0xe5] sm:$0x1]  ;;  %v3419_v25 = vld [vmem:[%s6677_s4 + $0xed] sm:$0x1] }
 0x179   : > { %v3687_v26 = vsel %vm998_vm6, %v3686_v60, %v3685_v21  ;;  %v4757_v27 = vsel %vm986_vm2, %v4756_v11, %v4755_v22  ;;  %v3420_v28 = vld [vmem:[%s6677_s4 + $0xf5] sm:$0x1]  ;;  %v3421_v29 = vld [vmem:[%s6677_s4 + $0xfd] sm:$0x1]  ;;  %v3688_v30 = vrot.slane %v3415_v19, 7  ;;  %v3690_v31 = vrot.slane %v3416_v20, 6 }
 0x17a   : > { %3888 = vxpose.xlu0.b32.cont [3/16] (narrow) %v3687_v26, 32  ;;  %v4759_v32 = vsel %vm989_vm3, %v4758_v12, %v4757_v27  ;;  %v3692_v33 = vrot.slane %v3417_v23, 5  ;;  %v3694_v34 = vrot.slane %v3418_v24, 4  ;;  %v3696_v35 = vrot.slane %v3419_v25, 3  ;;  %v4486_v36 = vld [vmem:[%s6677_s4 + $0x107] sm:$0x1] }
 0x17b   : > { %v4761_v37 = vsel %vm992_vm4, %v4760_v13, %v4759_v32  ;;  %v3689_v38 = vsel %vm980_vm0, %v3688_v30, %v3414_v14  ;;  %v3698_v39 = vrot.slane %v3420_v28, 2  ;;  %v3700_v40 = vrot.slane %v3421_v29, 1  ;;  %v4487_v41 = vld [vmem:[%s6677_s4 + $0x10f] sm:$0x1]  ;;  %v4488_v42 = vld [vmem:[%s6677_s4 + $0x117] sm:$0x1] }
 0x17c   : > { %v4763_v43 = vsel %vm995_vm5, %v4762_v17, %v4761_v37  ;;  %v3691_v44 = vsel %vm983_vm1, %v3690_v31, %v3689_v38  ;;  %v4489_v45 = vld [vmem:[%s6677_s4 + $0x11f] sm:$0x1]  ;;  %v4490_v46 = vld [vmem:[%s6677_s4 + $0x127] sm:$0x1]  ;;  %v4491_v47 = vld [vmem:[%s6677_s4 + $0x12f] sm:$0x1] }
 0x17d   : > { %v4765_v48 = vsel %vm998_vm6, %v4764_v18, %v4763_v43  ;;  %v3693_v49 = vsel %vm986_vm2, %v3692_v33, %v3691_v44  ;;  %v4492_v50 = vld [vmem:[%s6677_s4 + $0x137] sm:$0x1]  ;;  %v4493_v51 = vld [vmem:[%s6677_s4 + $0x13f] sm:$0x1]  ;;  %v4766_v52 = vrot.slane %v4487_v41, 7  ;;  %v4768_v53 = vrot.slane %v4488_v42, 6 }
 0x17e   : > { %4953 = vxpose.xlu1.b32.cont [4/16] (narrow) %v4765_v48, 32  ;;  %v3695_v54 = vsel %vm989_vm3, %v3694_v34, %v3693_v49  ;;  %v4770_v55 = vrot.slane %v4489_v45, 5  ;;  %v4772_v56 = vrot.slane %v4490_v46, 4  ;;  %v4774_v57 = vrot.slane %v4491_v47, 3  ;;  %v3422_v58 = vld [vmem:[%s6677_s4 + $0x105] sm:$0x1] }
 0x17f   : > { %v3697_v59 = vsel %vm992_vm4, %v3696_v35, %v3695_v54  ;;  %v4767_v60 = vsel %vm980_vm0, %v4766_v52, %v4486_v36  ;;  %v4776_v61 = vrot.slane %v4492_v50, 2  ;;  %v4778_v62 = vrot.slane %v4493_v51, 1  ;;  %v3423_v63 = vld [vmem:[%s6677_s4 + $0x10d] sm:$0x1]  ;;  %v3424_v0 = vld [vmem:[%s6677_s4 + $0x115] sm:$0x1] }
 0x180   : > { %v3699_v1 = vsel %vm995_vm5, %v3698_v39, %v3697_v59  ;;  %v4769_v2 = vsel %vm983_vm1, %v4768_v53, %v4767_v60  ;;  %v3425_v3 = vld [vmem:[%s6677_s4 + $0x11d] sm:$0x1]  ;;  %v3426_v4 = vld [vmem:[%s6677_s4 + $0x125] sm:$0x1]  ;;  %v3427_v5 = vld [vmem:[%s6677_s4 + $0x12d] sm:$0x1] }
 0x181   : > { %v3701_v6 = vsel %vm998_vm6, %v3700_v40, %v3699_v1  ;;  %v4771_v7 = vsel %vm986_vm2, %v4770_v55, %v4769_v2  ;;  %v3428_v8 = vld [vmem:[%s6677_s4 + $0x135] sm:$0x1]  ;;  %v3429_v9 = vld [vmem:[%s6677_s4 + $0x13d] sm:$0x1]  ;;  %v3702_v10 = vrot.slane %v3423_v63, 7  ;;  %v3704_v11 = vrot.slane %v3424_v0, 6 }
 0x182   : > { %3889 = vxpose.xlu0.b32.cont [4/16] (narrow) %v3701_v6, 32  ;;  %v4773_v12 = vsel %vm989_vm3, %v4772_v56, %v4771_v7  ;;  %v3706_v13 = vrot.slane %v3425_v3, 5  ;;  %v3708_v14 = vrot.slane %v3426_v4, 4  ;;  %v3710_v15 = vrot.slane %v3427_v5, 3  ;;  %v4494_v16 = vld [vmem:[%s6677_s4 + $0x147] sm:$0x1] }
 0x183   : > { %v4775_v17 = vsel %vm992_vm4, %v4774_v57, %v4773_v12  ;;  %v3703_v18 = vsel %vm980_vm0, %v3702_v10, %v3422_v58  ;;  %v3712_v19 = vrot.slane %v3428_v8, 2  ;;  %v3714_v20 = vrot.slane %v3429_v9, 1  ;;  %v4495_v21 = vld [vmem:[%s6677_s4 + $0x14f] sm:$0x1]  ;;  %v4496_v22 = vld [vmem:[%s6677_s4 + $0x157] sm:$0x1] }
 0x184   : > { %v4777_v23 = vsel %vm995_vm5, %v4776_v61, %v4775_v17  ;;  %v3705_v24 = vsel %vm983_vm1, %v3704_v11, %v3703_v18  ;;  %v4497_v25 = vld [vmem:[%s6677_s4 + $0x15f] sm:$0x1]  ;;  %v4498_v26 = vld [vmem:[%s6677_s4 + $0x167] sm:$0x1]  ;;  %v4499_v27 = vld [vmem:[%s6677_s4 + $0x16f] sm:$0x1] }
 0x185   : > { %v4779_v28 = vsel %vm998_vm6, %v4778_v62, %v4777_v23  ;;  %v3707_v29 = vsel %vm986_vm2, %v3706_v13, %v3705_v24  ;;  %v4500_v30 = vld [vmem:[%s6677_s4 + $0x177] sm:$0x1]  ;;  %v4501_v31 = vld [vmem:[%s6677_s4 + $0x17f] sm:$0x1]  ;;  %v4780_v32 = vrot.slane %v4495_v21, 7  ;;  %v4782_v33 = vrot.slane %v4496_v22, 6 }
 0x186   : > { %4954 = vxpose.xlu1.b32.cont [5/16] (narrow) %v4779_v28, 32  ;;  %v3709_v34 = vsel %vm989_vm3, %v3708_v14, %v3707_v29  ;;  %v4784_v35 = vrot.slane %v4497_v25, 5  ;;  %v4786_v36 = vrot.slane %v4498_v26, 4  ;;  %v4788_v37 = vrot.slane %v4499_v27, 3  ;;  %v3430_v38 = vld [vmem:[%s6677_s4 + $0x145] sm:$0x1] }
 0x187   : > { %v3711_v39 = vsel %vm992_vm4, %v3710_v15, %v3709_v34  ;;  %v4781_v40 = vsel %vm980_vm0, %v4780_v32, %v4494_v16  ;;  %v4790_v41 = vrot.slane %v4500_v30, 2  ;;  %v4792_v42 = vrot.slane %v4501_v31, 1  ;;  %v3431_v43 = vld [vmem:[%s6677_s4 + $0x14d] sm:$0x1]  ;;  %v3432_v44 = vld [vmem:[%s6677_s4 + $0x155] sm:$0x1] }
 0x188   : > { %v3713_v45 = vsel %vm995_vm5, %v3712_v19, %v3711_v39  ;;  %v4783_v46 = vsel %vm983_vm1, %v4782_v33, %v4781_v40  ;;  %v3433_v47 = vld [vmem:[%s6677_s4 + $0x15d] sm:$0x1]  ;;  %v3434_v48 = vld [vmem:[%s6677_s4 + $0x165] sm:$0x1]  ;;  %v3435_v49 = vld [vmem:[%s6677_s4 + $0x16d] sm:$0x1] }
 0x189   : > { %v3715_v50 = vsel %vm998_vm6, %v3714_v20, %v3713_v45  ;;  %v4785_v51 = vsel %vm986_vm2, %v4784_v35, %v4783_v46  ;;  %v3436_v52 = vld [vmem:[%s6677_s4 + $0x175] sm:$0x1]  ;;  %v3437_v53 = vld [vmem:[%s6677_s4 + $0x17d] sm:$0x1]  ;;  %v3716_v54 = vrot.slane %v3431_v43, 7  ;;  %v3718_v55 = vrot.slane %v3432_v44, 6 }
 0x18a   : > { %3890 = vxpose.xlu0.b32.cont [5/16] (narrow) %v3715_v50, 32  ;;  %v4787_v56 = vsel %vm989_vm3, %v4786_v36, %v4785_v51  ;;  %v3720_v57 = vrot.slane %v3433_v47, 5  ;;  %v3722_v58 = vrot.slane %v3434_v48, 4  ;;  %v3724_v59 = vrot.slane %v3435_v49, 3  ;;  %v4502_v60 = vld [vmem:[%s6677_s4 + $0x187] sm:$0x1] }
 0x18b   : > { %v4789_v61 = vsel %vm992_vm4, %v4788_v37, %v4787_v56  ;;  %v3717_v62 = vsel %vm980_vm0, %v3716_v54, %v3430_v38  ;;  %v3726_v63 = vrot.slane %v3436_v52, 2  ;;  %v3728_v0 = vrot.slane %v3437_v53, 1  ;;  %v4503_v1 = vld [vmem:[%s6677_s4 + $0x18f] sm:$0x1]  ;;  %v4504_v2 = vld [vmem:[%s6677_s4 + $0x197] sm:$0x1] }
 0x18c   : > { %v4791_v3 = vsel %vm995_vm5, %v4790_v41, %v4789_v61  ;;  %v3719_v4 = vsel %vm983_vm1, %v3718_v55, %v3717_v62  ;;  %v4505_v5 = vld [vmem:[%s6677_s4 + $0x19f] sm:$0x1]  ;;  %v4506_v6 = vld [vmem:[%s6677_s4 + $0x1a7] sm:$0x1]  ;;  %v4507_v7 = vld [vmem:[%s6677_s4 + $0x1af] sm:$0x1] }
 0x18d   : > { %v4793_v8 = vsel %vm998_vm6, %v4792_v42, %v4791_v3  ;;  %v3721_v9 = vsel %vm986_vm2, %v3720_v57, %v3719_v4  ;;  %v4508_v10 = vld [vmem:[%s6677_s4 + $0x1b7] sm:$0x1]  ;;  %v4509_v11 = vld [vmem:[%s6677_s4 + $0x1bf] sm:$0x1]  ;;  %v4794_v12 = vrot.slane %v4503_v1, 7  ;;  %v4796_v13 = vrot.slane %v4504_v2, 6 }
 0x18e   : > { %4955 = vxpose.xlu1.b32.cont [6/16] (narrow) %v4793_v8, 32  ;;  %v3723_v14 = vsel %vm989_vm3, %v3722_v58, %v3721_v9  ;;  %v4798_v15 = vrot.slane %v4505_v5, 5  ;;  %v4800_v16 = vrot.slane %v4506_v6, 4  ;;  %v4802_v17 = vrot.slane %v4507_v7, 3  ;;  %v3438_v18 = vld [vmem:[%s6677_s4 + $0x185] sm:$0x1] }
 0x18f   : > { %v3725_v19 = vsel %vm992_vm4, %v3724_v59, %v3723_v14  ;;  %v4795_v20 = vsel %vm980_vm0, %v4794_v12, %v4502_v60  ;;  %v4804_v21 = vrot.slane %v4508_v10, 2  ;;  %v4806_v22 = vrot.slane %v4509_v11, 1  ;;  %v3439_v23 = vld [vmem:[%s6677_s4 + $0x18d] sm:$0x1]  ;;  %v3440_v24 = vld [vmem:[%s6677_s4 + $0x195] sm:$0x1] }
 0x190   : > { %v3727_v25 = vsel %vm995_vm5, %v3726_v63, %v3725_v19  ;;  %v4797_v26 = vsel %vm983_vm1, %v4796_v13, %v4795_v20  ;;  %v3441_v27 = vld [vmem:[%s6677_s4 + $0x19d] sm:$0x1]  ;;  %v3442_v28 = vld [vmem:[%s6677_s4 + $0x1a5] sm:$0x1]  ;;  %v3443_v29 = vld [vmem:[%s6677_s4 + $0x1ad] sm:$0x1] }
 0x191   : > { %v3729_v30 = vsel %vm998_vm6, %v3728_v0, %v3727_v25  ;;  %v4799_v31 = vsel %vm986_vm2, %v4798_v15, %v4797_v26  ;;  %v3444_v32 = vld [vmem:[%s6677_s4 + $0x1b5] sm:$0x1]  ;;  %v3445_v33 = vld [vmem:[%s6677_s4 + $0x1bd] sm:$0x1]  ;;  %v3730_v34 = vrot.slane %v3439_v23, 7  ;;  %v3732_v35 = vrot.slane %v3440_v24, 6 }
 0x192   : > { %3891 = vxpose.xlu0.b32.cont [6/16] (narrow) %v3729_v30, 32  ;;  %v4801_v36 = vsel %vm989_vm3, %v4800_v16, %v4799_v31  ;;  %v3734_v37 = vrot.slane %v3441_v27, 5  ;;  %v3736_v38 = vrot.slane %v3442_v28, 4  ;;  %v3738_v39 = vrot.slane %v3443_v29, 3  ;;  %v4510_v40 = vld [vmem:[%s6677_s4 + $0x1c7] sm:$0x1] }
 0x193   : > { %v4803_v41 = vsel %vm992_vm4, %v4802_v17, %v4801_v36  ;;  %v3731_v42 = vsel %vm980_vm0, %v3730_v34, %v3438_v18  ;;  %v3740_v43 = vrot.slane %v3444_v32, 2  ;;  %v3742_v44 = vrot.slane %v3445_v33, 1  ;;  %v4511_v45 = vld [vmem:[%s6677_s4 + $0x1cf] sm:$0x1]  ;;  %v4512_v46 = vld [vmem:[%s6677_s4 + $0x1d7] sm:$0x1] }
 0x194   : > { %v4805_v47 = vsel %vm995_vm5, %v4804_v21, %v4803_v41  ;;  %v3733_v48 = vsel %vm983_vm1, %v3732_v35, %v3731_v42  ;;  %v4513_v49 = vld [vmem:[%s6677_s4 + $0x1df] sm:$0x1]  ;;  %v4514_v50 = vld [vmem:[%s6677_s4 + $0x1e7] sm:$0x1]  ;;  %v4515_v51 = vld [vmem:[%s6677_s4 + $0x1ef] sm:$0x1] }
 0x195   : > { %v4807_v52 = vsel %vm998_vm6, %v4806_v22, %v4805_v47  ;;  %v3735_v53 = vsel %vm986_vm2, %v3734_v37, %v3733_v48  ;;  %v4516_v54 = vld [vmem:[%s6677_s4 + $0x1f7] sm:$0x1]  ;;  %v4517_v55 = vld [vmem:[%s6677_s4 + $0x1ff] sm:$0x1]  ;;  %v4808_v56 = vrot.slane %v4511_v45, 7  ;;  %v4810_v57 = vrot.slane %v4512_v46, 6 }
 0x196   : > { %4956 = vxpose.xlu1.b32.cont [7/16] (narrow) %v4807_v52, 32  ;;  %v3737_v58 = vsel %vm989_vm3, %v3736_v38, %v3735_v53  ;;  %v4812_v59 = vrot.slane %v4513_v49, 5  ;;  %v4814_v60 = vrot.slane %v4514_v50, 4  ;;  %v4816_v61 = vrot.slane %v4515_v51, 3  ;;  %v3446_v62 = vld [vmem:[%s6677_s4 + $0x1c5] sm:$0x1] }
 0x197   : > { %v3739_v63 = vsel %vm992_vm4, %v3738_v39, %v3737_v58  ;;  %v4809_v0 = vsel %vm980_vm0, %v4808_v56, %v4510_v40  ;;  %v4818_v1 = vrot.slane %v4516_v54, 2  ;;  %v4820_v2 = vrot.slane %v4517_v55, 1  ;;  %v3447_v3 = vld [vmem:[%s6677_s4 + $0x1cd] sm:$0x1]  ;;  %v3448_v4 = vld [vmem:[%s6677_s4 + $0x1d5] sm:$0x1] }
 0x198   : > { %v3741_v5 = vsel %vm995_vm5, %v3740_v43, %v3739_v63  ;;  %v4811_v6 = vsel %vm983_vm1, %v4810_v57, %v4809_v0  ;;  %v3449_v7 = vld [vmem:[%s6677_s4 + $0x1dd] sm:$0x1]  ;;  %v3450_v8 = vld [vmem:[%s6677_s4 + $0x1e5] sm:$0x1]  ;;  %v3451_v9 = vld [vmem:[%s6677_s4 + $0x1ed] sm:$0x1] }
 0x199   : > { %v3743_v10 = vsel %vm998_vm6, %v3742_v44, %v3741_v5  ;;  %v4813_v11 = vsel %vm986_vm2, %v4812_v59, %v4811_v6  ;;  %v3452_v12 = vld [vmem:[%s6677_s4 + $0x1f5] sm:$0x1]  ;;  %v3453_v13 = vld [vmem:[%s6677_s4 + $0x1fd] sm:$0x1]  ;;  %v3744_v14 = vrot.slane %v3447_v3, 7  ;;  %v3746_v15 = vrot.slane %v3448_v4, 6 }
 0x19a   : > { %3892 = vxpose.xlu0.b32.cont [7/16] (narrow) %v3743_v10, 32  ;;  %v4815_v16 = vsel %vm989_vm3, %v4814_v60, %v4813_v11  ;;  %v3748_v17 = vrot.slane %v3449_v7, 5  ;;  %v3750_v18 = vrot.slane %v3450_v8, 4  ;;  %v3752_v19 = vrot.slane %v3451_v9, 3  ;;  %v4518_v20 = vld [vmem:[%s6677_s4 + $0x207] sm:$0x1] }
 0x19b   : > { %v4817_v21 = vsel %vm992_vm4, %v4816_v61, %v4815_v16  ;;  %v3745_v22 = vsel %vm980_vm0, %v3744_v14, %v3446_v62  ;;  %v3754_v23 = vrot.slane %v3452_v12, 2  ;;  %v3756_v24 = vrot.slane %v3453_v13, 1  ;;  %v4519_v25 = vld [vmem:[%s6677_s4 + $0x20f] sm:$0x1]  ;;  %v4520_v26 = vld [vmem:[%s6677_s4 + $0x217] sm:$0x1] }
 0x19c   : > { %v4819_v27 = vsel %vm995_vm5, %v4818_v1, %v4817_v21  ;;  %v3747_v28 = vsel %vm983_vm1, %v3746_v15, %v3745_v22  ;;  %v4521_v29 = vld [vmem:[%s6677_s4 + $0x21f] sm:$0x1]  ;;  %v4522_v30 = vld [vmem:[%s6677_s4 + $0x227] sm:$0x1]  ;;  %v4523_v31 = vld [vmem:[%s6677_s4 + $0x22f] sm:$0x1] }
 0x19d   : > { %v4821_v32 = vsel %vm998_vm6, %v4820_v2, %v4819_v27  ;;  %v3749_v33 = vsel %vm986_vm2, %v3748_v17, %v3747_v28  ;;  %v4524_v34 = vld [vmem:[%s6677_s4 + $0x237] sm:$0x1]  ;;  %v4525_v35 = vld [vmem:[%s6677_s4 + $0x23f] sm:$0x1]  ;;  %v4822_v36 = vrot.slane %v4519_v25, 7  ;;  %v4824_v37 = vrot.slane %v4520_v26, 6 }
 0x19e   : > { %4957 = vxpose.xlu1.b32.cont [8/16] (narrow) %v4821_v32, 32  ;;  %v3751_v38 = vsel %vm989_vm3, %v3750_v18, %v3749_v33  ;;  %v4826_v39 = vrot.slane %v4521_v29, 5  ;;  %v4828_v40 = vrot.slane %v4522_v30, 4  ;;  %v4830_v41 = vrot.slane %v4523_v31, 3  ;;  %v3454_v42 = vld [vmem:[%s6677_s4 + $0x205] sm:$0x1] }
 0x19f   : > { %v3753_v43 = vsel %vm992_vm4, %v3752_v19, %v3751_v38  ;;  %v4823_v44 = vsel %vm980_vm0, %v4822_v36, %v4518_v20  ;;  %v4832_v45 = vrot.slane %v4524_v34, 2  ;;  %v4834_v46 = vrot.slane %v4525_v35, 1  ;;  %v3455_v47 = vld [vmem:[%s6677_s4 + $0x20d] sm:$0x1]  ;;  %v3456_v48 = vld [vmem:[%s6677_s4 + $0x215] sm:$0x1] }
 0x1a0   : > { %v3755_v49 = vsel %vm995_vm5, %v3754_v23, %v3753_v43  ;;  %v4825_v50 = vsel %vm983_vm1, %v4824_v37, %v4823_v44  ;;  %v3457_v51 = vld [vmem:[%s6677_s4 + $0x21d] sm:$0x1]  ;;  %v3458_v52 = vld [vmem:[%s6677_s4 + $0x225] sm:$0x1]  ;;  %v3459_v53 = vld [vmem:[%s6677_s4 + $0x22d] sm:$0x1] }
 0x1a1   : > { %v3757_v54 = vsel %vm998_vm6, %v3756_v24, %v3755_v49  ;;  %v4827_v55 = vsel %vm986_vm2, %v4826_v39, %v4825_v50  ;;  %v3460_v56 = vld [vmem:[%s6677_s4 + $0x235] sm:$0x1]  ;;  %v3461_v57 = vld [vmem:[%s6677_s4 + $0x23d] sm:$0x1]  ;;  %v3758_v58 = vrot.slane %v3455_v47, 7  ;;  %v3760_v59 = vrot.slane %v3456_v48, 6 }
 0x1a2   : > { %3893 = vxpose.xlu0.b32.cont [8/16] (narrow) %v3757_v54, 32  ;;  %v4829_v60 = vsel %vm989_vm3, %v4828_v40, %v4827_v55  ;;  %v3762_v61 = vrot.slane %v3457_v51, 5  ;;  %v3764_v62 = vrot.slane %v3458_v52, 4  ;;  %v3766_v63 = vrot.slane %v3459_v53, 3  ;;  %v4526_v0 = vld [vmem:[%s6677_s4 + $0x247] sm:$0x1] }
 0x1a3   : > { %v4831_v1 = vsel %vm992_vm4, %v4830_v41, %v4829_v60  ;;  %v3759_v2 = vsel %vm980_vm0, %v3758_v58, %v3454_v42  ;;  %v3768_v3 = vrot.slane %v3460_v56, 2  ;;  %v3770_v4 = vrot.slane %v3461_v57, 1  ;;  %v4527_v5 = vld [vmem:[%s6677_s4 + $0x24f] sm:$0x1]  ;;  %v4528_v6 = vld [vmem:[%s6677_s4 + $0x257] sm:$0x1] }
 0x1a4   : > { %v4833_v7 = vsel %vm995_vm5, %v4832_v45, %v4831_v1  ;;  %v3761_v8 = vsel %vm983_vm1, %v3760_v59, %v3759_v2  ;;  %v4529_v9 = vld [vmem:[%s6677_s4 + $0x25f] sm:$0x1]  ;;  %v4530_v10 = vld [vmem:[%s6677_s4 + $0x267] sm:$0x1]  ;;  %v4531_v11 = vld [vmem:[%s6677_s4 + $0x26f] sm:$0x1] }
 0x1a5   : > { %v4835_v12 = vsel %vm998_vm6, %v4834_v46, %v4833_v7  ;;  %v3763_v13 = vsel %vm986_vm2, %v3762_v61, %v3761_v8  ;;  %v4532_v14 = vld [vmem:[%s6677_s4 + $0x277] sm:$0x1]  ;;  %v4533_v15 = vld [vmem:[%s6677_s4 + $0x27f] sm:$0x1]  ;;  %v4836_v16 = vrot.slane %v4527_v5, 7  ;;  %v4838_v17 = vrot.slane %v4528_v6, 6 }
 0x1a6   : > { %4958 = vxpose.xlu1.b32.cont [9/16] (narrow) %v4835_v12, 32  ;;  %v3765_v18 = vsel %vm989_vm3, %v3764_v62, %v3763_v13  ;;  %v4840_v19 = vrot.slane %v4529_v9, 5  ;;  %v4842_v20 = vrot.slane %v4530_v10, 4  ;;  %v4844_v21 = vrot.slane %v4531_v11, 3  ;;  %v3462_v22 = vld [vmem:[%s6677_s4 + $0x245] sm:$0x1] }
 0x1a7   : > { %v3767_v23 = vsel %vm992_vm4, %v3766_v63, %v3765_v18  ;;  %v4837_v24 = vsel %vm980_vm0, %v4836_v16, %v4526_v0  ;;  %v4846_v25 = vrot.slane %v4532_v14, 2  ;;  %v4848_v26 = vrot.slane %v4533_v15, 1  ;;  %v3463_v27 = vld [vmem:[%s6677_s4 + $0x24d] sm:$0x1]  ;;  %v3464_v28 = vld [vmem:[%s6677_s4 + $0x255] sm:$0x1] }
 0x1a8   : > { %v3769_v29 = vsel %vm995_vm5, %v3768_v3, %v3767_v23  ;;  %v4839_v30 = vsel %vm983_vm1, %v4838_v17, %v4837_v24  ;;  %v3465_v31 = vld [vmem:[%s6677_s4 + $0x25d] sm:$0x1]  ;;  %v3466_v32 = vld [vmem:[%s6677_s4 + $0x265] sm:$0x1]  ;;  %v3467_v33 = vld [vmem:[%s6677_s4 + $0x26d] sm:$0x1] }
 0x1a9   : > { %v3771_v34 = vsel %vm998_vm6, %v3770_v4, %v3769_v29  ;;  %v4841_v35 = vsel %vm986_vm2, %v4840_v19, %v4839_v30  ;;  %v3468_v36 = vld [vmem:[%s6677_s4 + $0x275] sm:$0x1]  ;;  %v3469_v37 = vld [vmem:[%s6677_s4 + $0x27d] sm:$0x1]  ;;  %v3772_v38 = vrot.slane %v3463_v27, 7  ;;  %v3774_v39 = vrot.slane %v3464_v28, 6 }
 0x1aa   : > { %3894 = vxpose.xlu0.b32.cont [9/16] (narrow) %v3771_v34, 32  ;;  %v4843_v40 = vsel %vm989_vm3, %v4842_v20, %v4841_v35  ;;  %v3776_v41 = vrot.slane %v3465_v31, 5  ;;  %v3778_v42 = vrot.slane %v3466_v32, 4  ;;  %v3780_v43 = vrot.slane %v3467_v33, 3  ;;  %v4534_v44 = vld [vmem:[%s6677_s4 + $0x287] sm:$0x1] }
 0x1ab   : > { %v4845_v45 = vsel %vm992_vm4, %v4844_v21, %v4843_v40  ;;  %v3773_v46 = vsel %vm980_vm0, %v3772_v38, %v3462_v22  ;;  %v3782_v47 = vrot.slane %v3468_v36, 2  ;;  %v3784_v48 = vrot.slane %v3469_v37, 1  ;;  %v4535_v49 = vld [vmem:[%s6677_s4 + $0x28f] sm:$0x1]  ;;  %v4536_v50 = vld [vmem:[%s6677_s4 + $0x297] sm:$0x1] }
 0x1ac   : > { %v4847_v51 = vsel %vm995_vm5, %v4846_v25, %v4845_v45  ;;  %v3775_v52 = vsel %vm983_vm1, %v3774_v39, %v3773_v46  ;;  %v4537_v53 = vld [vmem:[%s6677_s4 + $0x29f] sm:$0x1]  ;;  %v4538_v54 = vld [vmem:[%s6677_s4 + $0x2a7] sm:$0x1]  ;;  %v4539_v55 = vld [vmem:[%s6677_s4 + $0x2af] sm:$0x1] }
 0x1ad   : > { %v4849_v56 = vsel %vm998_vm6, %v4848_v26, %v4847_v51  ;;  %v3777_v57 = vsel %vm986_vm2, %v3776_v41, %v3775_v52  ;;  %v4540_v58 = vld [vmem:[%s6677_s4 + $0x2b7] sm:$0x1]  ;;  %v4541_v59 = vld [vmem:[%s6677_s4 + $0x2bf] sm:$0x1]  ;;  %v4850_v60 = vrot.slane %v4535_v49, 7  ;;  %v4852_v61 = vrot.slane %v4536_v50, 6 }
 0x1ae   : > { %4959 = vxpose.xlu1.b32.cont [10/16] (narrow) %v4849_v56, 32  ;;  %v3779_v62 = vsel %vm989_vm3, %v3778_v42, %v3777_v57  ;;  %v4854_v63 = vrot.slane %v4537_v53, 5  ;;  %v4856_v0 = vrot.slane %v4538_v54, 4  ;;  %v4858_v1 = vrot.slane %v4539_v55, 3  ;;  %v3470_v2 = vld [vmem:[%s6677_s4 + $0x285] sm:$0x1] }
 0x1af   : > { %v3781_v3 = vsel %vm992_vm4, %v3780_v43, %v3779_v62  ;;  %v4851_v4 = vsel %vm980_vm0, %v4850_v60, %v4534_v44  ;;  %v4860_v5 = vrot.slane %v4540_v58, 2  ;;  %v4862_v6 = vrot.slane %v4541_v59, 1  ;;  %v3471_v7 = vld [vmem:[%s6677_s4 + $0x28d] sm:$0x1]  ;;  %v3472_v8 = vld [vmem:[%s6677_s4 + $0x295] sm:$0x1] }
 0x1b0   : > { %v3783_v9 = vsel %vm995_vm5, %v3782_v47, %v3781_v3  ;;  %v4853_v10 = vsel %vm983_vm1, %v4852_v61, %v4851_v4  ;;  %v3473_v11 = vld [vmem:[%s6677_s4 + $0x29d] sm:$0x1]  ;;  %v3474_v12 = vld [vmem:[%s6677_s4 + $0x2a5] sm:$0x1]  ;;  %v3475_v13 = vld [vmem:[%s6677_s4 + $0x2ad] sm:$0x1] }
 0x1b1   : > { %v3785_v14 = vsel %vm998_vm6, %v3784_v48, %v3783_v9  ;;  %v4855_v15 = vsel %vm986_vm2, %v4854_v63, %v4853_v10  ;;  %v3476_v16 = vld [vmem:[%s6677_s4 + $0x2b5] sm:$0x1]  ;;  %v3477_v17 = vld [vmem:[%s6677_s4 + $0x2bd] sm:$0x1]  ;;  %v3786_v18 = vrot.slane %v3471_v7, 7  ;;  %v3788_v19 = vrot.slane %v3472_v8, 6 }
 0x1b2   : > { %3895 = vxpose.xlu0.b32.cont [10/16] (narrow) %v3785_v14, 32  ;;  %v4857_v20 = vsel %vm989_vm3, %v4856_v0, %v4855_v15  ;;  %v3790_v21 = vrot.slane %v3473_v11, 5  ;;  %v3792_v22 = vrot.slane %v3474_v12, 4  ;;  %v3794_v23 = vrot.slane %v3475_v13, 3  ;;  %v4542_v24 = vld [vmem:[%s6677_s4 + $0x2c7] sm:$0x1] }
 0x1b3   : > { %v4859_v25 = vsel %vm992_vm4, %v4858_v1, %v4857_v20  ;;  %v3787_v26 = vsel %vm980_vm0, %v3786_v18, %v3470_v2  ;;  %v3796_v27 = vrot.slane %v3476_v16, 2  ;;  %v3798_v28 = vrot.slane %v3477_v17, 1  ;;  %v4543_v29 = vld [vmem:[%s6677_s4 + $0x2cf] sm:$0x1]  ;;  %v4544_v30 = vld [vmem:[%s6677_s4 + $0x2d7] sm:$0x1] }
 0x1b4   : > { %v4861_v31 = vsel %vm995_vm5, %v4860_v5, %v4859_v25  ;;  %v3789_v32 = vsel %vm983_vm1, %v3788_v19, %v3787_v26  ;;  %v4545_v33 = vld [vmem:[%s6677_s4 + $0x2df] sm:$0x1]  ;;  %v4546_v34 = vld [vmem:[%s6677_s4 + $0x2e7] sm:$0x1]  ;;  %v4547_v35 = vld [vmem:[%s6677_s4 + $0x2ef] sm:$0x1] }
 0x1b5   : > { %v4863_v36 = vsel %vm998_vm6, %v4862_v6, %v4861_v31  ;;  %v3791_v37 = vsel %vm986_vm2, %v3790_v21, %v3789_v32  ;;  %v4548_v38 = vld [vmem:[%s6677_s4 + $0x2f7] sm:$0x1]  ;;  %v4549_v39 = vld [vmem:[%s6677_s4 + $0x2ff] sm:$0x1]  ;;  %v4864_v40 = vrot.slane %v4543_v29, 7  ;;  %v4866_v41 = vrot.slane %v4544_v30, 6 }
 0x1b6   : > { %4960 = vxpose.xlu1.b32.cont [11/16] (narrow) %v4863_v36, 32  ;;  %v3793_v42 = vsel %vm989_vm3, %v3792_v22, %v3791_v37  ;;  %v4868_v43 = vrot.slane %v4545_v33, 5  ;;  %v4870_v44 = vrot.slane %v4546_v34, 4  ;;  %v4872_v45 = vrot.slane %v4547_v35, 3  ;;  %v3478_v46 = vld [vmem:[%s6677_s4 + $0x2c5] sm:$0x1] }
 0x1b7   : > { %v3795_v47 = vsel %vm992_vm4, %v3794_v23, %v3793_v42  ;;  %v4865_v48 = vsel %vm980_vm0, %v4864_v40, %v4542_v24  ;;  %v4874_v49 = vrot.slane %v4548_v38, 2  ;;  %v4876_v50 = vrot.slane %v4549_v39, 1  ;;  %v3479_v51 = vld [vmem:[%s6677_s4 + $0x2cd] sm:$0x1]  ;;  %v3480_v52 = vld [vmem:[%s6677_s4 + $0x2d5] sm:$0x1]  ;;  %v8014_v38 = vpop.trf.xlu1  ;;  %v8016_v39 = vpop.trf.xlu0 }
 0x1b8   : > { %v3797_v53 = vsel %vm995_vm5, %v3796_v27, %v3795_v47  ;;  %v4867_v54 = vsel %vm983_vm1, %v4866_v41, %v4865_v48  ;;  %v3481_v55 = vld [vmem:[%s6677_s4 + $0x2dd] sm:$0x1]  ;;  %v3482_v56 = vld [vmem:[%s6677_s4 + $0x2e5] sm:$0x1]  ;;  %v3483_v57 = vld [vmem:[%s6677_s4 + $0x2ed] sm:$0x1] }
 0x1b9   : > { %v3799_v58 = vsel %vm998_vm6, %v3798_v28, %v3797_v53  ;;  %v4869_v59 = vsel %vm986_vm2, %v4868_v43, %v4867_v54  ;;  %v3484_v60 = vld [vmem:[%s6677_s4 + $0x2f5] sm:$0x1]  ;;  %v3485_v61 = vld [vmem:[%s6677_s4 + $0x2fd] sm:$0x1]  ;;  %v3800_v62 = vrot.slane %v3479_v51, 7  ;;  %v3802_v63 = vrot.slane %v3480_v52, 6 }
 0x1ba   : > { %3896 = vxpose.xlu0.b32.cont [11/16] (narrow) %v3799_v58, 32  ;;  %v4871_v0 = vsel %vm989_vm3, %v4870_v44, %v4869_v59  ;;  %v3804_v1 = vrot.slane %v3481_v55, 5  ;;  %v3806_v2 = vrot.slane %v3482_v56, 4  ;;  %v3808_v3 = vrot.slane %v3483_v57, 3  ;;  %v4550_v4 = vld [vmem:[%s6677_s4 + $0x307] sm:$0x1] }
 0x1bb   : > { %v4873_v5 = vsel %vm992_vm4, %v4872_v45, %v4871_v0  ;;  %v3801_v6 = vsel %vm980_vm0, %v3800_v62, %v3478_v46  ;;  %v3810_v7 = vrot.slane %v3484_v60, 2  ;;  %v3812_v8 = vrot.slane %v3485_v61, 1  ;;  %v4551_v9 = vld [vmem:[%s6677_s4 + $0x30f] sm:$0x1]  ;;  %v4552_v10 = vld [vmem:[%s6677_s4 + $0x317] sm:$0x1] }
 0x1bc   : > { %v4875_v11 = vsel %vm995_vm5, %v4874_v49, %v4873_v5  ;;  %v3803_v12 = vsel %vm983_vm1, %v3802_v63, %v3801_v6  ;;  %v4553_v13 = vld [vmem:[%s6677_s4 + $0x31f] sm:$0x1]  ;;  %v4554_v14 = vld [vmem:[%s6677_s4 + $0x327] sm:$0x1]  ;;  %v4555_v15 = vld [vmem:[%s6677_s4 + $0x32f] sm:$0x1] }
 0x1bd   : > { %v4877_v16 = vsel %vm998_vm6, %v4876_v50, %v4875_v11  ;;  %v3805_v17 = vsel %vm986_vm2, %v3804_v1, %v3803_v12  ;;  %v4556_v18 = vld [vmem:[%s6677_s4 + $0x337] sm:$0x1]  ;;  %v4557_v19 = vld [vmem:[%s6677_s4 + $0x33f] sm:$0x1]  ;;  %v4878_v20 = vrot.slane %v4551_v9, 7  ;;  %v4880_v21 = vrot.slane %v4552_v10, 6  ;;  %v8039_v9 = vpop.trf.xlu1  ;;  %v8041_v10 = vpop.trf.xlu0 }
 0x1be   : > { %4961 = vxpose.xlu1.b32.cont [12/16] (narrow) %v4877_v16, 32  ;;  %v3807_v22 = vsel %vm989_vm3, %v3806_v2, %v3805_v17  ;;  %v4882_v23 = vrot.slane %v4553_v13, 5  ;;  %v4884_v24 = vrot.slane %v4554_v14, 4  ;;  %v4886_v25 = vrot.slane %v4555_v15, 3  ;;  %v3486_v26 = vld [vmem:[%s6677_s4 + $0x305] sm:$0x1] }
 0x1bf   : > { %v3809_v27 = vsel %vm992_vm4, %v3808_v3, %v3807_v22  ;;  %v4879_v28 = vsel %vm980_vm0, %v4878_v20, %v4550_v4  ;;  %v4888_v29 = vrot.slane %v4556_v18, 2  ;;  %v4890_v30 = vrot.slane %v4557_v19, 1  ;;  %v3487_v31 = vld [vmem:[%s6677_s4 + $0x30d] sm:$0x1]  ;;  %v3488_v32 = vld [vmem:[%s6677_s4 + $0x315] sm:$0x1] }
 0x1c0   : > { %v3811_v33 = vsel %vm995_vm5, %v3810_v7, %v3809_v27  ;;  %v4881_v34 = vsel %vm983_vm1, %v4880_v21, %v4879_v28  ;;  %v3489_v35 = vld [vmem:[%s6677_s4 + $0x31d] sm:$0x1]  ;;  %v3490_v36 = vld [vmem:[%s6677_s4 + $0x325] sm:$0x1]  ;;  %v3491_v37 = vld [vmem:[%s6677_s4 + $0x32d] sm:$0x1] }
 0x1c1   : > { %v3813_v40 = vsel %vm998_vm6, %v3812_v8, %v3811_v33  ;;  %v4883_v41 = vsel %vm986_vm2, %v4882_v23, %v4881_v34  ;;  %v3492_v42 = vld [vmem:[%s6677_s4 + $0x335] sm:$0x1]  ;;  %v3493_v43 = vld [vmem:[%s6677_s4 + $0x33d] sm:$0x1]  ;;  %v3814_v44 = vrot.slane %v3487_v31, 7  ;;  %v3816_v45 = vrot.slane %v3488_v32, 6 }
 0x1c2   : > { %3897 = vxpose.xlu0.b32.cont [12/16] (narrow) %v3813_v40, 32  ;;  %v4885_v46 = vsel %vm989_vm3, %v4884_v24, %v4883_v41  ;;  %v3818_v47 = vrot.slane %v3489_v35, 5  ;;  %v3820_v48 = vrot.slane %v3490_v36, 4  ;;  %v3822_v49 = vrot.slane %v3491_v37, 3  ;;  %v4558_v50 = vld [vmem:[%s6677_s4 + $0x347] sm:$0x1] }
 0x1c3   : > { %v4887_v51 = vsel %vm992_vm4, %v4886_v25, %v4885_v46  ;;  %v3815_v52 = vsel %vm980_vm0, %v3814_v44, %v3486_v26  ;;  %v3824_v53 = vrot.slane %v3492_v42, 2  ;;  %v3826_v54 = vrot.slane %v3493_v43, 1  ;;  %v4559_v55 = vld [vmem:[%s6677_s4 + $0x34f] sm:$0x1]  ;;  %v4560_v56 = vld [vmem:[%s6677_s4 + $0x357] sm:$0x1]  ;;  %v8067_v46 = vpop.trf.xlu1 }
 0x1c4   : > { %v4889_v57 = vsel %vm995_vm5, %v4888_v29, %v4887_v51  ;;  %v3817_v58 = vsel %vm983_vm1, %v3816_v45, %v3815_v52  ;;  %v4561_v59 = vld [vmem:[%s6677_s4 + $0x35f] sm:$0x1]  ;;  %v4562_v60 = vld [vmem:[%s6677_s4 + $0x367] sm:$0x1]  ;;  %v4563_v61 = vld [vmem:[%s6677_s4 + $0x36f] sm:$0x1] }
 0x1c5   : > { %v4891_v62 = vsel %vm998_vm6, %v4890_v30, %v4889_v57  ;;  %v3819_v63 = vsel %vm986_vm2, %v3818_v47, %v3817_v58  ;;  %v4564_v0 = vld [vmem:[%s6677_s4 + $0x377] sm:$0x1]  ;;  %v4565_v1 = vld [vmem:[%s6677_s4 + $0x37f] sm:$0x1]  ;;  %v4892_v2 = vrot.slane %v4559_v55, 7  ;;  %v4894_v3 = vrot.slane %v4560_v56, 6  ;;  %v8069_v47 = vpop.trf.xlu0 }
 0x1c6   : > { %4962 = vxpose.xlu1.b32.cont [13/16] (narrow) %v4891_v62, 32  ;;  %v3821_v4 = vsel %vm989_vm3, %v3820_v48, %v3819_v63  ;;  %v4896_v5 = vrot.slane %v4561_v59, 5  ;;  %v4898_v6 = vrot.slane %v4562_v60, 4  ;;  %v4900_v7 = vrot.slane %v4563_v61, 3  ;;  %v3494_v8 = vld [vmem:[%s6677_s4 + $0x345] sm:$0x1] }
 0x1c7   : > { %v3823_v11 = vsel %vm992_vm4, %v3822_v49, %v3821_v4  ;;  %v4893_v12 = vsel %vm980_vm0, %v4892_v2, %v4558_v50  ;;  %v4902_v13 = vrot.slane %v4564_v0, 2  ;;  %v4904_v14 = vrot.slane %v4565_v1, 1  ;;  %v3495_v15 = vld [vmem:[%s6677_s4 + $0x34d] sm:$0x1]  ;;  %v3496_v16 = vld [vmem:[%s6677_s4 + $0x355] sm:$0x1] }
 0x1c8   : > { %v3825_v17 = vsel %vm995_vm5, %v3824_v53, %v3823_v11  ;;  %v4895_v18 = vsel %vm983_vm1, %v4894_v3, %v4893_v12  ;;  %v3497_v19 = vld [vmem:[%s6677_s4 + $0x35d] sm:$0x1]  ;;  %v3498_v20 = vld [vmem:[%s6677_s4 + $0x365] sm:$0x1]  ;;  %v3499_v21 = vld [vmem:[%s6677_s4 + $0x36d] sm:$0x1] }
 0x1c9   : > { %v3827_v22 = vsel %vm998_vm6, %v3826_v54, %v3825_v17  ;;  %v4897_v23 = vsel %vm986_vm2, %v4896_v5, %v4895_v18  ;;  %v3500_v24 = vld [vmem:[%s6677_s4 + $0x375] sm:$0x1]  ;;  %v3501_v25 = vld [vmem:[%s6677_s4 + $0x37d] sm:$0x1]  ;;  %v3828_v26 = vrot.slane %v3495_v15, 7  ;;  %v3830_v27 = vrot.slane %v3496_v16, 6 }
 0x1ca   : > { %3898 = vxpose.xlu0.b32.cont [13/16] (narrow) %v3827_v22, 32  ;;  %v4899_v28 = vsel %vm989_vm3, %v4898_v6, %v4897_v23  ;;  %v3832_v29 = vrot.slane %v3497_v19, 5  ;;  %v3834_v30 = vrot.slane %v3498_v20, 4  ;;  %v3836_v31 = vrot.slane %v3499_v21, 3  ;;  %v4566_v32 = vld [vmem:[%s6677_s4 + $0x387] sm:$0x1]  ;;  %v2841_v19 = vpop.trf.xlu1  ;;  %v1777_v20 = vpop.trf.xlu0 }
 0x1cb   : > { %v4901_v33 = vsel %vm992_vm4, %v4900_v7, %v4899_v28  ;;  %v3829_v34 = vsel %vm980_vm0, %v3828_v26, %v3494_v8  ;;  %v3838_v35 = vrot.slane %v3500_v24, 2  ;;  %v3840_v36 = vrot.slane %v3501_v25, 1  ;;  %v4567_v37 = vld [vmem:[%s6677_s4 + $0x38f] sm:$0x1]  ;;  %v4568_v40 = vld [vmem:[%s6677_s4 + $0x397] sm:$0x1]  ;;  %5188 = vmatprep.subr.mxu1 %v2841_v19  ;;  %5075 = vmatprep.subr.mxu0 %v1777_v20 }
 0x1cc   : > { %v4903_v41 = vsel %vm995_vm5, %v4902_v13, %v4901_v33  ;;  %v3831_v42 = vsel %vm983_vm1, %v3830_v27, %v3829_v34  ;;  %v4569_v43 = vld [vmem:[%s6677_s4 + $0x39f] sm:$0x1]  ;;  %v4570_v44 = vld [vmem:[%s6677_s4 + $0x3a7] sm:$0x1]  ;;  %v4571_v45 = vld [vmem:[%s6677_s4 + $0x3af] sm:$0x1] }
 0x1cd   : > { %v4905_v48 = vsel %vm998_vm6, %v4904_v14, %v4903_v41  ;;  %v3833_v49 = vsel %vm986_vm2, %v3832_v29, %v3831_v42  ;;  %v4572_v50 = vld [vmem:[%s6677_s4 + $0x3b7] sm:$0x1]  ;;  %v4573_v51 = vld [vmem:[%s6677_s4 + $0x3bf] sm:$0x1]  ;;  %v4906_v52 = vrot.slane %v4567_v37, 7  ;;  %v4908_v53 = vrot.slane %v4568_v40, 6 }
 0x1ce   : > { %4963 = vxpose.xlu1.b32.cont [14/16] (narrow) %v4905_v48, 32  ;;  %v3835_v54 = vsel %vm989_vm3, %v3834_v30, %v3833_v49  ;;  %v4910_v55 = vrot.slane %v4569_v43, 5  ;;  %v4912_v56 = vrot.slane %v4570_v44, 4  ;;  %v4914_v57 = vrot.slane %v4571_v45, 3  ;;  %v3502_v58 = vld [vmem:[%s6677_s4 + $0x385] sm:$0x1]  ;;  %v8133_v19 = vpop.trf.xlu0 }
 0x1cf   : > { %v3837_v59 = vsel %vm992_vm4, %v3836_v31, %v3835_v54  ;;  %v4907_v60 = vsel %vm980_vm0, %v4906_v52, %v4566_v32  ;;  %v4916_v61 = vrot.slane %v4572_v50, 2  ;;  %v4918_v62 = vrot.slane %v4573_v51, 1  ;;  %v3503_v63 = vld [vmem:[%s6677_s4 + $0x38d] sm:$0x1]  ;;  %v3504_v0 = vld [vmem:[%s6677_s4 + $0x395] sm:$0x1] }
 0x1d0   : > { %v3839_v1 = vsel %vm995_vm5, %v3838_v35, %v3837_v59  ;;  %v4909_v2 = vsel %vm983_vm1, %v4908_v53, %v4907_v60  ;;  %v3505_v3 = vld [vmem:[%s6677_s4 + $0x39d] sm:$0x1]  ;;  %v3506_v4 = vld [vmem:[%s6677_s4 + $0x3a5] sm:$0x1]  ;;  %v3507_v5 = vld [vmem:[%s6677_s4 + $0x3ad] sm:$0x1] }
 0x1d1   : > { %v3841_v6 = vsel %vm998_vm6, %v3840_v36, %v3839_v1  ;;  %v4911_v7 = vsel %vm986_vm2, %v4910_v55, %v4909_v2  ;;  %v3508_v8 = vld [vmem:[%s6677_s4 + $0x3b5] sm:$0x1]  ;;  %v3509_v11 = vld [vmem:[%s6677_s4 + $0x3bd] sm:$0x1]  ;;  %v3842_v12 = vrot.slane %v3503_v63, 7  ;;  %v3844_v13 = vrot.slane %v3504_v0, 6 }
 0x1d2   : > { %3899 = vxpose.xlu0.b32.cont [14/16] (narrow) %v3841_v6, 32  ;;  %v4913_v14 = vsel %vm989_vm3, %v4912_v56, %v4911_v7  ;;  %v3846_v15 = vrot.slane %v3505_v3, 5  ;;  %v3848_v16 = vrot.slane %v3506_v4, 4  ;;  %v3850_v17 = vrot.slane %v3507_v5, 3  ;;  %v4574_v18 = vld [vmem:[%s6677_s4 + $0x3c7] sm:$0x1] }
 0x1d3   : > { %v4915_v21 = vsel %vm992_vm4, %v4914_v57, %v4913_v14  ;;  %v3843_v22 = vsel %vm980_vm0, %v3842_v12, %v3502_v58  ;;  %v3852_v23 = vrot.slane %v3508_v8, 2  ;;  %v3854_v24 = vrot.slane %v3509_v11, 1  ;;  %v4575_v25 = vld [vmem:[%s6677_s4 + $0x3cf] sm:$0x1]  ;;  %v4576_v26 = vld [vmem:[%s6677_s4 + $0x3d7] sm:$0x1] }
 0x1d4   : > { %v4917_v27 = vsel %vm995_vm5, %v4916_v61, %v4915_v21  ;;  %v3845_v28 = vsel %vm983_vm1, %v3844_v13, %v3843_v22  ;;  %v4577_v29 = vld [vmem:[%s6677_s4 + $0x3df] sm:$0x1]  ;;  %v4578_v30 = vld [vmem:[%s6677_s4 + $0x3e7] sm:$0x1]  ;;  %v4579_v31 = vld [vmem:[%s6677_s4 + $0x3ef] sm:$0x1] }
 0x1d5   : > { %v4919_v32 = vsel %vm998_vm6, %v4918_v62, %v4917_v27  ;;  %v3847_v33 = vsel %vm986_vm2, %v3846_v15, %v3845_v28  ;;  %v4580_v34 = vld [vmem:[%s6677_s4 + $0x3f7] sm:$0x1]  ;;  %v4581_v35 = vld [vmem:[%s6677_s4 + $0x3ff] sm:$0x1]  ;;  %v4920_v36 = vrot.slane %v4575_v25, 7  ;;  %v4922_v37 = vrot.slane %v4576_v26, 6 }
 0x1d6   : > { %4964 = vxpose.xlu1.b32.cont [15/16] (narrow) %v4919_v32, 32  ;;  %v3849_v40 = vsel %vm989_vm3, %v3848_v16, %v3847_v33  ;;  %v4924_v41 = vrot.slane %v4577_v29, 5  ;;  %v4926_v42 = vrot.slane %v4578_v30, 4  ;;  %v4928_v43 = vrot.slane %v4579_v31, 3  ;;  %v3510_v44 = vld [vmem:[%s6677_s4 + $0x3c5] sm:$0x1] }
 0x1d7   : > { %v3851_v45 = vsel %vm992_vm4, %v3850_v17, %v3849_v40  ;;  %v4921_v48 = vsel %vm980_vm0, %v4920_v36, %v4574_v18  ;;  %v4930_v49 = vrot.slane %v4580_v34, 2  ;;  %v4932_v50 = vrot.slane %v4581_v35, 1  ;;  %v3511_v51 = vld [vmem:[%s6677_s4 + $0x3cd] sm:$0x1]  ;;  %v3512_v52 = vld [vmem:[%s6677_s4 + $0x3d5] sm:$0x1]  ;;  %v8131_v18 = vpop.trf.xlu1 }
 0x1d8   : > { %v3853_v53 = vsel %vm995_vm5, %v3852_v23, %v3851_v45  ;;  %v4923_v54 = vsel %vm983_vm1, %v4922_v37, %v4921_v48  ;;  %v3513_v55 = vld [vmem:[%s6677_s4 + $0x3dd] sm:$0x1]  ;;  %v3514_v56 = vld [vmem:[%s6677_s4 + $0x3e5] sm:$0x1]  ;;  %v3515_v57 = vld [vmem:[%s6677_s4 + $0x3ed] sm:$0x1] }
 0x1d9   : > { %v3855_v58 = vsel %vm998_vm6, %v3854_v24, %v3853_v53  ;;  %v4925_v59 = vsel %vm986_vm2, %v4924_v41, %v4923_v54  ;;  %v3516_v60 = vld [vmem:[%s6677_s4 + $0x3f5] sm:$0x1]  ;;  %v3517_v61 = vld [vmem:[%s6677_s4 + $0x3fd] sm:$0x1]  ;;  %v3856_v62 = vrot.slane %v3511_v51, 7  ;;  %v3858_v63 = vrot.slane %v3512_v52, 6 }
 0x1da   : > { %3900 = vxpose.xlu0.b32.cont [15/16] (narrow) %v3855_v58, 32  ;;  %v4927_v0 = vsel %vm989_vm3, %v4926_v42, %v4925_v59  ;;  %v3860_v1 = vrot.slane %v3513_v55, 5  ;;  %v3862_v2 = vrot.slane %v3514_v56, 4  ;;  %v3864_v3 = vrot.slane %v3515_v57, 3  ;;  %v3922_v4 = vld [vmem:[%s6677_s4 + $0x6] sm:$0x1]  ;;  %v8158_v58 = vpop.trf.xlu0 }
 0x1db   : > { %v4929_v5 = vsel %vm992_vm4, %v4928_v43, %v4927_v0  ;;  %v3857_v6 = vsel %vm980_vm0, %v3856_v62, %v3510_v44  ;;  %v3866_v7 = vrot.slane %v3516_v60, 2  ;;  %v3868_v8 = vrot.slane %v3517_v61, 1  ;;  %v3923_v11 = vld [vmem:[%s6677_s4 + $0xe] sm:$0x1]  ;;  %v3924_v12 = vld [vmem:[%s6677_s4 + $0x16] sm:$0x1]  ;;  %v8156_v57 = vpop.trf.xlu1 }
 0x1dc   : > { %v4931_v13 = vsel %vm995_vm5, %v4930_v49, %v4929_v5  ;;  %v3859_v14 = vsel %vm983_vm1, %v3858_v63, %v3857_v6  ;;  %v3925_v15 = vld [vmem:[%s6677_s4 + $0x1e] sm:$0x1]  ;;  %v3926_v16 = vld [vmem:[%s6677_s4 + $0x26] sm:$0x1]  ;;  %v3927_v17 = vld [vmem:[%s6677_s4 + $0x2e] sm:$0x1] }
 0x1dd   : > { %v4933_v20 = vsel %vm998_vm6, %v4932_v50, %v4931_v13  ;;  %v3861_v21 = vsel %vm986_vm2, %v3860_v1, %v3859_v14  ;;  %v3928_v22 = vld [vmem:[%s6677_s4 + $0x36] sm:$0x1]  ;;  %v3929_v23 = vld [vmem:[%s6677_s4 + $0x3e] sm:$0x1]  ;;  %v4178_v24 = vrot.slane %v3923_v11, 7  ;;  %v4180_v25 = vrot.slane %v3924_v12, 6 }
 0x1de   : > { %4965 = vxpose.xlu1.b32.end [16/16] (narrow) %v4933_v20, 32  ;;  %v3863_v26 = vsel %vm989_vm3, %v3862_v2, %v3861_v21  ;;  %v4182_v27 = vrot.slane %v3925_v15, 5  ;;  %v4184_v28 = vrot.slane %v3926_v16, 4  ;;  %v4186_v29 = vrot.slane %v3927_v17, 3  ;;  %v2858_v30 = vld [vmem:[%s6677_s4 + $0x4] sm:$0x1] }
 0x1df   : > { %v3865_v31 = vsel %vm992_vm4, %v3864_v3, %v3863_v26  ;;  %v4179_v32 = vsel %vm980_vm0, %v4178_v24, %v3922_v4  ;;  %v4188_v33 = vrot.slane %v3928_v22, 2  ;;  %v4190_v34 = vrot.slane %v3929_v23, 1  ;;  %v2859_v35 = vld [vmem:[%s6677_s4 + $0xc] sm:$0x1]  ;;  %v2860_v36 = vld [vmem:[%s6677_s4 + $0x14] sm:$0x1]  ;;  %v2308_v21 = vpop.trf.xlu1  ;;  %v1244_v22 = vpop.trf.xlu0 }
 0x1e0   : > { %v3867_v37 = vsel %vm995_vm5, %v3866_v7, %v3865_v31  ;;  %v4181_v40 = vsel %vm983_vm1, %v4180_v25, %v4179_v32  ;;  %v2861_v41 = vld [vmem:[%s6677_s4 + $0x1c] sm:$0x1]  ;;  %v2862_v42 = vld [vmem:[%s6677_s4 + $0x24] sm:$0x1]  ;;  %v2863_v43 = vld [vmem:[%s6677_s4 + $0x2c] sm:$0x1] }
 0x1e1   : > { %v3869_v44 = vsel %vm998_vm6, %v3868_v8, %v3867_v37  ;;  %v4183_v45 = vsel %vm986_vm2, %v4182_v27, %v4181_v40  ;;  %v2864_v48 = vld [vmem:[%s6677_s4 + $0x34] sm:$0x1]  ;;  %v2865_v49 = vld [vmem:[%s6677_s4 + $0x3c] sm:$0x1]  ;;  %v3114_v50 = vrot.slane %v2859_v35, 7  ;;  %v3116_v51 = vrot.slane %v2860_v36, 6 }
 0x1e2   : > { %3901 = vxpose.xlu0.b32.end [16/16] (narrow) %v3869_v44, 32  ;;  %v4185_v52 = vsel %vm989_vm3, %v4184_v28, %v4183_v45  ;;  %v3118_v53 = vrot.slane %v2861_v41, 5  ;;  %v3120_v54 = vrot.slane %v2862_v42, 4  ;;  %v3122_v55 = vrot.slane %v2863_v43, 3  ;;  %v3930_v56 = vld [vmem:[%s6677_s4 + $0x46] sm:$0x1] }
 0x1e3   : > { %v4187_v59 = vsel %vm992_vm4, %v4186_v29, %v4185_v52  ;;  %v3115_v60 = vsel %vm980_vm0, %v3114_v50, %v2858_v30  ;;  %v3124_v61 = vrot.slane %v2864_v48, 2  ;;  %v3126_v62 = vrot.slane %v2865_v49, 1  ;;  %v3931_v63 = vld [vmem:[%s6677_s4 + $0x4e] sm:$0x1]  ;;  %v3932_v0 = vld [vmem:[%s6677_s4 + $0x56] sm:$0x1]  ;;  %v2309_v49 = vpop.trf.xlu1  ;;  %v1245_v50 = vpop.trf.xlu0 }
 0x1e4   : > { %v4189_v1 = vsel %vm995_vm5, %v4188_v33, %v4187_v59  ;;  %v3117_v2 = vsel %vm983_vm1, %v3116_v51, %v3115_v60  ;;  %v3933_v3 = vld [vmem:[%s6677_s4 + $0x5e] sm:$0x1]  ;;  %v3934_v4 = vld [vmem:[%s6677_s4 + $0x66] sm:$0x1]  ;;  %v3935_v5 = vld [vmem:[%s6677_s4 + $0x6e] sm:$0x1]  ;;  %5076 = vmatpush1.msra.mxu0 %v1245_v50  ;;  %5189 = vmatpush1.msra.mxu1 %v2309_v49 }
 0x1e5   : > { %v4191_v6 = vsel %vm998_vm6, %v4190_v34, %v4189_v1  ;;  %v3119_v7 = vsel %vm986_vm2, %v3118_v53, %v3117_v2  ;;  %v3936_v8 = vld [vmem:[%s6677_s4 + $0x76] sm:$0x1]  ;;  %v3937_v11 = vld [vmem:[%s6677_s4 + $0x7e] sm:$0x1]  ;;  %v4192_v12 = vrot.slane %v3931_v63, 7  ;;  %v4194_v13 = vrot.slane %v3932_v0, 6  ;;  %5077 = vmatprep.subr.mxu0 %v8069_v47  ;;  %5190 = vmatprep.subr.mxu1 %v8067_v46 }
 0x1e6   : > { %4418 = vxpose.xlu1.b32.start [1/16] (narrow) %v4191_v6, 32  ;;  %v3121_v14 = vsel %vm989_vm3, %v3120_v54, %v3119_v7  ;;  %v4196_v15 = vrot.slane %v3933_v3, 5  ;;  %v4198_v16 = vrot.slane %v3934_v4, 4  ;;  %v4200_v17 = vrot.slane %v3935_v5, 3  ;;  %v2866_v20 = vld [vmem:[%s6677_s4 + $0x44] sm:$0x1]  ;;  %5078 = vmatpush1.msra.mxu0 %v1244_v22 }
 0x1e7   : > { %v3123_v23 = vsel %vm992_vm4, %v3122_v55, %v3121_v14  ;;  %v4193_v24 = vsel %vm980_vm0, %v4192_v12, %v3930_v56  ;;  %v4202_v25 = vrot.slane %v3936_v8, 2  ;;  %v4204_v26 = vrot.slane %v3937_v11, 1  ;;  %v2867_v27 = vld [vmem:[%s6677_s4 + $0x4c] sm:$0x1]  ;;  %v2868_v28 = vld [vmem:[%s6677_s4 + $0x54] sm:$0x1]  ;;  %5191 = vmatpush1.msra.mxu1 %v2308_v21  ;;  %5079 = vmatprep.subr.mxu0 %v8041_v10 }
 0x1e8   : > { %v3125_v29 = vsel %vm995_vm5, %v3124_v61, %v3123_v23  ;;  %v4195_v30 = vsel %vm983_vm1, %v4194_v13, %v4193_v24  ;;  %v2869_v31 = vld [vmem:[%s6677_s4 + $0x5c] sm:$0x1]  ;;  %v2870_v32 = vld [vmem:[%s6677_s4 + $0x64] sm:$0x1]  ;;  %v2871_v33 = vld [vmem:[%s6677_s4 + $0x6c] sm:$0x1]  ;;  %5192 = vmatprep.subr.mxu1 %v8039_v9  ;;  %5080 = vmatpush1.msra.mxu0 %v8158_v58 }
 0x1e9   : > { %v3127_v34 = vsel %vm998_vm6, %v3126_v62, %v3125_v29  ;;  %v4197_v35 = vsel %vm986_vm2, %v4196_v15, %v4195_v30  ;;  %v2872_v36 = vld [vmem:[%s6677_s4 + $0x74] sm:$0x1]  ;;  %v2873_v37 = vld [vmem:[%s6677_s4 + $0x7c] sm:$0x1]  ;;  %v3128_v40 = vrot.slane %v2867_v27, 7  ;;  %v3130_v41 = vrot.slane %v2868_v28, 6  ;;  %5193 = vmatpush1.msra.mxu1 %v8156_v57  ;;  %5081 = vmatprep.subr.mxu0 %v8016_v39 }
 0x1ea   : > { %3354 = vxpose.xlu0.b32.start [1/16] (narrow) %v3127_v34, 32  ;;  %v4199_v42 = vsel %vm989_vm3, %v4198_v16, %v4197_v35  ;;  %v3132_v43 = vrot.slane %v2869_v31, 5  ;;  %v3134_v44 = vrot.slane %v2870_v32, 4  ;;  %v3136_v45 = vrot.slane %v2871_v33, 3  ;;  %v3938_v48 = vld [vmem:[%s6677_s4 + $0x86] sm:$0x1]  ;;  %5194 = vmatprep.subr.mxu1 %v8014_v38 }
 0x1eb   : > { %v4201_v51 = vsel %vm992_vm4, %v4200_v17, %v4199_v42  ;;  %v3129_v52 = vsel %vm980_vm0, %v3128_v40, %v2866_v20  ;;  %v3138_v53 = vrot.slane %v2872_v36, 2  ;;  %v3140_v54 = vrot.slane %v2873_v37, 1  ;;  %v3939_v55 = vld [vmem:[%s6677_s4 + $0x8e] sm:$0x1]  ;;  %v3940_v56 = vld [vmem:[%s6677_s4 + $0x96] sm:$0x1]  ;;  %5082 = vmatpush1.msra.mxu0 %v8133_v19  ;;  %5195 = vmatpush1.msra.mxu1 %v8131_v18 }
 0x1ec   : > { %v4203_v59 = vsel %vm995_vm5, %v4202_v25, %v4201_v51  ;;  %v3131_v60 = vsel %vm983_vm1, %v3130_v41, %v3129_v52  ;;  %v3941_v61 = vld [vmem:[%s6677_s4 + $0x9e] sm:$0x1]  ;;  %v3942_v62 = vld [vmem:[%s6677_s4 + $0xa6] sm:$0x1]  ;;  %v3943_v63 = vld [vmem:[%s6677_s4 + $0xae] sm:$0x1] }
 0x1ed   : > { %v4205_v0 = vsel %vm998_vm6, %v4204_v26, %v4203_v59  ;;  %v3133_v1 = vsel %vm986_vm2, %v3132_v43, %v3131_v60  ;;  %v3944_v2 = vld [vmem:[%s6677_s4 + $0xb6] sm:$0x1]  ;;  %v3945_v3 = vld [vmem:[%s6677_s4 + $0xbe] sm:$0x1]  ;;  %v4206_v4 = vrot.slane %v3939_v55, 7  ;;  %v4208_v5 = vrot.slane %v3940_v56, 6 }
 0x1ee   : > { %4419 = vxpose.xlu1.b32.cont [2/16] (narrow) %v4205_v0, 32  ;;  %v3135_v6 = vsel %vm989_vm3, %v3134_v44, %v3133_v1  ;;  %v4210_v7 = vrot.slane %v3941_v61, 5  ;;  %v4212_v47 = vrot.slane %v3942_v62, 4  ;;  %v4214_v46 = vrot.slane %v3943_v63, 3  ;;  %v2874_v8 = vld [vmem:[%s6677_s4 + $0x84] sm:$0x1] }
 0x1ef   : > { %v3137_v11 = vsel %vm992_vm4, %v3136_v45, %v3135_v6  ;;  %v4207_v12 = vsel %vm980_vm0, %v4206_v4, %v3938_v48  ;;  %v4216_v13 = vrot.slane %v3944_v2, 2  ;;  %v4218_v14 = vrot.slane %v3945_v3, 1  ;;  %v2875_v15 = vld [vmem:[%s6677_s4 + $0x8c] sm:$0x1]  ;;  %v2876_v16 = vld [vmem:[%s6677_s4 + $0x94] sm:$0x1] }
 0x1f0   : > { %v3139_v17 = vsel %vm995_vm5, %v3138_v53, %v3137_v11  ;;  %v4209_v20 = vsel %vm983_vm1, %v4208_v5, %v4207_v12  ;;  %v2877_v21 = vld [vmem:[%s6677_s4 + $0x9c] sm:$0x1]  ;;  %v2878_v10 = vld [vmem:[%s6677_s4 + $0xa4] sm:$0x1]  ;;  %v2879_v22 = vld [vmem:[%s6677_s4 + $0xac] sm:$0x1] }
 0x1f1   : > { %v3141_v23 = vsel %vm998_vm6, %v3140_v54, %v3139_v17  ;;  %v4211_v24 = vsel %vm986_vm2, %v4210_v7, %v4209_v20  ;;  %v2880_v25 = vld [vmem:[%s6677_s4 + $0xb4] sm:$0x1]  ;;  %v2881_v9 = vld [vmem:[%s6677_s4 + $0xbc] sm:$0x1]  ;;  %v3142_v58 = vrot.slane %v2875_v15, 7  ;;  %v3144_v26 = vrot.slane %v2876_v16, 6 }
 0x1f2   : > { %3355 = vxpose.xlu0.b32.cont [2/16] (narrow) %v3141_v23, 32  ;;  %v4213_v57 = vsel %vm989_vm3, %v4212_v47, %v4211_v24  ;;  %v3146_v39 = vrot.slane %v2877_v21, 5  ;;  %v3148_v27 = vrot.slane %v2878_v10, 4  ;;  %v3150_v28 = vrot.slane %v2879_v22, 3  ;;  %v3946_v29 = vld [vmem:[%s6677_s4 + $0xc6] sm:$0x1] }
 0x1f3   : > { %v4215_v30 = vsel %vm992_vm4, %v4214_v46, %v4213_v57  ;;  %v3143_v38 = vsel %vm980_vm0, %v3142_v58, %v2874_v8  ;;  %v3152_v31 = vrot.slane %v2880_v25, 2  ;;  %v3154_v19 = vrot.slane %v2881_v9, 1  ;;  %v3947_v32 = vld [vmem:[%s6677_s4 + $0xce] sm:$0x1]  ;;  %v3948_v33 = vld [vmem:[%s6677_s4 + $0xd6] sm:$0x1] }
 0x1f4   : > { %v4217_v34 = vsel %vm995_vm5, %v4216_v13, %v4215_v30  ;;  %v3145_v35 = vsel %vm983_vm1, %v3144_v26, %v3143_v38  ;;  %v3949_v36 = vld [vmem:[%s6677_s4 + $0xde] sm:$0x1]  ;;  %v3950_v37 = vld [vmem:[%s6677_s4 + $0xe6] sm:$0x1]  ;;  %v3951_v40 = vld [vmem:[%s6677_s4 + $0xee] sm:$0x1] }
 0x1f5   : > { %v4219_v41 = vsel %vm998_vm6, %v4218_v14, %v4217_v34  ;;  %v3147_v18 = vsel %vm986_vm2, %v3146_v39, %v3145_v35  ;;  %v3952_v42 = vld [vmem:[%s6677_s4 + $0xf6] sm:$0x1]  ;;  %v3953_v43 = vld [vmem:[%s6677_s4 + $0xfe] sm:$0x1]  ;;  %v4220_v44 = vrot.slane %v3947_v32, 7  ;;  %v4222_v45 = vrot.slane %v3948_v33, 6 }
 0x1f6   : > { %4420 = vxpose.xlu1.b32.cont [3/16] (narrow) %v4219_v41, 32  ;;  %v3149_v48 = vsel %vm989_vm3, %v3148_v27, %v3147_v18  ;;  %v4224_v49 = vrot.slane %v3949_v36, 5  ;;  %v4226_v50 = vrot.slane %v3950_v37, 4  ;;  %v4228_v51 = vrot.slane %v3951_v40, 3  ;;  %v2882_v52 = vld [vmem:[%s6677_s4 + $0xc4] sm:$0x1] }
 0x1f7   : > { %v3151_v53 = vsel %vm992_vm4, %v3150_v28, %v3149_v48  ;;  %v4221_v54 = vsel %vm980_vm0, %v4220_v44, %v3946_v29  ;;  %v4230_v55 = vrot.slane %v3952_v42, 2  ;;  %v4232_v56 = vrot.slane %v3953_v43, 1  ;;  %v2883_v59 = vld [vmem:[%s6677_s4 + $0xcc] sm:$0x1]  ;;  %v2884_v60 = vld [vmem:[%s6677_s4 + $0xd4] sm:$0x1] }
 0x1f8   : > { %v3153_v61 = vsel %vm995_vm5, %v3152_v31, %v3151_v53  ;;  %v4223_v62 = vsel %vm983_vm1, %v4222_v45, %v4221_v54  ;;  %v2885_v63 = vld [vmem:[%s6677_s4 + $0xdc] sm:$0x1]  ;;  %v2886_v0 = vld [vmem:[%s6677_s4 + $0xe4] sm:$0x1]  ;;  %v2887_v1 = vld [vmem:[%s6677_s4 + $0xec] sm:$0x1] }
 0x1f9   : > { %v3155_v2 = vsel %vm998_vm6, %v3154_v19, %v3153_v61  ;;  %v4225_v3 = vsel %vm986_vm2, %v4224_v49, %v4223_v62  ;;  %v2888_v4 = vld [vmem:[%s6677_s4 + $0xf4] sm:$0x1]  ;;  %v2889_v5 = vld [vmem:[%s6677_s4 + $0xfc] sm:$0x1]  ;;  %v3156_v6 = vrot.slane %v2883_v59, 7  ;;  %v3158_v7 = vrot.slane %v2884_v60, 6 }
 0x1fa   : > { %3356 = vxpose.xlu0.b32.cont [3/16] (narrow) %v3155_v2, 32  ;;  %v4227_v47 = vsel %vm989_vm3, %v4226_v50, %v4225_v3  ;;  %v3160_v46 = vrot.slane %v2885_v63, 5  ;;  %v3162_v8 = vrot.slane %v2886_v0, 4  ;;  %v3164_v11 = vrot.slane %v2887_v1, 3  ;;  %v3954_v12 = vld [vmem:[%s6677_s4 + $0x106] sm:$0x1] }
 0x1fb   : > { %v4229_v13 = vsel %vm992_vm4, %v4228_v51, %v4227_v47  ;;  %v3157_v14 = vsel %vm980_vm0, %v3156_v6, %v2882_v52  ;;  %v3166_v15 = vrot.slane %v2888_v4, 2  ;;  %v3168_v16 = vrot.slane %v2889_v5, 1  ;;  %v3955_v17 = vld [vmem:[%s6677_s4 + $0x10e] sm:$0x1]  ;;  %v3956_v20 = vld [vmem:[%s6677_s4 + $0x116] sm:$0x1] }
 0x1fc   : > { %v4231_v21 = vsel %vm995_vm5, %v4230_v55, %v4229_v13  ;;  %v3159_v10 = vsel %vm983_vm1, %v3158_v7, %v3157_v14  ;;  %v3957_v22 = vld [vmem:[%s6677_s4 + $0x11e] sm:$0x1]  ;;  %v3958_v23 = vld [vmem:[%s6677_s4 + $0x126] sm:$0x1]  ;;  %v3959_v24 = vld [vmem:[%s6677_s4 + $0x12e] sm:$0x1] }
 0x1fd   : > { %v4233_v25 = vsel %vm998_vm6, %v4232_v56, %v4231_v21  ;;  %v3161_v9 = vsel %vm986_vm2, %v3160_v46, %v3159_v10  ;;  %v3960_v58 = vld [vmem:[%s6677_s4 + $0x136] sm:$0x1]  ;;  %v3961_v26 = vld [vmem:[%s6677_s4 + $0x13e] sm:$0x1]  ;;  %v4234_v57 = vrot.slane %v3955_v17, 7  ;;  %v4236_v39 = vrot.slane %v3956_v20, 6 }
 0x1fe   : > { %4421 = vxpose.xlu1.b32.cont [4/16] (narrow) %v4233_v25, 32  ;;  %v3163_v27 = vsel %vm989_vm3, %v3162_v8, %v3161_v9  ;;  %v4238_v28 = vrot.slane %v3957_v22, 5  ;;  %v4240_v29 = vrot.slane %v3958_v23, 4  ;;  %v4242_v30 = vrot.slane %v3959_v24, 3  ;;  %v2890_v38 = vld [vmem:[%s6677_s4 + $0x104] sm:$0x1] }
 0x1ff   : > { %v3165_v31 = vsel %vm992_vm4, %v3164_v11, %v3163_v27  ;;  %v4235_v19 = vsel %vm980_vm0, %v4234_v57, %v3954_v12  ;;  %v4244_v32 = vrot.slane %v3960_v58, 2  ;;  %v4246_v33 = vrot.slane %v3961_v26, 1  ;;  %v2891_v34 = vld [vmem:[%s6677_s4 + $0x10c] sm:$0x1]  ;;  %v2892_v35 = vld [vmem:[%s6677_s4 + $0x114] sm:$0x1] }
 0x200   : > { %v3167_v36 = vsel %vm995_vm5, %v3166_v15, %v3165_v31  ;;  %v4237_v37 = vsel %vm983_vm1, %v4236_v39, %v4235_v19  ;;  %v2893_v40 = vld [vmem:[%s6677_s4 + $0x11c] sm:$0x1]  ;;  %v2894_v41 = vld [vmem:[%s6677_s4 + $0x124] sm:$0x1]  ;;  %v2895_v18 = vld [vmem:[%s6677_s4 + $0x12c] sm:$0x1] }
 0x201   : > { %v3169_v42 = vsel %vm998_vm6, %v3168_v16, %v3167_v36  ;;  %v4239_v43 = vsel %vm986_vm2, %v4238_v28, %v4237_v37  ;;  %v2896_v44 = vld [vmem:[%s6677_s4 + $0x134] sm:$0x1]  ;;  %v2897_v45 = vld [vmem:[%s6677_s4 + $0x13c] sm:$0x1]  ;;  %v3170_v48 = vrot.slane %v2891_v34, 7  ;;  %v3172_v49 = vrot.slane %v2892_v35, 6 }
 0x202   : > { %3357 = vxpose.xlu0.b32.cont [4/16] (narrow) %v3169_v42, 32  ;;  %v4241_v50 = vsel %vm989_vm3, %v4240_v29, %v4239_v43  ;;  %v3174_v51 = vrot.slane %v2893_v40, 5  ;;  %v3176_v52 = vrot.slane %v2894_v41, 4  ;;  %v3178_v53 = vrot.slane %v2895_v18, 3  ;;  %v3962_v54 = vld [vmem:[%s6677_s4 + $0x146] sm:$0x1] }
 0x203   : > { %v4243_v55 = vsel %vm992_vm4, %v4242_v30, %v4241_v50  ;;  %v3171_v56 = vsel %vm980_vm0, %v3170_v48, %v2890_v38  ;;  %v3180_v59 = vrot.slane %v2896_v44, 2  ;;  %v3182_v60 = vrot.slane %v2897_v45, 1  ;;  %v3963_v61 = vld [vmem:[%s6677_s4 + $0x14e] sm:$0x1]  ;;  %v3964_v62 = vld [vmem:[%s6677_s4 + $0x156] sm:$0x1] }
 0x204   : > { %v4245_v63 = vsel %vm995_vm5, %v4244_v32, %v4243_v55  ;;  %v3173_v0 = vsel %vm983_vm1, %v3172_v49, %v3171_v56  ;;  %v3965_v1 = vld [vmem:[%s6677_s4 + $0x15e] sm:$0x1]  ;;  %v3966_v2 = vld [vmem:[%s6677_s4 + $0x166] sm:$0x1]  ;;  %v3967_v3 = vld [vmem:[%s6677_s4 + $0x16e] sm:$0x1] }
 0x205   : > { %v4247_v4 = vsel %vm998_vm6, %v4246_v33, %v4245_v63  ;;  %v3175_v5 = vsel %vm986_vm2, %v3174_v51, %v3173_v0  ;;  %v3968_v6 = vld [vmem:[%s6677_s4 + $0x176] sm:$0x1]  ;;  %v3969_v7 = vld [vmem:[%s6677_s4 + $0x17e] sm:$0x1]  ;;  %v4248_v47 = vrot.slane %v3963_v61, 7  ;;  %v4250_v46 = vrot.slane %v3964_v62, 6 }
 0x206   : > { %4422 = vxpose.xlu1.b32.cont [5/16] (narrow) %v4247_v4, 32  ;;  %v3177_v8 = vsel %vm989_vm3, %v3176_v52, %v3175_v5  ;;  %v4252_v11 = vrot.slane %v3965_v1, 5  ;;  %v4254_v12 = vrot.slane %v3966_v2, 4  ;;  %v4256_v13 = vrot.slane %v3967_v3, 3  ;;  %v2898_v14 = vld [vmem:[%s6677_s4 + $0x144] sm:$0x1] }
 0x207   : > { %v3179_v15 = vsel %vm992_vm4, %v3178_v53, %v3177_v8  ;;  %v4249_v16 = vsel %vm980_vm0, %v4248_v47, %v3962_v54  ;;  %v4258_v17 = vrot.slane %v3968_v6, 2  ;;  %v4260_v20 = vrot.slane %v3969_v7, 1  ;;  %v2899_v21 = vld [vmem:[%s6677_s4 + $0x14c] sm:$0x1]  ;;  %v2900_v10 = vld [vmem:[%s6677_s4 + $0x154] sm:$0x1] }
 0x208   : > { %v3181_v22 = vsel %vm995_vm5, %v3180_v59, %v3179_v15  ;;  %v4251_v23 = vsel %vm983_vm1, %v4250_v46, %v4249_v16  ;;  %v2901_v24 = vld [vmem:[%s6677_s4 + $0x15c] sm:$0x1]  ;;  %v2902_v25 = vld [vmem:[%s6677_s4 + $0x164] sm:$0x1]  ;;  %v2903_v9 = vld [vmem:[%s6677_s4 + $0x16c] sm:$0x1] }
 0x209   : > { %v3183_v58 = vsel %vm998_vm6, %v3182_v60, %v3181_v22  ;;  %v4253_v26 = vsel %vm986_vm2, %v4252_v11, %v4251_v23  ;;  %v2904_v57 = vld [vmem:[%s6677_s4 + $0x174] sm:$0x1]  ;;  %v2905_v39 = vld [vmem:[%s6677_s4 + $0x17c] sm:$0x1]  ;;  %v3184_v27 = vrot.slane %v2899_v21, 7  ;;  %v3186_v28 = vrot.slane %v2900_v10, 6 }
 0x20a   : > { %3358 = vxpose.xlu0.b32.cont [5/16] (narrow) %v3183_v58, 32  ;;  %v4255_v29 = vsel %vm989_vm3, %v4254_v12, %v4253_v26  ;;  %v3188_v30 = vrot.slane %v2901_v24, 5  ;;  %v3190_v38 = vrot.slane %v2902_v25, 4  ;;  %v3192_v31 = vrot.slane %v2903_v9, 3  ;;  %v3970_v19 = vld [vmem:[%s6677_s4 + $0x186] sm:$0x1] }
 0x20b   : > { %v4257_v32 = vsel %vm992_vm4, %v4256_v13, %v4255_v29  ;;  %v3185_v33 = vsel %vm980_vm0, %v3184_v27, %v2898_v14  ;;  %v3194_v34 = vrot.slane %v2904_v57, 2  ;;  %v3196_v35 = vrot.slane %v2905_v39, 1  ;;  %v3971_v36 = vld [vmem:[%s6677_s4 + $0x18e] sm:$0x1]  ;;  %v3972_v37 = vld [vmem:[%s6677_s4 + $0x196] sm:$0x1] }
 0x20c   : > { %v4259_v40 = vsel %vm995_vm5, %v4258_v17, %v4257_v32  ;;  %v3187_v41 = vsel %vm983_vm1, %v3186_v28, %v3185_v33  ;;  %v3973_v18 = vld [vmem:[%s6677_s4 + $0x19e] sm:$0x1]  ;;  %v3974_v42 = vld [vmem:[%s6677_s4 + $0x1a6] sm:$0x1]  ;;  %v3975_v43 = vld [vmem:[%s6677_s4 + $0x1ae] sm:$0x1] }
 0x20d   : > { %v4261_v44 = vsel %vm998_vm6, %v4260_v20, %v4259_v40  ;;  %v3189_v45 = vsel %vm986_vm2, %v3188_v30, %v3187_v41  ;;  %v3976_v48 = vld [vmem:[%s6677_s4 + $0x1b6] sm:$0x1]  ;;  %v3977_v49 = vld [vmem:[%s6677_s4 + $0x1be] sm:$0x1]  ;;  %v4262_v50 = vrot.slane %v3971_v36, 7  ;;  %v4264_v51 = vrot.slane %v3972_v37, 6 }
 0x20e   : > { %4423 = vxpose.xlu1.b32.cont [6/16] (narrow) %v4261_v44, 32  ;;  %v3191_v52 = vsel %vm989_vm3, %v3190_v38, %v3189_v45  ;;  %v4266_v53 = vrot.slane %v3973_v18, 5  ;;  %v4268_v54 = vrot.slane %v3974_v42, 4  ;;  %v4270_v55 = vrot.slane %v3975_v43, 3  ;;  %v2906_v56 = vld [vmem:[%s6677_s4 + $0x184] sm:$0x1] }
 0x20f   : > { %v3193_v59 = vsel %vm992_vm4, %v3192_v31, %v3191_v52  ;;  %v4263_v60 = vsel %vm980_vm0, %v4262_v50, %v3970_v19  ;;  %v4272_v61 = vrot.slane %v3976_v48, 2  ;;  %v4274_v62 = vrot.slane %v3977_v49, 1  ;;  %v2907_v63 = vld [vmem:[%s6677_s4 + $0x18c] sm:$0x1]  ;;  %v2908_v0 = vld [vmem:[%s6677_s4 + $0x194] sm:$0x1] }
 0x210   : > { %v3195_v1 = vsel %vm995_vm5, %v3194_v34, %v3193_v59  ;;  %v4265_v2 = vsel %vm983_vm1, %v4264_v51, %v4263_v60  ;;  %v2909_v3 = vld [vmem:[%s6677_s4 + $0x19c] sm:$0x1]  ;;  %v2910_v4 = vld [vmem:[%s6677_s4 + $0x1a4] sm:$0x1]  ;;  %v2911_v5 = vld [vmem:[%s6677_s4 + $0x1ac] sm:$0x1] }
 0x211   : > { %v3197_v6 = vsel %vm998_vm6, %v3196_v35, %v3195_v1  ;;  %v4267_v7 = vsel %vm986_vm2, %v4266_v53, %v4265_v2  ;;  %v2912_v47 = vld [vmem:[%s6677_s4 + $0x1b4] sm:$0x1]  ;;  %v2913_v46 = vld [vmem:[%s6677_s4 + $0x1bc] sm:$0x1]  ;;  %v3198_v8 = vrot.slane %v2907_v63, 7  ;;  %v3200_v11 = vrot.slane %v2908_v0, 6 }
 0x212   : > { %3359 = vxpose.xlu0.b32.cont [6/16] (narrow) %v3197_v6, 32  ;;  %v4269_v12 = vsel %vm989_vm3, %v4268_v54, %v4267_v7  ;;  %v3202_v13 = vrot.slane %v2909_v3, 5  ;;  %v3204_v14 = vrot.slane %v2910_v4, 4  ;;  %v3206_v15 = vrot.slane %v2911_v5, 3  ;;  %v3978_v16 = vld [vmem:[%s6677_s4 + $0x1c6] sm:$0x1] }
 0x213   : > { %v4271_v17 = vsel %vm992_vm4, %v4270_v55, %v4269_v12  ;;  %v3199_v20 = vsel %vm980_vm0, %v3198_v8, %v2906_v56  ;;  %v3208_v21 = vrot.slane %v2912_v47, 2  ;;  %v3210_v10 = vrot.slane %v2913_v46, 1  ;;  %v3979_v22 = vld [vmem:[%s6677_s4 + $0x1ce] sm:$0x1]  ;;  %v3980_v23 = vld [vmem:[%s6677_s4 + $0x1d6] sm:$0x1] }
 0x214   : > { %v4273_v24 = vsel %vm995_vm5, %v4272_v61, %v4271_v17  ;;  %v3201_v25 = vsel %vm983_vm1, %v3200_v11, %v3199_v20  ;;  %v3981_v9 = vld [vmem:[%s6677_s4 + $0x1de] sm:$0x1]  ;;  %v3982_v58 = vld [vmem:[%s6677_s4 + $0x1e6] sm:$0x1]  ;;  %v3983_v26 = vld [vmem:[%s6677_s4 + $0x1ee] sm:$0x1] }
 0x215   : > { %v4275_v57 = vsel %vm998_vm6, %v4274_v62, %v4273_v24  ;;  %v3203_v39 = vsel %vm986_vm2, %v3202_v13, %v3201_v25  ;;  %v3984_v27 = vld [vmem:[%s6677_s4 + $0x1f6] sm:$0x1]  ;;  %v3985_v28 = vld [vmem:[%s6677_s4 + $0x1fe] sm:$0x1]  ;;  %v4276_v29 = vrot.slane %v3979_v22, 7  ;;  %v4278_v30 = vrot.slane %v3980_v23, 6 }
 0x216   : > { %4424 = vxpose.xlu1.b32.cont [7/16] (narrow) %v4275_v57, 32  ;;  %v3205_v38 = vsel %vm989_vm3, %v3204_v14, %v3203_v39  ;;  %v4280_v31 = vrot.slane %v3981_v9, 5  ;;  %v4282_v19 = vrot.slane %v3982_v58, 4  ;;  %v4284_v32 = vrot.slane %v3983_v26, 3  ;;  %v2914_v33 = vld [vmem:[%s6677_s4 + $0x1c4] sm:$0x1] }
 0x217   : > { %v3207_v34 = vsel %vm992_vm4, %v3206_v15, %v3205_v38  ;;  %v4277_v35 = vsel %vm980_vm0, %v4276_v29, %v3978_v16  ;;  %v4286_v36 = vrot.slane %v3984_v27, 2  ;;  %v4288_v37 = vrot.slane %v3985_v28, 1  ;;  %v2915_v40 = vld [vmem:[%s6677_s4 + $0x1cc] sm:$0x1]  ;;  %v2916_v41 = vld [vmem:[%s6677_s4 + $0x1d4] sm:$0x1] }
 0x218   : > { %v3209_v18 = vsel %vm995_vm5, %v3208_v21, %v3207_v34  ;;  %v4279_v42 = vsel %vm983_vm1, %v4278_v30, %v4277_v35  ;;  %v2917_v43 = vld [vmem:[%s6677_s4 + $0x1dc] sm:$0x1]  ;;  %v2918_v44 = vld [vmem:[%s6677_s4 + $0x1e4] sm:$0x1]  ;;  %v2919_v45 = vld [vmem:[%s6677_s4 + $0x1ec] sm:$0x1] }
 0x219   : > { %v3211_v48 = vsel %vm998_vm6, %v3210_v10, %v3209_v18  ;;  %v4281_v49 = vsel %vm986_vm2, %v4280_v31, %v4279_v42  ;;  %v2920_v50 = vld [vmem:[%s6677_s4 + $0x1f4] sm:$0x1]  ;;  %v2921_v51 = vld [vmem:[%s6677_s4 + $0x1fc] sm:$0x1]  ;;  %v3212_v52 = vrot.slane %v2915_v40, 7  ;;  %v3214_v53 = vrot.slane %v2916_v41, 6 }
 0x21a   : > { %3360 = vxpose.xlu0.b32.cont [7/16] (narrow) %v3211_v48, 32  ;;  %v4283_v54 = vsel %vm989_vm3, %v4282_v19, %v4281_v49  ;;  %v3216_v55 = vrot.slane %v2917_v43, 5  ;;  %v3218_v56 = vrot.slane %v2918_v44, 4  ;;  %v3220_v59 = vrot.slane %v2919_v45, 3  ;;  %v3986_v60 = vld [vmem:[%s6677_s4 + $0x206] sm:$0x1] }
 0x21b   : > { %v4285_v61 = vsel %vm992_vm4, %v4284_v32, %v4283_v54  ;;  %v3213_v62 = vsel %vm980_vm0, %v3212_v52, %v2914_v33  ;;  %v3222_v63 = vrot.slane %v2920_v50, 2  ;;  %v3224_v0 = vrot.slane %v2921_v51, 1  ;;  %v3987_v1 = vld [vmem:[%s6677_s4 + $0x20e] sm:$0x1]  ;;  %v3988_v2 = vld [vmem:[%s6677_s4 + $0x216] sm:$0x1] }
 0x21c   : > { %v4287_v3 = vsel %vm995_vm5, %v4286_v36, %v4285_v61  ;;  %v3215_v4 = vsel %vm983_vm1, %v3214_v53, %v3213_v62  ;;  %v3989_v5 = vld [vmem:[%s6677_s4 + $0x21e] sm:$0x1]  ;;  %v3990_v6 = vld [vmem:[%s6677_s4 + $0x226] sm:$0x1]  ;;  %v3991_v7 = vld [vmem:[%s6677_s4 + $0x22e] sm:$0x1] }
 0x21d   : > { %v4289_v47 = vsel %vm998_vm6, %v4288_v37, %v4287_v3  ;;  %v3217_v46 = vsel %vm986_vm2, %v3216_v55, %v3215_v4  ;;  %v3992_v8 = vld [vmem:[%s6677_s4 + $0x236] sm:$0x1]  ;;  %v3993_v11 = vld [vmem:[%s6677_s4 + $0x23e] sm:$0x1]  ;;  %v4290_v12 = vrot.slane %v3987_v1, 7  ;;  %v4292_v13 = vrot.slane %v3988_v2, 6 }
 0x21e   : > { %4425 = vxpose.xlu1.b32.cont [8/16] (narrow) %v4289_v47, 32  ;;  %v3219_v14 = vsel %vm989_vm3, %v3218_v56, %v3217_v46  ;;  %v4294_v15 = vrot.slane %v3989_v5, 5  ;;  %v4296_v16 = vrot.slane %v3990_v6, 4  ;;  %v4298_v17 = vrot.slane %v3991_v7, 3  ;;  %v2922_v20 = vld [vmem:[%s6677_s4 + $0x204] sm:$0x1]  ;;  %v8395_v21 = vpop.trf.xlu1 }
 0x21f   : > { %v3221_v10 = vsel %vm992_vm4, %v3220_v59, %v3219_v14  ;;  %v4291_v22 = vsel %vm980_vm0, %v4290_v12, %v3986_v60  ;;  %v4300_v23 = vrot.slane %v3992_v8, 2  ;;  %v4302_v24 = vrot.slane %v3993_v11, 1  ;;  %v2923_v25 = vld [vmem:[%s6677_s4 + $0x20c] sm:$0x1]  ;;  %v2924_v9 = vld [vmem:[%s6677_s4 + $0x214] sm:$0x1] }
 0x220   : > { %v3223_v58 = vsel %vm995_vm5, %v3222_v63, %v3221_v10  ;;  %v4293_v26 = vsel %vm983_vm1, %v4292_v13, %v4291_v22  ;;  %v2925_v57 = vld [vmem:[%s6677_s4 + $0x21c] sm:$0x1]  ;;  %v2926_v39 = vld [vmem:[%s6677_s4 + $0x224] sm:$0x1]  ;;  %v2927_v27 = vld [vmem:[%s6677_s4 + $0x22c] sm:$0x1] }
 0x221   : > { %v3225_v28 = vsel %vm998_vm6, %v3224_v0, %v3223_v58  ;;  %v4295_v29 = vsel %vm986_vm2, %v4294_v15, %v4293_v26  ;;  %v2928_v30 = vld [vmem:[%s6677_s4 + $0x234] sm:$0x1]  ;;  %v2929_v38 = vld [vmem:[%s6677_s4 + $0x23c] sm:$0x1]  ;;  %v3226_v31 = vrot.slane %v2923_v25, 7  ;;  %v3228_v19 = vrot.slane %v2924_v9, 6 }
 0x222   : > { %3361 = vxpose.xlu0.b32.cont [8/16] (narrow) %v3225_v28, 32  ;;  %v4297_v32 = vsel %vm989_vm3, %v4296_v16, %v4295_v29  ;;  %v3230_v33 = vrot.slane %v2925_v57, 5  ;;  %v3232_v34 = vrot.slane %v2926_v39, 4  ;;  %v3234_v35 = vrot.slane %v2927_v27, 3  ;;  %v3994_v36 = vld [vmem:[%s6677_s4 + $0x246] sm:$0x1]  ;;  %v8412_v37 = vpop.trf.xlu0  ;;  %v8414_v40 = vpop.trf.xlu1 }
 0x223   : > { %v4299_v41 = vsel %vm992_vm4, %v4298_v17, %v4297_v32  ;;  %v3227_v18 = vsel %vm980_vm0, %v3226_v31, %v2922_v20  ;;  %v3236_v42 = vrot.slane %v2928_v30, 2  ;;  %v3238_v43 = vrot.slane %v2929_v38, 1  ;;  %v3995_v44 = vld [vmem:[%s6677_s4 + $0x24e] sm:$0x1]  ;;  %v3996_v45 = vld [vmem:[%s6677_s4 + $0x256] sm:$0x1] }
 0x224   : > { %v4301_v48 = vsel %vm995_vm5, %v4300_v23, %v4299_v41  ;;  %v3229_v49 = vsel %vm983_vm1, %v3228_v19, %v3227_v18  ;;  %v3997_v50 = vld [vmem:[%s6677_s4 + $0x25e] sm:$0x1]  ;;  %v3998_v51 = vld [vmem:[%s6677_s4 + $0x266] sm:$0x1]  ;;  %v3999_v52 = vld [vmem:[%s6677_s4 + $0x26e] sm:$0x1] }
 0x225   : > { %v4303_v53 = vsel %vm998_vm6, %v4302_v24, %v4301_v48  ;;  %v3231_v54 = vsel %vm986_vm2, %v3230_v33, %v3229_v49  ;;  %v4000_v55 = vld [vmem:[%s6677_s4 + $0x276] sm:$0x1]  ;;  %v4001_v56 = vld [vmem:[%s6677_s4 + $0x27e] sm:$0x1]  ;;  %v4304_v59 = vrot.slane %v3995_v44, 7  ;;  %v4306_v60 = vrot.slane %v3996_v45, 6 }
 0x226   : > { %4426 = vxpose.xlu1.b32.cont [9/16] (narrow) %v4303_v53, 32  ;;  %v3233_v61 = vsel %vm989_vm3, %v3232_v34, %v3231_v54  ;;  %v4308_v62 = vrot.slane %v3997_v50, 5  ;;  %v4310_v63 = vrot.slane %v3998_v51, 4  ;;  %v4312_v0 = vrot.slane %v3999_v52, 3  ;;  %v2930_v1 = vld [vmem:[%s6677_s4 + $0x244] sm:$0x1]  ;;  %v8431_v2 = vpop.trf.xlu0  ;;  %v8433_v3 = vpop.trf.xlu1 }
 0x227   : > { %v3235_v4 = vsel %vm992_vm4, %v3234_v35, %v3233_v61  ;;  %v4305_v5 = vsel %vm980_vm0, %v4304_v59, %v3994_v36  ;;  %v4314_v6 = vrot.slane %v4000_v55, 2  ;;  %v4316_v7 = vrot.slane %v4001_v56, 1  ;;  %v2931_v47 = vld [vmem:[%s6677_s4 + $0x24c] sm:$0x1]  ;;  %v2932_v46 = vld [vmem:[%s6677_s4 + $0x254] sm:$0x1] }
 0x228   : > { %v3237_v8 = vsel %vm995_vm5, %v3236_v42, %v3235_v4  ;;  %v4307_v11 = vsel %vm983_vm1, %v4306_v60, %v4305_v5  ;;  %v2933_v12 = vld [vmem:[%s6677_s4 + $0x25c] sm:$0x1]  ;;  %v2934_v13 = vld [vmem:[%s6677_s4 + $0x264] sm:$0x1]  ;;  %v2935_v14 = vld [vmem:[%s6677_s4 + $0x26c] sm:$0x1] }
 0x229   : > { %v3239_v15 = vsel %vm998_vm6, %v3238_v43, %v3237_v8  ;;  %v4309_v16 = vsel %vm986_vm2, %v4308_v62, %v4307_v11  ;;  %v2936_v17 = vld [vmem:[%s6677_s4 + $0x274] sm:$0x1]  ;;  %v2937_v20 = vld [vmem:[%s6677_s4 + $0x27c] sm:$0x1]  ;;  %v3240_v10 = vrot.slane %v2931_v47, 7  ;;  %v3242_v22 = vrot.slane %v2932_v46, 6 }
 0x22a   : > { %3362 = vxpose.xlu0.b32.cont [9/16] (narrow) %v3239_v15, 32  ;;  %v4311_v23 = vsel %vm989_vm3, %v4310_v63, %v4309_v16  ;;  %v3244_v24 = vrot.slane %v2933_v12, 5  ;;  %v3246_v25 = vrot.slane %v2934_v13, 4  ;;  %v3248_v9 = vrot.slane %v2935_v14, 3  ;;  %v4002_v58 = vld [vmem:[%s6677_s4 + $0x286] sm:$0x1]  ;;  %v8450_v26 = vpop.trf.xlu0  ;;  %v4969_v57 = vpop.trf.xlu1 }
 0x22b   : > { %v4313_v39 = vsel %vm992_vm4, %v4312_v0, %v4311_v23  ;;  %v3241_v27 = vsel %vm980_vm0, %v3240_v10, %v2930_v1  ;;  %v3250_v28 = vrot.slane %v2936_v17, 2  ;;  %v3252_v29 = vrot.slane %v2937_v20, 1  ;;  %v4003_v30 = vld [vmem:[%s6677_s4 + $0x28e] sm:$0x1]  ;;  %v4004_v38 = vld [vmem:[%s6677_s4 + $0x296] sm:$0x1]  ;;  %5414 = vmatprep.subr.mxu1 %v4969_v57 }
 0x22c   : > { %v4315_v31 = vsel %vm995_vm5, %v4314_v6, %v4313_v39  ;;  %v3243_v19 = vsel %vm983_vm1, %v3242_v22, %v3241_v27  ;;  %v4005_v32 = vld [vmem:[%s6677_s4 + $0x29e] sm:$0x1]  ;;  %v4006_v33 = vld [vmem:[%s6677_s4 + $0x2a6] sm:$0x1]  ;;  %v4007_v34 = vld [vmem:[%s6677_s4 + $0x2ae] sm:$0x1] }
 0x22d   : > { %v4317_v35 = vsel %vm998_vm6, %v4316_v7, %v4315_v31  ;;  %v3245_v36 = vsel %vm986_vm2, %v3244_v24, %v3243_v19  ;;  %v4008_v41 = vld [vmem:[%s6677_s4 + $0x2b6] sm:$0x1]  ;;  %v4009_v18 = vld [vmem:[%s6677_s4 + $0x2be] sm:$0x1]  ;;  %v4318_v42 = vrot.slane %v4003_v30, 7  ;;  %v4320_v43 = vrot.slane %v4004_v38, 6 }
 0x22e   : > { %4427 = vxpose.xlu1.b32.cont [10/16] (narrow) %v4317_v35, 32  ;;  %v3247_v44 = vsel %vm989_vm3, %v3246_v25, %v3245_v36  ;;  %v4322_v45 = vrot.slane %v4005_v32, 5  ;;  %v4324_v48 = vrot.slane %v4006_v33, 4  ;;  %v4326_v49 = vrot.slane %v4007_v34, 3  ;;  %v2938_v50 = vld [vmem:[%s6677_s4 + $0x284] sm:$0x1]  ;;  %v3905_v51 = vpop.trf.xlu0 }
 0x22f   : > { %v3249_v52 = vsel %vm992_vm4, %v3248_v9, %v3247_v44  ;;  %v4319_v53 = vsel %vm980_vm0, %v4318_v42, %v4002_v58  ;;  %v4328_v54 = vrot.slane %v4008_v41, 2  ;;  %v4330_v55 = vrot.slane %v4009_v18, 1  ;;  %v2939_v56 = vld [vmem:[%s6677_s4 + $0x28c] sm:$0x1]  ;;  %v2940_v59 = vld [vmem:[%s6677_s4 + $0x294] sm:$0x1]  ;;  %5301 = vmatprep.subr.mxu0 %v3905_v51 }
 0x230   : > { %v3251_v60 = vsel %vm995_vm5, %v3250_v28, %v3249_v52  ;;  %v4321_v61 = vsel %vm983_vm1, %v4320_v43, %v4319_v53  ;;  %v2941_v62 = vld [vmem:[%s6677_s4 + $0x29c] sm:$0x1]  ;;  %v2942_v63 = vld [vmem:[%s6677_s4 + $0x2a4] sm:$0x1]  ;;  %v2943_v0 = vld [vmem:[%s6677_s4 + $0x2ac] sm:$0x1] }
 0x231   : > { %v3253_v1 = vsel %vm998_vm6, %v3252_v29, %v3251_v60  ;;  %v4323_v4 = vsel %vm986_vm2, %v4322_v45, %v4321_v61  ;;  %v2944_v5 = vld [vmem:[%s6677_s4 + $0x2b4] sm:$0x1]  ;;  %v2945_v6 = vld [vmem:[%s6677_s4 + $0x2bc] sm:$0x1]  ;;  %v3254_v7 = vrot.slane %v2939_v56, 7  ;;  %v3256_v47 = vrot.slane %v2940_v59, 6 }
 0x232   : > { %3363 = vxpose.xlu0.b32.cont [10/16] (narrow) %v3253_v1, 32  ;;  %v4325_v46 = vsel %vm989_vm3, %v4324_v48, %v4323_v4  ;;  %v3258_v8 = vrot.slane %v2941_v62, 5  ;;  %v3260_v11 = vrot.slane %v2942_v63, 4  ;;  %v3262_v12 = vrot.slane %v2943_v0, 3  ;;  %v4010_v13 = vld [vmem:[%s6677_s4 + $0x2c6] sm:$0x1] }
 0x233   : > { %v4327_v14 = vsel %vm992_vm4, %v4326_v49, %v4325_v46  ;;  %v3255_v15 = vsel %vm980_vm0, %v3254_v7, %v2938_v50  ;;  %v3264_v16 = vrot.slane %v2944_v5, 2  ;;  %v3266_v17 = vrot.slane %v2945_v6, 1  ;;  %v4011_v20 = vld [vmem:[%s6677_s4 + $0x2ce] sm:$0x1]  ;;  %v4012_v10 = vld [vmem:[%s6677_s4 + $0x2d6] sm:$0x1] }
 0x234   : > { %v4329_v22 = vsel %vm995_vm5, %v4328_v54, %v4327_v14  ;;  %v3257_v23 = vsel %vm983_vm1, %v3256_v47, %v3255_v15  ;;  %v4013_v24 = vld [vmem:[%s6677_s4 + $0x2de] sm:$0x1]  ;;  %v4014_v25 = vld [vmem:[%s6677_s4 + $0x2e6] sm:$0x1]  ;;  %v4015_v9 = vld [vmem:[%s6677_s4 + $0x2ee] sm:$0x1] }
 0x235   : > { %v4331_v58 = vsel %vm998_vm6, %v4330_v55, %v4329_v22  ;;  %v3259_v57 = vsel %vm986_vm2, %v3258_v8, %v3257_v23  ;;  %v4016_v39 = vld [vmem:[%s6677_s4 + $0x2f6] sm:$0x1]  ;;  %v4017_v27 = vld [vmem:[%s6677_s4 + $0x2fe] sm:$0x1]  ;;  %v4332_v28 = vrot.slane %v4011_v20, 7  ;;  %v4334_v29 = vrot.slane %v4012_v10, 6 }
 0x236   : > { %4428 = vxpose.xlu1.b32.cont [11/16] (narrow) %v4331_v58, 32  ;;  %v3261_v30 = vsel %vm989_vm3, %v3260_v11, %v3259_v57  ;;  %v4336_v38 = vrot.slane %v4013_v24, 5  ;;  %v4338_v31 = vrot.slane %v4014_v25, 4  ;;  %v4340_v19 = vrot.slane %v4015_v9, 3  ;;  %v2946_v32 = vld [vmem:[%s6677_s4 + $0x2c4] sm:$0x1] }
 0x237   : > { %v3263_v33 = vsel %vm992_vm4, %v3262_v12, %v3261_v30  ;;  %v4333_v34 = vsel %vm980_vm0, %v4332_v28, %v4010_v13  ;;  %v4342_v35 = vrot.slane %v4016_v39, 2  ;;  %v4344_v36 = vrot.slane %v4017_v27, 1  ;;  %v2947_v41 = vld [vmem:[%s6677_s4 + $0x2cc] sm:$0x1]  ;;  %v2948_v18 = vld [vmem:[%s6677_s4 + $0x2d4] sm:$0x1] }
 0x238   : > { %v3265_v42 = vsel %vm995_vm5, %v3264_v16, %v3263_v33  ;;  %v4335_v43 = vsel %vm983_vm1, %v4334_v29, %v4333_v34  ;;  %v2949_v44 = vld [vmem:[%s6677_s4 + $0x2dc] sm:$0x1]  ;;  %v2950_v45 = vld [vmem:[%s6677_s4 + $0x2e4] sm:$0x1]  ;;  %v2951_v48 = vld [vmem:[%s6677_s4 + $0x2ec] sm:$0x1] }
 0x239   : > { %v3267_v49 = vsel %vm998_vm6, %v3266_v17, %v3265_v42  ;;  %v4337_v50 = vsel %vm986_vm2, %v4336_v38, %v4335_v43  ;;  %v2952_v51 = vld [vmem:[%s6677_s4 + $0x2f4] sm:$0x1]  ;;  %v2953_v52 = vld [vmem:[%s6677_s4 + $0x2fc] sm:$0x1]  ;;  %v3268_v53 = vrot.slane %v2947_v41, 7  ;;  %v3270_v54 = vrot.slane %v2948_v18, 6 }
 0x23a   : > { %3364 = vxpose.xlu0.b32.cont [11/16] (narrow) %v3267_v49, 32  ;;  %v4339_v55 = vsel %vm989_vm3, %v4338_v31, %v4337_v50  ;;  %v3272_v56 = vrot.slane %v2949_v44, 5  ;;  %v3274_v59 = vrot.slane %v2950_v45, 4  ;;  %v3276_v60 = vrot.slane %v2951_v48, 3  ;;  %v4018_v61 = vld [vmem:[%s6677_s4 + $0x306] sm:$0x1] }
 0x23b   : > { %v4341_v62 = vsel %vm992_vm4, %v4340_v19, %v4339_v55  ;;  %v3269_v63 = vsel %vm980_vm0, %v3268_v53, %v2946_v32  ;;  %v3278_v0 = vrot.slane %v2952_v51, 2  ;;  %v3280_v1 = vrot.slane %v2953_v52, 1  ;;  %v4019_v4 = vld [vmem:[%s6677_s4 + $0x30e] sm:$0x1]  ;;  %v4020_v5 = vld [vmem:[%s6677_s4 + $0x316] sm:$0x1] }
 0x23c   : > { %v4343_v6 = vsel %vm995_vm5, %v4342_v35, %v4341_v62  ;;  %v3271_v7 = vsel %vm983_vm1, %v3270_v54, %v3269_v63  ;;  %v4021_v47 = vld [vmem:[%s6677_s4 + $0x31e] sm:$0x1]  ;;  %v4022_v46 = vld [vmem:[%s6677_s4 + $0x326] sm:$0x1]  ;;  %v4023_v8 = vld [vmem:[%s6677_s4 + $0x32e] sm:$0x1] }
 0x23d   : > { %v4345_v11 = vsel %vm998_vm6, %v4344_v36, %v4343_v6  ;;  %v3273_v12 = vsel %vm986_vm2, %v3272_v56, %v3271_v7  ;;  %v4024_v13 = vld [vmem:[%s6677_s4 + $0x336] sm:$0x1]  ;;  %v4025_v14 = vld [vmem:[%s6677_s4 + $0x33e] sm:$0x1]  ;;  %v4346_v15 = vrot.slane %v4019_v4, 7  ;;  %v4348_v16 = vrot.slane %v4020_v5, 6 }
 0x23e   : > { %4429 = vxpose.xlu1.b32.cont [12/16] (narrow) %v4345_v11, 32  ;;  %v3275_v17 = vsel %vm989_vm3, %v3274_v59, %v3273_v12  ;;  %v4350_v20 = vrot.slane %v4021_v47, 5  ;;  %v4352_v10 = vrot.slane %v4022_v46, 4  ;;  %v4354_v22 = vrot.slane %v4023_v8, 3  ;;  %v2954_v23 = vld [vmem:[%s6677_s4 + $0x304] sm:$0x1] }
 0x23f   : > { %v3277_v24 = vsel %vm992_vm4, %v3276_v60, %v3275_v17  ;;  %v4347_v25 = vsel %vm980_vm0, %v4346_v15, %v4018_v61  ;;  %v4356_v9 = vrot.slane %v4024_v13, 2  ;;  %v4358_v58 = vrot.slane %v4025_v14, 1  ;;  %v2955_v57 = vld [vmem:[%s6677_s4 + $0x30c] sm:$0x1]  ;;  %v2956_v39 = vld [vmem:[%s6677_s4 + $0x314] sm:$0x1] }
 0x240   : > { %v3279_v27 = vsel %vm995_vm5, %v3278_v0, %v3277_v24  ;;  %v4349_v28 = vsel %vm983_vm1, %v4348_v16, %v4347_v25  ;;  %v2957_v29 = vld [vmem:[%s6677_s4 + $0x31c] sm:$0x1]  ;;  %v2958_v30 = vld [vmem:[%s6677_s4 + $0x324] sm:$0x1]  ;;  %v2959_v38 = vld [vmem:[%s6677_s4 + $0x32c] sm:$0x1] }
 0x241   : > { %v3281_v31 = vsel %vm998_vm6, %v3280_v1, %v3279_v27  ;;  %v4351_v19 = vsel %vm986_vm2, %v4350_v20, %v4349_v28  ;;  %v2960_v32 = vld [vmem:[%s6677_s4 + $0x334] sm:$0x1]  ;;  %v2961_v33 = vld [vmem:[%s6677_s4 + $0x33c] sm:$0x1]  ;;  %v3282_v34 = vrot.slane %v2955_v57, 7  ;;  %v3284_v35 = vrot.slane %v2956_v39, 6 }
 0x242   : > { %3365 = vxpose.xlu0.b32.cont [12/16] (narrow) %v3281_v31, 32  ;;  %v4353_v36 = vsel %vm989_vm3, %v4352_v10, %v4351_v19  ;;  %v3286_v41 = vrot.slane %v2957_v29, 5  ;;  %v3288_v18 = vrot.slane %v2958_v30, 4  ;;  %v3290_v42 = vrot.slane %v2959_v38, 3  ;;  %v4026_v43 = vld [vmem:[%s6677_s4 + $0x346] sm:$0x1] }
 0x243   : > { %v4355_v44 = vsel %vm992_vm4, %v4354_v22, %v4353_v36  ;;  %v3283_v45 = vsel %vm980_vm0, %v3282_v34, %v2954_v23  ;;  %v3292_v48 = vrot.slane %v2960_v32, 2  ;;  %v3294_v49 = vrot.slane %v2961_v33, 1  ;;  %v4027_v50 = vld [vmem:[%s6677_s4 + $0x34e] sm:$0x1]  ;;  %v4028_v51 = vld [vmem:[%s6677_s4 + $0x356] sm:$0x1] }
 0x244   : > { %v4357_v52 = vsel %vm995_vm5, %v4356_v9, %v4355_v44  ;;  %v3285_v53 = vsel %vm983_vm1, %v3284_v35, %v3283_v45  ;;  %v4029_v54 = vld [vmem:[%s6677_s4 + $0x35e] sm:$0x1]  ;;  %v4030_v55 = vld [vmem:[%s6677_s4 + $0x366] sm:$0x1]  ;;  %v4031_v56 = vld [vmem:[%s6677_s4 + $0x36e] sm:$0x1] }
 0x245   : > { %v4359_v59 = vsel %vm998_vm6, %v4358_v58, %v4357_v52  ;;  %v3287_v60 = vsel %vm986_vm2, %v3286_v41, %v3285_v53  ;;  %v4032_v61 = vld [vmem:[%s6677_s4 + $0x376] sm:$0x1]  ;;  %v4033_v62 = vld [vmem:[%s6677_s4 + $0x37e] sm:$0x1]  ;;  %v4360_v63 = vrot.slane %v4027_v50, 7  ;;  %v4362_v0 = vrot.slane %v4028_v51, 6 }
 0x246   : > { %4430 = vxpose.xlu1.b32.cont [13/16] (narrow) %v4359_v59, 32  ;;  %v3289_v1 = vsel %vm989_vm3, %v3288_v18, %v3287_v60  ;;  %v4364_v4 = vrot.slane %v4029_v54, 5  ;;  %v4366_v5 = vrot.slane %v4030_v55, 4  ;;  %v4368_v6 = vrot.slane %v4031_v56, 3  ;;  %v2962_v7 = vld [vmem:[%s6677_s4 + $0x344] sm:$0x1] }
 0x247   : > { %v3291_v47 = vsel %vm992_vm4, %v3290_v42, %v3289_v1  ;;  %v4361_v46 = vsel %vm980_vm0, %v4360_v63, %v4026_v43  ;;  %v4370_v8 = vrot.slane %v4032_v61, 2  ;;  %v4372_v11 = vrot.slane %v4033_v62, 1  ;;  %v2963_v12 = vld [vmem:[%s6677_s4 + $0x34c] sm:$0x1]  ;;  %v2964_v13 = vld [vmem:[%s6677_s4 + $0x354] sm:$0x1] }
 0x248   : > { %v3293_v14 = vsel %vm995_vm5, %v3292_v48, %v3291_v47  ;;  %v4363_v15 = vsel %vm983_vm1, %v4362_v0, %v4361_v46  ;;  %v2965_v16 = vld [vmem:[%s6677_s4 + $0x35c] sm:$0x1]  ;;  %v2966_v17 = vld [vmem:[%s6677_s4 + $0x364] sm:$0x1]  ;;  %v2967_v20 = vld [vmem:[%s6677_s4 + $0x36c] sm:$0x1] }
 0x249   : > { %v3295_v10 = vsel %vm998_vm6, %v3294_v49, %v3293_v14  ;;  %v4365_v22 = vsel %vm986_vm2, %v4364_v4, %v4363_v15  ;;  %v2968_v23 = vld [vmem:[%s6677_s4 + $0x374] sm:$0x1]  ;;  %v2969_v24 = vld [vmem:[%s6677_s4 + $0x37c] sm:$0x1]  ;;  %v3296_v25 = vrot.slane %v2963_v12, 7  ;;  %v3298_v9 = vrot.slane %v2964_v13, 6 }
 0x24a   : > { %3366 = vxpose.xlu0.b32.cont [13/16] (narrow) %v3295_v10, 32  ;;  %v4367_v58 = vsel %vm989_vm3, %v4366_v5, %v4365_v22  ;;  %v3300_v57 = vrot.slane %v2965_v16, 5  ;;  %v3302_v39 = vrot.slane %v2966_v17, 4  ;;  %v3304_v27 = vrot.slane %v2967_v20, 3  ;;  %v4034_v28 = vld [vmem:[%s6677_s4 + $0x386] sm:$0x1] }
 0x24b   : > { %v4369_v29 = vsel %vm992_vm4, %v4368_v6, %v4367_v58  ;;  %v3297_v30 = vsel %vm980_vm0, %v3296_v25, %v2962_v7  ;;  %v3306_v38 = vrot.slane %v2968_v23, 2  ;;  %v3308_v31 = vrot.slane %v2969_v24, 1  ;;  %v4035_v19 = vld [vmem:[%s6677_s4 + $0x38e] sm:$0x1]  ;;  %v4036_v32 = vld [vmem:[%s6677_s4 + $0x396] sm:$0x1] }
 0x24c   : > { %v4371_v33 = vsel %vm995_vm5, %v4370_v8, %v4369_v29  ;;  %v3299_v34 = vsel %vm983_vm1, %v3298_v9, %v3297_v30  ;;  %v4037_v35 = vld [vmem:[%s6677_s4 + $0x39e] sm:$0x1]  ;;  %v4038_v36 = vld [vmem:[%s6677_s4 + $0x3a6] sm:$0x1]  ;;  %v4039_v41 = vld [vmem:[%s6677_s4 + $0x3ae] sm:$0x1] }
 0x24d   : > { %v4373_v18 = vsel %vm998_vm6, %v4372_v11, %v4371_v33  ;;  %v3301_v42 = vsel %vm986_vm2, %v3300_v57, %v3299_v34  ;;  %v4040_v43 = vld [vmem:[%s6677_s4 + $0x3b6] sm:$0x1]  ;;  %v4041_v44 = vld [vmem:[%s6677_s4 + $0x3be] sm:$0x1]  ;;  %v4374_v45 = vrot.slane %v4035_v19, 7  ;;  %v4376_v48 = vrot.slane %v4036_v32, 6 }
 0x24e   : > { %4431 = vxpose.xlu1.b32.cont [14/16] (narrow) %v4373_v18, 32  ;;  %v3303_v49 = vsel %vm989_vm3, %v3302_v39, %v3301_v42  ;;  %v4378_v50 = vrot.slane %v4037_v35, 5  ;;  %v4380_v51 = vrot.slane %v4038_v36, 4  ;;  %v4382_v52 = vrot.slane %v4039_v41, 3  ;;  %v2970_v53 = vld [vmem:[%s6677_s4 + $0x384] sm:$0x1] }
 0x24f   : > { %v3305_v54 = vsel %vm992_vm4, %v3304_v27, %v3303_v49  ;;  %v4375_v55 = vsel %vm980_vm0, %v4374_v45, %v4034_v28  ;;  %v4384_v56 = vrot.slane %v4040_v43, 2  ;;  %v4386_v59 = vrot.slane %v4041_v44, 1  ;;  %v2971_v60 = vld [vmem:[%s6677_s4 + $0x38c] sm:$0x1]  ;;  %v2972_v61 = vld [vmem:[%s6677_s4 + $0x394] sm:$0x1] }
 0x250   : > { %v3307_v62 = vsel %vm995_vm5, %v3306_v38, %v3305_v54  ;;  %v4377_v63 = vsel %vm983_vm1, %v4376_v48, %v4375_v55  ;;  %v2973_v0 = vld [vmem:[%s6677_s4 + $0x39c] sm:$0x1]  ;;  %v2974_v1 = vld [vmem:[%s6677_s4 + $0x3a4] sm:$0x1]  ;;  %v2975_v4 = vld [vmem:[%s6677_s4 + $0x3ac] sm:$0x1] }
 0x251   : > { %v3309_v5 = vsel %vm998_vm6, %v3308_v31, %v3307_v62  ;;  %v4379_v6 = vsel %vm986_vm2, %v4378_v50, %v4377_v63  ;;  %v2976_v7 = vld [vmem:[%s6677_s4 + $0x3b4] sm:$0x1]  ;;  %v2977_v47 = vld [vmem:[%s6677_s4 + $0x3bc] sm:$0x1]  ;;  %v3310_v46 = vrot.slane %v2971_v60, 7  ;;  %v3312_v8 = vrot.slane %v2972_v61, 6 }
 0x252   : > { %3367 = vxpose.xlu0.b32.cont [14/16] (narrow) %v3309_v5, 32  ;;  %v4381_v11 = vsel %vm989_vm3, %v4380_v51, %v4379_v6  ;;  %v3314_v12 = vrot.slane %v2973_v0, 5  ;;  %v3316_v13 = vrot.slane %v2974_v1, 4  ;;  %v3318_v14 = vrot.slane %v2975_v4, 3  ;;  %v4042_v15 = vld [vmem:[%s6677_s4 + $0x3c6] sm:$0x1] }
 0x253   : > { %v4383_v16 = vsel %vm992_vm4, %v4382_v52, %v4381_v11  ;;  %v3311_v17 = vsel %vm980_vm0, %v3310_v46, %v2970_v53  ;;  %v3320_v20 = vrot.slane %v2976_v7, 2  ;;  %v3322_v10 = vrot.slane %v2977_v47, 1  ;;  %v4043_v22 = vld [vmem:[%s6677_s4 + $0x3ce] sm:$0x1]  ;;  %v4044_v23 = vld [vmem:[%s6677_s4 + $0x3d6] sm:$0x1] }
 0x254   : > { %v4385_v24 = vsel %vm995_vm5, %v4384_v56, %v4383_v16  ;;  %v3313_v25 = vsel %vm983_vm1, %v3312_v8, %v3311_v17  ;;  %v4045_v9 = vld [vmem:[%s6677_s4 + $0x3de] sm:$0x1]  ;;  %v4046_v58 = vld [vmem:[%s6677_s4 + $0x3e6] sm:$0x1]  ;;  %v4047_v57 = vld [vmem:[%s6677_s4 + $0x3ee] sm:$0x1] }
 0x255   : > { %v4387_v39 = vsel %vm998_vm6, %v4386_v59, %v4385_v24  ;;  %v3315_v27 = vsel %vm986_vm2, %v3314_v12, %v3313_v25  ;;  %v4048_v28 = vld [vmem:[%s6677_s4 + $0x3f6] sm:$0x1]  ;;  %v4049_v29 = vld [vmem:[%s6677_s4 + $0x3fe] sm:$0x1]  ;;  %v4388_v30 = vrot.slane %v4043_v22, 7  ;;  %v4390_v38 = vrot.slane %v4044_v23, 6 }
 0x256   : > { %4432 = vxpose.xlu1.b32.cont [15/16] (narrow) %v4387_v39, 32  ;;  %v3317_v31 = vsel %vm989_vm3, %v3316_v13, %v3315_v27  ;;  %v4392_v19 = vrot.slane %v4045_v9, 5  ;;  %v4394_v32 = vrot.slane %v4046_v58, 4  ;;  %v4396_v33 = vrot.slane %v4047_v57, 3  ;;  %v2978_v34 = vld [vmem:[%s6677_s4 + $0x3c4] sm:$0x1] }
 0x257   : > { %v3319_v35 = vsel %vm992_vm4, %v3318_v14, %v3317_v31  ;;  %v4389_v36 = vsel %vm980_vm0, %v4388_v30, %v4042_v15  ;;  %v4398_v41 = vrot.slane %v4048_v28, 2  ;;  %v4400_v18 = vrot.slane %v4049_v29, 1  ;;  %v2979_v42 = vld [vmem:[%s6677_s4 + $0x3cc] sm:$0x1]  ;;  %v2980_v43 = vld [vmem:[%s6677_s4 + $0x3d4] sm:$0x1] }
 0x258   : > { %v3321_v44 = vsel %vm995_vm5, %v3320_v20, %v3319_v35  ;;  %v4391_v45 = vsel %vm983_vm1, %v4390_v38, %v4389_v36  ;;  %v2981_v48 = vld [vmem:[%s6677_s4 + $0x3dc] sm:$0x1]  ;;  %v2982_v49 = vld [vmem:[%s6677_s4 + $0x3e4] sm:$0x1]  ;;  %v2983_v50 = vld [vmem:[%s6677_s4 + $0x3ec] sm:$0x1] }
 0x259   : > { %v3323_v51 = vsel %vm998_vm6, %v3322_v10, %v3321_v44  ;;  %v4393_v52 = vsel %vm986_vm2, %v4392_v19, %v4391_v45  ;;  %v2984_v53 = vld [vmem:[%s6677_s4 + $0x3f4] sm:$0x1]  ;;  %v3324_v54 = vrot.slane %v2979_v42, 7  ;;  %v3326_v55 = vrot.slane %v2980_v43, 6  ;;  %v2985_v59 = vld [vmem:[%s6677_s4 + $0x3fc] sm:$0x1] }
 0x25a   : > { %3368 = vxpose.xlu0.b32.cont [15/16] (narrow) %v3323_v51, 32  ;;  %v4395_v56 = vsel %vm989_vm3, %v4394_v32, %v4393_v52  ;;  %v3328_v60 = vrot.slane %v2981_v48, 5  ;;  %v3330_v61 = vrot.slane %v2982_v49, 4  ;;  %v3332_v0 = vrot.slane %v2983_v50, 3  ;;  %v8636_v4 = vld [vmem:[%s8896_s1] sm:$0xff]  ;;  %v8654_v13 = vld [vmem:[%s8896_s1 + $0x8] sm:$0xff] }
 0x25b   : > { %v4397_v62 = vsel %vm992_vm4, %v4396_v33, %v4395_v56  ;;  %v3325_v63 = vsel %vm980_vm0, %v3324_v54, %v2978_v34  ;;  %v3334_v1 = vrot.slane %v2984_v53, 2  ;;  %vm5026_vm7 = vcmask 261120   ;;  %v8667_v16 = vld [vmem:[%s8896_s1 + $0x10] sm:$0xff]  ;;  %v4989_v17 = vld [vmem:[%s8896_s1 + $0x18] sm:$0xff]  ;;  %v4990_v20 = vld [vmem:[%s8896_s1 + $0x20] sm:$0xff] }
 0x25c   : > { %v4399_v5 = vsel %vm995_vm5, %v4398_v41, %v4397_v62  ;;  %v3327_v6 = vsel %vm983_vm1, %v3326_v55, %v3325_v63  ;;  %v3336_v46 = vrot.slane %v2985_v59, 1  ;;  %v6346_v8 = vmov 0.0   ;;  %v4991_v10 = vld [vmem:[%s8896_s1 + $0x28] sm:$0xff]  ;;  %v4992_v22 = vld [vmem:[%s8896_s1 + $0x30] sm:$0xff]  ;;  %v4993_v23 = vld [vmem:[%s8896_s1 + $0x38] sm:$0xff] }
 0x25d   : > { %v4401_v7 = vsel %vm998_vm6, %v4400_v18, %v4399_v5  ;;  %v3329_v47 = vsel %vm986_vm2, %v3328_v60, %v3327_v6  ;;  %5115 = vmatprep.mubr.f32.mxu0 %v6346_v8  ;;  %5228 = vmatprep.mubr.f32.mxu1 %v6346_v8 }
 0x25e   : > { %4433 = vxpose.xlu1.b32.end [16/16] (narrow) %v4401_v7, 32  ;;  %v3331_v11 = vsel %vm989_vm3, %v3330_v61, %v3329_v47  ;;  %6181 = vmatmul.mubr.msk.f32.vlgmr.msra.gmra.mxu0 %vm5026_vm7, %v8636_v4 }
 0x25f   : > { %v3333_v12 = vsel %vm992_vm4, %v3332_v0, %v3331_v11  ;;  %6189 = vmatmul.mubr.msk.f32.vlgmr.msra.gmra.mxu1 %vm5026_vm7, %v8636_v4  ;;  %5121 = vmatprep.mubr.f32.mxu0 %v6346_v8 }
 0x260   : > { %v3335_v14 = vsel %vm995_vm5, %v3334_v1, %v3333_v12  ;;  %5234 = vmatprep.mubr.f32.mxu1 %v6346_v8 }
 0x261   : > { %v3337_v15 = vsel %vm998_vm6, %v3336_v46, %v3335_v14 }
 0x262   : > { %3369 = vxpose.xlu0.b32.end [16/16] (narrow) %v3337_v15, 32  ;;  %6182 = vmatmul.mubr.msk.f32.gmra.mxu0 %vm5026_vm7, %v8654_v13 }
 0x263   : > { %6190 = vmatmul.mubr.msk.f32.gmra.mxu1 %vm5026_vm7, %v8654_v13  ;;  %5127 = vmatprep.mubr.f32.mxu0 %v6346_v8 }
 0x264   : > { %5240 = vmatprep.mubr.f32.mxu1 %v6346_v8 }
 0x266   : > { %6183 = vmatmul.mubr.msk.f32.gmra.mxu0 %vm5026_vm7, %v8667_v16 }
 0x267   : > { %6191 = vmatmul.mubr.msk.f32.gmra.mxu1 %vm5026_vm7, %v8667_v16  ;;  %5133 = vmatprep.mubr.f32.mxu0 %v6346_v8 }
 0x268   : > { %5246 = vmatprep.mubr.f32.mxu1 %v6346_v8 }
 0x26a   : > { %6184 = vmatmul.mubr.msk.f32.gmra.mxu0 %vm5026_vm7, %v4989_v17 }
 0x26b   : > { %6192 = vmatmul.mubr.msk.f32.gmra.mxu1 %vm5026_vm7, %v4989_v17  ;;  %5139 = vmatprep.mubr.f32.mxu0 %v6346_v8 }
 0x26c   : > { %5252 = vmatprep.mubr.f32.mxu1 %v6346_v8 }
 0x26e   : > { %6185 = vmatmul.mubr.msk.f32.gmra.mxu0 %vm5026_vm7, %v4990_v20 }
 0x26f   : > { %6193 = vmatmul.mubr.msk.f32.gmra.mxu1 %vm5026_vm7, %v4990_v20  ;;  %5145 = vmatprep.mubr.f32.mxu0 %v6346_v8 }
 0x270   : > { %5258 = vmatprep.mubr.f32.mxu1 %v6346_v8 }
 0x272   : > { %6186 = vmatmul.mubr.msk.f32.gmra.mxu0 %vm5026_vm7, %v4991_v10 }
 0x273   : > { %6194 = vmatmul.mubr.msk.f32.gmra.mxu1 %vm5026_vm7, %v4991_v10  ;;  %5151 = vmatprep.mubr.f32.mxu0 %v6346_v8 }
 0x274   : > { %5264 = vmatprep.mubr.f32.mxu1 %v6346_v8 }
 0x276   : > { %6187 = vmatmul.mubr.msk.f32.gmra.mxu0 %vm5026_vm7, %v4992_v22 }
 0x277   : > { %6195 = vmatmul.mubr.msk.f32.gmra.mxu1 %vm5026_vm7, %v4992_v22  ;;  %5157 = vmatprep.mubr.f32.mxu0 %v6346_v8 }
 0x278   : > { %5270 = vmatprep.mubr.f32.mxu1 %v6346_v8 }
 0x27a   : > { %6188 = vmatmul.mubr.msk.f32.gmra.mxu0 %vm5026_vm7, %v4993_v23 }
 0x27b   : > { %6196 = vmatmul.mubr.msk.f32.gmra.mxu1 %vm5026_vm7, %v4993_v23  ;;  %5341 = vmatprep.mubr.f32.mxu0 %v6346_v8 }
 0x27c   : > { %5454 = vmatprep.mubr.f32.mxu1 %v6346_v8 }
 0x29e   : > { %v4434_v24 = vpop.trf.xlu1 }
 0x2a2   : > { %v3370_v25 = vpop.trf.xlu0  ;;  %v4435_v9 = vpop.trf.xlu1 }
 0x2a6   : > { %v3371_v58 = vpop.trf.xlu0  ;;  %v4436_v57 = vpop.trf.xlu1 }
 0x2aa   : > { %v3372_v39 = vpop.trf.xlu0  ;;  %v4437_v27 = vpop.trf.xlu1 }
 0x2ab   : > { %5415 = vmatpush1.msra.mxu1 %v4437_v27 }
 0x2ac   : > { %5416 = vmatprep.subr.mxu1 %v8433_v3 }
 0x2ad   : > { %5417 = vmatpush1.msra.mxu1 %v4436_v57 }
 0x2ae   : > { %v3373_v28 = vpop.trf.xlu0  ;;  %5418 = vmatprep.subr.mxu1 %v8414_v40 }
 0x2af   : > { %5302 = vmatpush1.msra.mxu0 %v3373_v28  ;;  %5419 = vmatpush1.msra.mxu1 %v4435_v9 }
 0x2b0   : > { %5303 = vmatprep.subr.mxu0 %v8450_v26  ;;  %5420 = vmatprep.subr.mxu1 %v8395_v21 }
 0x2b1   : > { %5304 = vmatpush1.msra.mxu0 %v3372_v39  ;;  %5421 = vmatpush1.msra.mxu1 %v4434_v24 }
 0x2b2   : > { %5305 = vmatprep.subr.mxu0 %v8431_v2  ;;  %6205 = vmatmul.mubr.msk.f32.vlgmr.msra.gmra.mxu1 %vm5026_vm7, %v8636_v4 }
 0x2b3   : > { %5306 = vmatpush1.msra.mxu0 %v3371_v58  ;;  %5460 = vmatprep.mubr.f32.mxu1 %v6346_v8 }
 0x2b4   : > { %5307 = vmatprep.subr.mxu0 %v8412_v37 }
 0x2b5   : > { %5308 = vmatpush1.msra.mxu0 %v3370_v25 }
 0x2b6   : > { %6197 = vmatmul.mubr.msk.f32.vlgmr.msra.gmra.mxu0 %vm5026_vm7, %v8636_v4  ;;  %6206 = vmatmul.mubr.msk.f32.gmra.mxu1 %vm5026_vm7, %v8654_v13 }
 0x2b7   : > { %5347 = vmatprep.mubr.f32.mxu0 %v6346_v8  ;;  %5466 = vmatprep.mubr.f32.mxu1 %v6346_v8 }
 0x2ba   : > { %6198 = vmatmul.mubr.msk.f32.gmra.mxu0 %vm5026_vm7, %v8654_v13  ;;  %6207 = vmatmul.mubr.msk.f32.gmra.mxu1 %vm5026_vm7, %v8667_v16 }
 0x2bb   : > { %5353 = vmatprep.mubr.f32.mxu0 %v6346_v8  ;;  %5472 = vmatprep.mubr.f32.mxu1 %v6346_v8 }
 0x2be   : > { %6199 = vmatmul.mubr.msk.f32.gmra.mxu0 %vm5026_vm7, %v8667_v16  ;;  %6208 = vmatmul.mubr.msk.f32.gmra.mxu1 %vm5026_vm7, %v4989_v17 }
 0x2bf   : > { %5359 = vmatprep.mubr.f32.mxu0 %v6346_v8  ;;  %5478 = vmatprep.mubr.f32.mxu1 %v6346_v8 }
 0x2c2   : > { %6200 = vmatmul.mubr.msk.f32.gmra.mxu0 %vm5026_vm7, %v4989_v17  ;;  %6209 = vmatmul.mubr.msk.f32.gmra.mxu1 %vm5026_vm7, %v4990_v20 }
 0x2c3   : > { %5365 = vmatprep.mubr.f32.mxu0 %v6346_v8  ;;  %5484 = vmatprep.mubr.f32.mxu1 %v6346_v8 }
 0x2c6   : > { %6201 = vmatmul.mubr.msk.f32.gmra.mxu0 %vm5026_vm7, %v4990_v20  ;;  %6210 = vmatmul.mubr.msk.f32.gmra.mxu1 %vm5026_vm7, %v4991_v10 }
 0x2c7   : > { %5371 = vmatprep.mubr.f32.mxu0 %v6346_v8  ;;  %5490 = vmatprep.mubr.f32.mxu1 %v6346_v8 }
 0x2ca   : > { %6202 = vmatmul.mubr.msk.f32.gmra.mxu0 %vm5026_vm7, %v4991_v10  ;;  %6211 = vmatmul.mubr.msk.f32.gmra.mxu1 %vm5026_vm7, %v4992_v22 }
 0x2cb   : > { %5377 = vmatprep.mubr.f32.mxu0 %v6346_v8  ;;  %5496 = vmatprep.mubr.f32.mxu1 %v6346_v8 }
 0x2ce   : > { %6203 = vmatmul.mubr.msk.f32.gmra.mxu0 %vm5026_vm7, %v4992_v22  ;;  %6212 = vmatmul.mubr.msk.f32.gmra.mxu1 %vm5026_vm7, %v4993_v23 }
 0x2cf   : > { %5383 = vmatprep.mubr.f32.mxu0 %v6346_v8 }
 0x2d2   : > { %6204 = vmatmul.mubr.msk.f32.gmra.mxu0 %vm5026_vm7, %v4993_v23 }
 0x31e   : > { %v8753_v21 = vpop.f32.mrf.mxu0 }
 0x31f   : > { %v5230_v37 = vpop.f32.mrf.mxu1 }
 0x320   : > { %5505 = vst [vmem:[#allocation4 + $0xd8] sm:$0xff] %v5230_v37  ;;  %v5119_v40 = vpop.f32.mrf.mxu0 }
 0x321   : > { %5504 = vst [vmem:[#allocation4 + $0x1b0] sm:$0xff] %v5119_v40  ;;  %v5232_v2 = vpop.f32.mrf.mxu1 }
 0x322   : > { %5506 = vst [vmem:[#allocation4 + $0x18] sm:$0xff] %v5232_v2  ;;  %v8755_v3 = vpop.f32.mrf.mxu0 }
 0x323   : > { %v5236_v26 = vpop.f32.mrf.mxu1 }
 0x324   : > { %5513 = vst [vmem:[#allocation4 + $0x118] sm:$0xff] %v5236_v26  ;;  %v5125_v29 = vpop.f32.mrf.mxu0 }
 0x325   : > { %5512 = vst [vmem:[#allocation4 + $0x110] sm:$0xff] %v5125_v29  ;;  %v5238_v30 = vpop.f32.mrf.mxu1 }
 0x326   : > { %5514 = vst [vmem:[#allocation4 + $0x98] sm:$0xff] %v5238_v30  ;;  %v8757_v38 = vpop.f32.mrf.mxu0 }
 0x327   : > { %v5242_v31 = vpop.f32.mrf.mxu1 }
 0x328   : > { %5521 = vst [vmem:[#allocation4 + $0x138] sm:$0xff] %v5242_v31  ;;  %v5131_v19 = vpop.f32.mrf.mxu0 }
 0x329   : > { %5520 = vst [vmem:[#allocation4 + $0x188] sm:$0xff] %v5131_v19  ;;  %v5244_v32 = vpop.f32.mrf.mxu1 }
 0x32a   : > { %5522 = vst [vmem:[#allocation4 + $0x140] sm:$0xff] %v5244_v32  ;;  %v8759_v33 = vpop.f32.mrf.mxu0 }
 0x32b   : > { %v5248_v34 = vpop.f32.mrf.mxu1 }
 0x32c   : > { %5529 = vst [vmem:[#allocation4 + $0x160] sm:$0xff] %v5248_v34  ;;  %v5137_v35 = vpop.f32.mrf.mxu0 }
 0x32d   : > { %5528 = vst [vmem:[#allocation4 + $0xf8] sm:$0xff] %v5137_v35  ;;  %v5250_v36 = vpop.f32.mrf.mxu1 }
 0x32e   : > { %5530 = vst [vmem:[#allocation4 + $0x30] sm:$0xff] %v5250_v36  ;;  %v8761_v41 = vpop.f32.mrf.mxu0 }
 0x32f   : > { %v5254_v18 = vpop.f32.mrf.mxu1 }
 0x330   : > { %5537 = vst [vmem:[#allocation4 + $0x100] sm:$0xff] %v5254_v18  ;;  %v5143_v42 = vpop.f32.mrf.mxu0 }
 0x331   : > { %5536 = vst [vmem:[#allocation4 + $0x1d0] sm:$0xff] %v5143_v42  ;;  %v5256_v43 = vpop.f32.mrf.mxu1 }
 0x332   : > { %5538 = vst [vmem:[#allocation4 + $0xc8] sm:$0xff] %v5256_v43  ;;  %v8763_v44 = vpop.f32.mrf.mxu0 }
 0x333   : > { %v5260_v45 = vpop.f32.mrf.mxu1 }
 0x334   : > { %5545 = vst [vmem:[#allocation4 + $0xe8] sm:$0xff] %v5260_v45  ;;  %v5149_v48 = vpop.f32.mrf.mxu0 }
 0x335   : > { %5544 = vst [vmem:[#allocation4 + $0x1f0] sm:$0xff] %v5149_v48  ;;  %v5262_v49 = vpop.f32.mrf.mxu1 }
 0x336   : > { %5546 = vst [vmem:[#allocation4 + $0x78] sm:$0xff] %v5262_v49  ;;  %v8765_v50 = vpop.f32.mrf.mxu0 }
 0x337   : > { %v5266_v51 = vpop.f32.mrf.mxu1 }
 0x338   : > { %5553 = vst [vmem:[#allocation4 + $0xa8] sm:$0xff] %v5266_v51  ;;  %v5155_v52 = vpop.f32.mrf.mxu0 }
 0x339   : > { %5552 = vst [vmem:[#allocation4 + $0x88] sm:$0xff] %v5155_v52  ;;  %v5268_v53 = vpop.f32.mrf.mxu1 }
 0x33a   : > { %5554 = vst [vmem:[#allocation4 + $0x1c8] sm:$0xff] %v5268_v53  ;;  %v8767_v54 = vpop.f32.mrf.mxu0 }
 0x33b   : > { %v5272_v55 = vpop.f32.mrf.mxu1 }
 0x33c   : > { %5561 = vst [vmem:[#allocation4 + $0xc0] sm:$0xff] %v5272_v55  ;;  %v5161_v56 = vpop.f32.mrf.mxu0 }
 0x33d   : > { %5560 = vst [vmem:[#allocation4 + $0x38] sm:$0xff] %v5161_v56  ;;  %v5274_v59 = vpop.f32.mrf.mxu1 }
 0x33e   : > { %5562 = vst [vmem:[#allocation4 + $0x1c0] sm:$0xff] %v5274_v59 }
 0x372   : > { %v5456_v60 = vpop.f32.mrf.mxu1 }
 0x373   : > { %5509 = vst [vmem:[#allocation4 + $0x130] sm:$0xff] %v5456_v60 }
 0x374   : > { %v5458_v61 = vpop.f32.mrf.mxu1 }
 0x375   : > { %5510 = vst [vmem:[#allocation4 + $0x48] sm:$0xff] %v5458_v61 }
 0x376   : > { %v5343_v62 = vpop.f32.mrf.mxu0  ;;  %v5462_v63 = vpop.f32.mrf.mxu1 }
 0x377   : > { %5507 = vst [vmem:[#allocation4 + $0x50] sm:$0xff] %v5343_v62  ;;  %5517 = vst [vmem:[#allocation4 + $0x108] sm:$0xff] %v5462_v63 }
 0x378   : > { %v5345_v0 = vpop.f32.mrf.mxu0  ;;  %v5464_v1 = vpop.f32.mrf.mxu1 }
 0x379   : > { %5508 = vst [vmem:[#allocation4 + $0x168] sm:$0xff] %v5345_v0  ;;  %5518 = vst [vmem:[#allocation4 + $0x60] sm:$0xff] %v5464_v1 }
 0x37a   : > { %v5349_v4 = vpop.f32.mrf.mxu0  ;;  %v5468_v5 = vpop.f32.mrf.mxu1 }
 0x37b   : > { %5515 = vst [vmem:[#allocation4 + $0x120] sm:$0xff] %v5349_v4  ;;  %5525 = vst [vmem:[#allocation4 + $0x1b8] sm:$0xff] %v5468_v5 }
 0x37c   : > { %v5351_v6 = vpop.f32.mrf.mxu0  ;;  %v5470_v7 = vpop.f32.mrf.mxu1 }
 0x37d   : > { %5516 = vst [vmem:[#allocation4 + $0x150] sm:$0xff] %v5351_v6  ;;  %5526 = vst [vmem:[#allocation4 + $0x28] sm:$0xff] %v5470_v7 }
 0x37e   : > { %v5355_v47 = vpop.f32.mrf.mxu0  ;;  %v5474_v46 = vpop.f32.mrf.mxu1 }
 0x37f   : > { %5523 = vst [vmem:[#allocation4 + $0x80] sm:$0xff] %v5355_v47  ;;  %5533 = vst [vmem:[#allocation4 + $0xf0] sm:$0xff] %v5474_v46 }
 0x380   : > { %v5357_v8 = vpop.f32.mrf.mxu0  ;;  %v5476_v11 = vpop.f32.mrf.mxu1 }
 0x381   : > { %5524 = vst [vmem:[#allocation4 + $0x1a8] sm:$0xff] %v5357_v8  ;;  %5534 = vst [vmem:[#allocation4 + $0x8] sm:$0xff] %v5476_v11 }
 0x382   : > { %v5361_v12 = vpop.f32.mrf.mxu0  ;;  %v5480_v13 = vpop.f32.mrf.mxu1 }
 0x383   : > { %5531 = vst [vmem:[#allocation4 + $0x1e0] sm:$0xff] %v5361_v12  ;;  %5541 = vst [vmem:[#allocation4 + $0x20] sm:$0xff] %v5480_v13 }
 0x384   : > { %v5363_v14 = vpop.f32.mrf.mxu0  ;;  %v5482_v15 = vpop.f32.mrf.mxu1 }
 0x385   : > { %5532 = vst [vmem:[#allocation4] sm:$0xff] %v5363_v14  ;;  %5542 = vst [vmem:[#allocation4 + $0x128] sm:$0xff] %v5482_v15 }
 0x386   : > { %v5367_v16 = vpop.f32.mrf.mxu0  ;;  %v5486_v17 = vpop.f32.mrf.mxu1 }
 0x387   : > { %5539 = vst [vmem:[#allocation4 + $0x40] sm:$0xff] %v5367_v16  ;;  %5549 = vst [vmem:[#allocation4 + $0x1d8] sm:$0xff] %v5486_v17 }
 0x388   : > { %v5369_v20 = vpop.f32.mrf.mxu0  ;;  %v5488_v10 = vpop.f32.mrf.mxu1 }
 0x389   : > { %5540 = vst [vmem:[#allocation4 + $0x1f8] sm:$0xff] %v5369_v20  ;;  %5550 = vst [vmem:[#allocation4 + $0xd0] sm:$0xff] %v5488_v10 }
 0x38a   : > { %v5373_v22 = vpop.f32.mrf.mxu0  ;;  %v5492_v23 = vpop.f32.mrf.mxu1 }
 0x38b   : > { %5547 = vst [vmem:[#allocation4 + $0x70] sm:$0xff] %v5373_v22  ;;  %5557 = vst [vmem:[#allocation4 + $0x68] sm:$0xff] %v5492_v23 }
 0x38c   : > { %v5375_v24 = vpop.f32.mrf.mxu0  ;;  %v5494_v25 = vpop.f32.mrf.mxu1 }
 0x38d   : > { %5548 = vst [vmem:[#allocation4 + $0x90] sm:$0xff] %v5375_v24  ;;  %5558 = vst [vmem:[#allocation4 + $0x190] sm:$0xff] %v5494_v25 }
 0x38e   : > { %v5379_v9 = vpop.f32.mrf.mxu0  ;;  %v5498_v58 = vpop.f32.mrf.mxu1 }
 0x38f   : > { %5555 = vst [vmem:[#allocation4 + $0x170] sm:$0xff] %v5379_v9  ;;  %5565 = vst [vmem:[#allocation4 + $0x58] sm:$0xff] %v5498_v58 }
 0x390   : > { %v5381_v57 = vpop.f32.mrf.mxu0  ;;  %v5500_v39 = vpop.f32.mrf.mxu1 }
 0x391   : > { %5556 = vst [vmem:[#allocation4 + $0x178] sm:$0xff] %v5381_v57  ;;  %5566 = vst [vmem:[#allocation4 + $0xa0] sm:$0xff] %v5500_v39  ;;  %5578 = sbr.rel (%p6213_p9) target bundleno = 933 (0x3a5), region = 74 }
 0x392   : > { %v5385_v27 = vpop.f32.mrf.mxu0 }
 0x393   : > { %5563 = vst [vmem:[#allocation4 + $0x158] sm:$0xff] %v5385_v27 }
 0x394   : > { %v5387_v28 = vpop.f32.mrf.mxu0 }
 0x395   : > { %5564 = vst [vmem:[#allocation4 + $0x10] sm:$0xff] %v5387_v28 }
 0x396   : > { %v5579_v37 = vadd.f32 %v8755_v3, %v8753_v21 }
 0x398   : > { %v5580_v40 = vadd.f32 %v5579_v37, %v8757_v38 }
 0x39a   : > { %v5581_v2 = vadd.f32 %v5580_v40, %v8759_v33 }
 0x39c   : > { %v5582_v26 = vadd.f32 %v5581_v2, %v8761_v41 }
 0x39e   : > { %v5583_v29 = vadd.f32 %v5582_v26, %v8763_v44 }
 0x3a0   : > { %v5584_v30 = vadd.f32 %v5583_v29, %v8765_v50 }
 0x3a2   : > { %v5585_v31 = vadd.f32 %v5584_v30, %v8767_v54 }
 0x3a4   : > { %5586 = vst [vmem:[#allocation2] sm:$0xff] %v5585_v31 }
 0x3a5 PF: > { %p6214_p10 = scmp.eq.s32.totalorder %s6336_s14, 0 }
 0x3a7   : > { %5590 = sbr.rel (%p6214_p10) target bundleno = 958 (0x3be), region = 78 }
 0x3ac   : > { %v5592_v19 = vlaneseq  ;;  %v5591_v34 = vld [vmem:[#allocation2] sm:$0xff] }
 0x3ae   : > { %v5593_v32 = vshrl.u32 %v5592_v19, 7 }
 0x3b0   : > { %v5594_v35 = vsub.s32 0, %v5593_v32  ;;  %v5599_v36 = vsub.s32 1, %v5593_v32  ;;  %v5604_v18 = vsub.s32 2, %v5593_v32  ;;  %v5609_v42 = vsub.s32 3, %v5593_v32 }
 0x3b1   : > { %v5614_v43 = vsub.s32 4, %v5593_v32  ;;  %v5619_v45 = vsub.s32 5, %v5593_v32  ;;  %v5624_v48 = vsub.s32 6, %v5593_v32  ;;  %v5629_v49 = vsub.s32 7, %v5593_v32 }
 0x3b2   : > { %v5595_v51 = vrot.slane %v5591_v34, %v5594_v35  ;;  %v5600_v52 = vrot.slane %v5591_v34, %v5599_v36  ;;  %v5605_v53 = vrot.slane %v5591_v34, %v5604_v18  ;;  %v5610_v55 = vrot.slane %v5591_v34, %v5609_v42 }
 0x3b3   : > { %v5615_v56 = vrot.slane %v5591_v34, %v5614_v43  ;;  %v5620_v59 = vrot.slane %v5591_v34, %v5619_v45  ;;  %v5625_v60 = vrot.slane %v5591_v34, %v5624_v48  ;;  %v5630_v61 = vrot.slane %v5591_v34, %v5629_v49 }
 0x3b4   : > { %v5596_v62 = vmul.f32 %v5595_v51, %v8753_v21  ;;  %v5601_v63 = vmul.f32 %v5600_v52, %v8755_v3  ;;  %v5606_v0 = vmul.f32 %v5605_v53, %v8757_v38  ;;  %v5611_v1 = vmul.f32 %v5610_v55, %v8759_v33 }
 0x3b5   : > { %v5616_v4 = vmul.f32 %v5615_v56, %v8761_v41  ;;  %v5621_v5 = vmul.f32 %v5620_v59, %v8763_v44  ;;  %v5626_v6 = vmul.f32 %v5625_v60, %v8765_v50  ;;  %v5631_v7 = vmul.f32 %v5630_v61, %v8767_v54 }
 0x3b6   : > { %v5632_v47 = vadd.f32 %v5601_v63, %v5596_v62  ;;  %v5633_v46 = vadd.f32 %v5611_v1, %v5606_v0 }
 0x3b7   : > { %v5634_v8 = vadd.f32 %v5621_v5, %v5616_v4  ;;  %v5635_v11 = vadd.f32 %v5631_v7, %v5626_v6 }
 0x3b8   : > { %v5636_v12 = vadd.f32 %v5633_v46, %v5632_v47 }
 0x3b9   : > { %v5637_v21 = vadd.f32 %v5635_v11, %v5634_v8 }
 0x3bb   : > { %v5638_v13 = vadd.f32 %v5637_v21, %v5636_v12 }
 0x3bd   : > { %5639 = vst [vmem:[#allocation2] sm:$0xff] %v5638_v13 }
 0x3be PF: > { %v5649_v3 = vlaneseq  ;;  %v5641_v14 = vld [vmem:[#allocation4 + $0x1b0] sm:$0xff]  ;;  %v5643_v15 = vld [vmem:[#allocation4 + $0x188] sm:$0xff]  ;;  %v5644_v17 = vld [vmem:[#allocation4 + $0xf8] sm:$0xff]  ;;  %p6215_p11 = scmp.ne.s32.totalorder %s6336_s14, 1 }
 0x3bf   : > { %v5642_v41 = vld [vmem:[#allocation4 + $0x110] sm:$0xff]  ;;  %v5647_v9 = vld [vmem:[#allocation4 + $0x88] sm:$0xff]  ;;  %v5648_v58 = vld [vmem:[#allocation4 + $0x38] sm:$0xff] }
 0x3c0   : > { %v5650_v38 = vshrl.u32 %v5649_v3, 7  ;;  %v5645_v20 = vld [vmem:[#allocation4 + $0x1d0] sm:$0xff]  ;;  %v5696_v52 = vld [vmem:[#allocation4 + $0xd8] sm:$0xff]  ;;  %v5699_v56 = vld [vmem:[#allocation4 + $0x160] sm:$0xff] }
 0x3c1   : > { %v5646_v25 = vld [vmem:[#allocation4 + $0x1f0] sm:$0xff]  ;;  %v5697_v53 = vld [vmem:[#allocation4 + $0x118] sm:$0xff]  ;;  %v5700_v59 = vld [vmem:[#allocation4 + $0x100] sm:$0xff] }
 0x3c2   : > { %v8787_v44 = vsub.s32 0, %v5650_v38  ;;  %v8789_v50 = vsub.s32 1, %v5650_v38  ;;  %v8791_v54 = vsub.s32 2, %v5650_v38  ;;  %v8793_v16 = vsub.s32 3, %v5650_v38  ;;  %v5698_v55 = vld [vmem:[#allocation4 + $0x138] sm:$0xff]  ;;  %v5701_v60 = vld [vmem:[#allocation4 + $0xe8] sm:$0xff] }
 0x3c3   : > { %v8795_v10 = vsub.s32 4, %v5650_v38  ;;  %v8797_v22 = vsub.s32 5, %v5650_v38  ;;  %v8799_v23 = vsub.s32 6, %v5650_v38  ;;  %v8801_v24 = vsub.s32 7, %v5650_v38  ;;  %v5702_v61 = vld [vmem:[#allocation4 + $0xa8] sm:$0xff]  ;;  %v5703_v62 = vld [vmem:[#allocation4 + $0xc0] sm:$0xff] }
 0x3c4   : > { %v5640_v33 = vld [vmem:[#allocation2] sm:$0xff] }
 0x3c5   : > { %v5652_v57 = vrot.slane %v5640_v33, %v8787_v44  ;;  %v5657_v39 = vrot.slane %v5640_v33, %v8789_v50  ;;  %v5662_v27 = vrot.slane %v5640_v33, %v8791_v54  ;;  %v5667_v28 = vrot.slane %v5640_v33, %v8793_v16 }
 0x3c6   : > { %v5672_v37 = vrot.slane %v5640_v33, %v8795_v10  ;;  %v5677_v40 = vrot.slane %v5640_v33, %v8797_v22  ;;  %v5682_v2 = vrot.slane %v5640_v33, %v8799_v23  ;;  %v5687_v26 = vrot.slane %v5640_v33, %v8801_v24 }
 0x3c7   : > { %v5653_v29 = vmul.f32 %v5652_v57, %v5641_v14  ;;  %v5658_v30 = vmul.f32 %v5657_v39, %v5642_v41  ;;  %v5663_v31 = vmul.f32 %v5662_v27, %v5643_v15  ;;  %v5668_v19 = vmul.f32 %v5667_v28, %v5644_v17  ;;  %v5753_v57 = vld [vmem:[#allocation4 + $0x140] sm:$0xff]  ;;  %v5754_v39 = vld [vmem:[#allocation4 + $0x30] sm:$0xff]  ;;  %v5755_v27 = vld [vmem:[#allocation4 + $0xc8] sm:$0xff] }
 0x3c8   : > { %v5673_v32 = vmul.f32 %v5672_v37, %v5645_v20  ;;  %v5678_v34 = vmul.f32 %v5677_v40, %v5646_v25  ;;  %v5683_v35 = vmul.f32 %v5682_v2, %v5647_v9  ;;  %v5688_v36 = vmul.f32 %v5687_v26, %v5648_v58  ;;  %v5751_v9 = vld [vmem:[#allocation4 + $0x18] sm:$0xff]  ;;  %v5757_v37 = vld [vmem:[#allocation4 + $0x1c8] sm:$0xff]  ;;  %v5758_v40 = vld [vmem:[#allocation4 + $0x1c0] sm:$0xff] }
 0x3c9   : > { %v5689_v18 = vadd.f32 %v5658_v30, %v5653_v29  ;;  %v5690_v42 = vadd.f32 %v5668_v19, %v5663_v31  ;;  %v5752_v58 = vld [vmem:[#allocation4 + $0x98] sm:$0xff] }
 0x3ca   : > { %v5691_v43 = vadd.f32 %v5678_v34, %v5673_v32  ;;  %v5692_v45 = vadd.f32 %v5688_v36, %v5683_v35  ;;  %v5756_v28 = vld [vmem:[#allocation4 + $0x78] sm:$0xff] }
 0x3cb   : > { %v5693_v48 = vadd.f32 %v5690_v42, %v5689_v18 }
 0x3cc   : > { %v5694_v49 = vadd.f32 %v5692_v45, %v5691_v43 }
 0x3ce   : > { %v5695_v51 = vadd.f32 %v5694_v49, %v5693_v48 }
 0x3d0   : > { %v5707_v63 = vrot.slane %v5695_v51, %v8787_v44  ;;  %v5712_v0 = vrot.slane %v5695_v51, %v8789_v50  ;;  %v5717_v1 = vrot.slane %v5695_v51, %v8791_v54  ;;  %v5722_v4 = vrot.slane %v5695_v51, %v8793_v16 }
 0x3d1   : > { %v5727_v5 = vrot.slane %v5695_v51, %v8795_v10  ;;  %v5732_v6 = vrot.slane %v5695_v51, %v8797_v22  ;;  %v5737_v7 = vrot.slane %v5695_v51, %v8799_v23  ;;  %v5742_v47 = vrot.slane %v5695_v51, %v8801_v24 }
 0x3d2   : > { %v5708_v46 = vmul.f32 %v5707_v63, %v5696_v52  ;;  %v5713_v8 = vmul.f32 %v5712_v0, %v5697_v53  ;;  %v5718_v11 = vmul.f32 %v5717_v1, %v5698_v55  ;;  %v5723_v12 = vmul.f32 %v5722_v4, %v5699_v56  ;;  %v5808_v63 = vld [vmem:[#allocation4 + $0x80] sm:$0xff]  ;;  %v5811_v4 = vld [vmem:[#allocation4 + $0x70] sm:$0xff] }
 0x3d3   : > { %v5728_v21 = vmul.f32 %v5727_v5, %v5700_v59  ;;  %v5733_v13 = vmul.f32 %v5732_v6, %v5701_v60  ;;  %v5738_v3 = vmul.f32 %v5737_v7, %v5702_v61  ;;  %v5743_v38 = vmul.f32 %v5742_v47, %v5703_v62  ;;  %v5806_v61 = vld [vmem:[#allocation4 + $0x50] sm:$0xff]  ;;  %v5807_v62 = vld [vmem:[#allocation4 + $0x120] sm:$0xff]  ;;  %v5813_v6 = vld [vmem:[#allocation4 + $0x158] sm:$0xff] }
 0x3d4   : > { %v5744_v33 = vadd.f32 %v5713_v8, %v5708_v46  ;;  %v5745_v14 = vadd.f32 %v5723_v12, %v5718_v11  ;;  %v5809_v0 = vld [vmem:[#allocation4 + $0x1e0] sm:$0xff]  ;;  %v5812_v5 = vld [vmem:[#allocation4 + $0x170] sm:$0xff] }
 0x3d5   : > { %v5746_v41 = vadd.f32 %v5733_v13, %v5728_v21  ;;  %v5747_v15 = vadd.f32 %v5743_v38, %v5738_v3  ;;  %v5810_v1 = vld [vmem:[#allocation4 + $0x40] sm:$0xff] }
 0x3d6   : > { %v5748_v17 = vadd.f32 %v5745_v14, %v5744_v33 }
 0x3d7   : > { %v5749_v20 = vadd.f32 %v5747_v15, %v5746_v41 }
 0x3d9   : > { %v5750_v25 = vadd.f32 %v5749_v20, %v5748_v17 }
 0x3db   : > { %v5762_v2 = vrot.slane %v5750_v25, %v8787_v44  ;;  %v5767_v26 = vrot.slane %v5750_v25, %v8789_v50  ;;  %v5772_v29 = vrot.slane %v5750_v25, %v8791_v54  ;;  %v5777_v30 = vrot.slane %v5750_v25, %v8793_v16 }
 0x3dc   : > { %v5782_v31 = vrot.slane %v5750_v25, %v8795_v10  ;;  %v5787_v19 = vrot.slane %v5750_v25, %v8797_v22  ;;  %v5792_v32 = vrot.slane %v5750_v25, %v8799_v23  ;;  %v5797_v34 = vrot.slane %v5750_v25, %v8801_v24 }
 0x3dd   : > { %v5763_v35 = vmul.f32 %v5762_v2, %v5751_v9  ;;  %v5768_v36 = vmul.f32 %v5767_v26, %v5752_v58  ;;  %v5773_v18 = vmul.f32 %v5772_v29, %v5753_v57  ;;  %v5778_v42 = vmul.f32 %v5777_v30, %v5754_v39  ;;  %v5863_v2 = vld [vmem:[#allocation4 + $0x1a8] sm:$0xff]  ;;  %v5864_v26 = vld [vmem:[#allocation4] sm:$0xff]  ;;  %v5865_v29 = vld [vmem:[#allocation4 + $0x1f8] sm:$0xff] }
 0x3de   : > { %v5783_v43 = vmul.f32 %v5782_v31, %v5755_v27  ;;  %v5788_v45 = vmul.f32 %v5787_v19, %v5756_v28  ;;  %v5793_v48 = vmul.f32 %v5792_v32, %v5757_v37  ;;  %v5798_v49 = vmul.f32 %v5797_v34, %v5758_v40  ;;  %v5861_v37 = vld [vmem:[#allocation4 + $0x168] sm:$0xff]  ;;  %v5862_v40 = vld [vmem:[#allocation4 + $0x150] sm:$0xff]  ;;  %v5867_v31 = vld [vmem:[#allocation4 + $0x178] sm:$0xff] }
 0x3df   : > { %v5799_v51 = vadd.f32 %v5768_v36, %v5763_v35  ;;  %v5800_v52 = vadd.f32 %v5778_v42, %v5773_v18  ;;  %v5866_v30 = vld [vmem:[#allocation4 + $0x90] sm:$0xff] }
 0x3e0   : > { %v5801_v53 = vadd.f32 %v5788_v45, %v5783_v43  ;;  %v5802_v55 = vadd.f32 %v5798_v49, %v5793_v48  ;;  %v5868_v19 = vld [vmem:[#allocation4 + $0x10] sm:$0xff] }
 0x3e1   : > { %v5803_v56 = vadd.f32 %v5800_v52, %v5799_v51 }
 0x3e2   : > { %v5804_v59 = vadd.f32 %v5802_v55, %v5801_v53 }
 0x3e4   : > { %v5805_v60 = vadd.f32 %v5804_v59, %v5803_v56 }
 0x3e6   : > { %v5817_v7 = vrot.slane %v5805_v60, %v8787_v44  ;;  %v5822_v47 = vrot.slane %v5805_v60, %v8789_v50  ;;  %v5827_v46 = vrot.slane %v5805_v60, %v8791_v54  ;;  %v5832_v8 = vrot.slane %v5805_v60, %v8793_v16 }
 0x3e7   : > { %v5837_v11 = vrot.slane %v5805_v60, %v8795_v10  ;;  %v5842_v12 = vrot.slane %v5805_v60, %v8797_v22  ;;  %v5847_v21 = vrot.slane %v5805_v60, %v8799_v23  ;;  %v5852_v13 = vrot.slane %v5805_v60, %v8801_v24 }
 0x3e8   : > { %v5818_v3 = vmul.f32 %v5817_v7, %v5806_v61  ;;  %v5823_v38 = vmul.f32 %v5822_v47, %v5807_v62  ;;  %v5828_v33 = vmul.f32 %v5827_v46, %v5808_v63  ;;  %v5833_v14 = vmul.f32 %v5832_v8, %v5809_v0  ;;  %v5918_v7 = vld [vmem:[#allocation4 + $0x1b8] sm:$0xff]  ;;  %v5919_v47 = vld [vmem:[#allocation4 + $0xf0] sm:$0xff]  ;;  %v5920_v46 = vld [vmem:[#allocation4 + $0x20] sm:$0xff] }
 0x3e9   : > { %v5838_v41 = vmul.f32 %v5837_v11, %v5810_v1  ;;  %v5843_v15 = vmul.f32 %v5842_v12, %v5811_v4  ;;  %v5848_v17 = vmul.f32 %v5847_v21, %v5812_v5  ;;  %v5853_v20 = vmul.f32 %v5852_v13, %v5813_v6  ;;  %v5916_v5 = vld [vmem:[#allocation4 + $0x130] sm:$0xff]  ;;  %v5917_v6 = vld [vmem:[#allocation4 + $0x108] sm:$0xff]  ;;  %v5921_v8 = vld [vmem:[#allocation4 + $0x1d8] sm:$0xff] }
 0x3ea   : > { %v5854_v25 = vadd.f32 %v5823_v38, %v5818_v3  ;;  %v5855_v9 = vadd.f32 %v5833_v14, %v5828_v33  ;;  %v5922_v11 = vld [vmem:[#allocation4 + $0x68] sm:$0xff]  ;;  %v5923_v12 = vld [vmem:[#allocation4 + $0x58] sm:$0xff] }
 0x3eb   : > { %v5856_v58 = vadd.f32 %v5843_v15, %v5838_v41  ;;  %v5857_v57 = vadd.f32 %v5853_v20, %v5848_v17 }
 0x3ec   : > { %v5858_v39 = vadd.f32 %v5855_v9, %v5854_v25 }
 0x3ed   : > { %v5859_v27 = vadd.f32 %v5857_v57, %v5856_v58 }
 0x3ef   : > { %v5860_v28 = vadd.f32 %v5859_v27, %v5858_v39 }
 0x3f1   : > { %v5872_v32 = vrot.slane %v5860_v28, %v8787_v44  ;;  %v5877_v34 = vrot.slane %v5860_v28, %v8789_v50  ;;  %v5882_v35 = vrot.slane %v5860_v28, %v8791_v54  ;;  %v5887_v36 = vrot.slane %v5860_v28, %v8793_v16 }
 0x3f2   : > { %v5892_v18 = vrot.slane %v5860_v28, %v8795_v10  ;;  %v5897_v42 = vrot.slane %v5860_v28, %v8797_v22  ;;  %v5902_v43 = vrot.slane %v5860_v28, %v8799_v23  ;;  %v5907_v45 = vrot.slane %v5860_v28, %v8801_v24 }
 0x3f3   : > { %v5873_v48 = vmul.f32 %v5872_v32, %v5861_v37  ;;  %v5878_v49 = vmul.f32 %v5877_v34, %v5862_v40  ;;  %v5883_v51 = vmul.f32 %v5882_v35, %v5863_v2  ;;  %v5888_v52 = vmul.f32 %v5887_v36, %v5864_v26  ;;  %v5973_v32 = vld [vmem:[#allocation4 + $0x28] sm:$0xff]  ;;  %v5976_v36 = vld [vmem:[#allocation4 + $0xd0] sm:$0xff] }
 0x3f4   : > { %v5893_v53 = vmul.f32 %v5892_v18, %v5865_v29  ;;  %v5898_v55 = vmul.f32 %v5897_v42, %v5866_v30  ;;  %v5903_v56 = vmul.f32 %v5902_v43, %v5867_v31  ;;  %v5908_v59 = vmul.f32 %v5907_v45, %v5868_v19  ;;  %v5971_v31 = vld [vmem:[#allocation4 + $0x48] sm:$0xff]  ;;  %v5972_v19 = vld [vmem:[#allocation4 + $0x60] sm:$0xff]  ;;  %v5977_v18 = vld [vmem:[#allocation4 + $0x190] sm:$0xff] }
 0x3f5   : > { %v5909_v60 = vadd.f32 %v5878_v49, %v5873_v48  ;;  %v5910_v61 = vadd.f32 %v5888_v52, %v5883_v51  ;;  %v5974_v34 = vld [vmem:[#allocation4 + $0x8] sm:$0xff]  ;;  %v5978_v42 = vld [vmem:[#allocation4 + $0xa0] sm:$0xff] }
 0x3f6   : > { %v5911_v62 = vadd.f32 %v5898_v55, %v5893_v53  ;;  %v5912_v63 = vadd.f32 %v5908_v59, %v5903_v56  ;;  %v5975_v35 = vld [vmem:[#allocation4 + $0x128] sm:$0xff] }
 0x3f7   : > { %v5913_v0 = vadd.f32 %v5910_v61, %v5909_v60 }
 0x3f8   : > { %v5914_v1 = vadd.f32 %v5912_v63, %v5911_v62 }
 0x3fa   : > { %v5915_v4 = vadd.f32 %v5914_v1, %v5913_v0 }
 0x3fc   : > { %v5927_v21 = vrot.slane %v5915_v4, %v8787_v44  ;;  %v5932_v13 = vrot.slane %v5915_v4, %v8789_v50  ;;  %v5937_v3 = vrot.slane %v5915_v4, %v8791_v54  ;;  %v5942_v38 = vrot.slane %v5915_v4, %v8793_v16 }
 0x3fd   : > { %v5947_v33 = vrot.slane %v5915_v4, %v8795_v10  ;;  %v5952_v14 = vrot.slane %v5915_v4, %v8797_v22  ;;  %v5957_v41 = vrot.slane %v5915_v4, %v8799_v23  ;;  %v5962_v15 = vrot.slane %v5915_v4, %v8801_v24 }
 0x3fe   : > { %v5928_v17 = vmul.f32 %v5927_v21, %v5916_v5  ;;  %v5933_v20 = vmul.f32 %v5932_v13, %v5917_v6  ;;  %v5938_v25 = vmul.f32 %v5937_v3, %v5918_v7  ;;  %v5943_v9 = vmul.f32 %v5942_v38, %v5919_v47 }
 0x3ff   : > { %v5948_v58 = vmul.f32 %v5947_v33, %v5920_v46  ;;  %v5953_v57 = vmul.f32 %v5952_v14, %v5921_v8  ;;  %v5958_v39 = vmul.f32 %v5957_v41, %v5922_v11  ;;  %v5963_v27 = vmul.f32 %v5962_v15, %v5923_v12 }
 0x400   : > { %v5964_v28 = vadd.f32 %v5933_v20, %v5928_v17  ;;  %v5965_v37 = vadd.f32 %v5943_v9, %v5938_v25 }
 0x401   : > { %v5966_v40 = vadd.f32 %v5953_v57, %v5948_v58  ;;  %v5967_v2 = vadd.f32 %v5963_v27, %v5958_v39 }
 0x402   : > { %v5968_v26 = vadd.f32 %v5965_v37, %v5964_v28 }
 0x403   : > { %v5969_v29 = vadd.f32 %v5967_v2, %v5966_v40 }
 0x405   : > { %v5970_v30 = vadd.f32 %v5969_v29, %v5968_v26 }
 0x407   : > { %v5982_v43 = vrot.slane %v5970_v30, %v8787_v44  ;;  %v5987_v45 = vrot.slane %v5970_v30, %v8789_v50  ;;  %v5992_v48 = vrot.slane %v5970_v30, %v8791_v54  ;;  %v5997_v49 = vrot.slane %v5970_v30, %v8793_v16 }
 0x408   : > { %v6002_v51 = vrot.slane %v5970_v30, %v8795_v10  ;;  %v6007_v52 = vrot.slane %v5970_v30, %v8797_v22  ;;  %v6012_v53 = vrot.slane %v5970_v30, %v8799_v23  ;;  %v6017_v55 = vrot.slane %v5970_v30, %v8801_v24 }
 0x409   : > { %v5983_v56 = vmul.f32 %v5982_v43, %v5971_v31  ;;  %v5988_v59 = vmul.f32 %v5987_v45, %v5972_v19  ;;  %v5993_v60 = vmul.f32 %v5992_v48, %v5973_v32  ;;  %v5998_v61 = vmul.f32 %v5997_v49, %v5974_v34 }
 0x40a   : > { %v6003_v62 = vmul.f32 %v6002_v51, %v5975_v35  ;;  %v6008_v44 = vmul.f32 %v6007_v52, %v5976_v36  ;;  %v6013_v63 = vmul.f32 %v6012_v53, %v5977_v18  ;;  %v6018_v50 = vmul.f32 %v6017_v55, %v5978_v42 }
 0x40b   : > { %v6019_v0 = vadd.f32 %v5988_v59, %v5983_v56  ;;  %v6020_v54 = vadd.f32 %v5998_v61, %v5993_v60 }
 0x40c   : > { %v6021_v1 = vadd.f32 %v6008_v44, %v6003_v62  ;;  %v6022_v16 = vadd.f32 %v6018_v50, %v6013_v63 }
 0x40d   : > { %v6023_v4 = vadd.f32 %v6020_v54, %v6019_v0 }
 0x40e   : > { %v6024_v10 = vadd.f32 %v6022_v16, %v6021_v1  ;;  %6030 = sbr.rel (%p6215_p11) target bundleno = 1241 (0x4d9), region = 82 }
 0x410   : > { %v6025_v5 = vadd.f32 %v6024_v10, %v6023_v4 }
 0x412   : > { %6026 = vst [vmem:[#allocation2] sm:$0xff] %v6025_v5 }
 0x413   : > { %v6031_v22 = vld [vmem:[%s8897_s2] sm:$0xf]  ;;  %vm6032_vm8 = vcmask 64512   ;;  %v6347_v23 = vmov 0.0   ;;  %vm6348_vm9 = vmmov 0  }
 0x414   : > { %6223 = vmatprep.subr.mxu0 %v6347_v23  ;;  %6225 = vmatprep.mubr.msk.f32.mxu0 %vm6348_vm9, %v6347_v23 }
 0x415   : > { %6224 = vmatpush3.msra.mxu0 %v6025_v5 }
 0x416   : > { %6226 = vmatmul.mubr.msk.f32.vlgmr.msra.gmra.mxu0 %vm6032_vm8, %v6031_v22 }
 0x4d6   : > { %v6102_v24 = vpop.f32.mrf.mxu0 }
 0x4d7   : > { %6106 = vst [vmem:[#allocation6] sm:$0xf] %v6102_v24 }
 0x4d8   : > { %v6227_v6 = vpop.f32.mrf.mxu0 }
 0x4d9 PF: > { %p8865_p12 = scmp.eq.s32.totalorder %s6174_s17, 1  ;;  %s6349_s30 = smov [#allocation6]  }
 0x4da   : > { %s6116_s4 = sshll.u32 %s6349_s30, 4  ;;  %s6117_s4 = int_to_ptr.vmem [resolvable:$true] %s6116_s4 }
 0x4db   : > { %s6278_s5 = scalar_lea.vmem %s6117_s4, 64  ;;  %p6285_p2 = scmp.lt.s32.totalorder %s6117_s4, %s6117_s4 }
 0x4dc   : > { %p6279_p13 = scmp.ne.s32.totalorder %s6117_s4, %s6278_s5  ;;  %p6286_p3 = scmp.lt.s32.totalorder %s6278_s5, %s6278_s5 }
 0x4de   : > { %p6280_p0 = pnand %p6279_p13, %p8865_p12  ;;  %p6287_p4 = por %p6286_p3, %p6285_p2 }
 0x4e0   : > { %p6281_p1 = pneg %p6280_p0 }
 0x4e2   : > { %p6288_p5 = pnand %p6287_p4, %p6281_p1 }
 0x4e4   : > { %6291 = shalt.err (!%p6288_p5)
}
 0x4e5   : > { %6229 = dma.vmem_to_hbm [thread:$0]  (%p8865_p12), %s6117_s4, 64, %s8898_s3, [#allocation7]  }
 0x4e6   : > { %6323 = dma.done.wait (%p8865_p12), [#allocation7], 64  }
 0x4e7   : > { %6325 = vsyncadd (%p8865_p12), [#allocation7], 4294967232 }
 0x4e8 PF: > { %s14_s16 = sadd.s32 1, %s6344_s16   ;;  %s8900_s12 = smov %s6332_s13 }
 0x4e9   : > { %p11_p6 = scmp.ge.s32.totalorder %s14_s16, 4   ;;  %s8901_s13 = smov %s6406_s21 }
 0x4ea   : > { %s8902_s14 = smov %s6340_s15  ;;  %s8903_s15 = smov %s8905_s18 }
 0x4eb   :  { %13 = sbr.rel (!%p11_p6) target bundleno = 3 (0x3), region = 115 }
 0x4f0   :  { %6129 = vsyncpa [#allocation7], 1 }
 0x4f1   :  { %6131 = vsyncpa [#allocation7 + $0x1], 1 }

</bundles_post_ra>
